<compile_context>
chip_gen: v7x
topology: tpu7x:2x2x1
jax: 0.10.0
libtpu: 0.0.40
codegen_flags: <defaults>
</compile_context>

<pallas_src>
import jax
import jax.numpy as jnp
from jax.experimental import pallas as pl
from jax.experimental.pallas import tpu as pltpu

_EPS = 1e-5
_LANE = 128


def _round_up(x, m):
    return ((x + m - 1) // m) * m


def _pad_axis(a, axis, target):
    pad = target - a.shape[axis]
    if pad == 0:
        return a
    widths = [(0, 0)] * a.ndim
    widths[axis] = (0, pad)
    return jnp.pad(a, widths)


def _pick_pixel_tile(m, cap=1024):
    """Largest multiple-of-8 divisor of m that is <= cap, preferring >= 2 tiles."""
    best = None
    for d in range(min(cap, m), 7, -1):
        if m % d == 0 and d % 8 == 0:
            if m // d >= 2:
                return d
            if best is None:
                best = d
    return best if best is not None else m


def _pick_row_tile(h, w):
    """Rows per conv3x3 tile: divisor of h, >=2 tiles per image when possible."""
    if w % 8 != 0:
        return h                      # whole-image tile: block shapes hit full dims
    cands = [d for d in range(1, h + 1) if h % d == 0]
    good = [d for d in cands if h // d >= 2 and d * w <= 2048]
    if good:
        return max(good)
    ok = [d for d in cands if d * w <= 4096]
    return max(ok) if ok else h


# --------------------------- Pallas kernels -------------------------------- #

def _make_conv1_kernel(num_slices):
    """BN1(affine, per dense slice) + ReLU + 1x1 conv as accumulating slice matmuls,
    plus per-tile per-channel [sum, sumsq] of the bf16-rounded output (BN2 stats)."""

    def kernel(*refs):
        acc = None
        for j in range(num_slices):
            a_ref, sc_ref, sh_ref, w_ref = refs[4 * j:4 * j + 4]
            a = a_ref[...].astype(jnp.float32)
            a = jnp.maximum(a * sc_ref[...] + sh_ref[...], 0.0).astype(jnp.bfloat16)
            d = jnp.dot(a, w_ref[...], preferred_element_type=jnp.float32)
            acc = d if acc is None else acc + d
        y_ref = refs[4 * num_slices]
        stats_ref = refs[4 * num_slices + 1]
        yb = acc.astype(jnp.bfloat16)
        y_ref[...] = yb
        yf = yb.astype(jnp.float32)   # statistics of what conv2 will actually read
        stats_ref[0] = jnp.concatenate(
            [jnp.sum(yf, axis=0, keepdims=True),
             jnp.sum(yf * yf, axis=0, keepdims=True)], axis=0)

    return kernel


def _make_conv2_kernel(th, w, cin, cout, nh, has_halo):
    """BN2(affine) + ReLU + 3x3 'SAME' conv on a row tile, as 9 accumulating dots on a
    flat haloed activation, plus per-tile per-channel [sum, sumsq] of the output
    (running BN1 statistics for later layers)."""
    tw = th * w
    base = w + 8          # main tile starts sublane-aligned, with room for a -w-1 shift

    def kernel(*refs):
        if has_halo:
            (y_ref, top_ref, bot_ref, sc_ref, sh_ref, w_ref,
             out_ref, stats_ref, abuf) = refs
        else:
            (y_ref, sc_ref, sh_ref, w_ref, out_ref, stats_ref, abuf) = refs
            top_ref = bot_ref = None
        j = pl.program_id(1)
        sc = sc_ref[...]
        sh = sh_ref[...]

        def act(v):
            return jnp.maximum(v.astype(jnp.float32) * sc + sh, 0.0).astype(jnp.bfloat16)

        # Filler rows (read only under masks, must be finite); re-zeroed every step so
        # megacore sharding / scratch reuse is safe.
        zfill = jnp.zeros((8, cin), jnp.bfloat16)
        abuf[0:8, :] = zfill
        abuf[base + tw + w:base + tw + w + 8, :] = zfill

        # Main tile rows.
        abuf[base:base + tw, :] = act(y_ref[0])

        # Single-row halos (real neighbor rows, zeroed at image borders).
        if has_halo:
            top = act(top_ref[0])
            abuf[base - w:base, :] = jnp.where(j > 0, top, jnp.zeros_like(top))
            bot = act(bot_ref[0])
            abuf[base + tw:base + tw + w, :] = jnp.where(
                j < nh - 1, bot, jnp.zeros_like(bot))
        else:
            zrow = jnp.zeros((w, cin), jnp.bfloat16)
            abuf[base - w:base, :] = zrow
            abuf[base + tw:base + tw + w, :] = zrow

        # Column-boundary masks (kill row-wrap artifacts of the flat shifts).
        col = jax.lax.broadcasted_iota(jnp.int32, (tw, 1), 0) % w
        not_first = col >= 1          # taps with dx = -1
        not_last = col <= w - 2       # taps with dx = +1

        # 9 accumulating dots instead of an im2col slab (no (tw, 9*cin) scratch).
        acc = jnp.zeros((tw, cout), jnp.float32)
        for ky in range(3):
            for kx in range(3):
                t = ky * 3 + kx
                s = (ky - 1) * w + (kx - 1)
                win = abuf[base + s:base + s + tw, :]
                if kx == 0:
                    win = jnp.where(not_first, win, jnp.zeros_like(win))
                elif kx == 2:
                    win = jnp.where(not_last, win, jnp.zeros_like(win))
                acc = acc + jnp.dot(win, w_ref[t],
                                    preferred_element_type=jnp.float32)

        ob = acc.astype(jnp.bfloat16)
        out_ref[0] = ob                              # compact bf16 (growth channels)
        of = ob.astype(jnp.float32)                  # stats of the stored values
        stats_ref[0, 0] = jnp.concatenate(
            [jnp.sum(of, axis=0, keepdims=True),
             jnp.sum(of * of, axis=0, keepdims=True)], axis=0)

    return kernel


# ------------------------------ wrappers ------------------------------------ #

def bn_relu_conv1x1(slices, scales, shifts, weights, interp, tm):
    """y = relu(bn1(concat(slices))) @ W1 without materializing the concat.
    Returns (y_bf16 (m, interp), stats (2, interp)) with stats = [sum, sumsq] of y."""
    m = slices[0].shape[0]
    n_tiles = m // tm
    in_specs = []
    args = []
    for a, sc, sh, wt in zip(slices, scales, shifts, weights):
        c = a.shape[1]
        in_specs += [
            pl.BlockSpec((tm, c), lambda i: (i, 0)),
            pl.BlockSpec((1, c), lambda i: (0, 0)),
            pl.BlockSpec((1, c), lambda i: (0, 0)),
            pl.BlockSpec((c, interp), lambda i: (0, 0)),
        ]
        args += [a, sc.reshape(1, c), sh.reshape(1, c), wt]

    y, stats = pl.pallas_call(
        _make_conv1_kernel(len(slices)),
        out_shape=(jax.ShapeDtypeStruct((m, interp), jnp.bfloat16),
                   jax.ShapeDtypeStruct((n_tiles, 2, interp), jnp.float32)),
        grid=(n_tiles,),
        in_specs=in_specs,
        out_specs=(pl.BlockSpec((tm, interp), lambda i: (i, 0)),
                   pl.BlockSpec((1, 2, interp), lambda i: (i, 0, 0))),
        compiler_params=pltpu.CompilerParams(
            dimension_semantics=("parallel",)),
    )(*args)
    return y, jnp.sum(stats, axis=0)


def bn_relu_conv3x3(y, scale2, shift2, w2, n, h, w, growth):
    """3x3 'SAME' conv of relu(bn2(y)); y: (m, interp) bf16.
    Returns (out (n, h*w, growth) bf16, stats (2, growth))."""
    interp = y.shape[-1]
    hw = h * w
    th = _pick_row_tile(h, w)
    nh = h // th
    has_halo = nh > 1
    tw = th * w
    y3 = y.reshape(n, hw, interp)

    in_specs = [pl.BlockSpec((1, tw, interp), lambda i, j: (i, j, 0))]
    args = [y3]
    if has_halo:
        in_specs += [
            pl.BlockSpec((1, w, interp),
                         lambda i, j: (i, jnp.maximum(j * th - 1, 0), 0)),
            pl.BlockSpec((1, w, interp),
                         lambda i, j: (i, jnp.minimum((j + 1) * th, h - 1), 0)),
        ]
        args += [y3, y3]
    in_specs += [
        pl.BlockSpec((1, interp), lambda i, j: (0, 0)),
        pl.BlockSpec((1, interp), lambda i, j: (0, 0)),
        pl.BlockSpec((9, interp, growth), lambda i, j: (0, 0, 0)),
    ]
    args += [scale2.reshape(1, interp), shift2.reshape(1, interp), w2]

    out, stats = pl.pallas_call(
        _make_conv2_kernel(th, w, interp, growth, nh, has_halo),
        out_shape=(jax.ShapeDtypeStruct((n, hw, growth), jnp.bfloat16),
                   jax.ShapeDtypeStruct((n, nh, 2, growth), jnp.float32)),
        grid=(n, nh),
        in_specs=in_specs,
        out_specs=(pl.BlockSpec((1, tw, growth), lambda i, j: (i, j, 0)),
                   pl.BlockSpec((1, 1, 2, growth), lambda i, j: (i, j, 0, 0))),
        scratch_shapes=[pltpu.VMEM((tw + 2 * w + 16, interp), jnp.bfloat16)],
        compiler_params=pltpu.CompilerParams(
            dimension_semantics=("parallel", "parallel")),
    )(*args)
    return out, jnp.sum(stats, axis=(0, 1))


def denseblock_forward(x_nchw, params_list):
    x = jnp.transpose(x_nchw, (0, 2, 3, 1)).astype(jnp.float32)   # NCHW -> NHWC
    n, h, w, c0 = x.shape
    m = n * h * w
    tm = _pick_pixel_tile(m)

    x2d = x.reshape(m, c0)
    # Dense input kept as compact slices + running per-slice statistics so layers never
    # re-read (or re-write) the growing concatenated feature map.
    slices = [x2d]
    slice_sum = [jnp.sum(x2d, axis=0)]
    slice_sqsum = [jnp.sum(x2d * x2d, axis=0)]
    outs = []

    for p in params_list:
        inter = p["w1"].shape[1]
        growth = p["w2"].shape[3]
        interp = _round_up(inter, _LANE)

        # --- BN1 scale/shift per slice from the running statistics -------------
        scales, shifts, weights = [], [], []
        off = 0
        for j, a in enumerate(slices):
            c = a.shape[1]
            mean = slice_sum[j] / m
            var = jnp.maximum(slice_sqsum[j] / m - mean * mean, 0.0)
            sc = p["gamma1"][off:off + c] * jax.lax.rsqrt(var + _EPS)
            sh = p["beta1"][off:off + c] - mean * sc
            scales.append(sc)
            shifts.append(sh)
            weights.append(_pad_axis(p["w1"][off:off + c, :], 1, interp)
                           .astype(jnp.bfloat16))
            off += c

        # --- fused BN1 + ReLU + conv1x1 (+ BN2 statistics) ----------------------
        y, ystats = bn_relu_conv1x1(slices, scales, shifts, weights, interp, tm)

        # --- BN2 scale/shift from the fused statistics (biased variance) -------
        mean2 = ystats[0] / m
        var2 = jnp.maximum(ystats[1] / m - mean2 * mean2, 0.0)
        sc2 = _pad_axis(p["gamma2"], 0, interp) * jax.lax.rsqrt(var2 + _EPS)
        sh2 = _pad_axis(p["beta2"], 0, interp) - mean2 * sc2

        # --- fused BN2 + ReLU + conv3x3 (+ next-layer BN1 statistics) ----------
        w2 = _pad_axis(p["w2"], 2, interp).reshape(9, interp, growth).astype(jnp.bfloat16)
        out, ostats = bn_relu_conv3x3(y, sc2, sh2, w2, n, h, w, growth)

        slices.append(out.reshape(m, growth))
        slice_sum.append(ostats[0])
        slice_sqsum.append(ostats[1])
        outs.append(out.reshape(n, h, w, growth))

    # Single concatenation: the module's return value (the only full-map write).
    full = jnp.concatenate([x] + [o.astype(jnp.float32) for o in outs], axis=-1)
    return jnp.transpose(full, (0, 3, 1, 2))                       # NHWC -> NCHW


def init_denseblock_params(key, nChannels, growthRate, nDenseBlocks):
    params = []
    nCh = nChannels
    inter = 4 * growthRate
    for _ in range(int(nDenseBlocks)):
        key, k1, k2, k3, k4, k5, k6 = jax.random.split(key, 7)
        p = {
            "gamma1": 1.0 + 0.1 * jax.random.normal(k1, (nCh,), jnp.float32),
            "beta1": 0.1 * jax.random.normal(k2, (nCh,), jnp.float32),
            # PyTorch conv1 weight (inter, nCh, 1, 1) -> (nCh, inter)
            "w1": jax.random.normal(k3, (nCh, inter), jnp.float32) / jnp.sqrt(nCh),
            "gamma2": 1.0 + 0.1 * jax.random.normal(k4, (inter,), jnp.float32),
            "beta2": 0.1 * jax.random.normal(k5, (inter,), jnp.float32),
            # PyTorch conv2 weight (growthRate, inter, 3, 3) -> (3, 3, inter, growthRate)
            "w2": jax.random.normal(k6, (3, 3, inter, growthRate), jnp.float32)
                  / jnp.sqrt(9.0 * inter),
        }
        params.append(p)
        nCh += growthRate
    return params


# --------------------------- pure-JAX reference ----------------------------- #

def reference_forward(x_nchw, params_list):
    x = jnp.transpose(x_nchw, (0, 2, 3, 1)).astype(jnp.float32)
    hp = jax.lax.Precision.HIGHEST
    for p in params_list:
        mean1 = jnp.mean(x, axis=(0, 1, 2))
        var1 = jnp.mean(jnp.square(x - mean1), axis=(0, 1, 2))
        a1 = jnp.maximum((x - mean1) * (p["gamma1"] / jnp.sqrt(var1 + _EPS))
                         + p["beta1"], 0.0)
        y = jnp.einsum("nhwc,cd->nhwd", a1, p["w1"], precision=hp)
        mean2 = jnp.mean(y, axis=(0, 1, 2))
        var2 = jnp.mean(jnp.square(y - mean2), axis=(0, 1, 2))
        a2 = jnp.maximum((y - mean2) * (p["gamma2"] / jnp.sqrt(var2 + _EPS))
                         + p["beta2"], 0.0)
        out = jax.lax.conv_general_dilated(
            a2, p["w2"], window_strides=(1, 1), padding="SAME",
            dimension_numbers=("NHWC", "HWIO", "NHWC"), precision=hp)
        x = jnp.concatenate([x, out], axis=-1)
    return jnp.transpose(x, (0, 3, 1, 2))


if __name__ == "__main__":
    nChannels, growthRate, nDenseBlocks = 4, 4, 3
    N, H, W = 2, 16, 16

    key = jax.random.PRNGKey(0)
    key, xkey = jax.random.split(key)
    x = jax.random.normal(xkey, (N, nChannels, H, W), jnp.float32)   # NCHW like PyTorch
    params = init_denseblock_params(key, nChannels, growthRate, nDenseBlocks)

    fwd = jax.jit(denseblock_forward)
    out = jax.block_until_ready(fwd(x, params))

    expected_channels = nChannels + growthRate * nDenseBlocks
    assert out.shape == (N, expected_channels, H, W), out.shape
    assert out.dtype == jnp.float32
    assert bool(jnp.all(jnp.isfinite(out)))

    ref = reference_forward(x, params)
    max_err = float(jnp.max(jnp.abs(out - ref)))
    # bf16 MXU operands + bf16 intermediates (y and per-layer outputs) tolerance.
    assert max_err < 2.5e-1, f"max abs err {max_err}"

    print("KERNEL_OK")
</pallas_src>

<mosaic_0001>
module attributes {stable_mosaic.version = 11 : i64} {
  func.func @kernel(%arg0: i32, %arg1: i32, %arg2: memref<1x128x128xbf16, #tpu.memory_space<vmem>>, %arg3: memref<1x16x128xbf16, #tpu.memory_space<vmem>>, %arg4: memref<1x16x128xbf16, #tpu.memory_space<vmem>>, %arg5: memref<1x128xf32, #tpu.memory_space<vmem>>, %arg6: memref<1x128xf32, #tpu.memory_space<vmem>>, %arg7: memref<9x128x4xbf16, #tpu.memory_space<vmem>>, %arg8: memref<1x128x4xbf16, #tpu.memory_space<vmem>>, %arg9: memref<1x1x2x4xf32, #tpu.memory_space<vmem>>, %arg10: memref<176x128xbf16, #tpu.memory_space<vmem>>) attributes {dimension_semantics = [#tpu.dimension_semantics<parallel>, #tpu.dimension_semantics<parallel>], iteration_bounds = array<i64: 2, 2>, scalar_prefetch = 0 : i64, scratch_operands = 1 : i64, tpu.core_type = #tpu.core_type<tc>, window_params = [{transform_indices = @transform_0, window_bounds = array<i64: 1, 128, 128>}, {transform_indices = @transform_1, window_bounds = array<i64: 1, 16, 128>}, {transform_indices = @transform_2, window_bounds = array<i64: 1, 16, 128>}, {pipeline_mode = #tpu.pipeline_mode<synchronous>, transform_indices = @transform_3, window_bounds = array<i64: 1, 128>}, {pipeline_mode = #tpu.pipeline_mode<synchronous>, transform_indices = @transform_4, window_bounds = array<i64: 1, 128>}, {pipeline_mode = #tpu.pipeline_mode<synchronous>, transform_indices = @transform_5, window_bounds = array<i64: 9, 128, 4>}, {transform_indices = @transform_6, window_bounds = array<i64: 1, 128, 4>}, {transform_indices = @transform_7, window_bounds = array<i64: 1, 1, 2, 4>}]} {
    %c0 = arith.constant 0 : index
    %c0_0 = arith.constant 0 : index
    %0 = vector.load %arg5[%c0, %c0_0] : memref<1x128xf32, #tpu.memory_space<vmem>>, vector<1x128xf32>
    %c0_1 = arith.constant 0 : index
    %c0_2 = arith.constant 0 : index
    %1 = vector.load %arg6[%c0_1, %c0_2] : memref<1x128xf32, #tpu.memory_space<vmem>>, vector<1x128xf32>
    %cst = arith.constant 0.000000e+00 : bf16
    %2 = vector.broadcast %cst : bf16 to vector<8x128xbf16>
    %c0_3 = arith.constant 0 : index
    %c0_4 = arith.constant 0 : index
    %3 = vector.load %arg10[%c0_3, %c0_4] : memref<176x128xbf16, #tpu.memory_space<vmem>>, vector<8x128xbf16>
    tpu.vector_store %arg10[%c0_3, %c0_4], %2 {strides = array<i32>} : memref<176x128xbf16, #tpu.memory_space<vmem>>, vector<8x128xbf16>,
    %c168 = arith.constant 168 : index
    %c0_5 = arith.constant 0 : index
    %4 = vector.load %arg10[%c168, %c0_5] : memref<176x128xbf16, #tpu.memory_space<vmem>>, vector<8x128xbf16>
    tpu.vector_store %arg10[%c168, %c0_5], %2 {strides = array<i32>} : memref<176x128xbf16, #tpu.memory_space<vmem>>, vector<8x128xbf16>,
    %c0_6 = arith.constant 0 : index
    %c0_7 = arith.constant 0 : index
    %c0_8 = arith.constant 0 : index
    %5 = vector.load %arg2[%c0_6, %c0_7, %c0_8] : memref<1x128x128xbf16, #tpu.memory_space<vmem>>, vector<1x128x128xbf16>
    %6 = vector.shape_cast %5 : vector<1x128x128xbf16> to vector<128x128xbf16>
    %7 = arith.extf %6 : vector<128x128xbf16> to vector<128x128xf32>
    %8 = vector.broadcast %0 : vector<1x128xf32> to vector<128x128xf32>
    %9 = arith.mulf %7, %8 : vector<128x128xf32>
    %10 = vector.broadcast %1 : vector<1x128xf32> to vector<128x128xf32>
    %11 = arith.addf %9, %10 : vector<128x128xf32>
    %cst_9 = arith.constant 0.000000e+00 : f32
    %12 = vector.broadcast %cst_9 : f32 to vector<128x128xf32>
    %13 = arith.maximumf %11, %12 : vector<128x128xf32>
    %14 = arith.truncf %13 : vector<128x128xf32> to vector<128x128xbf16>
    %c24 = arith.constant 24 : index
    %c0_10 = arith.constant 0 : index
    %15 = vector.load %arg10[%c24, %c0_10] : memref<176x128xbf16, #tpu.memory_space<vmem>>, vector<128x128xbf16>
    tpu.vector_store %arg10[%c24, %c0_10], %14 {strides = array<i32>} : memref<176x128xbf16, #tpu.memory_space<vmem>>, vector<128x128xbf16>,
    %c0_11 = arith.constant 0 : index
    %c0_12 = arith.constant 0 : index
    %c0_13 = arith.constant 0 : index
    %16 = vector.load %arg3[%c0_11, %c0_12, %c0_13] : memref<1x16x128xbf16, #tpu.memory_space<vmem>>, vector<1x16x128xbf16>
    %17 = vector.shape_cast %16 : vector<1x16x128xbf16> to vector<16x128xbf16>
    %18 = arith.extf %17 : vector<16x128xbf16> to vector<16x128xf32>
    %19 = vector.broadcast %0 : vector<1x128xf32> to vector<16x128xf32>
    %20 = arith.mulf %18, %19 : vector<16x128xf32>
    %21 = vector.broadcast %1 : vector<1x128xf32> to vector<16x128xf32>
    %22 = arith.addf %20, %21 : vector<16x128xf32>
    %cst_14 = arith.constant 0.000000e+00 : f32
    %23 = vector.broadcast %cst_14 : f32 to vector<16x128xf32>
    %24 = arith.maximumf %22, %23 : vector<16x128xf32>
    %25 = arith.truncf %24 : vector<16x128xf32> to vector<16x128xbf16>
    %c0_i32 = arith.constant 0 : i32
    %26 = arith.cmpi sgt, %arg1, %c0_i32 : i32
    %cst_15 = arith.constant 0.000000e+00 : bf16
    %27 = vector.broadcast %cst_15 : bf16 to vector<16x128xbf16>
    %28 = arith.select %26, %25, %27 : vector<16x128xbf16>
    %c8 = arith.constant 8 : index
    %c0_16 = arith.constant 0 : index
    %29 = vector.load %arg10[%c8, %c0_16] : memref<176x128xbf16, #tpu.memory_space<vmem>>, vector<16x128xbf16>
    tpu.vector_store %arg10[%c8, %c0_16], %28 {strides = array<i32>} : memref<176x128xbf16, #tpu.memory_space<vmem>>, vector<16x128xbf16>,
    %c0_17 = arith.constant 0 : index
    %c0_18 = arith.constant 0 : index
    %c0_19 = arith.constant 0 : index
    %30 = vector.load %arg4[%c0_17, %c0_18, %c0_19] : memref<1x16x128xbf16, #tpu.memory_space<vmem>>, vector<1x16x128xbf16>
    %31 = vector.shape_cast %30 : vector<1x16x128xbf16> to vector<16x128xbf16>
    %32 = arith.extf %31 : vector<16x128xbf16> to vector<16x128xf32>
    %33 = vector.broadcast %0 : vector<1x128xf32> to vector<16x128xf32>
    %34 = arith.mulf %32, %33 : vector<16x128xf32>
    %35 = vector.broadcast %1 : vector<1x128xf32> to vector<16x128xf32>
    %36 = arith.addf %34, %35 : vector<16x128xf32>
    %cst_20 = arith.constant 0.000000e+00 : f32
    %37 = vector.broadcast %cst_20 : f32 to vector<16x128xf32>
    %38 = arith.maximumf %36, %37 : vector<16x128xf32>
    %39 = arith.truncf %38 : vector<16x128xf32> to vector<16x128xbf16>
    %c1_i32 = arith.constant 1 : i32
    %40 = arith.cmpi slt, %arg1, %c1_i32 : i32
    %cst_21 = arith.constant 0.000000e+00 : bf16
    %41 = vector.broadcast %cst_21 : bf16 to vector<16x128xbf16>
    %42 = arith.select %40, %39, %41 : vector<16x128xbf16>
    %c152 = arith.constant 152 : index
    %c0_22 = arith.constant 0 : index
    %43 = vector.load %arg10[%c152, %c0_22] : memref<176x128xbf16, #tpu.memory_space<vmem>>, vector<16x128xbf16>
    tpu.vector_store %arg10[%c152, %c0_22], %42 {strides = array<i32>} : memref<176x128xbf16, #tpu.memory_space<vmem>>, vector<16x128xbf16>,
    %44 = tpu.iota {dimensions = array<i32: 0>} : vector<128x1xi32>
    %c16_i32 = arith.constant 16 : i32
    %c0_i32_23 = arith.constant 0 : i32
    %45 = arith.cmpi eq, %c16_i32, %c0_i32_23 : i32
    %c1_i32_24 = arith.constant 1 : i32
    %46 = arith.select %45, %c1_i32_24, %c16_i32 : i32
    %47 = vector.broadcast %46 : i32 to vector<128x1xi32>
    %48 = arith.remsi %44, %47 : vector<128x1xi32>
    %c0_i32_25 = arith.constant 0 : i32
    %49 = vector.broadcast %c0_i32_25 : i32 to vector<128x1xi32>
    %50 = arith.cmpi ne, %48, %49 : vector<128x1xi32>
    %c0_i32_26 = arith.constant 0 : i32
    %51 = vector.broadcast %c0_i32_26 : i32 to vector<128x1xi32>
    %52 = arith.cmpi slt, %48, %51 : vector<128x1xi32>
    %c0_i32_27 = arith.constant 0 : i32
    %53 = arith.cmpi slt, %46, %c0_i32_27 : i32
    %54 = vector.broadcast %53 : i1 to vector<128x1xi1>
    %55 = vector.broadcast %54 : vector<128x1xi1> to vector<128x1xi1>
    %56 = arith.xori %52, %55 : vector<128x1xi1>
    %57 = arith.andi %56, %50 : vector<128x1xi1>
    %58 = vector.broadcast %46 : i32 to vector<128x1xi32>
    %59 = arith.addi %48, %58 : vector<128x1xi32>
    %60 = arith.select %57, %59, %48 : vector<128x1xi1>, vector<128x1xi32>
    %c1_i32_28 = arith.constant 1 : i32
    %61 = vector.broadcast %c1_i32_28 : i32 to vector<128x1xi32>
    %62 = arith.cmpi sge, %60, %61 : vector<128x1xi32>
    %c14_i32 = arith.constant 14 : i32
    %63 = vector.broadcast %c14_i32 : i32 to vector<128x1xi32>
    %64 = arith.cmpi sle, %60, %63 : vector<128x1xi32>
    %cst_29 = arith.constant 0.000000e+00 : f32
    %65 = vector.broadcast %cst_29 : f32 to vector<128x4xf32>
    %c7 = arith.constant 7 : index
    %c0_30 = arith.constant 0 : index
    %66 = vector.load %arg10[%c7, %c0_30] : memref<176x128xbf16, #tpu.memory_space<vmem>>, vector<128x128xbf16>
    %cst_31 = arith.constant 0.000000e+00 : bf16
    %67 = vector.broadcast %cst_31 : bf16 to vector<128x128xbf16>
    %68 = vector.shape_cast %62 : vector<128x1xi1> to vector<128x1xi1>
    %69 = vector.broadcast %68 : vector<128x1xi1> to vector<128x128xi1>
    %70 = arith.select %69, %66, %67 : vector<128x128xi1>, vector<128x128xbf16>
    %c0_32 = arith.constant 0 : index
    %c0_33 = arith.constant 0 : index
    %c0_34 = arith.constant 0 : index
    %71 = vector.load %arg7[%c0_32, %c0_33, %c0_34] : memref<9x128x4xbf16, #tpu.memory_space<vmem>>, vector<1x128x4xbf16>
    %72 = vector.shape_cast %71 : vector<1x128x4xbf16> to vector<128x4xbf16>
    %cst_35 = arith.constant dense<0.000000e+00> : vector<128x4xf32>
    %73 = tpu.matmul %70, %72, %cst_35 {dimension_numbers = #tpu.dot_dimension_numbers<[1], [0], [0], [1], [0, 0, 1, 1], [], []>} : vector<128x128xbf16>, vector<128x4xbf16>, vector<128x4xf32> -> vector<128x4xf32>
    %74 = arith.addf %65, %73 : vector<128x4xf32>
    %c8_36 = arith.constant 8 : index
    %c0_37 = arith.constant 0 : index
    %75 = vector.load %arg10[%c8_36, %c0_37] : memref<176x128xbf16, #tpu.memory_space<vmem>>, vector<128x128xbf16>
    %c1 = arith.constant 1 : index
    %c0_38 = arith.constant 0 : index
    %c0_39 = arith.constant 0 : index
    %76 = vector.load %arg7[%c1, %c0_38, %c0_39] : memref<9x128x4xbf16, #tpu.memory_space<vmem>>, vector<1x128x4xbf16>
    %77 = vector.shape_cast %76 : vector<1x128x4xbf16> to vector<128x4xbf16>
    %cst_40 = arith.constant dense<0.000000e+00> : vector<128x4xf32>
    %78 = tpu.matmul %75, %77, %cst_40 {dimension_numbers = #tpu.dot_dimension_numbers<[1], [0], [0], [1], [0, 0, 1, 1], [], []>} : vector<128x128xbf16>, vector<128x4xbf16>, vector<128x4xf32> -> vector<128x4xf32>
    %79 = arith.addf %74, %78 : vector<128x4xf32>
    %c9 = arith.constant 9 : index
    %c0_41 = arith.constant 0 : index
    %80 = vector.load %arg10[%c9, %c0_41] : memref<176x128xbf16, #tpu.memory_space<vmem>>, vector<128x128xbf16>
    %cst_42 = arith.constant 0.000000e+00 : bf16
    %81 = vector.broadcast %cst_42 : bf16 to vector<128x128xbf16>
    %82 = vector.shape_cast %64 : vector<128x1xi1> to vector<128x1xi1>
    %83 = vector.broadcast %82 : vector<128x1xi1> to vector<128x128xi1>
    %84 = arith.select %83, %80, %81 : vector<128x128xi1>, vector<128x128xbf16>
    %c2 = arith.constant 2 : index
    %c0_43 = arith.constant 0 : index
    %c0_44 = arith.constant 0 : index
    %85 = vector.load %arg7[%c2, %c0_43, %c0_44] : memref<9x128x4xbf16, #tpu.memory_space<vmem>>, vector<1x128x4xbf16>
    %86 = vector.shape_cast %85 : vector<1x128x4xbf16> to vector<128x4xbf16>
    %cst_45 = arith.constant dense<0.000000e+00> : vector<128x4xf32>
    %87 = tpu.matmul %84, %86, %cst_45 {dimension_numbers = #tpu.dot_dimension_numbers<[1], [0], [0], [1], [0, 0, 1, 1], [], []>} : vector<128x128xbf16>, vector<128x4xbf16>, vector<128x4xf32> -> vector<128x4xf32>
    %88 = arith.addf %79, %87 : vector<128x4xf32>
    %c23 = arith.constant 23 : index
    %c0_46 = arith.constant 0 : index
    %89 = vector.load %arg10[%c23, %c0_46] : memref<176x128xbf16, #tpu.memory_space<vmem>>, vector<128x128xbf16>
    %cst_47 = arith.constant 0.000000e+00 : bf16
    %90 = vector.broadcast %cst_47 : bf16 to vector<128x128xbf16>
    %91 = vector.shape_cast %62 : vector<128x1xi1> to vector<128x1xi1>
    %92 = vector.broadcast %91 : vector<128x1xi1> to vector<128x128xi1>
    %93 = arith.select %92, %89, %90 : vector<128x128xi1>, vector<128x128xbf16>
    %c3 = arith.constant 3 : index
    %c0_48 = arith.constant 0 : index
    %c0_49 = arith.constant 0 : index
    %94 = vector.load %arg7[%c3, %c0_48, %c0_49] : memref<9x128x4xbf16, #tpu.memory_space<vmem>>, vector<1x128x4xbf16>
    %95 = vector.shape_cast %94 : vector<1x128x4xbf16> to vector<128x4xbf16>
    %cst_50 = arith.constant dense<0.000000e+00> : vector<128x4xf32>
    %96 = tpu.matmul %93, %95, %cst_50 {dimension_numbers = #tpu.dot_dimension_numbers<[1], [0], [0], [1], [0, 0, 1, 1], [], []>} : vector<128x128xbf16>, vector<128x4xbf16>, vector<128x4xf32> -> vector<128x4xf32>
    %97 = arith.addf %88, %96 : vector<128x4xf32>
    %c24_51 = arith.constant 24 : index
    %c0_52 = arith.constant 0 : index
    %98 = vector.load %arg10[%c24_51, %c0_52] : memref<176x128xbf16, #tpu.memory_space<vmem>>, vector<128x128xbf16>
    %c4 = arith.constant 4 : index
    %c0_53 = arith.constant 0 : index
    %c0_54 = arith.constant 0 : index
    %99 = vector.load %arg7[%c4, %c0_53, %c0_54] : memref<9x128x4xbf16, #tpu.memory_space<vmem>>, vector<1x128x4xbf16>
    %100 = vector.shape_cast %99 : vector<1x128x4xbf16> to vector<128x4xbf16>
    %cst_55 = arith.constant dense<0.000000e+00> : vector<128x4xf32>
    %101 = tpu.matmul %98, %100, %cst_55 {dimension_numbers = #tpu.dot_dimension_numbers<[1], [0], [0], [1], [0, 0, 1, 1], [], []>} : vector<128x128xbf16>, vector<128x4xbf16>, vector<128x4xf32> -> vector<128x4xf32>
    %102 = arith.addf %97, %101 : vector<128x4xf32>
    %c25 = arith.constant 25 : index
    %c0_56 = arith.constant 0 : index
    %103 = vector.load %arg10[%c25, %c0_56] : memref<176x128xbf16, #tpu.memory_space<vmem>>, vector<128x128xbf16>
    %cst_57 = arith.constant 0.000000e+00 : bf16
    %104 = vector.broadcast %cst_57 : bf16 to vector<128x128xbf16>
    %105 = vector.shape_cast %64 : vector<128x1xi1> to vector<128x1xi1>
    %106 = vector.broadcast %105 : vector<128x1xi1> to vector<128x128xi1>
    %107 = arith.select %106, %103, %104 : vector<128x128xi1>, vector<128x128xbf16>
    %c5 = arith.constant 5 : index
    %c0_58 = arith.constant 0 : index
    %c0_59 = arith.constant 0 : index
    %108 = vector.load %arg7[%c5, %c0_58, %c0_59] : memref<9x128x4xbf16, #tpu.memory_space<vmem>>, vector<1x128x4xbf16>
    %109 = vector.shape_cast %108 : vector<1x128x4xbf16> to vector<128x4xbf16>
    %cst_60 = arith.constant dense<0.000000e+00> : vector<128x4xf32>
    %110 = tpu.matmul %107, %109, %cst_60 {dimension_numbers = #tpu.dot_dimension_numbers<[1], [0], [0], [1], [0, 0, 1, 1], [], []>} : vector<128x128xbf16>, vector<128x4xbf16>, vector<128x4xf32> -> vector<128x4xf32>
    %111 = arith.addf %102, %110 : vector<128x4xf32>
    %c39 = arith.constant 39 : index
    %c0_61 = arith.constant 0 : index
    %112 = vector.load %arg10[%c39, %c0_61] : memref<176x128xbf16, #tpu.memory_space<vmem>>, vector<128x128xbf16>
    %cst_62 = arith.constant 0.000000e+00 : bf16
    %113 = vector.broadcast %cst_62 : bf16 to vector<128x128xbf16>
    %114 = vector.shape_cast %62 : vector<128x1xi1> to vector<128x1xi1>
    %115 = vector.broadcast %114 : vector<128x1xi1> to vector<128x128xi1>
    %116 = arith.select %115, %112, %113 : vector<128x128xi1>, vector<128x128xbf16>
    %c6 = arith.constant 6 : index
    %c0_63 = arith.constant 0 : index
    %c0_64 = arith.constant 0 : index
    %117 = vector.load %arg7[%c6, %c0_63, %c0_64] : memref<9x128x4xbf16, #tpu.memory_space<vmem>>, vector<1x128x4xbf16>
    %118 = vector.shape_cast %117 : vector<1x128x4xbf16> to vector<128x4xbf16>
    %cst_65 = arith.constant dense<0.000000e+00> : vector<128x4xf32>
    %119 = tpu.matmul %116, %118, %cst_65 {dimension_numbers = #tpu.dot_dimension_numbers<[1], [0], [0], [1], [0, 0, 1, 1], [], []>} : vector<128x128xbf16>, vector<128x4xbf16>, vector<128x4xf32> -> vector<128x4xf32>
    %120 = arith.addf %111, %119 : vector<128x4xf32>
    %c40 = arith.constant 40 : index
    %c0_66 = arith.constant 0 : index
    %121 = vector.load %arg10[%c40, %c0_66] : memref<176x128xbf16, #tpu.memory_space<vmem>>, vector<128x128xbf16>
    %c7_67 = arith.constant 7 : index
    %c0_68 = arith.constant 0 : index
    %c0_69 = arith.constant 0 : index
    %122 = vector.load %arg7[%c7_67, %c0_68, %c0_69] : memref<9x128x4xbf16, #tpu.memory_space<vmem>>, vector<1x128x4xbf16>
    %123 = vector.shape_cast %122 : vector<1x128x4xbf16> to vector<128x4xbf16>
    %cst_70 = arith.constant dense<0.000000e+00> : vector<128x4xf32>
    %124 = tpu.matmul %121, %123, %cst_70 {dimension_numbers = #tpu.dot_dimension_numbers<[1], [0], [0], [1], [0, 0, 1, 1], [], []>} : vector<128x128xbf16>, vector<128x4xbf16>, vector<128x4xf32> -> vector<128x4xf32>
    %125 = arith.addf %120, %124 : vector<128x4xf32>
    %c41 = arith.constant 41 : index
    %c0_71 = arith.constant 0 : index
    %126 = vector.load %arg10[%c41, %c0_71] : memref<176x128xbf16, #tpu.memory_space<vmem>>, vector<128x128xbf16>
    %cst_72 = arith.constant 0.000000e+00 : bf16
    %127 = vector.broadcast %cst_72 : bf16 to vector<128x128xbf16>
    %128 = vector.shape_cast %64 : vector<128x1xi1> to vector<128x1xi1>
    %129 = vector.broadcast %128 : vector<128x1xi1> to vector<128x128xi1>
    %130 = arith.select %129, %126, %127 : vector<128x128xi1>, vector<128x128xbf16>
    %c8_73 = arith.constant 8 : index
    %c0_74 = arith.constant 0 : index
    %c0_75 = arith.constant 0 : index
    %131 = vector.load %arg7[%c8_73, %c0_74, %c0_75] : memref<9x128x4xbf16, #tpu.memory_space<vmem>>, vector<1x128x4xbf16>
    %132 = vector.shape_cast %131 : vector<1x128x4xbf16> to vector<128x4xbf16>
    %cst_76 = arith.constant dense<0.000000e+00> : vector<128x4xf32>
    %133 = tpu.matmul %130, %132, %cst_76 {dimension_numbers = #tpu.dot_dimension_numbers<[1], [0], [0], [1], [0, 0, 1, 1], [], []>} : vector<128x128xbf16>, vector<128x4xbf16>, vector<128x4xf32> -> vector<128x4xf32>
    %134 = arith.addf %125, %133 : vector<128x4xf32>
    %135 = arith.truncf %134 : vector<128x4xf32> to vector<128x4xbf16>
    %c0_77 = arith.constant 0 : index
    %c0_78 = arith.constant 0 : index
    %c0_79 = arith.constant 0 : index
    %136 = vector.load %arg8[%c0_77, %c0_78, %c0_79] : memref<1x128x4xbf16, #tpu.memory_space<vmem>>, vector<1x128x4xbf16>
    %137 = vector.shape_cast %136 : vector<1x128x4xbf16> to vector<128x4xbf16>
    %138 = vector.shape_cast %135 : vector<128x4xbf16> to vector<1x128x4xbf16>
    tpu.vector_store %arg8[%c0_77, %c0_78, %c0_79], %138 {strides = array<i32>} : memref<1x128x4xbf16, #tpu.memory_space<vmem>>, vector<1x128x4xbf16>,
    %139 = arith.extf %135 : vector<128x4xbf16> to vector<128x4xf32>
    %cst_80 = arith.constant dense<0.000000e+00> : vector<4xf32>
    %140 = vector.multi_reduction <add>, %139, %cst_80 [0] : vector<128x4xf32> to vector<4xf32>
    %141 = vector.shape_cast %140 : vector<4xf32> to vector<1x4xf32>
    %142 = arith.mulf %139, %139 : vector<128x4xf32>
    %cst_81 = arith.constant dense<0.000000e+00> : vector<4xf32>
    %143 = vector.multi_reduction <add>, %142, %cst_81 [0] : vector<128x4xf32> to vector<4xf32>
    %144 = vector.shape_cast %143 : vector<4xf32> to vector<1x4xf32>
    %145 = tpu.concatenate %141, %144 in 0 : vector<1x4xf32>, vector<1x4xf32> -> vector<2x4xf32>
    %c0_82 = arith.constant 0 : index
    %c0_83 = arith.constant 0 : index
    %c0_84 = arith.constant 0 : index
    %c0_85 = arith.constant 0 : index
    %146 = vector.load %arg9[%c0_82, %c0_83, %c0_84, %c0_85] : memref<1x1x2x4xf32, #tpu.memory_space<vmem>>, vector<1x1x2x4xf32>
    %147 = vector.shape_cast %146 : vector<1x1x2x4xf32> to vector<2x4xf32>
    %148 = vector.shape_cast %145 : vector<2x4xf32> to vector<1x1x2x4xf32>
    tpu.vector_store %arg9[%c0_82, %c0_83, %c0_84, %c0_85], %148 {strides = array<i32>} : memref<1x1x2x4xf32, #tpu.memory_space<vmem>>, vector<1x1x2x4xf32>,
    return
  }
  func.func @transform_0(%arg0: i32, %arg1: i32) -> (i32, i32, i32) {
    %c0_i32 = arith.constant 0 : i32
    %c0_i32_0 = arith.constant 0 : i32
    return %arg0, %arg1, %c0_i32 : i32, i32, i32
  }
  func.func @transform_1(%arg0: i32, %arg1: i32) -> (i32, i32, i32) {
    %c8_i32 = arith.constant 8 : i32
    %0 = arith.muli %arg1, %c8_i32 : i32
    %c1_i32 = arith.constant 1 : i32
    %1 = arith.subi %0, %c1_i32 : i32
    %c0_i32 = arith.constant 0 : i32
    %2 = arith.maxsi %1, %c0_i32 : i32
    %c0_i32_0 = arith.constant 0 : i32
    %c0_i32_1 = arith.constant 0 : i32
    return %arg0, %2, %c0_i32_0 : i32, i32, i32
  }
  func.func @transform_2(%arg0: i32, %arg1: i32) -> (i32, i32, i32) {
    %c1_i32 = arith.constant 1 : i32
    %0 = arith.addi %arg1, %c1_i32 : i32
    %c8_i32 = arith.constant 8 : i32
    %1 = arith.muli %0, %c8_i32 : i32
    %c15_i32 = arith.constant 15 : i32
    %2 = arith.minsi %1, %c15_i32 : i32
    %c0_i32 = arith.constant 0 : i32
    %c0_i32_0 = arith.constant 0 : i32
    return %arg0, %2, %c0_i32 : i32, i32, i32
  }
  func.func @transform_3(%arg0: i32, %arg1: i32) -> (i32, i32) {
    %c0_i32 = arith.constant 0 : i32
    %c0_i32_0 = arith.constant 0 : i32
    %c0_i32_1 = arith.constant 0 : i32
    return %c0_i32, %c0_i32_0 : i32, i32
  }
  func.func @transform_4(%arg0: i32, %arg1: i32) -> (i32, i32) {
    %c0_i32 = arith.constant 0 : i32
    %c0_i32_0 = arith.constant 0 : i32
    %c0_i32_1 = arith.constant 0 : i32
    return %c0_i32, %c0_i32_0 : i32, i32
  }
  func.func @transform_5(%arg0: i32, %arg1: i32) -> (i32, i32, i32) {
    %c0_i32 = arith.constant 0 : i32
    %c0_i32_0 = arith.constant 0 : i32
    %c0_i32_1 = arith.constant 0 : i32
    %c0_i32_2 = arith.constant 0 : i32
    return %c0_i32, %c0_i32_0, %c0_i32_1 : i32, i32, i32
  }
  func.func @transform_6(%arg0: i32, %arg1: i32) -> (i32, i32, i32) {
    %c0_i32 = arith.constant 0 : i32
    %c0_i32_0 = arith.constant 0 : i32
    return %arg0, %arg1, %c0_i32 : i32, i32, i32
  }
  func.func @transform_7(%arg0: i32, %arg1: i32) -> (i32, i32, i32, i32) {
    %c0_i32 = arith.constant 0 : i32
    %c0_i32_0 = arith.constant 0 : i32
    %c0_i32_1 = arith.constant 0 : i32
    return %arg0, %arg1, %c0_i32, %c0_i32_0 : i32, i32, i32, i32
  }
}

module attributes {stable_mosaic.version = 11 : i64} {
  func.func @kernel(%arg0: i32, %arg1: memref<256x4xf32, #tpu.memory_space<vmem>>, %arg2: memref<1x4xf32, #tpu.memory_space<vmem>>, %arg3: memref<1x4xf32, #tpu.memory_space<vmem>>, %arg4: memref<4x128xbf16, #tpu.memory_space<vmem>>, %arg5: memref<256x128xbf16, #tpu.memory_space<vmem>>, %arg6: memref<1x2x128xf32, #tpu.memory_space<vmem>>) attributes {dimension_semantics = [#tpu.dimension_semantics<parallel>], iteration_bounds = array<i64: 2>, scalar_prefetch = 0 : i64, scratch_operands = 0 : i64, tpu.core_type = #tpu.core_type<tc>, window_params = [{transform_indices = @transform_0, window_bounds = array<i64: 256, 4>}, {pipeline_mode = #tpu.pipeline_mode<synchronous>, transform_indices = @transform_1, window_bounds = array<i64: 1, 4>}, {pipeline_mode = #tpu.pipeline_mode<synchronous>, transform_indices = @transform_2, window_bounds = array<i64: 1, 4>}, {pipeline_mode = #tpu.pipeline_mode<synchronous>, transform_indices = @transform_3, window_bounds = array<i64: 4, 128>}, {transform_indices = @transform_4, window_bounds = array<i64: 256, 128>}, {transform_indices = @transform_5, window_bounds = array<i64: 1, 2, 128>}]} {
    %c0 = arith.constant 0 : index
    %c0_0 = arith.constant 0 : index
    %0 = vector.load %arg1[%c0, %c0_0] : memref<256x4xf32, #tpu.memory_space<vmem>>, vector<256x4xf32>
    %c0_1 = arith.constant 0 : index
    %c0_2 = arith.constant 0 : index
    %1 = vector.load %arg2[%c0_1, %c0_2] : memref<1x4xf32, #tpu.memory_space<vmem>>, vector<1x4xf32>
    %2 = vector.broadcast %1 : vector<1x4xf32> to vector<256x4xf32>
    %3 = arith.mulf %0, %2 : vector<256x4xf32>
    %c0_3 = arith.constant 0 : index
    %c0_4 = arith.constant 0 : index
    %4 = vector.load %arg3[%c0_3, %c0_4] : memref<1x4xf32, #tpu.memory_space<vmem>>, vector<1x4xf32>
    %5 = vector.broadcast %4 : vector<1x4xf32> to vector<256x4xf32>
    %6 = arith.addf %3, %5 : vector<256x4xf32>
    %cst = arith.constant 0.000000e+00 : f32
    %7 = vector.broadcast %cst : f32 to vector<256x4xf32>
    %8 = arith.maximumf %6, %7 : vector<256x4xf32>
    %9 = arith.truncf %8 : vector<256x4xf32> to vector<256x4xbf16>
    %c0_5 = arith.constant 0 : index
    %c0_6 = arith.constant 0 : index
    %10 = vector.load %arg4[%c0_5, %c0_6] : memref<4x128xbf16, #tpu.memory_space<vmem>>, vector<4x128xbf16>
    %cst_7 = arith.constant dense<0.000000e+00> : vector<256x128xf32>
    %11 = tpu.matmul %9, %10, %cst_7 {dimension_numbers = #tpu.dot_dimension_numbers<[1], [0], [0], [1], [0, 0, 1, 1], [], []>} : vector<256x4xbf16>, vector<4x128xbf16>, vector<256x128xf32> -> vector<256x128xf32>
    %12 = arith.truncf %11 : vector<256x128xf32> to vector<256x128xbf16>
    %c0_8 = arith.constant 0 : index
    %c0_9 = arith.constant 0 : index
    %13 = vector.load %arg5[%c0_8, %c0_9] : memref<256x128xbf16, #tpu.memory_space<vmem>>, vector<256x128xbf16>
    tpu.vector_store %arg5[%c0_8, %c0_9], %12 {strides = array<i32>} : memref<256x128xbf16, #tpu.memory_space<vmem>>, vector<256x128xbf16>,
    %14 = arith.extf %12 : vector<256x128xbf16> to vector<256x128xf32>
    %cst_10 = arith.constant dense<0.000000e+00> : vector<128xf32>
    %15 = vector.multi_reduction <add>, %14, %cst_10 [0] : vector<256x128xf32> to vector<128xf32>
    %16 = vector.shape_cast %15 : vector<128xf32> to vector<1x128xf32>
    %17 = arith.mulf %14, %14 : vector<256x128xf32>
    %cst_11 = arith.constant dense<0.000000e+00> : vector<128xf32>
    %18 = vector.multi_reduction <add>, %17, %cst_11 [0] : vector<256x128xf32> to vector<128xf32>
    %19 = vector.shape_cast %18 : vector<128xf32> to vector<1x128xf32>
    %20 = tpu.concatenate %16, %19 in 0 : vector<1x128xf32>, vector<1x128xf32> -> vector<2x128xf32>
    %c0_12 = arith.constant 0 : index
    %c0_13 = arith.constant 0 : index
    %c0_14 = arith.constant 0 : index
    %21 = vector.load %arg6[%c0_12, %c0_13, %c0_14] : memref<1x2x128xf32, #tpu.memory_space<vmem>>, vector<1x2x128xf32>
    %22 = vector.shape_cast %21 : vector<1x2x128xf32> to vector<2x128xf32>
    %23 = vector.shape_cast %20 : vector<2x128xf32> to vector<1x2x128xf32>
    tpu.vector_store %arg6[%c0_12, %c0_13, %c0_14], %23 {strides = array<i32>} : memref<1x2x128xf32, #tpu.memory_space<vmem>>, vector<1x2x128xf32>,
    return
  }
  func.func @transform_0(%arg0: i32) -> (i32, i32) {
    %c0_i32 = arith.constant 0 : i32
    %c0_i32_0 = arith.constant 0 : i32
    return %arg0, %c0_i32 : i32, i32
  }
  func.func @transform_1(%arg0: i32) -> (i32, i32) {
    %c0_i32 = arith.constant 0 : i32
    %c0_i32_0 = arith.constant 0 : i32
    %c0_i32_1 = arith.constant 0 : i32
    return %c0_i32, %c0_i32_0 : i32, i32
  }
  func.func @transform_2(%arg0: i32) -> (i32, i32) {
    %c0_i32 = arith.constant 0 : i32
    %c0_i32_0 = arith.constant 0 : i32
    %c0_i32_1 = arith.constant 0 : i32
    return %c0_i32, %c0_i32_0 : i32, i32
  }
  func.func @transform_3(%arg0: i32) -> (i32, i32) {
    %c0_i32 = arith.constant 0 : i32
    %c0_i32_0 = arith.constant 0 : i32
    %c0_i32_1 = arith.constant 0 : i32
    return %c0_i32, %c0_i32_0 : i32, i32
  }
  func.func @transform_4(%arg0: i32) -> (i32, i32) {
    %c0_i32 = arith.constant 0 : i32
    %c0_i32_0 = arith.constant 0 : i32
    return %arg0, %c0_i32 : i32, i32
  }
  func.func @transform_5(%arg0: i32) -> (i32, i32, i32) {
    %c0_i32 = arith.constant 0 : i32
    %c0_i32_0 = arith.constant 0 : i32
    %c0_i32_1 = arith.constant 0 : i32
    return %arg0, %c0_i32, %c0_i32_0 : i32, i32, i32
  }
}

module attributes {stable_mosaic.version = 11 : i64} {
  func.func @kernel(%arg0: i32, %arg1: memref<256x4xf32, #tpu.memory_space<vmem>>, %arg2: memref<1x4xf32, #tpu.memory_space<vmem>>, %arg3: memref<1x4xf32, #tpu.memory_space<vmem>>, %arg4: memref<4x128xbf16, #tpu.memory_space<vmem>>, %arg5: memref<256x4xbf16, #tpu.memory_space<vmem>>, %arg6: memref<1x4xf32, #tpu.memory_space<vmem>>, %arg7: memref<1x4xf32, #tpu.memory_space<vmem>>, %arg8: memref<4x128xbf16, #tpu.memory_space<vmem>>, %arg9: memref<256x128xbf16, #tpu.memory_space<vmem>>, %arg10: memref<1x2x128xf32, #tpu.memory_space<vmem>>) attributes {dimension_semantics = [#tpu.dimension_semantics<parallel>], iteration_bounds = array<i64: 2>, scalar_prefetch = 0 : i64, scratch_operands = 0 : i64, tpu.core_type = #tpu.core_type<tc>, window_params = [{transform_indices = @transform_0, window_bounds = array<i64: 256, 4>}, {pipeline_mode = #tpu.pipeline_mode<synchronous>, transform_indices = @transform_1, window_bounds = array<i64: 1, 4>}, {pipeline_mode = #tpu.pipeline_mode<synchronous>, transform_indices = @transform_2, window_bounds = array<i64: 1, 4>}, {pipeline_mode = #tpu.pipeline_mode<synchronous>, transform_indices = @transform_3, window_bounds = array<i64: 4, 128>}, {transform_indices = @transform_4, window_bounds = array<i64: 256, 4>}, {pipeline_mode = #tpu.pipeline_mode<synchronous>, transform_indices = @transform_5, window_bounds = array<i64: 1, 4>}, {pipeline_mode = #tpu.pipeline_mode<synchronous>, transform_indices = @transform_6, window_bounds = array<i64: 1, 4>}, {pipeline_mode = #tpu.pipeline_mode<synchronous>, transform_indices = @transform_7, window_bounds = array<i64: 4, 128>}, {transform_indices = @transform_8, window_bounds = array<i64: 256, 128>}, {transform_indices = @transform_9, window_bounds = array<i64: 1, 2, 128>}]} {
    %c0 = arith.constant 0 : index
    %c0_0 = arith.constant 0 : index
    %0 = vector.load %arg1[%c0, %c0_0] : memref<256x4xf32, #tpu.memory_space<vmem>>, vector<256x4xf32>
    %c0_1 = arith.constant 0 : index
    %c0_2 = arith.constant 0 : index
    %1 = vector.load %arg2[%c0_1, %c0_2] : memref<1x4xf32, #tpu.memory_space<vmem>>, vector<1x4xf32>
    %2 = vector.broadcast %1 : vector<1x4xf32> to vector<256x4xf32>
    %3 = arith.mulf %0, %2 : vector<256x4xf32>
    %c0_3 = arith.constant 0 : index
    %c0_4 = arith.constant 0 : index
    %4 = vector.load %arg3[%c0_3, %c0_4] : memref<1x4xf32, #tpu.memory_space<vmem>>, vector<1x4xf32>
    %5 = vector.broadcast %4 : vector<1x4xf32> to vector<256x4xf32>
    %6 = arith.addf %3, %5 : vector<256x4xf32>
    %cst = arith.constant 0.000000e+00 : f32
    %7 = vector.broadcast %cst : f32 to vector<256x4xf32>
    %8 = arith.maximumf %6, %7 : vector<256x4xf32>
    %9 = arith.truncf %8 : vector<256x4xf32> to vector<256x4xbf16>
    %c0_5 = arith.constant 0 : index
    %c0_6 = arith.constant 0 : index
    %10 = vector.load %arg4[%c0_5, %c0_6] : memref<4x128xbf16, #tpu.memory_space<vmem>>, vector<4x128xbf16>
    %cst_7 = arith.constant dense<0.000000e+00> : vector<256x128xf32>
    %11 = tpu.matmul %9, %10, %cst_7 {dimension_numbers = #tpu.dot_dimension_numbers<[1], [0], [0], [1], [0, 0, 1, 1], [], []>} : vector<256x4xbf16>, vector<4x128xbf16>, vector<256x128xf32> -> vector<256x128xf32>
    %c0_8 = arith.constant 0 : index
    %c0_9 = arith.constant 0 : index
    %12 = vector.load %arg5[%c0_8, %c0_9] : memref<256x4xbf16, #tpu.memory_space<vmem>>, vector<256x4xbf16>
    %13 = arith.extf %12 : vector<256x4xbf16> to vector<256x4xf32>
    %c0_10 = arith.constant 0 : index
    %c0_11 = arith.constant 0 : index
    %14 = vector.load %arg6[%c0_10, %c0_11] : memref<1x4xf32, #tpu.memory_space<vmem>>, vector<1x4xf32>
    %15 = vector.broadcast %14 : vector<1x4xf32> to vector<256x4xf32>
    %16 = arith.mulf %13, %15 : vector<256x4xf32>
    %c0_12 = arith.constant 0 : index
    %c0_13 = arith.constant 0 : index
    %17 = vector.load %arg7[%c0_12, %c0_13] : memref<1x4xf32, #tpu.memory_space<vmem>>, vector<1x4xf32>
    %18 = vector.broadcast %17 : vector<1x4xf32> to vector<256x4xf32>
    %19 = arith.addf %16, %18 : vector<256x4xf32>
    %cst_14 = arith.constant 0.000000e+00 : f32
    %20 = vector.broadcast %cst_14 : f32 to vector<256x4xf32>
    %21 = arith.maximumf %19, %20 : vector<256x4xf32>
    %22 = arith.truncf %21 : vector<256x4xf32> to vector<256x4xbf16>
    %c0_15 = arith.constant 0 : index
    %c0_16 = arith.constant 0 : index
    %23 = vector.load %arg8[%c0_15, %c0_16] : memref<4x128xbf16, #tpu.memory_space<vmem>>, vector<4x128xbf16>
    %cst_17 = arith.constant dense<0.000000e+00> : vector<256x128xf32>
    %24 = tpu.matmul %22, %23, %cst_17 {dimension_numbers = #tpu.dot_dimension_numbers<[1], [0], [0], [1], [0, 0, 1, 1], [], []>} : vector<256x4xbf16>, vector<4x128xbf16>, vector<256x128xf32> -> vector<256x128xf32>
    %25 = arith.addf %11, %24 : vector<256x128xf32>
    %26 = arith.truncf %25 : vector<256x128xf32> to vector<256x128xbf16>
    %c0_18 = arith.constant 0 : index
    %c0_19 = arith.constant 0 : index
    %27 = vector.load %arg9[%c0_18, %c0_19] : memref<256x128xbf16, #tpu.memory_space<vmem>>, vector<256x128xbf16>
    tpu.vector_store %arg9[%c0_18, %c0_19], %26 {strides = array<i32>} : memref<256x128xbf16, #tpu.memory_space<vmem>>, vector<256x128xbf16>,
    %28 = arith.extf %26 : vector<256x128xbf16> to vector<256x128xf32>
    %cst_20 = arith.constant dense<0.000000e+00> : vector<128xf32>
    %29 = vector.multi_reduction <add>, %28, %cst_20 [0] : vector<256x128xf32> to vector<128xf32>
    %30 = vector.shape_cast %29 : vector<128xf32> to vector<1x128xf32>
    %31 = arith.mulf %28, %28 : vector<256x128xf32>
    %cst_21 = arith.constant dense<0.000000e+00> : vector<128xf32>
    %32 = vector.multi_reduction <add>, %31, %cst_21 [0] : vector<256x128xf32> to vector<128xf32>
    %33 = vector.shape_cast %32 : vector<128xf32> to vector<1x128xf32>
    %34 = tpu.concatenate %30, %33 in 0 : vector<1x128xf32>, vector<1x128xf32> -> vector<2x128xf32>
    %c0_22 = arith.constant 0 : index
    %c0_23 = arith.constant 0 : index
    %c0_24 = arith.constant 0 : index
    %35 = vector.load %arg10[%c0_22, %c0_23, %c0_24] : memref<1x2x128xf32, #tpu.memory_space<vmem>>, vector<1x2x128xf32>
    %36 = vector.shape_cast %35 : vector<1x2x128xf32> to vector<2x128xf32>
    %37 = vector.shape_cast %34 : vector<2x128xf32> to vector<1x2x128xf32>
    tpu.vector_store %arg10[%c0_22, %c0_23, %c0_24], %37 {strides = array<i32>} : memref<1x2x128xf32, #tpu.memory_space<vmem>>, vector<1x2x128xf32>,
    return
  }
  func.func @transform_0(%arg0: i32) -> (i32, i32) {
    %c0_i32 = arith.constant 0 : i32
    %c0_i32_0 = arith.constant 0 : i32
    return %arg0, %c0_i32 : i32, i32
  }
  func.func @transform_1(%arg0: i32) -> (i32, i32) {
    %c0_i32 = arith.constant 0 : i32
    %c0_i32_0 = arith.constant 0 : i32
    %c0_i32_1 = arith.constant 0 : i32
    return %c0_i32, %c0_i32_0 : i32, i32
  }
  func.func @transform_2(%arg0: i32) -> (i32, i32) {
    %c0_i32 = arith.constant 0 : i32
    %c0_i32_0 = arith.constant 0 : i32
    %c0_i32_1 = arith.constant 0 : i32
    return %c0_i32, %c0_i32_0 : i32, i32
  }
  func.func @transform_3(%arg0: i32) -> (i32, i32) {
    %c0_i32 = arith.constant 0 : i32
    %c0_i32_0 = arith.constant 0 : i32
    %c0_i32_1 = arith.constant 0 : i32
    return %c0_i32, %c0_i32_0 : i32, i32
  }
  func.func @transform_4(%arg0: i32) -> (i32, i32) {
    %c0_i32 = arith.constant 0 : i32
    %c0_i32_0 = arith.constant 0 : i32
    return %arg0, %c0_i32 : i32, i32
  }
  func.func @transform_5(%arg0: i32) -> (i32, i32) {
    %c0_i32 = arith.constant 0 : i32
    %c0_i32_0 = arith.constant 0 : i32
    %c0_i32_1 = arith.constant 0 : i32
    return %c0_i32, %c0_i32_0 : i32, i32
  }
  func.func @transform_6(%arg0: i32) -> (i32, i32) {
    %c0_i32 = arith.constant 0 : i32
    %c0_i32_0 = arith.constant 0 : i32
    %c0_i32_1 = arith.constant 0 : i32
    return %c0_i32, %c0_i32_0 : i32, i32
  }
  func.func @transform_7(%arg0: i32) -> (i32, i32) {
    %c0_i32 = arith.constant 0 : i32
    %c0_i32_0 = arith.constant 0 : i32
    %c0_i32_1 = arith.constant 0 : i32
    return %c0_i32, %c0_i32_0 : i32, i32
  }
  func.func @transform_8(%arg0: i32) -> (i32, i32) {
    %c0_i32 = arith.constant 0 : i32
    %c0_i32_0 = arith.constant 0 : i32
    return %arg0, %c0_i32 : i32, i32
  }
  func.func @transform_9(%arg0: i32) -> (i32, i32, i32) {
    %c0_i32 = arith.constant 0 : i32
    %c0_i32_0 = arith.constant 0 : i32
    %c0_i32_1 = arith.constant 0 : i32
    return %arg0, %c0_i32, %c0_i32_0 : i32, i32, i32
  }
}

module attributes {stable_mosaic.version = 11 : i64} {
  func.func @kernel(%arg0: i32, %arg1: memref<256x4xf32, #tpu.memory_space<vmem>>, %arg2: memref<1x4xf32, #tpu.memory_space<vmem>>, %arg3: memref<1x4xf32, #tpu.memory_space<vmem>>, %arg4: memref<4x128xbf16, #tpu.memory_space<vmem>>, %arg5: memref<256x4xbf16, #tpu.memory_space<vmem>>, %arg6: memref<1x4xf32, #tpu.memory_space<vmem>>, %arg7: memref<1x4xf32, #tpu.memory_space<vmem>>, %arg8: memref<4x128xbf16, #tpu.memory_space<vmem>>, %arg9: memref<256x4xbf16, #tpu.memory_space<vmem>>, %arg10: memref<1x4xf32, #tpu.memory_space<vmem>>, %arg11: memref<1x4xf32, #tpu.memory_space<vmem>>, %arg12: memref<4x128xbf16, #tpu.memory_space<vmem>>, %arg13: memref<256x128xbf16, #tpu.memory_space<vmem>>, %arg14: memref<1x2x128xf32, #tpu.memory_space<vmem>>) attributes {dimension_semantics = [#tpu.dimension_semantics<parallel>], iteration_bounds = array<i64: 2>, scalar_prefetch = 0 : i64, scratch_operands = 0 : i64, tpu.core_type = #tpu.core_type<tc>, window_params = [{transform_indices = @transform_0, window_bounds = array<i64: 256, 4>}, {pipeline_mode = #tpu.pipeline_mode<synchronous>, transform_indices = @transform_1, window_bounds = array<i64: 1, 4>}, {pipeline_mode = #tpu.pipeline_mode<synchronous>, transform_indices = @transform_2, window_bounds = array<i64: 1, 4>}, {pipeline_mode = #tpu.pipeline_mode<synchronous>, transform_indices = @transform_3, window_bounds = array<i64: 4, 128>}, {transform_indices = @transform_4, window_bounds = array<i64: 256, 4>}, {pipeline_mode = #tpu.pipeline_mode<synchronous>, transform_indices = @transform_5, window_bounds = array<i64: 1, 4>}, {pipeline_mode = #tpu.pipeline_mode<synchronous>, transform_indices = @transform_6, window_bounds = array<i64: 1, 4>}, {pipeline_mode = #tpu.pipeline_mode<synchronous>, transform_indices = @transform_7, window_bounds = array<i64: 4, 128>}, {transform_indices = @transform_8, window_bounds = array<i64: 256, 4>}, {pipeline_mode = #tpu.pipeline_mode<synchronous>, transform_indices = @transform_9, window_bounds = array<i64: 1, 4>}, {pipeline_mode = #tpu.pipeline_mode<synchronous>, transform_indices = @transform_10, window_bounds = array<i64: 1, 4>}, {pipeline_mode = #tpu.pipeline_mode<synchronous>, transform_indices = @transform_11, window_bounds = array<i64: 4, 128>}, {transform_indices = @transform_12, window_bounds = array<i64: 256, 128>}, {transform_indices = @transform_13, window_bounds = array<i64: 1, 2, 128>}]} {
    %c0 = arith.constant 0 : index
    %c0_0 = arith.constant 0 : index
    %0 = vector.load %arg1[%c0, %c0_0] : memref<256x4xf32, #tpu.memory_space<vmem>>, vector<256x4xf32>
    %c0_1 = arith.constant 0 : index
    %c0_2 = arith.constant 0 : index
    %1 = vector.load %arg2[%c0_1, %c0_2] : memref<1x4xf32, #tpu.memory_space<vmem>>, vector<1x4xf32>
    %2 = vector.broadcast %1 : vector<1x4xf32> to vector<256x4xf32>
    %3 = arith.mulf %0, %2 : vector<256x4xf32>
    %c0_3 = arith.constant 0 : index
    %c0_4 = arith.constant 0 : index
    %4 = vector.load %arg3[%c0_3, %c0_4] : memref<1x4xf32, #tpu.memory_space<vmem>>, vector<1x4xf32>
    %5 = vector.broadcast %4 : vector<1x4xf32> to vector<256x4xf32>
    %6 = arith.addf %3, %5 : vector<256x4xf32>
    %cst = arith.constant 0.000000e+00 : f32
    %7 = vector.broadcast %cst : f32 to vector<256x4xf32>
    %8 = arith.maximumf %6, %7 : vector<256x4xf32>
    %9 = arith.truncf %8 : vector<256x4xf32> to vector<256x4xbf16>
    %c0_5 = arith.constant 0 : index
    %c0_6 = arith.constant 0 : index
    %10 = vector.load %arg4[%c0_5, %c0_6] : memref<4x128xbf16, #tpu.memory_space<vmem>>, vector<4x128xbf16>
    %cst_7 = arith.constant dense<0.000000e+00> : vector<256x128xf32>
    %11 = tpu.matmul %9, %10, %cst_7 {dimension_numbers = #tpu.dot_dimension_numbers<[1], [0], [0], [1], [0, 0, 1, 1], [], []>} : vector<256x4xbf16>, vector<4x128xbf16>, vector<256x128xf32> -> vector<256x128xf32>
    %c0_8 = arith.constant 0 : index
    %c0_9 = arith.constant 0 : index
    %12 = vector.load %arg5[%c0_8, %c0_9] : memref<256x4xbf16, #tpu.memory_space<vmem>>, vector<256x4xbf16>
    %13 = arith.extf %12 : vector<256x4xbf16> to vector<256x4xf32>
    %c0_10 = arith.constant 0 : index
    %c0_11 = arith.constant 0 : index
    %14 = vector.load %arg6[%c0_10, %c0_11] : memref<1x4xf32, #tpu.memory_space<vmem>>, vector<1x4xf32>
    %15 = vector.broadcast %14 : vector<1x4xf32> to vector<256x4xf32>
    %16 = arith.mulf %13, %15 : vector<256x4xf32>
    %c0_12 = arith.constant 0 : index
    %c0_13 = arith.constant 0 : index
    %17 = vector.load %arg7[%c0_12, %c0_13] : memref<1x4xf32, #tpu.memory_space<vmem>>, vector<1x4xf32>
    %18 = vector.broadcast %17 : vector<1x4xf32> to vector<256x4xf32>
    %19 = arith.addf %16, %18 : vector<256x4xf32>
    %cst_14 = arith.constant 0.000000e+00 : f32
    %20 = vector.broadcast %cst_14 : f32 to vector<256x4xf32>
    %21 = arith.maximumf %19, %20 : vector<256x4xf32>
    %22 = arith.truncf %21 : vector<256x4xf32> to vector<256x4xbf16>
    %c0_15 = arith.constant 0 : index
    %c0_16 = arith.constant 0 : index
    %23 = vector.load %arg8[%c0_15, %c0_16] : memref<4x128xbf16, #tpu.memory_space<vmem>>, vector<4x128xbf16>
    %cst_17 = arith.constant dense<0.000000e+00> : vector<256x128xf32>
    %24 = tpu.matmul %22, %23, %cst_17 {dimension_numbers = #tpu.dot_dimension_numbers<[1], [0], [0], [1], [0, 0, 1, 1], [], []>} : vector<256x4xbf16>, vector<4x128xbf16>, vector<256x128xf32> -> vector<256x128xf32>
    %25 = arith.addf %11, %24 : vector<256x128xf32>
    %c0_18 = arith.constant 0 : index
    %c0_19 = arith.constant 0 : index
    %26 = vector.load %arg9[%c0_18, %c0_19] : memref<256x4xbf16, #tpu.memory_space<vmem>>, vector<256x4xbf16>
    %27 = arith.extf %26 : vector<256x4xbf16> to vector<256x4xf32>
    %c0_20 = arith.constant 0 : index
    %c0_21 = arith.constant 0 : index
    %28 = vector.load %arg10[%c0_20, %c0_21] : memref<1x4xf32, #tpu.memory_space<vmem>>, vector<1x4xf32>
    %29 = vector.broadcast %28 : vector<1x4xf32> to vector<256x4xf32>
    %30 = arith.mulf %27, %29 : vector<256x4xf32>
    %c0_22 = arith.constant 0 : index
    %c0_23 = arith.constant 0 : index
    %31 = vector.load %arg11[%c0_22, %c0_23] : memref<1x4xf32, #tpu.memory_space<vmem>>, vector<1x4xf32>
    %32 = vector.broadcast %31 : vector<1x4xf32> to vector<256x4xf32>
    %33 = arith.addf %30, %32 : vector<256x4xf32>
    %cst_24 = arith.constant 0.000000e+00 : f32
    %34 = vector.broadcast %cst_24 : f32 to vector<256x4xf32>
    %35 = arith.maximumf %33, %34 : vector<256x4xf32>
    %36 = arith.truncf %35 : vector<256x4xf32> to vector<256x4xbf16>
    %c0_25 = arith.constant 0 : index
    %c0_26 = arith.constant 0 : index
    %37 = vector.load %arg12[%c0_25, %c0_26] : memref<4x128xbf16, #tpu.memory_space<vmem>>, vector<4x128xbf16>
    %cst_27 = arith.constant dense<0.000000e+00> : vector<256x128xf32>
    %38 = tpu.matmul %36, %37, %cst_27 {dimension_numbers = #tpu.dot_dimension_numbers<[1], [0], [0], [1], [0, 0, 1, 1], [], []>} : vector<256x4xbf16>, vector<4x128xbf16>, vector<256x128xf32> -> vector<256x128xf32>
    %39 = arith.addf %25, %38 : vector<256x128xf32>
    %40 = arith.truncf %39 : vector<256x128xf32> to vector<256x128xbf16>
    %c0_28 = arith.constant 0 : index
    %c0_29 = arith.constant 0 : index
    %41 = vector.load %arg13[%c0_28, %c0_29] : memref<256x128xbf16, #tpu.memory_space<vmem>>, vector<256x128xbf16>
    tpu.vector_store %arg13[%c0_28, %c0_29], %40 {strides = array<i32>} : memref<256x128xbf16, #tpu.memory_space<vmem>>, vector<256x128xbf16>,
    %42 = arith.extf %40 : vector<256x128xbf16> to vector<256x128xf32>
    %cst_30 = arith.constant dense<0.000000e+00> : vector<128xf32>
    %43 = vector.multi_reduction <add>, %42, %cst_30 [0] : vector<256x128xf32> to vector<128xf32>
    %44 = vector.shape_cast %43 : vector<128xf32> to vector<1x128xf32>
    %45 = arith.mulf %42, %42 : vector<256x128xf32>
    %cst_31 = arith.constant dense<0.000000e+00> : vector<128xf32>
    %46 = vector.multi_reduction <add>, %45, %cst_31 [0] : vector<256x128xf32> to vector<128xf32>
    %47 = vector.shape_cast %46 : vector<128xf32> to vector<1x128xf32>
    %48 = tpu.concatenate %44, %47 in 0 : vector<1x128xf32>, vector<1x128xf32> -> vector<2x128xf32>
    %c0_32 = arith.constant 0 : index
    %c0_33 = arith.constant 0 : index
    %c0_34 = arith.constant 0 : index
    %49 = vector.load %arg14[%c0_32, %c0_33, %c0_34] : memref<1x2x128xf32, #tpu.memory_space<vmem>>, vector<1x2x128xf32>
    %50 = vector.shape_cast %49 : vector<1x2x128xf32> to vector<2x128xf32>
    %51 = vector.shape_cast %48 : vector<2x128xf32> to vector<1x2x128xf32>
    tpu.vector_store %arg14[%c0_32, %c0_33, %c0_34], %51 {strides = array<i32>} : memref<1x2x128xf32, #tpu.memory_space<vmem>>, vector<1x2x128xf32>,
    return
  }
  func.func @transform_0(%arg0: i32) -> (i32, i32) {
    %c0_i32 = arith.constant 0 : i32
    %c0_i32_0 = arith.constant 0 : i32
    return %arg0, %c0_i32 : i32, i32
  }
  func.func @transform_1(%arg0: i32) -> (i32, i32) {
    %c0_i32 = arith.constant 0 : i32
    %c0_i32_0 = arith.constant 0 : i32
    %c0_i32_1 = arith.constant 0 : i32
    return %c0_i32, %c0_i32_0 : i32, i32
  }
  func.func @transform_2(%arg0: i32) -> (i32, i32) {
    %c0_i32 = arith.constant 0 : i32
    %c0_i32_0 = arith.constant 0 : i32
    %c0_i32_1 = arith.constant 0 : i32
    return %c0_i32, %c0_i32_0 : i32, i32
  }
  func.func @transform_3(%arg0: i32) -> (i32, i32) {
    %c0_i32 = arith.constant 0 : i32
    %c0_i32_0 = arith.constant 0 : i32
    %c0_i32_1 = arith.constant 0 : i32
    return %c0_i32, %c0_i32_0 : i32, i32
  }
  func.func @transform_4(%arg0: i32) -> (i32, i32) {
    %c0_i32 = arith.constant 0 : i32
    %c0_i32_0 = arith.constant 0 : i32
    return %arg0, %c0_i32 : i32, i32
  }
  func.func @transform_5(%arg0: i32) -> (i32, i32) {
    %c0_i32 = arith.constant 0 : i32
    %c0_i32_0 = arith.constant 0 : i32
    %c0_i32_1 = arith.constant 0 : i32
    return %c0_i32, %c0_i32_0 : i32, i32
  }
  func.func @transform_6(%arg0: i32) -> (i32, i32) {
    %c0_i32 = arith.constant 0 : i32
    %c0_i32_0 = arith.constant 0 : i32
    %c0_i32_1 = arith.constant 0 : i32
    return %c0_i32, %c0_i32_0 : i32, i32
  }
  func.func @transform_7(%arg0: i32) -> (i32, i32) {
    %c0_i32 = arith.constant 0 : i32
    %c0_i32_0 = arith.constant 0 : i32
    %c0_i32_1 = arith.constant 0 : i32
    return %c0_i32, %c0_i32_0 : i32, i32
  }
  func.func @transform_8(%arg0: i32) -> (i32, i32) {
    %c0_i32 = arith.constant 0 : i32
    %c0_i32_0 = arith.constant 0 : i32
    return %arg0, %c0_i32 : i32, i32
  }
  func.func @transform_9(%arg0: i32) -> (i32, i32) {
    %c0_i32 = arith.constant 0 : i32
    %c0_i32_0 = arith.constant 0 : i32
    %c0_i32_1 = arith.constant 0 : i32
    return %c0_i32, %c0_i32_0 : i32, i32
  }
  func.func @transform_10(%arg0: i32) -> (i32, i32) {
    %c0_i32 = arith.constant 0 : i32
    %c0_i32_0 = arith.constant 0 : i32
    %c0_i32_1 = arith.constant 0 : i32
    return %c0_i32, %c0_i32_0 : i32, i32
  }
  func.func @transform_11(%arg0: i32) -> (i32, i32) {
    %c0_i32 = arith.constant 0 : i32
    %c0_i32_0 = arith.constant 0 : i32
    %c0_i32_1 = arith.constant 0 : i32
    return %c0_i32, %c0_i32_0 : i32, i32
  }
  func.func @transform_12(%arg0: i32) -> (i32, i32) {
    %c0_i32 = arith.constant 0 : i32
    %c0_i32_0 = arith.constant 0 : i32
    return %arg0, %c0_i32 : i32, i32
  }
  func.func @transform_13(%arg0: i32) -> (i32, i32, i32) {
    %c0_i32 = arith.constant 0 : i32
    %c0_i32_0 = arith.constant 0 : i32
    %c0_i32_1 = arith.constant 0 : i32
    return %arg0, %c0_i32, %c0_i32_0 : i32, i32, i32
  }
}

module attributes {stable_mosaic.version = 11 : i64} {
  func.func @kernel(%arg0: i32, %arg1: i32, %arg2: memref<1x128x128xbf16, #tpu.memory_space<vmem>>, %arg3: memref<1x16x128xbf16, #tpu.memory_space<vmem>>, %arg4: memref<1x16x128xbf16, #tpu.memory_space<vmem>>, %arg5: memref<1x128xf32, #tpu.memory_space<vmem>>, %arg6: memref<1x128xf32, #tpu.memory_space<vmem>>, %arg7: memref<9x128x4xbf16, #tpu.memory_space<vmem>>, %arg8: memref<1x128x4xbf16, #tpu.memory_space<vmem>>, %arg9: memref<1x1x2x4xf32, #tpu.memory_space<vmem>>, %arg10: memref<176x128xbf16, #tpu.memory_space<vmem>>) attributes {dimension_semantics = [#tpu.dimension_semantics<parallel>, #tpu.dimension_semantics<parallel>], iteration_bounds = array<i64: 2, 2>, scalar_prefetch = 0 : i64, scratch_operands = 1 : i64, tpu.core_type = #tpu.core_type<tc>, window_params = [{transform_indices = @transform_0, window_bounds = array<i64: 1, 128, 128>}, {transform_indices = @transform_1, window_bounds = array<i64: 1, 16, 128>}, {transform_indices = @transform_2, window_bounds = array<i64: 1, 16, 128>}, {pipeline_mode = #tpu.pipeline_mode<synchronous>, transform_indices = @transform_3, window_bounds = array<i64: 1, 128>}, {pipeline_mode = #tpu.pipeline_mode<synchronous>, transform_indices = @transform_4, window_bounds = array<i64: 1, 128>}, {pipeline_mode = #tpu.pipeline_mode<synchronous>, transform_indices = @transform_5, window_bounds = array<i64: 9, 128, 4>}, {transform_indices = @transform_6, window_bounds = array<i64: 1, 128, 4>}, {transform_indices = @transform_7, window_bounds = array<i64: 1, 1, 2, 4>}]} {
    %c0 = arith.constant 0 : index
    %c0_0 = arith.constant 0 : index
    %0 = vector.load %arg5[%c0, %c0_0] : memref<1x128xf32, #tpu.memory_space<vmem>>, vector<1x128xf32>
    %c0_1 = arith.constant 0 : index
    %c0_2 = arith.constant 0 : index
    %1 = vector.load %arg6[%c0_1, %c0_2] : memref<1x128xf32, #tpu.memory_space<vmem>>, vector<1x128xf32>
    %cst = arith.constant 0.000000e+00 : bf16
    %2 = vector.broadcast %cst : bf16 to vector<8x128xbf16>
    %c0_3 = arith.constant 0 : index
    %c0_4 = arith.constant 0 : index
    %3 = vector.load %arg10[%c0_3, %c0_4] : memref<176x128xbf16, #tpu.memory_space<vmem>>, vector<8x128xbf16>
    tpu.vector_store %arg10[%c0_3, %c0_4], %2 {strides = array<i32>} : memref<176x128xbf16, #tpu.memory_space<vmem>>, vector<8x128xbf16>,
    %c168 = arith.constant 168 : index
    %c0_5 = arith.constant 0 : index
    %4 = vector.load %arg10[%c168, %c0_5] : memref<176x128xbf16, #tpu.memory_space<vmem>>, vector<8x128xbf16>
    tpu.vector_store %arg10[%c168, %c0_5], %2 {strides = array<i32>} : memref<176x128xbf16, #tpu.memory_space<vmem>>, vector<8x128xbf16>,
    %c0_6 = arith.constant 0 : index
    %c0_7 = arith.constant 0 : index
    %c0_8 = arith.constant 0 : index
    %5 = vector.load %arg2[%c0_6, %c0_7, %c0_8] : memref<1x128x128xbf16, #tpu.memory_space<vmem>>, vector<1x128x128xbf16>
    %6 = vector.shape_cast %5 : vector<1x128x128xbf16> to vector<128x128xbf16>
    %7 = arith.extf %6 : vector<128x128xbf16> to vector<128x128xf32>
    %8 = vector.broadcast %0 : vector<1x128xf32> to vector<128x128xf32>
    %9 = arith.mulf %7, %8 : vector<128x128xf32>
    %10 = vector.broadcast %1 : vector<1x128xf32> to vector<128x128xf32>
    %11 = arith.addf %9, %10 : vector<128x128xf32>
    %cst_9 = arith.constant 0.000000e+00 : f32
    %12 = vector.broadcast %cst_9 : f32 to vector<128x128xf32>
    %13 = arith.maximumf %11, %12 : vector<128x128xf32>
    %14 = arith.truncf %13 : vector<128x128xf32> to vector<128x128xbf16>
    %c24 = arith.constant 24 : index
    %c0_10 = arith.constant 0 : index
    %15 = vector.load %arg10[%c24, %c0_10] : memref<176x128xbf16, #tpu.memory_space<vmem>>, vector<128x128xbf16>
    tpu.vector_store %arg10[%c24, %c0_10], %14 {strides = array<i32>} : memref<176x128xbf16, #tpu.memory_space<vmem>>, vector<128x128xbf16>,
    %c0_11 = arith.constant 0 : index
    %c0_12 = arith.constant 0 : index
    %c0_13 = arith.constant 0 : index
    %16 = vector.load %arg3[%c0_11, %c0_12, %c0_13] : memref<1x16x128xbf16, #tpu.memory_space<vmem>>, vector<1x16x128xbf16>
    %17 = vector.shape_cast %16 : vector<1x16x128xbf16> to vector<16x128xbf16>
    %18 = arith.extf %17 : vector<16x128xbf16> to vector<16x128xf32>
    %19 = vector.broadcast %0 : vector<1x128xf32> to vector<16x128xf32>
    %20 = arith.mulf %18, %19 : vector<16x128xf32>
    %21 = vector.broadcast %1 : vector<1x128xf32> to vector<16x128xf32>
    %22 = arith.addf %20, %21 : vector<16x128xf32>
    %cst_14 = arith.constant 0.000000e+00 : f32
    %23 = vector.broadcast %cst_14 : f32 to vector<16x128xf32>
    %24 = arith.maximumf %22, %23 : vector<16x128xf32>
    %25 = arith.truncf %24 : vector<16x128xf32> to vector<16x128xbf16>
    %c0_i32 = arith.constant 0 : i32
    %26 = arith.cmpi sgt, %arg1, %c0_i32 : i32
    %cst_15 = arith.constant 0.000000e+00 : bf16
    %27 = vector.broadcast %cst_15 : bf16 to vector<16x128xbf16>
    %28 = arith.select %26, %25, %27 : vector<16x128xbf16>
    %c8 = arith.constant 8 : index
    %c0_16 = arith.constant 0 : index
    %29 = vector.load %arg10[%c8, %c0_16] : memref<176x128xbf16, #tpu.memory_space<vmem>>, vector<16x128xbf16>
    tpu.vector_store %arg10[%c8, %c0_16], %28 {strides = array<i32>} : memref<176x128xbf16, #tpu.memory_space<vmem>>, vector<16x128xbf16>,
    %c0_17 = arith.constant 0 : index
    %c0_18 = arith.constant 0 : index
    %c0_19 = arith.constant 0 : index
    %30 = vector.load %arg4[%c0_17, %c0_18, %c0_19] : memref<1x16x128xbf16, #tpu.memory_space<vmem>>, vector<1x16x128xbf16>
    %31 = vector.shape_cast %30 : vector<1x16x128xbf16> to vector<16x128xbf16>
    %32 = arith.extf %31 : vector<16x128xbf16> to vector<16x128xf32>
    %33 = vector.broadcast %0 : vector<1x128xf32> to vector<16x128xf32>
    %34 = arith.mulf %32, %33 : vector<16x128xf32>
    %35 = vector.broadcast %1 : vector<1x128xf32> to vector<16x128xf32>
    %36 = arith.addf %34, %35 : vector<16x128xf32>
    %cst_20 = arith.constant 0.000000e+00 : f32
    %37 = vector.broadcast %cst_20 : f32 to vector<16x128xf32>
    %38 = arith.maximumf %36, %37 : vector<16x128xf32>
    %39 = arith.truncf %38 : vector<16x128xf32> to vector<16x128xbf16>
    %c1_i32 = arith.constant 1 : i32
    %40 = arith.cmpi slt, %arg1, %c1_i32 : i32
    %cst_21 = arith.constant 0.000000e+00 : bf16
    %41 = vector.broadcast %cst_21 : bf16 to vector<16x128xbf16>
    %42 = arith.select %40, %39, %41 : vector<16x128xbf16>
    %c152 = arith.constant 152 : index
    %c0_22 = arith.constant 0 : index
    %43 = vector.load %arg10[%c152, %c0_22] : memref<176x128xbf16, #tpu.memory_space<vmem>>, vector<16x128xbf16>
    tpu.vector_store %arg10[%c152, %c0_22], %42 {strides = array<i32>} : memref<176x128xbf16, #tpu.memory_space<vmem>>, vector<16x128xbf16>,
    %44 = tpu.iota {dimensions = array<i32: 0>} : vector<128x1xi32>
    %c16_i32 = arith.constant 16 : i32
    %c0_i32_23 = arith.constant 0 : i32
    %45 = arith.cmpi eq, %c16_i32, %c0_i32_23 : i32
    %c1_i32_24 = arith.constant 1 : i32
    %46 = arith.select %45, %c1_i32_24, %c16_i32 : i32
    %47 = vector.broadcast %46 : i32 to vector<128x1xi32>
    %48 = arith.remsi %44, %47 : vector<128x1xi32>
    %c0_i32_25 = arith.constant 0 : i32
    %49 = vector.broadcast %c0_i32_25 : i32 to vector<128x1xi32>
    %50 = arith.cmpi ne, %48, %49 : vector<128x1xi32>
    %c0_i32_26 = arith.constant 0 : i32
    %51 = vector.broadcast %c0_i32_26 : i32 to vector<128x1xi32>
    %52 = arith.cmpi slt, %48, %51 : vector<128x1xi32>
    %c0_i32_27 = arith.constant 0 : i32
    %53 = arith.cmpi slt, %46, %c0_i32_27 : i32
    %54 = vector.broadcast %53 : i1 to vector<128x1xi1>
    %55 = vector.broadcast %54 : vector<128x1xi1> to vector<128x1xi1>
    %56 = arith.xori %52, %55 : vector<128x1xi1>
    %57 = arith.andi %56, %50 : vector<128x1xi1>
    %58 = vector.broadcast %46 : i32 to vector<128x1xi32>
    %59 = arith.addi %48, %58 : vector<128x1xi32>
    %60 = arith.select %57, %59, %48 : vector<128x1xi1>, vector<128x1xi32>
    %c1_i32_28 = arith.constant 1 : i32
    %61 = vector.broadcast %c1_i32_28 : i32 to vector<128x1xi32>
    %62 = arith.cmpi sge, %60, %61 : vector<128x1xi32>
    %c14_i32 = arith.constant 14 : i32
    %63 = vector.broadcast %c14_i32 : i32 to vector<128x1xi32>
    %64 = arith.cmpi sle, %60, %63 : vector<128x1xi32>
    %cst_29 = arith.constant 0.000000e+00 : f32
    %65 = vector.broadcast %cst_29 : f32 to vector<128x4xf32>
    %c7 = arith.constant 7 : index
    %c0_30 = arith.constant 0 : index
    %66 = vector.load %arg10[%c7, %c0_30] : memref<176x128xbf16, #tpu.memory_space<vmem>>, vector<128x128xbf16>
    %cst_31 = arith.constant 0.000000e+00 : bf16
    %67 = vector.broadcast %cst_31 : bf16 to vector<128x128xbf16>
    %68 = vector.shape_cast %62 : vector<128x1xi1> to vector<128x1xi1>
    %69 = vector.broadcast %68 : vector<128x1xi1> to vector<128x128xi1>
    %70 = arith.select %69, %66, %67 : vector<128x128xi1>, vector<128x128xbf16>
    %c0_32 = arith.constant 0 : index
    %c0_33 = arith.constant 0 : index
    %c0_34 = arith.constant 0 : index
    %71 = vector.load %arg7[%c0_32, %c0_33, %c0_34] : memref<9x128x4xbf16, #tpu.memory_space<vmem>>, vector<1x128x4xbf16>
    %72 = vector.shape_cast %71 : vector<1x128x4xbf16> to vector<128x4xbf16>
    %cst_35 = arith.constant dense<0.000000e+00> : vector<128x4xf32>
    %73 = tpu.matmul %70, %72, %cst_35 {dimension_numbers = #tpu.dot_dimension_numbers<[1], [0], [0], [1], [0, 0, 1, 1], [], []>} : vector<128x128xbf16>, vector<128x4xbf16>, vector<128x4xf32> -> vector<128x4xf32>
    %74 = arith.addf %65, %73 : vector<128x4xf32>
    %c8_36 = arith.constant 8 : index
    %c0_37 = arith.constant 0 : index
    %75 = vector.load %arg10[%c8_36, %c0_37] : memref<176x128xbf16, #tpu.memory_space<vmem>>, vector<128x128xbf16>
    %c1 = arith.constant 1 : index
    %c0_38 = arith.constant 0 : index
    %c0_39 = arith.constant 0 : index
    %76 = vector.load %arg7[%c1, %c0_38, %c0_39] : memref<9x128x4xbf16, #tpu.memory_space<vmem>>, vector<1x128x4xbf16>
    %77 = vector.shape_cast %76 : vector<1x128x4xbf16> to vector<128x4xbf16>
    %cst_40 = arith.constant dense<0.000000e+00> : vector<128x4xf32>
    %78 = tpu.matmul %75, %77, %cst_40 {dimension_numbers = #tpu.dot_dimension_numbers<[1], [0], [0], [1], [0, 0, 1, 1], [], []>} : vector<128x128xbf16>, vector<128x4xbf16>, vector<128x4xf32> -> vector<128x4xf32>
    %79 = arith.addf %74, %78 : vector<128x4xf32>
    %c9 = arith.constant 9 : index
    %c0_41 = arith.constant 0 : index
    %80 = vector.load %arg10[%c9, %c0_41] : memref<176x128xbf16, #tpu.memory_space<vmem>>, vector<128x128xbf16>
    %cst_42 = arith.constant 0.000000e+00 : bf16
    %81 = vector.broadcast %cst_42 : bf16 to vector<128x128xbf16>
    %82 = vector.shape_cast %64 : vector<128x1xi1> to vector<128x1xi1>
    %83 = vector.broadcast %82 : vector<128x1xi1> to vector<128x128xi1>
    %84 = arith.select %83, %80, %81 : vector<128x128xi1>, vector<128x128xbf16>
    %c2 = arith.constant 2 : index
    %c0_43 = arith.constant 0 : index
    %c0_44 = arith.constant 0 : index
    %85 = vector.load %arg7[%c2, %c0_43, %c0_44] : memref<9x128x4xbf16, #tpu.memory_space<vmem>>, vector<1x128x4xbf16>
    %86 = vector.shape_cast %85 : vector<1x128x4xbf16> to vector<128x4xbf16>
    %cst_45 = arith.constant dense<0.000000e+00> : vector<128x4xf32>
    %87 = tpu.matmul %84, %86, %cst_45 {dimension_numbers = #tpu.dot_dimension_numbers<[1], [0], [0], [1], [0, 0, 1, 1], [], []>} : vector<128x128xbf16>, vector<128x4xbf16>, vector<128x4xf32> -> vector<128x4xf32>
    %88 = arith.addf %79, %87 : vector<128x4xf32>
    %c23 = arith.constant 23 : index
    %c0_46 = arith.constant 0 : index
    %89 = vector.load %arg10[%c23, %c0_46] : memref<176x128xbf16, #tpu.memory_space<vmem>>, vector<128x128xbf16>
    %cst_47 = arith.constant 0.000000e+00 : bf16
    %90 = vector.broadcast %cst_47 : bf16 to vector<128x128xbf16>
    %91 = vector.shape_cast %62 : vector<128x1xi1> to vector<128x1xi1>
    %92 = vector.broadcast %91 : vector<128x1xi1> to vector<128x128xi1>
    %93 = arith.select %92, %89, %90 : vector<128x128xi1>, vector<128x128xbf16>
    %c3 = arith.constant 3 : index
    %c0_48 = arith.constant 0 : index
    %c0_49 = arith.constant 0 : index
    %94 = vector.load %arg7[%c3, %c0_48, %c0_49] : memref<9x128x4xbf16, #tpu.memory_space<vmem>>, vector<1x128x4xbf16>
    %95 = vector.shape_cast %94 : vector<1x128x4xbf16> to vector<128x4xbf16>
    %cst_50 = arith.constant dense<0.000000e+00> : vector<128x4xf32>
    %96 = tpu.matmul %93, %95, %cst_50 {dimension_numbers = #tpu.dot_dimension_numbers<[1], [0], [0], [1], [0, 0, 1, 1], [], []>} : vector<128x128xbf16>, vector<128x4xbf16>, vector<128x4xf32> -> vector<128x4xf32>
    %97 = arith.addf %88, %96 : vector<128x4xf32>
    %c24_51 = arith.constant 24 : index
    %c0_52 = arith.constant 0 : index
    %98 = vector.load %arg10[%c24_51, %c0_52] : memref<176x128xbf16, #tpu.memory_space<vmem>>, vector<128x128xbf16>
    %c4 = arith.constant 4 : index
    %c0_53 = arith.constant 0 : index
    %c0_54 = arith.constant 0 : index
    %99 = vector.load %arg7[%c4, %c0_53, %c0_54] : memref<9x128x4xbf16, #tpu.memory_space<vmem>>, vector<1x128x4xbf16>
    %100 = vector.shape_cast %99 : vector<1x128x4xbf16> to vector<128x4xbf16>
    %cst_55 = arith.constant dense<0.000000e+00> : vector<128x4xf32>
    %101 = tpu.matmul %98, %100, %cst_55 {dimension_numbers = #tpu.dot_dimension_numbers<[1], [0], [0], [1], [0, 0, 1, 1], [], []>} : vector<128x128xbf16>, vector<128x4xbf16>, vector<128x4xf32> -> vector<128x4xf32>
    %102 = arith.addf %97, %101 : vector<128x4xf32>
    %c25 = arith.constant 25 : index
    %c0_56 = arith.constant 0 : index
    %103 = vector.load %arg10[%c25, %c0_56] : memref<176x128xbf16, #tpu.memory_space<vmem>>, vector<128x128xbf16>
    %cst_57 = arith.constant 0.000000e+00 : bf16
    %104 = vector.broadcast %cst_57 : bf16 to vector<128x128xbf16>
    %105 = vector.shape_cast %64 : vector<128x1xi1> to vector<128x1xi1>
    %106 = vector.broadcast %105 : vector<128x1xi1> to vector<128x128xi1>
    %107 = arith.select %106, %103, %104 : vector<128x128xi1>, vector<128x128xbf16>
    %c5 = arith.constant 5 : index
    %c0_58 = arith.constant 0 : index
    %c0_59 = arith.constant 0 : index
    %108 = vector.load %arg7[%c5, %c0_58, %c0_59] : memref<9x128x4xbf16, #tpu.memory_space<vmem>>, vector<1x128x4xbf16>
    %109 = vector.shape_cast %108 : vector<1x128x4xbf16> to vector<128x4xbf16>
    %cst_60 = arith.constant dense<0.000000e+00> : vector<128x4xf32>
    %110 = tpu.matmul %107, %109, %cst_60 {dimension_numbers = #tpu.dot_dimension_numbers<[1], [0], [0], [1], [0, 0, 1, 1], [], []>} : vector<128x128xbf16>, vector<128x4xbf16>, vector<128x4xf32> -> vector<128x4xf32>
    %111 = arith.addf %102, %110 : vector<128x4xf32>
    %c39 = arith.constant 39 : index
    %c0_61 = arith.constant 0 : index
    %112 = vector.load %arg10[%c39, %c0_61] : memref<176x128xbf16, #tpu.memory_space<vmem>>, vector<128x128xbf16>
    %cst_62 = arith.constant 0.000000e+00 : bf16
    %113 = vector.broadcast %cst_62 : bf16 to vector<128x128xbf16>
    %114 = vector.shape_cast %62 : vector<128x1xi1> to vector<128x1xi1>
    %115 = vector.broadcast %114 : vector<128x1xi1> to vector<128x128xi1>
    %116 = arith.select %115, %112, %113 : vector<128x128xi1>, vector<128x128xbf16>
    %c6 = arith.constant 6 : index
    %c0_63 = arith.constant 0 : index
    %c0_64 = arith.constant 0 : index
    %117 = vector.load %arg7[%c6, %c0_63, %c0_64] : memref<9x128x4xbf16, #tpu.memory_space<vmem>>, vector<1x128x4xbf16>
    %118 = vector.shape_cast %117 : vector<1x128x4xbf16> to vector<128x4xbf16>
    %cst_65 = arith.constant dense<0.000000e+00> : vector<128x4xf32>
    %119 = tpu.matmul %116, %118, %cst_65 {dimension_numbers = #tpu.dot_dimension_numbers<[1], [0], [0], [1], [0, 0, 1, 1], [], []>} : vector<128x128xbf16>, vector<128x4xbf16>, vector<128x4xf32> -> vector<128x4xf32>
    %120 = arith.addf %111, %119 : vector<128x4xf32>
    %c40 = arith.constant 40 : index
    %c0_66 = arith.constant 0 : index
    %121 = vector.load %arg10[%c40, %c0_66] : memref<176x128xbf16, #tpu.memory_space<vmem>>, vector<128x128xbf16>
    %c7_67 = arith.constant 7 : index
    %c0_68 = arith.constant 0 : index
    %c0_69 = arith.constant 0 : index
    %122 = vector.load %arg7[%c7_67, %c0_68, %c0_69] : memref<9x128x4xbf16, #tpu.memory_space<vmem>>, vector<1x128x4xbf16>
    %123 = vector.shape_cast %122 : vector<1x128x4xbf16> to vector<128x4xbf16>
    %cst_70 = arith.constant dense<0.000000e+00> : vector<128x4xf32>
    %124 = tpu.matmul %121, %123, %cst_70 {dimension_numbers = #tpu.dot_dimension_numbers<[1], [0], [0], [1], [0, 0, 1, 1], [], []>} : vector<128x128xbf16>, vector<128x4xbf16>, vector<128x4xf32> -> vector<128x4xf32>
    %125 = arith.addf %120, %124 : vector<128x4xf32>
    %c41 = arith.constant 41 : index
    %c0_71 = arith.constant 0 : index
    %126 = vector.load %arg10[%c41, %c0_71] : memref<176x128xbf16, #tpu.memory_space<vmem>>, vector<128x128xbf16>
    %cst_72 = arith.constant 0.000000e+00 : bf16
    %127 = vector.broadcast %cst_72 : bf16 to vector<128x128xbf16>
    %128 = vector.shape_cast %64 : vector<128x1xi1> to vector<128x1xi1>
    %129 = vector.broadcast %128 : vector<128x1xi1> to vector<128x128xi1>
    %130 = arith.select %129, %126, %127 : vector<128x128xi1>, vector<128x128xbf16>
    %c8_73 = arith.constant 8 : index
    %c0_74 = arith.constant 0 : index
    %c0_75 = arith.constant 0 : index
    %131 = vector.load %arg7[%c8_73, %c0_74, %c0_75] : memref<9x128x4xbf16, #tpu.memory_space<vmem>>, vector<1x128x4xbf16>
    %132 = vector.shape_cast %131 : vector<1x128x4xbf16> to vector<128x4xbf16>
    %cst_76 = arith.constant dense<0.000000e+00> : vector<128x4xf32>
    %133 = tpu.matmul %130, %132, %cst_76 {dimension_numbers = #tpu.dot_dimension_numbers<[1], [0], [0], [1], [0, 0, 1, 1], [], []>} : vector<128x128xbf16>, vector<128x4xbf16>, vector<128x4xf32> -> vector<128x4xf32>
    %134 = arith.addf %125, %133 : vector<128x4xf32>
    %135 = arith.truncf %134 : vector<128x4xf32> to vector<128x4xbf16>
    %c0_77 = arith.constant 0 : index
    %c0_78 = arith.constant 0 : index
    %c0_79 = arith.constant 0 : index
    %136 = vector.load %arg8[%c0_77, %c0_78, %c0_79] : memref<1x128x4xbf16, #tpu.memory_space<vmem>>, vector<1x128x4xbf16>
    %137 = vector.shape_cast %136 : vector<1x128x4xbf16> to vector<128x4xbf16>
    %138 = vector.shape_cast %135 : vector<128x4xbf16> to vector<1x128x4xbf16>
    tpu.vector_store %arg8[%c0_77, %c0_78, %c0_79], %138 {strides = array<i32>} : memref<1x128x4xbf16, #tpu.memory_space<vmem>>, vector<1x128x4xbf16>,
    %139 = arith.extf %135 : vector<128x4xbf16> to vector<128x4xf32>
    %cst_80 = arith.constant dense<0.000000e+00> : vector<4xf32>
    %140 = vector.multi_reduction <add>, %139, %cst_80 [0] : vector<128x4xf32> to vector<4xf32>
    %141 = vector.shape_cast %140 : vector<4xf32> to vector<1x4xf32>
    %142 = arith.mulf %139, %139 : vector<128x4xf32>
    %cst_81 = arith.constant dense<0.000000e+00> : vector<4xf32>
    %143 = vector.multi_reduction <add>, %142, %cst_81 [0] : vector<128x4xf32> to vector<4xf32>
    %144 = vector.shape_cast %143 : vector<4xf32> to vector<1x4xf32>
    %145 = tpu.concatenate %141, %144 in 0 : vector<1x4xf32>, vector<1x4xf32> -> vector<2x4xf32>
    %c0_82 = arith.constant 0 : index
    %c0_83 = arith.constant 0 : index
    %c0_84 = arith.constant 0 : index
    %c0_85 = arith.constant 0 : index
    %146 = vector.load %arg9[%c0_82, %c0_83, %c0_84, %c0_85] : memref<1x1x2x4xf32, #tpu.memory_space<vmem>>, vector<1x1x2x4xf32>
    %147 = vector.shape_cast %146 : vector<1x1x2x4xf32> to vector<2x4xf32>
    %148 = vector.shape_cast %145 : vector<2x4xf32> to vector<1x1x2x4xf32>
    tpu.vector_store %arg9[%c0_82, %c0_83, %c0_84, %c0_85], %148 {strides = array<i32>} : memref<1x1x2x4xf32, #tpu.memory_space<vmem>>, vector<1x1x2x4xf32>,
    return
  }
  func.func @transform_0(%arg0: i32, %arg1: i32) -> (i32, i32, i32) {
    %c0_i32 = arith.constant 0 : i32
    %c0_i32_0 = arith.constant 0 : i32
    return %arg0, %arg1, %c0_i32 : i32, i32, i32
  }
  func.func @transform_1(%arg0: i32, %arg1: i32) -> (i32, i32, i32) {
    %c8_i32 = arith.constant 8 : i32
    %0 = arith.muli %arg1, %c8_i32 : i32
    %c1_i32 = arith.constant 1 : i32
    %1 = arith.subi %0, %c1_i32 : i32
    %c0_i32 = arith.constant 0 : i32
    %2 = arith.maxsi %1, %c0_i32 : i32
    %c0_i32_0 = arith.constant 0 : i32
    %c0_i32_1 = arith.constant 0 : i32
    return %arg0, %2, %c0_i32_0 : i32, i32, i32
  }
  func.func @transform_2(%arg0: i32, %arg1: i32) -> (i32, i32, i32) {
    %c1_i32 = arith.constant 1 : i32
    %0 = arith.addi %arg1, %c1_i32 : i32
    %c8_i32 = arith.constant 8 : i32
    %1 = arith.muli %0, %c8_i32 : i32
    %c15_i32 = arith.constant 15 : i32
    %2 = arith.minsi %1, %c15_i32 : i32
    %c0_i32 = arith.constant 0 : i32
    %c0_i32_0 = arith.constant 0 : i32
    return %arg0, %2, %c0_i32 : i32, i32, i32
  }
  func.func @transform_3(%arg0: i32, %arg1: i32) -> (i32, i32) {
    %c0_i32 = arith.constant 0 : i32
    %c0_i32_0 = arith.constant 0 : i32
    %c0_i32_1 = arith.constant 0 : i32
    return %c0_i32, %c0_i32_0 : i32, i32
  }
  func.func @transform_4(%arg0: i32, %arg1: i32) -> (i32, i32) {
    %c0_i32 = arith.constant 0 : i32
    %c0_i32_0 = arith.constant 0 : i32
    %c0_i32_1 = arith.constant 0 : i32
    return %c0_i32, %c0_i32_0 : i32, i32
  }
  func.func @transform_5(%arg0: i32, %arg1: i32) -> (i32, i32, i32) {
    %c0_i32 = arith.constant 0 : i32
    %c0_i32_0 = arith.constant 0 : i32
    %c0_i32_1 = arith.constant 0 : i32
    %c0_i32_2 = arith.constant 0 : i32
    return %c0_i32, %c0_i32_0, %c0_i32_1 : i32, i32, i32
  }
  func.func @transform_6(%arg0: i32, %arg1: i32) -> (i32, i32, i32) {
    %c0_i32 = arith.constant 0 : i32
    %c0_i32_0 = arith.constant 0 : i32
    return %arg0, %arg1, %c0_i32 : i32, i32, i32
  }
  func.func @transform_7(%arg0: i32, %arg1: i32) -> (i32, i32, i32, i32) {
    %c0_i32 = arith.constant 0 : i32
    %c0_i32_0 = arith.constant 0 : i32
    %c0_i32_1 = arith.constant 0 : i32
    return %arg0, %arg1, %c0_i32, %c0_i32_0 : i32, i32, i32, i32
  }
}

</mosaic_0001>

<bundles_post_ra>
// kernel: denseblock_forward.6
= control target key start
LH: loop header
LB: loop body
LE: loop exit
PB: predicated region body
PF: predicated region fallthrough
CT: control target
= control target key end

     0   :  { %s1291_s18 = smov 0   ;;  %s1488_s0 = inlined_call_operand.vmem [shape: f32[512,4], index: 0, kind: input, shape index: {}]   ;;  %s1489_s1 = inlined_call_operand.vmem [shape: f32[1,4], index: 1, kind: input, shape index: {}]   ;;  %s1490_s2 = inlined_call_operand.vmem [shape: f32[1,4], index: 2, kind: input, shape index: {}]   ;;  %s1491_s3 = inlined_call_operand.vmem [shape: bf16[4,128], index: 3, kind: input, shape index: {}]   ;;  %s1492_s4 = inlined_call_operand.vmem [shape: bf16[512,128], index: 4, kind: output, shape index: {0}]   ;;  %s1493_s5 = inlined_call_operand.vmem [shape: f32[2,2,128], index: 5, kind: output, shape index: {1}]  }
   0x1 LB: > { %s1297_s19 = sadd.s32 4294967295, %s1259_s18   ;;  %p1005_p0 = scmp.ge.s32.totalorder %s1259_s18, 1  ;;  %s1259_s18 = sphi %s1291_s18, %s16_s18  }
   0x2   : > { %p191_p1 = scmp.lt.s32.totalorder %s1259_s18, 3 }
   0x4   : > { %p192_p2 = pnand %p1005_p0, %p191_p1 }
   0x5   : > { %v398_v0 = vld [vmem:[%s1491_s3] sm:$0x3] (!%p192_p2)  ;;  %vm448_vm0 = vcmask (!%p192_p2), 1041408   ;;  %s1006_s22 = sshll.u32 (!%p192_p2), %s1297_s19, 5  ;;  %vm399_vm1 = vcmask (!%p192_p2), 31744   ;;  %p235_p4 = scmp.lt.s32.totalorder (!%p192_p2), %s1297_s19, 1 }
   0x6   : > { %195 = sbr.rel (%p192_p2) target bundleno = 325 (0x145), region = 36  ;;  %1243 = vmatprep.subr.msk.bf16.mxu0 (!%p192_p2), %vm448_vm0, %v398_v0  ;;  %v450_v1 = vsel (!%p192_p2), %vm448_vm0, %v398_v0, 0  ;;  %p224_p3 = scmp.lt.s32.totalorder (!%p192_p2), %s1006_s22, 63  ;;  %1244 = vmatprep.subr.msk.bf16.mxu1 (!%p192_p2), %vm448_vm0, %v398_v0  ;;  %v1311_v2 = vld [vmem:[%s1489_s1] ss:$0 sm:$0xff] (!%p192_p2)  ;;  %vm911_vm2 = vcmask (!%p192_p2), 1040384  }
   0x7   : > { %1208 = vmatpush3.bf16.msra.mxu0 (!%p192_p2), %v450_v1  ;;  %1242 = vmatpush3.bf16.msra.mxu1 (!%p192_p2), %v450_v1  ;;  %v1321_v3 = vld [vmem:[%s1490_s2] ss:$0 sm:$0xff] (!%p192_p2) }
   0xd   : > { %s1495_s22 = smov (!%p224_p3, %s1006_s22), 63  ;;  %s1497_s19 = smov (!%p235_p4, %s1297_s19), 1 }
   0xe   : > { %s1007_s23 = sshll.u32 %s1495_s22, 3  ;;  %s1009_s6 = sshll.u32 %s1495_s22, 2 }
   0xf   : > { %s1316_s28 = scalar_lea.vmem %s1488_s0, %s1007_s23  ;;  %s1442_s9 = scalar_lea.vmem %s1492_s4, %s1009_s6 }
  0x10   : > { %v240_v4 = vld [vmem:[%s1316_s28] sm:$0xff]  ;;  %v241_v5 = vld [vmem:[%s1316_s28 + $0x8] sm:$0xff]  ;;  %v242_v6 = vld [vmem:[%s1316_s28 + $0x10] sm:$0xff]  ;;  %s1010_s10 = sshll.u32 %s1497_s19, 1 }
  0x11   : > { %v279_v7 = vmul.f32 %v1311_v2, %v240_v4  ;;  %v280_v8 = vmul.f32 %v1311_v2, %v241_v5  ;;  %v243_v9 = vld [vmem:[%s1316_s28 + $0x18] sm:$0xff]  ;;  %v281_v10 = vmul.f32 %v1311_v2, %v242_v6  ;;  %v244_v11 = vld [vmem:[%s1316_s28 + $0x20] sm:$0xff]  ;;  %v245_v12 = vld [vmem:[%s1316_s28 + $0x28] sm:$0xff]  ;;  %s238_s13 = scalar_lea.vmem %s1493_s5, %s1010_s10 }
  0x12   : > { %v282_v13 = vmul.f32 %v1311_v2, %v243_v9  ;;  %v283_v14 = vmul.f32 %v1311_v2, %v244_v11  ;;  %v284_v15 = vmul.f32 %v1311_v2, %v245_v12  ;;  %v246_v16 = vld [vmem:[%s1316_s28 + $0x30] sm:$0xff]  ;;  %v247_v17 = vld [vmem:[%s1316_s28 + $0x38] sm:$0xff]  ;;  %v248_v26 = vld [vmem:[%s1316_s28 + $0x40] sm:$0xff] }
  0x13   : > { %v318_v18 = vadd.f32 %v1321_v3, %v279_v7  ;;  %v319_v19 = vadd.f32 %v1321_v3, %v280_v8  ;;  %v320_v20 = vadd.f32 %v1321_v3, %v281_v10  ;;  %v285_v21 = vmul.f32 %v1311_v2, %v246_v16  ;;  %v249_v27 = vld [vmem:[%s1316_s28 + $0x48] sm:$0xff]  ;;  %v250_v32 = vld [vmem:[%s1316_s28 + $0x50] sm:$0xff]  ;;  %v251_v37 = vld [vmem:[%s1316_s28 + $0x58] sm:$0xff] }
  0x14   : > { %v321_v22 = vadd.f32 %v1321_v3, %v282_v13  ;;  %v322_v23 = vadd.f32 %v1321_v3, %v283_v14  ;;  %v323_v24 = vadd.f32 %v1321_v3, %v284_v15  ;;  %v286_v25 = vmul.f32 %v1311_v2, %v247_v17  ;;  %v252_v38 = vld [vmem:[%s1316_s28 + $0x60] sm:$0xff]  ;;  %v253_v43 = vld [vmem:[%s1316_s28 + $0x68] sm:$0xff]  ;;  %v254_v44 = vld [vmem:[%s1316_s28 + $0x70] sm:$0xff] }
  0x15   : > { %v350_v28 = vmax.f32 %v318_v18, 0.0  ;;  %v351_v29 = vmax.f32 %v319_v19, 0.0  ;;  %v352_v30 = vmax.f32 %v320_v20, 0.0  ;;  %v324_v31 = vadd.f32 %v1321_v3, %v285_v21  ;;  %v255_v53 = vld [vmem:[%s1316_s28 + $0x78] sm:$0xff]  ;;  %v256_v57 = vld [vmem:[%s1316_s28 + $0x80] sm:$0xff]  ;;  %v257_v62 = vld [vmem:[%s1316_s28 + $0x88] sm:$0xff] }
  0x16   : > { %v353_v33 = vmax.f32 %v321_v22, 0.0  ;;  %v354_v34 = vmax.f32 %v322_v23, 0.0  ;;  %v355_v35 = vmax.f32 %v323_v24, 0.0  ;;  %v325_v36 = vadd.f32 %v1321_v3, %v286_v25  ;;  %v258_v1 = vld [vmem:[%s1316_s28 + $0x90] sm:$0xff]  ;;  %v259_v4 = vld [vmem:[%s1316_s28 + $0x98] sm:$0xff]  ;;  %v260_v8 = vld [vmem:[%s1316_s28 + $0xa0] sm:$0xff] }
  0x17   : > { %v382_v39 = vpack.c.bf16 %v351_v29, %v350_v28  ;;  %v356_v40 = vmax.f32 %v324_v31, 0.0  ;;  %v287_v41 = vmul.f32 %v1311_v2, %v248_v26  ;;  %v288_v42 = vmul.f32 %v1311_v2, %v249_v27  ;;  %v261_v13 = vld [vmem:[%s1316_s28 + $0xa8] sm:$0xff]  ;;  %v262_v18 = vld [vmem:[%s1316_s28 + $0xb0] sm:$0xff]  ;;  %v263_v23 = vld [vmem:[%s1316_s28 + $0xb8] sm:$0xff] }
  0x18   : > { %v383_v45 = vpack.c.bf16 %v353_v33, %v352_v30  ;;  %v384_v46 = vpack.c.bf16 %v355_v35, %v354_v34  ;;  %v357_v47 = vmax.f32 %v325_v36, 0.0  ;;  %v289_v48 = vmul.f32 %v1311_v2, %v250_v32  ;;  %v264_v28 = vld [vmem:[%s1316_s28 + $0xc0] sm:$0xff]  ;;  %v265_v33 = vld [vmem:[%s1316_s28 + $0xc8] sm:$0xff] }
  0x19   : > { %1209 = vmatprep.mubr.msk.bf16.mxu0 %vm399_vm1, %v382_v39  ;;  %v326_v49 = vadd.f32 %v1321_v3, %v287_v41  ;;  %v327_v50 = vadd.f32 %v1321_v3, %v288_v42  ;;  %v290_v51 = vmul.f32 %v1311_v2, %v251_v37  ;;  %v291_v52 = vmul.f32 %v1311_v2, %v252_v38  ;;  %v266_v38 = vld [vmem:[%s1316_s28 + $0xd0] sm:$0xff] }
  0x1a   : > { %1210 = vmatmul.mubr.msk.bf16.vlgmr.msra.gmra.mrb[0].mxu0 %vm399_vm1, %v383_v45  ;;  %v328_v54 = vadd.f32 %v1321_v3, %v289_v48  ;;  %v292_v55 = vmul.f32 %v1311_v2, %v253_v43  ;;  %v293_v56 = vmul.f32 %v1311_v2, %v254_v44  ;;  %v294_v0 = vmul.f32 %v1311_v2, %v255_v53  ;;  %v267_v43 = vld [vmem:[%s1316_s28 + $0xd8] sm:$0xff]  ;;  %v268_v48 = vld [vmem:[%s1316_s28 + $0xe0] sm:$0xff] }
  0x1b   : > { %1213 = vmatprep.mubr.msk.bf16.mxu0 %vm399_vm1, %v384_v46  ;;  %v358_v58 = vmax.f32 %v326_v49, 0.0  ;;  %v359_v59 = vmax.f32 %v327_v50, 0.0  ;;  %v329_v60 = vadd.f32 %v1321_v3, %v290_v51  ;;  %v330_v61 = vadd.f32 %v1321_v3, %v291_v52  ;;  %v269_v49 = vld [vmem:[%s1316_s28 + $0xe8] sm:$0xff] }
  0x1c   : > { %v331_v63 = vadd.f32 %v1321_v3, %v292_v55  ;;  %v385_v5 = vpack.c.bf16 %v357_v47, %v356_v40  ;;  %v360_v6 = vmax.f32 %v328_v54, 0.0  ;;  %v295_v7 = vmul.f32 %v1311_v2, %v256_v57 }
  0x1d   : > { %v386_v9 = vpack.c.bf16 %v359_v59, %v358_v58  ;;  %v361_v10 = vmax.f32 %v329_v60, 0.0  ;;  %v1379_v11 = vadd.f32 %v1321_v3, %v293_v56  ;;  %v296_v12 = vmul.f32 %v1311_v2, %v257_v62 }
  0x1e   : > { %v362_v14 = vmax.f32 %v330_v61, 0.0  ;;  %v334_v15 = vadd.f32 %v1321_v3, %v295_v7  ;;  %v297_v16 = vmul.f32 %v1311_v2, %v258_v1  ;;  %v298_v17 = vmul.f32 %v1311_v2, %v259_v4 }
  0x1f   : > { %v363_v19 = vmax.f32 %v331_v63, 0.0  ;;  %v333_v20 = vadd.f32 %v1321_v3, %v294_v0  ;;  %v335_v21 = vadd.f32 %v1321_v3, %v296_v12  ;;  %v299_v22 = vmul.f32 %v1311_v2, %v260_v8  ;;  %v270_v8 = vld [vmem:[%s1316_s28 + $0xf0] sm:$0xff] }
  0x20   : > { %v366_v24 = vmax.f32 %v334_v15, 0.0  ;;  %v336_v25 = vadd.f32 %v1321_v3, %v297_v16  ;;  %v337_v26 = vadd.f32 %v1321_v3, %v298_v17  ;;  %v300_v27 = vmul.f32 %v1311_v2, %v261_v13 }
  0x21   : > { %v387_v29 = vpack.c.bf16 %v361_v10, %v360_v6  ;;  %v367_v30 = vmax.f32 %v335_v21, 0.0  ;;  %v338_v31 = vadd.f32 %v1321_v3, %v299_v22  ;;  %v301_v32 = vmul.f32 %v1311_v2, %v262_v18 }
  0x22   : > { %1214 = vmatmul.mubr.msk.bf16.gmra.mrb[4].mxu0 %vm399_vm1, %v385_v5  ;;  %v368_v34 = vmax.f32 %v336_v25, 0.0  ;;  %v369_v35 = vmax.f32 %v337_v26, 0.0  ;;  %v339_v36 = vadd.f32 %v1321_v3, %v300_v27  ;;  %v302_v37 = vmul.f32 %v1311_v2, %v263_v23 }
  0x23   : > { %1217 = vmatprep.mubr.msk.bf16.mxu0 %vm399_vm1, %v386_v9  ;;  %v390_v39 = vpack.c.bf16 %v367_v30, %v366_v24  ;;  %v370_v40 = vmax.f32 %v338_v31, 0.0  ;;  %v340_v41 = vadd.f32 %v1321_v3, %v301_v32  ;;  %v303_v42 = vmul.f32 %v1311_v2, %v264_v28  ;;  %v271_v9 = vld [vmem:[%s1316_s28 + $0xf8] sm:$0xff] }
  0x24   : > { %v391_v44 = vpack.c.bf16 %v369_v35, %v368_v34  ;;  %v371_v45 = vmax.f32 %v339_v36, 0.0  ;;  %v341_v46 = vadd.f32 %v1321_v3, %v302_v37  ;;  %v304_v47 = vmul.f32 %v1311_v2, %v265_v33 }
  0x25   : > { %v388_v50 = vpack.c.bf16 %v363_v19, %v362_v14  ;;  %1225 = vmatprep.mubr.msk.bf16.mxu1 %vm399_vm1, %v390_v39  ;;  %v372_v51 = vmax.f32 %v340_v41, 0.0  ;;  %v342_v52 = vadd.f32 %v1321_v3, %v303_v42  ;;  %v305_v53 = vmul.f32 %v1311_v2, %v266_v38 }
  0x26   : > { %1226 = vmatmul.mubr.msk.bf16.vlgmr.msra.gmra.mrb[0].mxu1 %vm399_vm1, %v391_v44  ;;  %v392_v54 = vpack.c.bf16 %v371_v45, %v370_v40  ;;  %v373_v55 = vmax.f32 %v341_v46, 0.0  ;;  %v343_v56 = vadd.f32 %v1321_v3, %v304_v47  ;;  %v306_v57 = vmul.f32 %v1311_v2, %v267_v43 }
  0x27   : > { %v374_v58 = vmax.f32 %v342_v52, 0.0  ;;  %v307_v59 = vmul.f32 %v1311_v2, %v268_v48  ;;  %v308_v60 = vmul.f32 %v1311_v2, %v269_v49  ;;  %v364_v62 = vmax.f32 %v1379_v11, 0.0 }
  0x28   : > { %1229 = vmatprep.mubr.msk.bf16.mxu1 %vm399_vm1, %v392_v54  ;;  %v375_v61 = vmax.f32 %v343_v56, 0.0  ;;  %v365_v63 = vmax.f32 %v333_v20, 0.0  ;;  %v393_v0 = vpack.c.bf16 %v373_v55, %v372_v51  ;;  %v344_v1 = vadd.f32 %v1321_v3, %v305_v53 }
  0x29   : > { %v345_v4 = vadd.f32 %v1321_v3, %v306_v57  ;;  %v346_v6 = vadd.f32 %v1321_v3, %v307_v59  ;;  %v347_v7 = vadd.f32 %v1321_v3, %v308_v60  ;;  %v309_v13 = vmul.f32 %v1311_v2, %v270_v8 }
  0x2a   : > { %1218 = vmatmul.mubr.msk.bf16.gmra.mrb[8].mxu0 %vm399_vm1, %v387_v29  ;;  %v394_v5 = vpack.c.bf16 %v375_v61, %v374_v58  ;;  %v389_v10 = vpack.c.bf16 %v365_v63, %v364_v62  ;;  %v376_v12 = vmax.f32 %v344_v1, 0.0  ;;  %v310_v14 = vmul.f32 %v1311_v2, %v271_v9 }
  0x2b   : > { %1221 = vmatprep.mubr.msk.bf16.mxu0 %vm399_vm1, %v388_v50  ;;  %v377_v11 = vmax.f32 %v345_v4, 0.0  ;;  %v378_v15 = vmax.f32 %v346_v6, 0.0  ;;  %v379_v16 = vmax.f32 %v347_v7, 0.0  ;;  %v348_v18 = vadd.f32 %v1321_v3, %v309_v13 }
  0x2c   : > { %v349_v19 = vadd.f32 %v1321_v3, %v310_v14 }
  0x2d   : > { %v395_v17 = vpack.c.bf16 %v377_v11, %v376_v12  ;;  %v396_v20 = vpack.c.bf16 %v379_v16, %v378_v15  ;;  %v380_v21 = vmax.f32 %v348_v18, 0.0 }
  0x2e   : > { %1230 = vmatmul.mubr.msk.bf16.gmra.mrb[4].mxu1 %vm399_vm1, %v393_v0  ;;  %v381_v22 = vmax.f32 %v349_v19, 0.0 }
  0x2f   : > { %1233 = vmatprep.mubr.msk.bf16.mxu1 %vm399_vm1, %v394_v5 }
  0x30   : > { %v397_v23 = vpack.c.bf16 %v381_v22, %v380_v21 }
  0x32   : > { %1222 = vmatmul.mubr.msk.bf16.gmra.mrb[12].mxu0 %vm399_vm1, %v389_v10 }
  0x36   : > { %1234 = vmatmul.mubr.msk.bf16.gmra.mrb[8].mxu1 %vm399_vm1, %v395_v17 }
  0x37   : > { %1237 = vmatprep.mubr.msk.bf16.mxu1 %vm399_vm1, %v396_v20 }
  0x3e   : > { %1238 = vmatmul.mubr.msk.bf16.gmra.mrb[12].mxu1 %vm399_vm1, %v397_v23 }
  0xed   : > { %v1211_v2 = vpop.f32.mrb[0].mxu0 }
  0xee   : > { %v486_v24 = vpop.f32.mrb[1].mxu0 }
  0xef   : > { %v1212_v3 = vpop.f32.mrb[2].mxu0 }
  0xf0   : > { %v614_v25 = vpack.c.bf16 %v1212_v3, %v1211_v2  ;;  %v489_v26 = vpop.f32.mrb[3].mxu0 }
  0xf1   : > { %v613_v27 = vpack.c.bf16 %v489_v26, %v486_v24 }
  0xf2   : > { %1175 = vst [vmem:[%s1442_s9 + $0x8] sm:$0xff] %v614_v25   ;;  %v775_v28 = vunpack.c.l.bf16 %v614_v25  ;;  %v776_v31 = vunpack.c.h.bf16 %v614_v25 }
  0xf3   : > { %1099 = vst [vmem:[%s1442_s9] sm:$0xff] %v613_v27   ;;  %v773_v29 = vunpack.c.l.bf16 %v613_v27  ;;  %v774_v30 = vunpack.c.h.bf16 %v613_v27 }
  0xf4   : > { %v844_v37 = vmul.f32 %v775_v28, %v775_v28  ;;  %v845_v43 = vmul.f32 %v776_v31, %v776_v31 }
  0xf5   : > { %v805_v32 = vadd.f32 %v774_v30, %v773_v29  ;;  %v842_v33 = vmul.f32 %v773_v29, %v773_v29  ;;  %v843_v34 = vmul.f32 %v774_v30, %v774_v30  ;;  %v1215_v35 = vpop.f32.mrb[4].mxu0 }
  0xf6   : > { %v502_v36 = vpop.f32.mrb[5].mxu0 }
  0xf7   : > { %v806_v38 = vadd.f32 %v805_v32, %v775_v28  ;;  %v874_v39 = vadd.f32 %v843_v34, %v842_v33  ;;  %v1216_v40 = vpop.f32.mrb[6].mxu0 }
  0xf8   : > { %v616_v41 = vpack.c.bf16 %v1216_v40, %v1215_v35  ;;  %v505_v42 = vpop.f32.mrb[7].mxu0 }
  0xf9   : > { %v875_v44 = vadd.f32 %v874_v39, %v844_v37  ;;  %v615_v45 = vpack.c.bf16 %v505_v42, %v502_v36  ;;  %v807_v46 = vadd.f32 %v806_v38, %v776_v31  ;;  %v1227_v47 = vpop.f32.mrb[0].mxu1 }
  0xfa   : > { %1177 = vst [vmem:[%s1442_s9 + $0x18] sm:$0xff] %v616_v41   ;;  %v550_v51 = vpop.f32.mrb[1].mxu1  ;;  %v779_v53 = vunpack.c.l.bf16 %v616_v41  ;;  %v780_v59 = vunpack.c.h.bf16 %v616_v41 }
  0xfb   : > { %1176 = vst [vmem:[%s1442_s9 + $0x10] sm:$0xff] %v615_v45   ;;  %v777_v48 = vunpack.c.l.bf16 %v615_v45  ;;  %v778_v49 = vunpack.c.h.bf16 %v615_v45  ;;  %v876_v50 = vadd.f32 %v875_v44, %v845_v43  ;;  %v1228_v52 = vpop.f32.mrb[2].mxu1 }
  0xfc   : > { %v1448_v57 = vpack.c.bf16 %v1228_v52, %v1227_v47  ;;  %v553_v58 = vpop.f32.mrb[3].mxu1  ;;  %v848_v6 = vmul.f32 %v779_v53, %v779_v53  ;;  %v849_v10 = vmul.f32 %v780_v59, %v780_v59 }
  0xfd   : > { %v808_v54 = vadd.f32 %v807_v46, %v777_v48  ;;  %v846_v55 = vmul.f32 %v777_v48, %v777_v48  ;;  %v1219_v56 = vpop.f32.mrb[8].mxu0  ;;  %v1450_v61 = vpack.c.bf16 %v553_v58, %v550_v51  ;;  %v847_v63 = vmul.f32 %v778_v49, %v778_v49 }
  0xfe   : > { %v518_v60 = vpop.f32.mrb[9].mxu0  ;;  %1183 = vst [vmem:[%s1442_s9 + $0x48] sm:$0xff] %v1448_v57  }
  0xff   : > { %v809_v62 = vadd.f32 %v808_v54, %v778_v49  ;;  %v877_v0 = vadd.f32 %v876_v50, %v846_v55  ;;  %v1220_v1 = vpop.f32.mrb[10].mxu0  ;;  %1182 = vst [vmem:[%s1442_s9 + $0x40] sm:$0xff] %v1450_v61  }
 0x100   : > { %v618_v4 = vpack.c.bf16 %v1220_v1, %v1219_v56  ;;  %v521_v5 = vpop.f32.mrb[11].mxu0 }
 0x101   : > { %v810_v7 = vadd.f32 %v809_v62, %v779_v53  ;;  %v878_v8 = vadd.f32 %v877_v0, %v847_v63  ;;  %v617_v9 = vpack.c.bf16 %v521_v5, %v518_v60  ;;  %v1231_v12 = vpop.f32.mrb[4].mxu1  ;;  %v790_v0 = vunpack.c.h.bf16 %v1450_v61 }
 0x102   : > { %1179 = vst [vmem:[%s1442_s9 + $0x28] sm:$0xff] %v618_v4   ;;  %v566_v16 = vpop.f32.mrb[5].mxu1  ;;  %v783_v18 = vunpack.c.l.bf16 %v618_v4  ;;  %v784_v2 = vunpack.c.h.bf16 %v618_v4  ;;  %v791_v5 = vunpack.c.l.bf16 %v1448_v57 }
 0x103   : > { %v879_v11 = vadd.f32 %v878_v8, %v848_v6  ;;  %1178 = vst [vmem:[%s1442_s9 + $0x20] sm:$0xff] %v617_v9   ;;  %v781_v13 = vunpack.c.l.bf16 %v617_v9  ;;  %v782_v14 = vunpack.c.h.bf16 %v617_v9  ;;  %v811_v15 = vadd.f32 %v810_v7, %v780_v59  ;;  %v1232_v17 = vpop.f32.mrb[6].mxu1 }
 0x104   : > { %v569_v23 = vpop.f32.mrb[7].mxu1  ;;  %v1458_v3 = vpack.c.bf16 %v1232_v17, %v1231_v12  ;;  %v852_v32 = vmul.f32 %v783_v18, %v783_v18  ;;  %v853_v36 = vmul.f32 %v784_v2, %v784_v2  ;;  %v789_v59 = vunpack.c.l.bf16 %v1450_v61 }
 0x105   : > { %v812_v19 = vadd.f32 %v811_v15, %v781_v13  ;;  %v850_v20 = vmul.f32 %v781_v13, %v781_v13  ;;  %v880_v21 = vadd.f32 %v879_v11, %v849_v10  ;;  %v1223_v22 = vpop.f32.mrb[12].mxu0  ;;  %v1460_v25 = vpack.c.bf16 %v569_v23, %v566_v16 }
 0x106   : > { %v534_v24 = vpop.f32.mrb[13].mxu0  ;;  %v851_v27 = vmul.f32 %v782_v14, %v782_v14  ;;  %1185 = vst [vmem:[%s1442_s9 + $0x58] sm:$0xff] %v1458_v3   ;;  %v858_v8 = vmul.f32 %v789_v59, %v789_v59  ;;  %v792_v13 = vunpack.c.h.bf16 %v1448_v57  ;;  %v859_v15 = vmul.f32 %v790_v0, %v790_v0 }
 0x107   : > { %v813_v26 = vadd.f32 %v812_v19, %v782_v14  ;;  %v881_v28 = vadd.f32 %v880_v21, %v850_v20  ;;  %v1224_v29 = vpop.f32.mrb[14].mxu0  ;;  %1184 = vst [vmem:[%s1442_s9 + $0x50] sm:$0xff] %v1460_v25   ;;  %v860_v61 = vmul.f32 %v791_v5, %v791_v5  ;;  %v793_v19 = vunpack.c.l.bf16 %v1460_v25 }
 0x108   : > { %v620_v30 = vpack.c.bf16 %v1224_v29, %v1223_v22  ;;  %v537_v31 = vpop.f32.mrb[15].mxu0  ;;  %v861_v20 = vmul.f32 %v792_v13, %v792_v13  ;;  %v794_v22 = vunpack.c.h.bf16 %v1460_v25 }
 0x109   : > { %v814_v33 = vadd.f32 %v813_v26, %v783_v18  ;;  %v882_v34 = vadd.f32 %v881_v28, %v851_v27  ;;  %v619_v35 = vpack.c.bf16 %v537_v31, %v534_v24  ;;  %v1235_v37 = vpop.f32.mrb[8].mxu1  ;;  %v862_v26 = vmul.f32 %v793_v19, %v793_v19 }
 0x10a   : > { %1181 = vst [vmem:[%s1442_s9 + $0x38] sm:$0xff] %v620_v30   ;;  %v582_v42 = vpop.f32.mrb[9].mxu1  ;;  %v787_v44 = vunpack.c.l.bf16 %v620_v30  ;;  %v788_v51 = vunpack.c.h.bf16 %v620_v30  ;;  %v796_v27 = vunpack.c.h.bf16 %v1458_v3  ;;  %v863_v29 = vmul.f32 %v794_v22, %v794_v22 }
 0x10b   : > { %v883_v38 = vadd.f32 %v882_v34, %v852_v32  ;;  %1180 = vst [vmem:[%s1442_s9 + $0x30] sm:$0xff] %v619_v35   ;;  %v785_v39 = vunpack.c.l.bf16 %v619_v35  ;;  %v786_v40 = vunpack.c.h.bf16 %v619_v35  ;;  %v815_v41 = vadd.f32 %v814_v33, %v784_v2  ;;  %v1236_v43 = vpop.f32.mrb[10].mxu1 }
 0x10c   : > { %v585_v48 = vpop.f32.mrb[11].mxu1  ;;  %v626_v49 = vpack.c.bf16 %v1236_v43, %v1235_v37  ;;  %v856_v55 = vmul.f32 %v787_v44, %v787_v44  ;;  %v857_v62 = vmul.f32 %v788_v51, %v788_v51  ;;  %v795_v2 = vunpack.c.l.bf16 %v1458_v3 }
 0x10d   : > { %v816_v45 = vadd.f32 %v815_v41, %v785_v39  ;;  %v854_v46 = vmul.f32 %v785_v39, %v785_v39  ;;  %v884_v47 = vadd.f32 %v883_v38, %v853_v36  ;;  %v625_v50 = vpack.c.bf16 %v585_v48, %v582_v42 }
 0x10e   : > { %v855_v53 = vmul.f32 %v786_v40, %v786_v40  ;;  %1187 = vst [vmem:[%s1442_s9 + $0x68] sm:$0xff] %v626_v49   ;;  %v864_v31 = vmul.f32 %v795_v2, %v795_v2  ;;  %v865_v35 = vmul.f32 %v796_v27, %v796_v27  ;;  %v799_v25 = vunpack.c.l.bf16 %v626_v49 }
 0x10f   : > { %v817_v52 = vadd.f32 %v816_v45, %v786_v40  ;;  %v885_v54 = vadd.f32 %v884_v47, %v854_v46  ;;  %1186 = vst [vmem:[%s1442_s9 + $0x60] sm:$0xff] %v625_v50   ;;  %v797_v34 = vunpack.c.l.bf16 %v625_v50  ;;  %v798_v37 = vunpack.c.h.bf16 %v625_v50 }
 0x110   : > { %v800_v42 = vunpack.c.h.bf16 %v626_v49  ;;  %v868_v3 = vmul.f32 %v799_v25, %v799_v25 }
 0x111   : > { %v818_v56 = vadd.f32 %v817_v52, %v787_v44  ;;  %v886_v58 = vadd.f32 %v885_v54, %v855_v53  ;;  %v1239_v60 = vpop.f32.mrb[12].mxu1  ;;  %v866_v40 = vmul.f32 %v797_v34, %v797_v34  ;;  %v867_v44 = vmul.f32 %v798_v37, %v798_v37 }
 0x112   : > { %v598_v4 = vpop.f32.mrb[13].mxu1 }
 0x113   : > { %v887_v63 = vadd.f32 %v886_v58, %v856_v55  ;;  %v819_v1 = vadd.f32 %v818_v56, %v788_v51  ;;  %v1240_v6 = vpop.f32.mrb[14].mxu1  ;;  %v869_v51 = vmul.f32 %v800_v42, %v800_v42 }
 0x114   : > { %v628_v10 = vpack.c.bf16 %v1240_v6, %v1239_v60  ;;  %v601_v12 = vpop.f32.mrb[15].mxu1 }
 0x115   : > { %v820_v7 = vadd.f32 %v819_v1, %v789_v59  ;;  %v888_v9 = vadd.f32 %v887_v63, %v857_v62  ;;  %v627_v11 = vpack.c.bf16 %v601_v12, %v598_v4 }
 0x116   : > { %1189 = vst [vmem:[%s1442_s9 + $0x78] sm:$0xff] %v628_v10   ;;  %v803_v55 = vunpack.c.l.bf16 %v628_v10  ;;  %v804_v59 = vunpack.c.h.bf16 %v628_v10 }
 0x117   : > { %v821_v14 = vadd.f32 %v820_v7, %v790_v0  ;;  %v889_v16 = vadd.f32 %v888_v9, %v858_v8  ;;  %1188 = vst [vmem:[%s1442_s9 + $0x70] sm:$0xff] %v627_v11   ;;  %v801_v48 = vunpack.c.l.bf16 %v627_v11  ;;  %v802_v53 = vunpack.c.h.bf16 %v627_v11 }
 0x118   : > { %v872_v63 = vmul.f32 %v803_v55, %v803_v55  ;;  %v873_v4 = vmul.f32 %v804_v59, %v804_v59 }
 0x119   : > { %v822_v17 = vadd.f32 %v821_v14, %v791_v5  ;;  %v890_v18 = vadd.f32 %v889_v16, %v859_v15  ;;  %v870_v56 = vmul.f32 %v801_v48, %v801_v48  ;;  %v871_v49 = vmul.f32 %v802_v53, %v802_v53 }
 0x11b   : > { %v891_v21 = vadd.f32 %v890_v18, %v860_v61  ;;  %v823_v23 = vadd.f32 %v822_v17, %v792_v13 }
 0x11d   : > { %v824_v24 = vadd.f32 %v823_v23, %v793_v19  ;;  %v892_v57 = vadd.f32 %v891_v21, %v861_v20 }
 0x11f   : > { %v825_v28 = vadd.f32 %v824_v24, %v794_v22  ;;  %v893_v30 = vadd.f32 %v892_v57, %v862_v26 }
 0x121   : > { %v826_v32 = vadd.f32 %v825_v28, %v795_v2  ;;  %v894_v33 = vadd.f32 %v893_v30, %v863_v29 }
 0x123   : > { %v895_v36 = vadd.f32 %v894_v33, %v864_v31  ;;  %v827_v38 = vadd.f32 %v826_v32, %v796_v27 }
 0x125   : > { %v828_v39 = vadd.f32 %v827_v38, %v797_v34  ;;  %v896_v41 = vadd.f32 %v895_v36, %v865_v35 }
 0x127   : > { %v829_v43 = vadd.f32 %v828_v39, %v798_v37  ;;  %v897_v45 = vadd.f32 %v896_v41, %v866_v40 }
 0x129   : > { %v830_v46 = vadd.f32 %v829_v43, %v799_v25  ;;  %v898_v47 = vadd.f32 %v897_v45, %v867_v44 }
 0x12b   : > { %v899_v52 = vadd.f32 %v898_v47, %v868_v3  ;;  %v831_v54 = vadd.f32 %v830_v46, %v800_v42 }
 0x12d   : > { %v832_v50 = vadd.f32 %v831_v54, %v801_v48  ;;  %v900_v58 = vadd.f32 %v899_v52, %v869_v51 }
 0x12f   : > { %v833_v60 = vadd.f32 %v832_v50, %v802_v53  ;;  %v901_v62 = vadd.f32 %v900_v58, %v870_v56 }
 0x131   : > { %v834_v0 = vadd.f32 %v833_v60, %v803_v55  ;;  %v902_v1 = vadd.f32 %v901_v62, %v871_v49 }
 0x133   : > { %v835_v5 = vadd.f32 %v834_v0, %v804_v59  ;;  %v903_v6 = vadd.f32 %v902_v1, %v872_v63 }
 0x135   : > { %v836_v7 = vrot.slane %v835_v5, 4  ;;  %v904_v8 = vadd.f32 %v903_v6, %v873_v4 }
 0x137   : > { %v837_v9 = vadd.f32 %v836_v7, %v835_v5  ;;  %v905_v12 = vrot.slane %v904_v8, 4 }
 0x139   : > { %v838_v11 = vrot.slane %v837_v9, 2  ;;  %v906_v13 = vadd.f32 %v905_v12, %v904_v8 }
 0x13b   : > { %v839_v14 = vadd.f32 %v838_v11, %v837_v9  ;;  %v907_v10 = vrot.slane %v906_v13, 2 }
 0x13d   : > { %v840_v15 = vrot.slane %v839_v14, 1  ;;  %v908_v16 = vadd.f32 %v907_v10, %v906_v13 }
 0x13f   : > { %v909_v61 = vrot.slane %v908_v16, 1  ;;  %v841_v17 = vadd.f32 %v840_v15, %v839_v14 }
 0x141   : > { %v910_v18 = vadd.f32 %v909_v61, %v908_v16 }
 0x143   : > { %v912_v19 = vsel %vm911_vm2, %v841_v17, %v910_v18 }
 0x144   : > { %913 = vst [vmem:[%s238_s13] sm:$0x3] %v912_v19 }
 0x145 PF: > { %s16_s18 = sadd.s32 1, %s1259_s18  }
 0x146   : > { %p13_p5 = scmp.ge.s32.totalorder %s16_s18, 4  }
 0x148   :  { %15 = sbr.rel (!%p13_p5) target bundleno = 1 (0x1), region = 78 }

// kernel: denseblock_forward.7
= control target key start
LH: loop header
LB: loop body
LE: loop exit
PB: predicated region body
PF: predicated region fallthrough
CT: control target
= control target key end

     0   :  { %s5002_s24 = smov 0   ;;  %s5004_s25 = smov 0   ;;  %s6211_s0 = inlined_call_operand.vmem [shape: bf16[2,256,128], index: 0, kind: input, shape index: {}, may-alias: {0,1,2}]   ;;  %s6212_s1 = inlined_call_operand.vmem [shape: bf16[2,256,128], index: 1, kind: input, shape index: {}, may-alias: {0,1,2}]   ;;  %s6213_s2 = inlined_call_operand.vmem [shape: bf16[2,256,128], index: 2, kind: input, shape index: {}, may-alias: {0,1,2}]   ;;  %s6214_s3 = inlined_call_operand.vmem [shape: f32[1,128], index: 3, kind: input, shape index: {}]   ;;  %s6215_s4 = inlined_call_operand.vmem [shape: f32[1,128], index: 4, kind: input, shape index: {}]   ;;  %s6216_s5 = inlined_call_operand.vmem [shape: bf16[9,128,4], index: 5, kind: input, shape index: {}]   ;;  %s6217_s6 = inlined_call_operand.vmem [shape: bf16[2,256,4], index: 6, kind: output, shape index: {0}]   ;;  %s6218_s7 = inlined_call_operand.vmem [shape: f32[2,2,2,4], index: 7, kind: output, shape index: {1}]  }
   0x1   :  { %s5006_s26 = smov 0   ;;  %s5008_s27 = smov 0  }
   0x2   :  { %s5010_s28 = smov 0  }
   0x3 LB: > { %s27_s29 = sadd.s32 1, %s4950_s26  ;;  %s30_s30 = sadd.s32 1, %s4954_s27  ;;  %s4958_s28 = sphi %s5010_s28, %s18_s28   ;;  %s4954_s27 = sphi %s5008_s27, %s6262_s27   ;;  %s4950_s26 = sphi %s5006_s26, %s6261_s26   ;;  %s4946_s25 = sphi %s5004_s25, %s6260_s25   ;;  %s4942_s24 = sphi %s5002_s24, %s6259_s24  }
   0x4   : > { %p28_p0 = scmp.ge.s32.totalorder %s27_s29, 2  ;;  %p3898_p1 = scmp.ge.s32.totalorder %s4958_s28, 1 }
   0x5   : > { %p329_p2 = scmp.lt.s32.totalorder %s4958_s28, 5 }
   0x6   : > { %s6264_s29 = smov (%p28_p0, %s27_s29), 0  ;;  %s6266_s30 = smov (!%p28_p0, %s30_s30), %s4954_s27 }
   0x7   : > { %p330_p3 = pnand %p3898_p1, %p329_p2  ;;  %p32_p4 = scmp.ge.s32.totalorder %s6266_s30, 2 }
   0x8   : > { %v4839_v0 = vld [vmem:[%s6216_s5 + $0x100] sm:$0xff] (!%p330_p3)   ;;  %s3899_s10 = sshll.u32 (!%p330_p3), %s4942_s24, 4  ;;  %v4840_v1 = vld [vmem:[%s6216_s5 + $0x108] sm:$0xff] (!%p330_p3)   ;;  %p404_p5 = scmp.lt.s32.totalorder (!%p330_p3), %s4946_s25, 1  ;;  %v4842_v3 = vld [vmem:[%s6216_s5 + $0x110] sm:$0xff] (!%p330_p3)   ;;  %v658_v5 = vlaneseq (!%p330_p3)  ;;  %v4960_v7 = vmov (!%p330_p3), 0  }
   0x9   : > { %s6268_s30 = smov (%p32_p4, %s6266_s30), 0  ;;  %333 = sbr.rel (%p330_p3) target bundleno = 483 (0x1e3), region = 44 }
   0xa   : > { %4493 = vmatprep.subr.bf16.mxu0 (!%p330_p3), %v4839_v0  ;;  %v4841_v2 = vld [vmem:[%s6216_s5 + $0x40] sm:$0xff] (!%p330_p3)   ;;  %p406_p6 = scmp.lt.s32.totalorder (!%p330_p3), %s3899_s10, 31  ;;  %v4843_v4 = vld [vmem:[%s6216_s5 + $0x48] sm:$0xff] (!%p330_p3)   ;;  %v4845_v6 = vld [vmem:[%s6216_s5 + $0x50] sm:$0xff] (!%p330_p3)   ;;  %472 = vst [vmem:[#allocation2] sm:$0xf] (!%p330_p3), %v4960_v7 }
   0xb   : > { %4494 = vmatpush3.bf16.msra.mxu0 (!%p330_p3), %v4839_v0  ;;  %4365 = vmatprep.subr.bf16.mxu1 (!%p330_p3), %v4841_v2  ;;  %473 = vst [vmem:[#allocation2 + $0x50] sm:$0xf0] (!%p330_p3), %v4960_v7  ;;  %v4844_v8 = vld [vmem:[%s6216_s5 + $0x118] sm:$0xff] (!%p330_p3)   ;;  %v5066_v9 = vshrl.u32 (!%p330_p3), %v658_v5, 7  ;;  %v4846_v12 = vld [vmem:[%s6216_s5 + $0x120] sm:$0xff] (!%p330_p3)   ;;  %v4848_v17 = vld [vmem:[%s6216_s5 + $0x128] sm:$0xff] (!%p330_p3)  }
   0xc   : > { %4495 = vmatprep.subr.bf16.mxu0 (!%p330_p3), %v4840_v1  ;;  %4366 = vmatpush3.bf16.msra.mxu1 (!%p330_p3), %v4841_v2  ;;  %v4847_v10 = vld [vmem:[%s6216_s5 + $0x58] sm:$0xff] (!%p330_p3)   ;;  %v4849_v15 = vld [vmem:[%s6216_s5 + $0x60] sm:$0xff] (!%p330_p3)   ;;  %vm4961_vm0 = vmmov (!%p330_p3), 1   ;;  %v4851_v32 = vld [vmem:[%s6216_s5 + $0x68] sm:$0xff] (!%p330_p3)   ;;  %vm6222_vm8 = vcmask (!%p330_p3), 1043456   ;;  %p627_p11 = scmp.gt.s32.totalorder (!%p330_p3), %s4942_s24, 0 }
   0xd   : > { %4367 = vmatprep.subr.bf16.mxu1 (!%p330_p3), %v4843_v4  ;;  %v660_v11 = vadd.s32 (!%p330_p3), 8, %v5066_v9  ;;  %v661_v13 = vadd.s32 (!%p330_p3), 16, %v5066_v9  ;;  %v662_v14 = vadd.s32 (!%p330_p3), 24, %v5066_v9  ;;  %v679_v16 = vand.u32 (!%p330_p3), 15, %v5066_v9  ;;  %v5093_v18 = vld [vmem:[%s6214_s3] ss:$0 sm:$0xff] (!%p330_p3)  ;;  %vm5102_vm1 = vmpackc.low (!%p330_p3), %vm4961_vm0, %vm4961_vm0 }
   0xe   : > { %v5099_v21 = vld [vmem:[%s6215_s4] ss:$0 sm:$0xff] (!%p330_p3)  ;;  %v4850_v37 = vld [vmem:[%s6216_s5 + $0x130] sm:$0xff] (!%p330_p3)   ;;  %v5143_v41 = vsel (!%p330_p3), %vm5102_vm1, 65537, %v4960_v7  ;;  %v4852_v54 = vld [vmem:[%s6216_s5 + $0x138] sm:$0xff] (!%p330_p3)   ;;  %p461_p12 = scmp.lt.s32.totalorder (!%p330_p3), %s4942_s24, 1 }
   0xf   : > { %4496 = vmatpush3.bf16.msra.mxu0 (!%p330_p3), %v4840_v1  ;;  %v686_v20 = vand.u32 (!%p330_p3), 15, %v660_v11  ;;  %v693_v25 = vand.u32 (!%p330_p3), 15, %v661_v13  ;;  %v700_v26 = vand.u32 (!%p330_p3), 15, %v662_v14  ;;  %vm5107_vm2 = vcmp.ge.s32.totalorder (!%p330_p3), %v679_v16, 1  ;;  %v4853_v49 = vld [vmem:[%s6216_s5 + $0x70] sm:$0xff] (!%p330_p3)   ;;  %v4855_v62 = vld [vmem:[%s6216_s5 + $0x78] sm:$0xff] (!%p330_p3)  }
  0x10   : > { %s6270_s25 = smov (!%p404_p5, %s4946_s25), 1  ;;  %s6272_s10 = smov (!%p406_p6, %s3899_s10), 31  ;;  %4497 = vmatprep.subr.bf16.mxu0 %v4842_v3  ;;  %4368 = vmatpush3.bf16.msra.mxu1 %v4843_v4  ;;  %vm940_vm6 = vmpackc.low %vm5107_vm2, %vm5107_vm2  ;;  %vm1299_vm11 = vsmask.f32 4352  ;;  %vm996_vm12 = vsmask.f32 3328 }
  0x11   : > { %s5053_s19 = sshll.u32 %s6270_s25, 5  ;;  %4369 = vmatprep.subr.bf16.mxu1 %v4845_v6  ;;  %vm5111_vm3 = vcmp.le.s32.totalorder %v686_v20, 14  ;;  %vm5120_vm4 = vcmp.ge.s32.totalorder %v693_v25, 1  ;;  %vm5124_vm5 = vcmp.le.s32.totalorder %v700_v26, 14  ;;  %v956_v40 = vsel %vm940_vm6, 65537, %v4960_v7  ;;  %v5201_v16 = vld [vmem:[%s6216_s5 + $0x140] sm:$0xff]  }
  0x12   : > { %s409_s22 = sadd.s32 %s5053_s19, %s6272_s10  ;;  %s3902_s10 = sshll.u32 %s4942_s24, 3  ;;  %vm942_vm7 = vmpackc.low %vm5120_vm4, %vm5120_vm4  ;;  %v3918_v45 = vcombine.low %v956_v40, %v5143_v41  ;;  %v5226_v26 = vld [vmem:[%s6216_s5] sm:$0xff]  }
  0x13   : > { %s5064_s9 = sshll.u32 %s409_s22, 2  ;;  %4498 = vmatpush3.bf16.msra.mxu0 %v4842_v3  ;;  %s3903_s14 = sadd.s32 4294967295, %s3902_s10  ;;  %v958_v44 = vsel %vm942_vm7, 65537, %v4960_v7  ;;  %vm1567_vm9 = vmpackc.low %vm5111_vm3, %vm5111_vm3 }
  0x14   : > { %4499 = vmatprep.subr.bf16.mxu0 %v4844_v8  ;;  %s5079_s16 = scalar_lea.vmem %s6211_s0, %s5064_s9  ;;  %4370 = vmatpush3.bf16.msra.mxu1 %v4845_v6  ;;  %p415_p7 = scmp.gt.s32.totalorder %s3903_s14, 0  ;;  %v3919_v48 = vcombine.low %v958_v44, %v5143_v41  ;;  %v998_v52 = vshrl.u32 %v3918_v45, 16  ;;  %v1001_v53 = vshll.u32 %v3918_v45, 16  ;;  %vm1569_vm10 = vmpackc.low %vm5124_vm5, %vm5124_vm5  ;;  %v1583_v2 = vsel %vm1567_vm9, 65537, %v4960_v7 }
  0x15   : > { %4371 = vmatprep.subr.bf16.mxu1 %v4847_v10  ;;  %v4175_v19 = vld [vmem:[%s5079_s16] sm:$0xff]   ;;  %v4214_v24 = vld [vmem:[%s5079_s16 + $0x8] sm:$0xff]   ;;  %s5149_s18 = sadd.s32 8, %s3902_s10  ;;  %v4215_v61 = vld [vmem:[%s5079_s16 + $0x10] sm:$0xff]   ;;  %v1585_v5 = vsel %vm1569_vm10, 65537, %v4960_v7  ;;  %v3958_v6 = vcombine.low %v5143_v41, %v1583_v2  ;;  %s6107_s20 = scalar_lea.vmem %s6217_s6, %s5064_s9 }
  0x16   : > { %v4176_v22 = vunpack.c.l.bf16 %v4175_v19  ;;  %v4177_v23 = vunpack.c.h.bf16 %v4175_v19  ;;  %v4180_v28 = vunpack.c.l.bf16 %v4214_v24  ;;  %v4181_v29 = vunpack.c.h.bf16 %v4214_v24  ;;  %s6274_s14 = smov (!%p415_p7, %s3903_s14), 0  ;;  %p433_p8 = scmp.lt.s32.totalorder %s5149_s18, 15 }
  0x17   : > { %4500 = vmatpush3.bf16.msra.mxu0 %v4844_v8  ;;  %v1006_v57 = vshrl.u32 %v3919_v48, 16  ;;  %v1009_v58 = vshll.u32 %v3919_v48, 16  ;;  %s3904_s8 = sshll.u32 %s6274_s14, 1  ;;  %v1000_v60 = vrot.slane %v998_v52, 4  ;;  %v1003_v0 = vrot.slane %v1001_v53, 5  ;;  %s6282_s24 = smov (!%p461_p12, %s4942_s24), 1 }
  0x18   : > { %4501 = vmatprep.subr.bf16.mxu0 %v4846_v12  ;;  %4372 = vmatpush3.bf16.msra.mxu1 %v4847_v10  ;;  %v512_v33 = vmul.f32 %v4176_v22, %v5093_v18  ;;  %v513_v34 = vmul.f32 %v4177_v23, %v5093_v18  ;;  %v514_v38 = vmul.f32 %v4180_v28, %v5093_v18  ;;  %p420_p9 = scmp.lt.s32.totalorder %s3904_s8, 31  ;;  %s6276_s18 = smov (!%p433_p8, %s5149_s18), 15  ;;  %v4184_v11 = vunpack.c.l.bf16 %v4215_v61 }
  0x19   : > { %4373 = vmatprep.subr.bf16.mxu1 %v4849_v15  ;;  %v515_v39 = vmul.f32 %v4181_v29, %v5093_v18  ;;  %v1008_v1 = vrot.slane %v1006_v57, 4  ;;  %v1011_v4 = vrot.slane %v1009_v58, 5  ;;  %v3959_v10 = vcombine.low %v5143_v41, %v1585_v5  ;;  %s3908_s12 = sshll.u32 %s6276_s18, 1  ;;  %v4216_v57 = vld [vmem:[%s5079_s16 + $0x18] sm:$0xff]   ;;  %s3914_s9 = sshll.u32 %s6270_s25, 1 }
  0x1a   : > { %v534_v42 = vadd.f32 %v5099_v21, %v512_v33  ;;  %v535_v43 = vadd.f32 %v5099_v21, %v513_v34  ;;  %v536_v46 = vadd.f32 %v5099_v21, %v514_v38  ;;  %s6278_s8 = smov (!%p420_p9, %s3904_s8), 31  ;;  %v1626_v13 = vshll.u32 %v3958_v6, 16  ;;  %p5211_p10 = scmp.lt.s32.totalorder %s3908_s12, 31 }
  0x1b   : > { %4502 = vmatpush3.bf16.msra.mxu0 %v4846_v12  ;;  %v537_v47 = vadd.f32 %v5099_v21, %v515_v39  ;;  %v1623_v12 = vshrl.u32 %v3958_v6, 16  ;;  %v4185_v14 = vunpack.c.h.bf16 %v4215_v61  ;;  %s423_s15 = sadd.s32 %s5053_s19, %s6278_s8  ;;  %v1631_v19 = vshrl.u32 %v3959_v10, 16  ;;  %s464_s21 = sadd.s32 %s3914_s9, %s6282_s24 }
  0x1c   : > { %4503 = vmatprep.subr.bf16.mxu0 %v4848_v17  ;;  %4374 = vmatpush3.bf16.msra.mxu1 %v4849_v15  ;;  %v550_v50 = vmax.f32 %v534_v42, 0.0  ;;  %v551_v51 = vmax.f32 %v535_v43, 0.0  ;;  %v552_v55 = vmax.f32 %v536_v46, 0.0  ;;  %v663_v15 = vadd.s32 32, %v5066_v9  ;;  %s3906_s17 = sshll.u32 %s423_s15, 2  ;;  %s6280_s12 = smov (!%p5211_p10, %s3908_s12), 31 }
  0x1d   : > { %4375 = vmatprep.subr.bf16.mxu1 %v4851_v32  ;;  %v553_v56 = vmax.f32 %v537_v47, 0.0  ;;  %v1634_v20 = vshll.u32 %v3959_v10, 16  ;;  %v5216_v22 = vor.u32 %v1003_v0, %v1000_v60  ;;  %v5218_v23 = vor.u32 %v1011_v4, %v1008_v1  ;;  %s425_s23 = scalar_lea.vmem %s6212_s1, %s3906_s17  ;;  %s441_s18 = sadd.s32 %s5053_s19, %s6280_s12 }
  0x1e   : > { %v566_v59 = vpack.c.bf16 %v551_v51, %v550_v50  ;;  %v1625_v24 = vrot.slane %v1623_v12, 3  ;;  %v1628_v25 = vrot.slane %v1626_v13, 4  ;;  %v1633_v27 = vrot.slane %v1631_v19, 3  ;;  %v4207_v31 = vld [vmem:[%s425_s23] sm:$0xff]   ;;  %s628_s10 = scalar_select %p627_p11, 1, 0 }
  0x1f   : > { %4504 = vmatpush3.bf16.msra.mxu0 %v4848_v17  ;;  %v5174_v63 = vpack.c.bf16 %v553_v56, %v552_v55  ;;  %v1636_v28 = vrot.slane %v1634_v20, 4  ;;  %v516_v30 = vmul.f32 %v4184_v11, %v5093_v18  ;;  %v517_v33 = vmul.f32 %v4185_v14, %v5093_v18  ;;  %v4217_v14 = vld [vmem:[%s5079_s16 + $0x20] sm:$0xff]   ;;  %s5601_s13 = sshll.u32 %s441_s18, 2  ;;  %s3915_s22 = sshll.u32 %s464_s21, 1 }
  0x20   : > { %4505 = vmatprep.subr.bf16.mxu0 %v4850_v37  ;;  %4376 = vmatpush3.bf16.msra.mxu1 %v4851_v32  ;;  %v583_v3 = vrot.slane %v566_v59, 4  ;;  %v5232_v32 = vor.u32 %v1628_v25, %v1625_v24  ;;  %v664_v34 = vadd.s32 40, %v5066_v9  ;;  %v707_v35 = vand.u32 15, %v663_v15  ;;  %s443_s11 = scalar_lea.vmem %s6213_s2, %s5601_s13 }
  0x21   : > { %4377 = vmatprep.subr.bf16.mxu1 %v4853_v49  ;;  %v584_v8 = vrot.slane %v5174_v63, 4  ;;  %v5238_v36 = vor.u32 %v1636_v28, %v1633_v27  ;;  %v4208_v38 = vunpack.c.l.bf16 %v4207_v31  ;;  %v4209_v39 = vunpack.c.h.bf16 %v4207_v31  ;;  %s5683_s19 = scalar_select %p461_p12, 1, 0 }
  0x22   : > { %607 = vst [vmem:[#allocation2 + $0x8] sm:$0xf0] %v583_v3  ;;  %vm6220_vm13 = vcmp.ne.s16.totalorder %v5232_v32, 0  ;;  %v539_v40 = vadd.f32 %v5099_v21, %v517_v33  ;;  %v714_v42 = vand.u32 15, %v664_v34  ;;  %vm5249_vm14 = vcmp.ge.s32.totalorder %v707_v35, 1 }
  0x23   : > { %4506 = vmatpush3.bf16.msra.mxu0 %v4850_v37  ;;  %v5207_v17 = vsel %vm6222_vm8, %v583_v3, %v584_v8  ;;  %v538_v37 = vadd.f32 %v5099_v21, %v516_v30  ;;  %v5257_v44 = vsel %vm1299_vm11, %v5232_v32, %v5238_v36  ;;  %vm944_vm15 = vmpackc.low %vm5249_vm14, %vm5249_vm14  ;;  %v620_v47 = vmul.f32 %v4208_v38, %v5093_v18 }
  0x24   : > { %4507 = vmatprep.subr.bf16.mxu0 %v4852_v54  ;;  %4378 = vmatpush3.bf16.msra.mxu1 %v4853_v49  ;;  %608 = vst [vmem:[#allocation2 + $0x10] sm:$0xff] %v5207_v17  ;;  %v5229_v29 = vrot.slane %v5207_v17, 4  ;;  %v555_v50 = vmax.f32 %v539_v40, 0.0  ;;  %v621_v51 = vmul.f32 %v4209_v39, %v5093_v18  ;;  %v5273_v52 = vsel %vm996_vm12, %v5216_v22, %v5218_v23 }
  0x25   : > { %4379 = vmatprep.subr.bf16.mxu1 %v4855_v62  ;;  %v554_v46 = vmax.f32 %v538_v37, 0.0  ;;  %vm6221_vm0 = vcmp.ne.s16.totalorder %v5257_v44, 0  ;;  %vm888_vm1 = vcmp.le.s32.totalorder %v714_v42, 14  ;;  %v960_v55 = vsel %vm944_vm15, 65537, %v4960_v7 }
  0x26   : > { %vm1571_vm2 = vmpackc.low %vm888_vm1, %vm888_vm1  ;;  %v622_v56 = vadd.f32 %v5099_v21, %v620_v47  ;;  %v3920_v60 = vcombine.low %v960_v55, %v5143_v41  ;;  %v623_v1 = vadd.f32 %v5099_v21, %v621_v51  ;;  %v629_v5 = vstv %s628_s10 }
  0x27   : > { %4508 = vmatpush3.bf16.msra.mxu0 %v4852_v54  ;;  %v5280_v54 = vpack.c.bf16 %v555_v50, %v554_v46  ;;  %v1587_v61 = vsel %vm1571_vm2, 65537, %v4960_v7  ;;  %v4188_v6 = vunpack.c.l.bf16 %v4216_v57  ;;  %vm5302_vm3 = vcmp.eq.s32.totalorder %v629_v5, 1  ;;  %v4218_v50 = vld [vmem:[%s5079_s16 + $0x28] sm:$0xff]   ;;  %v4860_v5 = vld [vmem:[%s6216_s5 + $0x158] sm:$0xff]  }
  0x28   : > { %4525 = vmatprep.subr.bf16.mxu0 %v5201_v16  ;;  %4380 = vmatpush3.bf16.msra.mxu1 %v4855_v62  ;;  %v3960_v0 = vcombine.low %v5143_v41, %v1587_v61  ;;  %v624_v2 = vmax.f32 %v622_v56, 0.0  ;;  %v1015_v3 = vshrl.u32 %v3920_v60, 16  ;;  %v1018_v4 = vshll.u32 %v3920_v60, 16 }
  0x29   : > { %4397 = vmatprep.subr.bf16.mxu1 %v5226_v26  ;;  %v2261_v45 = vld [vmem:[#allocation2 + $0x8] sm:$0xf0]  ;;  %v586_v62 = vrot.slane %v5280_v54, 4  ;;  %v625_v13 = vmax.f32 %v623_v1, 0.0  ;;  %v4189_v28 = vunpack.c.h.bf16 %v4216_v57  ;;  %v518_v33 = vmul.f32 %v4188_v6, %v5093_v18  ;;  %v4219_v57 = vld [vmem:[%s5079_s16 + $0x30] sm:$0xff]  }
  0x2a   : > { %v2288_v48 = vrot.slane %v2261_v45, 4  ;;  %v5267_v49 = vsel %vm6220_vm13, %v2261_v45, 0  ;;  %v1640_v11 = vshrl.u32 %v3960_v0, 16  ;;  %v1643_v12 = vshll.u32 %v3960_v0, 16 }
  0x2b   : > { %v2502_v58 = vshrl.u32 %v5267_v49, 16  ;;  %v2505_v59 = vshll.u32 %v5267_v49, 16  ;;  %v5297_v10 = vsel %vm6222_vm8, %v584_v8, %v586_v62  ;;  %v1017_v15 = vrot.slane %v1015_v3, 4  ;;  %v4856_v8 = vld [vmem:[%s6216_s5 + $0x148] sm:$0xff]  }
  0x2c   : > { %v2290_v53 = vsel %vm6222_vm8, %v2288_v48, %v5229_v29  ;;  %609 = vst [vmem:[#allocation2 + $0x18] sm:$0xff] %v5297_v10  ;;  %v1020_v19 = vrot.slane %v1018_v4, 5  ;;  %v2291_v20 = vrot.slane %v5297_v10, 4  ;;  %v1642_v25 = vrot.slane %v1640_v11, 3 }
  0x2d   : > { %4509 = vmatprep.mubr.bf16.mxu0 %v2290_v53  ;;  %v1645_v27 = vrot.slane %v1643_v12, 4  ;;  %v626_v63 = vpack.c.bf16 %v625_v13, %v624_v2  ;;  %v4192_v34 = vunpack.c.l.bf16 %v4217_v14  ;;  %vm1069_vm4 = vcmp.ne.s16.totalorder %v5273_v52, 0 }
  0x2e   : > { %v5309_v30 = vor.u32 %v1020_v19, %v1017_v15  ;;  %v5315_v31 = vsel %vm6222_vm8, %v5229_v29, %v2291_v20  ;;  %v519_v38 = vmul.f32 %v4189_v28, %v5093_v18  ;;  %v4193_v39 = vunpack.c.h.bf16 %v4217_v14 }
  0x2f   : > { %v5319_v35 = vor.u32 %v1645_v27, %v1642_v25  ;;  %4510 = vmatmul.mubr.bf16.vlgmr.msra.gmra.mrb[0].mxu0 %v5315_v31  ;;  %v631_v37 = vsel %vm5302_vm3, %v626_v63, 0  ;;  %v5328_v40 = vsel %vm6221_vm0, %v5207_v17, 0  ;;  %v540_v45 = vadd.f32 %v5099_v21, %v518_v33 }
  0x30   : > { %v5333_v42 = vsel %vm996_vm12, %v5218_v23, %v5309_v30  ;;  %4526 = vmatpush3.bf16.msra.mxu0 %v5201_v16  ;;  %v633_v43 = vrot.slane %v631_v37, 4  ;;  %v541_v47 = vadd.f32 %v5099_v21, %v519_v38  ;;  %v520_v23 = vmul.f32 %v4192_v34, %v5093_v18  ;;  %v4858_v16 = vld [vmem:[%s6216_s5 + $0x150] sm:$0xff]   ;;  %v4862_v37 = vld [vmem:[%s6216_s5 + $0x160] sm:$0xff]  }
  0x31   : > { %vm1070_vm5 = vcmp.ne.s16.totalorder %v5333_v42, 0  ;;  %v5341_v46 = vsel %vm1299_vm11, %v5238_v36, %v5319_v35  ;;  %4527 = vmatprep.subr.bf16.mxu0 %v4856_v8  ;;  %v5348_v48 = vrot.slane %v2502_v58, 4  ;;  %v521_v49 = vmul.f32 %v4193_v39, %v5093_v18  ;;  %v5368_v58 = vld [vmem:[%s5079_s16 + $0x38] sm:$0xff]   ;;  %v4918_v42 = vld [vmem:[#allocation2 + $0x10] sm:$0xff] }
  0x32   : > { %vm6219_vm6 = vcmp.ne.s16.totalorder %v5341_v46, 0  ;;  %635 = vst [vmem:[#allocation2 + $0x8] ss:$-4 sps:$4 sm:$0xff] %v633_v43   ;;  %v5354_v36 = vsel %vm1070_vm5, %v5207_v17, 0  ;;  %v5358_v51 = vrot.slane %v2505_v59, 5  ;;  %v556_v56 = vmax.f32 %v540_v45, 0.0 }
  0x33   : > { %v5363_v53 = vsel %vm6219_vm6, %v5297_v10, 0  ;;  %v1318_v55 = vshrl.u32 %v5354_v36, 16  ;;  %v1321_v0 = vshll.u32 %v5354_v36, 16  ;;  %v5376_v59 = vsel %vm6219_vm6, %v5207_v17, 0 }
  0x34   : > { %v2519_v60 = vshrl.u32 %v5363_v53, 16  ;;  %v2522_v61 = vshll.u32 %v5363_v53, 16  ;;  %4528 = vmatpush3.bf16.msra.mxu0 %v4856_v8  ;;  %v1746_v1 = vshrl.u32 %v5376_v59, 16  ;;  %v1749_v2 = vshll.u32 %v5376_v59, 16 }
  0x35   : > { %v557_v3 = vmax.f32 %v541_v47, 0.0  ;;  %v542_v4 = vadd.f32 %v5099_v21, %v520_v23  ;;  %4529 = vmatprep.subr.bf16.mxu0 %v4858_v16  ;;  %v543_v6 = vadd.f32 %v5099_v21, %v521_v49  ;;  %v4196_v11 = vunpack.c.l.bf16 %v4218_v50 }
  0x36   : > { %v4197_v12 = vunpack.c.h.bf16 %v4218_v50  ;;  %v4200_v13 = vunpack.c.l.bf16 %v4219_v57  ;;  %v4201_v15 = vunpack.c.h.bf16 %v4219_v57  ;;  %v4204_v19 = vunpack.c.l.bf16 %v5368_v58 }
  0x37   : > { %v569_v17 = vpack.c.bf16 %v557_v3, %v556_v56  ;;  %v558_v14 = vmax.f32 %v542_v4, 0.0  ;;  %v559_v24 = vmax.f32 %v543_v6, 0.0  ;;  %v522_v25 = vmul.f32 %v4196_v11, %v5093_v18  ;;  %v4859_v6 = vld [vmem:[%s6216_s5 + $0x8] sm:$0xff]  }
  0x38   : > { %4530 = vmatpush3.bf16.msra.mxu0 %v4858_v16  ;;  %v523_v27 = vmul.f32 %v4197_v12, %v5093_v18  ;;  %v524_v63 = vmul.f32 %v4200_v13, %v5093_v18  ;;  %v525_v34 = vmul.f32 %v4201_v15, %v5093_v18  ;;  %v4205_v38 = vunpack.c.h.bf16 %v5368_v58 }
  0x39   : > { %v900_v8 = vld [vmem:[#allocation2 + $0x8] sm:$0xff]  ;;  %v1102_v28 = vld [vmem:[#allocation2] sm:$0xf0]  ;;  %v588_v33 = vrot.slane %v569_v17, 4  ;;  %4531 = vmatprep.subr.bf16.mxu0 %v4860_v5  ;;  %v526_v39 = vmul.f32 %v4204_v19, %v5093_v18  ;;  %v570_v4 = vpack.c.bf16 %v559_v24, %v558_v14  ;;  %v544_v11 = vadd.f32 %v5099_v21, %v522_v25 }
  0x3a   : > { %v5397_v43 = vsel %vm1069_vm4, %v900_v8, 0  ;;  %v1129_v45 = vrot.slane %v1102_v28, 4  ;;  %v1130_v47 = vrot.slane %v900_v8, 4  ;;  %v1702_v23 = vsel %vm6220_vm13, %v1102_v28, 0  ;;  %v4864_v14 = vld [vmem:[%s6216_s5 + $0x168] sm:$0xff]  }
  0x3b   : > { %v5403_v16 = vsel %vm6221_vm0, %v900_v8, 0  ;;  %v1729_v49 = vshrl.u32 %v1702_v23, 16  ;;  %v1732_v50 = vshll.u32 %v1702_v23, 16  ;;  %v5408_v56 = vsel %vm6222_vm8, %v586_v62, %v588_v33 }
  0x3c   : > { %v1131_v57 = vsel %vm6222_vm8, %v1129_v45, %v1130_v47  ;;  %v1133_v58 = vsel %vm6222_vm8, %v1130_v47, %v5229_v29  ;;  %610 = vst [vmem:[#allocation2 + $0x20] sm:$0xff] %v5408_v56  ;;  %v2293_v3 = vrot.slane %v5408_v56, 4  ;;  %4532 = vmatpush3.bf16.msra.mxu0 %v4860_v5  ;;  %v545_v12 = vadd.f32 %v5099_v21, %v523_v27  ;;  %v4861_v27 = vld [vmem:[%s6216_s5 + $0x10] sm:$0xff]  }
  0x3d   : > { %4381 = vmatprep.mubr.bf16.mxu1 %v1131_v57  ;;  %v5418_v54 = vrot.slane %v1729_v49, 4  ;;  %v5420_v62 = vrot.slane %v1732_v50, 5  ;;  %4533 = vmatprep.subr.bf16.mxu0 %v4862_v37  ;;  %v590_v13 = vrot.slane %v570_v4, 4  ;;  %v546_v17 = vadd.f32 %v5099_v21, %v524_v63  ;;  %v899_v57 = vld [vmem:[#allocation2] sm:$0xf8] }
  0x3e   : > { %4382 = vmatmul.mubr.bf16.vlgmr.msra.gmra.mrb[0].mxu1 %v1133_v58  ;;  %v2294_v29 = vsel %vm6222_vm8, %v2291_v20, %v2293_v3  ;;  %v547_v5 = vadd.f32 %v5099_v21, %v525_v34  ;;  %v560_v15 = vmax.f32 %v544_v11, 0.0  ;;  %v561_v19 = vmax.f32 %v545_v12, 0.0 }
  0x3f   : > { %4398 = vmatpush3.bf16.msra.mxu1 %v5226_v26  ;;  %4513 = vmatprep.mubr.bf16.mxu0 %v2294_v29  ;;  %v527_v24 = vmul.f32 %v4205_v38, %v5093_v18  ;;  %v548_v25 = vadd.f32 %v5099_v21, %v526_v39  ;;  %v5436_v20 = vsel %vm6222_vm8, %v588_v33, %v590_v13  ;;  %v562_v63 = vmax.f32 %v546_v17, 0.0  ;;  %v4866_v39 = vld [vmem:[%s6216_s5 + $0x170] sm:$0xff]  }
  0x40   : > { %4399 = vmatprep.subr.bf16.mxu1 %v4859_v6  ;;  %4385 = vmatprep.mubr.bf16.mxu1 %v5315_v31  ;;  %v563_v8 = vmax.f32 %v547_v5, 0.0  ;;  %v673_v26 = vadd.s32 112, %v5066_v9  ;;  %611 = vst [vmem:[#allocation2 + $0x28] sm:$0xff] %v5436_v20  ;;  %v2295_v18 = vrot.slane %v5436_v20, 4  ;;  %v571_v28 = vpack.c.bf16 %v561_v19, %v560_v15 }
  0x41   : > { %4534 = vmatpush3.bf16.msra.mxu0 %v4862_v37  ;;  %v549_v33 = vadd.f32 %v5099_v21, %v527_v24  ;;  %v564_v34 = vmax.f32 %v548_v25, 0.0  ;;  %v2508_v45 = vor.u32 %v5358_v51, %v5348_v48  ;;  %v2510_v47 = vshrl.u32 %v5328_v40, 16  ;;  %v4863_v21 = vld [vmem:[%s6216_s5 + $0x18] sm:$0xff]  }
  0x42   : > { %v572_v38 = vpack.c.bf16 %v563_v8, %v562_v63  ;;  %4535 = vmatprep.subr.bf16.mxu0 %v4864_v14  ;;  %v777_v31 = vand.u32 15, %v673_v26  ;;  %v2296_v23 = vsel %vm6222_vm8, %v2293_v3, %v2295_v18  ;;  %v592_v49 = vrot.slane %v571_v28, 4  ;;  %v5496_v26 = vld [vmem:[%s6216_s5 + $0x180] sm:$0xff]  }
  0x43   : > { %4400 = vmatpush3.bf16.msra.mxu1 %v4859_v6  ;;  %v565_v37 = vmax.f32 %v549_v33, 0.0  ;;  %v2513_v50 = vshll.u32 %v5328_v40, 16  ;;  %4514 = vmatmul.mubr.bf16.gmra.mrb[4].mxu0 %v2296_v23  ;;  %v2512_v4 = vrot.slane %v2510_v47, 4  ;;  %v2521_v48 = vrot.slane %v2519_v60, 4 }
  0x44   : > { %4401 = vmatprep.subr.bf16.mxu1 %v4861_v27  ;;  %v594_v58 = vrot.slane %v572_v38, 4  ;;  %vm881_vm7 = vcmp.ge.s32.totalorder %v777_v31, 1  ;;  %v5460_v51 = vsel %vm6222_vm8, %v590_v13, %v592_v49  ;;  %v2524_v11 = vrot.slane %v2522_v61, 5  ;;  %v4868_v13 = vld [vmem:[%s6216_s5 + $0x178] sm:$0xff]   ;;  %v4865_v61 = vld [vmem:[%s6216_s5 + $0x20] sm:$0xff]  }
  0x45   : > { %4536 = vmatpush3.bf16.msra.mxu0 %v4864_v14  ;;  %v573_v3 = vpack.c.bf16 %v565_v37, %v564_v34  ;;  %vm954_vm9 = vmpackc.low %vm881_vm7, %vm881_vm7  ;;  %v2515_v6 = vrot.slane %v2513_v50, 5  ;;  %612 = vst [vmem:[#allocation2 + $0x30] sm:$0xff] %v5460_v51  ;;  %v2297_v40 = vrot.slane %v5460_v51, 4  ;;  %vm1068_vm10 = vcmp.ne.s16.totalorder %v5216_v22, 0 }
  0x46   : > { %4386 = vmatmul.mubr.bf16.gmra.mrb[4].mxu1 %v2294_v29  ;;  %v5467_v12 = vsel %vm6222_vm8, %v592_v49, %v594_v58  ;;  %v970_v60 = vsel %vm954_vm9, 65537, %v4960_v7  ;;  %4537 = vmatprep.subr.bf16.mxu0 %v4866_v39  ;;  %v5483_v15 = vor.u32 %v2524_v11, %v2521_v48  ;;  %v1077_v19 = vsel %vm1068_vm10, %v899_v57, 0  ;;  %v4867_v49 = vld [vmem:[%s6216_s5 + $0x28] sm:$0xff]  }
  0x47   : > { %4402 = vmatpush3.bf16.msra.mxu1 %v4861_v27  ;;  %613 = vst [vmem:[#allocation2 + $0x38] sm:$0xff] %v5467_v12  ;;  %v5476_v53 = vrot.slane %v5467_v12, 4  ;;  %4389 = vmatprep.mubr.bf16.mxu1 %v2296_v23  ;;  %v596_v29 = vrot.slane %v573_v3, 4  ;;  %v3925_v17 = vcombine.low %v970_v60, %v5143_v41  ;;  %v2516_v5 = vor.u32 %v2515_v6, %v2512_v4 }
  0x48   : > { %v2298_v14 = vsel %vm6222_vm8, %v2295_v18, %v2297_v40  ;;  %4403 = vmatprep.subr.bf16.mxu1 %v4863_v21  ;;  %v1309_v24 = vshrl.u32 %v5397_v43, 16  ;;  %v1301_v34 = vshrl.u32 %v1077_v19, 16  ;;  %v1312_v37 = vshll.u32 %v5397_v43, 16 }
  0x49   : > { %4517 = vmatprep.mubr.bf16.mxu0 %v2298_v14  ;;  %v2300_v25 = vsel %vm6222_vm8, %v2297_v40, %v5476_v53  ;;  %v5491_v27 = vsel %vm6222_vm8, %v594_v58, %v596_v29  ;;  %615 = vst [vmem:[#allocation2 + $0x48] sm:$0xf] %v596_v29  ;;  %v1060_v63 = vshrl.u32 %v3925_v17, 16  ;;  %v1063_v8 = vshll.u32 %v3925_v17, 16  ;;  %4538 = vmatpush3.bf16.msra.mxu0 %v4866_v39  ;;  %v4869_v40 = vld [vmem:[%s6216_s5 + $0x30] sm:$0xff]  }
  0x4a   : > { %614 = vst [vmem:[#allocation2 + $0x40] sm:$0xff] %v5491_v27  ;;  %v2301_v18 = vrot.slane %v5491_v27, 4  ;;  %4539 = vmatprep.subr.bf16.mxu0 %v4868_v13  ;;  %v2517_v28 = vsel %vm996_vm12, %v2508_v45, %v2516_v5  ;;  %v5503_v33 = vsel %vm996_vm12, %v2516_v5, %v5483_v15  ;;  %v1304_v39 = vshll.u32 %v1077_v19, 16 }
  0x4b   : > { %4404 = vmatpush3.bf16.msra.mxu1 %v4863_v21  ;;  %v1062_v38 = vrot.slane %v1060_v63, 4  ;;  %v1065_v31 = vrot.slane %v1063_v8, 5  ;;  %v1311_v47 = vrot.slane %v1309_v24, 3  ;;  %4518 = vmatmul.mubr.bf16.gmra.mrb[8].mxu0 %v2300_v25  ;;  %v1303_v45 = vrot.slane %v1301_v34, 3 }
  0x4c   : > { %4405 = vmatprep.subr.bf16.mxu1 %v4865_v61  ;;  %v2302_v23 = vsel %vm6222_vm8, %v5476_v53, %v2301_v18  ;;  %v1320_v50 = vrot.slane %v1318_v55, 3  ;;  %v1306_v57 = vrot.slane %v1304_v39, 4  ;;  %v1323_v58 = vrot.slane %v1321_v0, 4 }
  0x4d   : > { %4521 = vmatprep.mubr.bf16.mxu0 %v2302_v23  ;;  %v5513_v21 = vor.u32 %v1065_v31, %v1062_v38  ;;  %4540 = vmatpush3.bf16.msra.mxu0 %v4868_v13  ;;  %v666_v4 = vadd.s32 56, %v5066_v9  ;;  %v1314_v48 = vrot.slane %v1312_v37, 4  ;;  %v668_v3 = vadd.s32 72, %v5066_v9 }
  0x4e   : > { %4390 = vmatmul.mubr.bf16.gmra.mrb[8].mxu1 %v2298_v14  ;;  %4557 = vmatprep.subr.bf16.mxu0 %v5496_v26  ;;  %v665_v43 = vadd.s32 48, %v5066_v9  ;;  %v667_v55 = vadd.s32 64, %v5066_v9  ;;  %v1307_v6 = vor.u32 %v1306_v57, %v1303_v45  ;;  %v5523_v11 = vor.u32 %v1323_v58, %v1320_v50 }
  0x4f   : > { %4406 = vmatpush3.bf16.msra.mxu1 %v4865_v61  ;;  %vm6223_vm14 = vcmp.ne.s16.totalorder %v5513_v21, 0  ;;  %4393 = vmatprep.mubr.bf16.mxu1 %v2300_v25  ;;  %v728_v36 = vand.u32 15, %v666_v4  ;;  %v1315_v60 = vor.u32 %v1314_v48, %v1311_v47  ;;  %v742_v13 = vand.u32 15, %v668_v3  ;;  %v4871_v47 = vld [vmem:[%s6216_s5 + $0x38] sm:$0xff]   ;;  %v4873_v48 = vld [vmem:[%s6216_s5 + $0x80] sm:$0xff]  }
  0x50   : > { %v1985_v0 = vld [vmem:[#allocation2 + $0x48] sm:$0xf]  ;;  %4407 = vmatprep.subr.bf16.mxu1 %v4867_v49  ;;  %v721_v29 = vand.u32 15, %v665_v43  ;;  %v735_v17 = vand.u32 15, %v667_v55  ;;  %v670_v19 = vadd.s32 88, %v5066_v9  ;;  %v5566_v37 = vadd.s32 80, %v5066_v9 }
  0x51   : > { %v5530_v61 = vsel %vm6223_vm14, %v1985_v0, 0  ;;  %v2303_v5 = vrot.slane %v1985_v0, 4  ;;  %v907_v14 = vld [vmem:[#allocation2 + $0x40] sm:$0xf]  ;;  %vm890_vm15 = vcmp.le.s32.totalorder %v728_v36, 14  ;;  %v1316_v63 = vsel %vm1299_vm11, %v1307_v6, %v1315_v60 }
  0x52   : > { %v5535_v24 = vsel %vm6223_vm14, %v907_v14, 0  ;;  %v1144_v25 = vrot.slane %v907_v14, 4  ;;  %v5540_v8 = vsel %vm1299_vm11, %v1315_v60, %v5523_v11  ;;  %vm1573_vm1 = vmpackc.low %vm890_vm15, %vm890_vm15  ;;  %vm892_vm2 = vcmp.le.s32.totalorder %v742_v13, 14 }
  0x53   : > { %v2304_v34 = vsel %vm6222_vm8, %v2301_v18, %v2303_v5  ;;  %4408 = vmatpush3.bf16.msra.mxu1 %v4867_v49  ;;  %v1589_v38 = vsel %vm1573_vm1, 65537, %v4960_v7  ;;  %vm5544_vm3 = vcmp.ge.s32.totalorder %v721_v29, 1  ;;  %vm1575_vm7 = vmpackc.low %vm892_vm2, %vm892_vm2  ;;  %vm5554_vm9 = vcmp.ge.s32.totalorder %v735_v17, 1 }
  0x54   : > { %4522 = vmatmul.mubr.bf16.gmra.mrb[12].mxu0 %v2304_v34  ;;  %v1145_v39 = vsel %vm6222_vm8, %v5476_v53, %v1144_v25  ;;  %4409 = vmatprep.subr.bf16.mxu1 %v4869_v40  ;;  %v3961_v23 = vcombine.low %v5143_v41, %v1589_v38  ;;  %v756_v49 = vand.u32 15, %v670_v19  ;;  %v1591_v45 = vsel %vm1575_vm7, 65537, %v4960_v7  ;;  %vm946_vm15 = vmpackc.low %vm5544_vm3, %vm5544_vm3 }
  0x55   : > { %4541 = vmatprep.mubr.bf16.mxu0 %v2517_v28  ;;  %v5563_v53 = vadd.s32 104, %v5066_v9  ;;  %v5569_v50 = vadd.s32 96, %v5066_v9  ;;  %v3962_v28 = vcombine.low %v5143_v41, %v1591_v45  ;;  %v962_v4 = vsel %vm946_vm15, 65537, %v4960_v7  ;;  %vm948_vm1 = vmpackc.low %vm5554_vm9, %vm5554_vm9 }
  0x56   : > { %4394 = vmatmul.mubr.bf16.gmra.mrb[12].mxu1 %v1145_v39  ;;  %v1649_v57 = vshrl.u32 %v3961_v23, 16  ;;  %v1652_v58 = vshll.u32 %v3961_v23, 16  ;;  %v3921_v3 = vcombine.low %v962_v4, %v5143_v41  ;;  %v964_v43 = vsel %vm948_vm1, 65537, %v4960_v7 }
  0x57   : > { %4410 = vmatpush3.bf16.msra.mxu1 %v4869_v40  ;;  %4413 = vmatprep.mubr.bf16.mxu1 %v1316_v63  ;;  %vm894_vm2 = vcmp.le.s32.totalorder %v756_v49, 14  ;;  %v770_v55 = vand.u32 15, %v5563_v53  ;;  %v1658_v0 = vshrl.u32 %v3962_v28, 16  ;;  %v1661_v60 = vshll.u32 %v3962_v28, 16  ;;  %v4872_v40 = vld [vmem:[%s6216_s5 + $0x188] sm:$0xff]  }
  0x58   : > { %4411 = vmatprep.subr.bf16.mxu1 %v4871_v47  ;;  %v1651_v6 = vrot.slane %v1649_v57, 3  ;;  %v1654_v36 = vrot.slane %v1652_v58, 4  ;;  %vm1577_vm3 = vmpackc.low %vm894_vm2, %vm894_vm2  ;;  %v1024_v13 = vshrl.u32 %v3921_v3, 16  ;;  %v1027_v29 = vshll.u32 %v3921_v3, 16  ;;  %v4875_v49 = vld [vmem:[%s6216_s5 + $0x88] sm:$0xff]  }
  0x59   : > { %v3922_v17 = vcombine.low %v964_v43, %v5143_v41  ;;  %v1593_v5 = vsel %vm1577_vm3, 65537, %v4960_v7  ;;  %v1660_v19 = vrot.slane %v1658_v0, 3  ;;  %v1663_v25 = vrot.slane %v1661_v60, 4 }
  0x5a   : > { %v1655_v14 = vor.u32 %v1654_v36, %v1651_v6  ;;  %v3963_v63 = vcombine.low %v5143_v41, %v1593_v5  ;;  %v1026_v34 = vrot.slane %v1024_v13, 4  ;;  %v1029_v38 = vrot.slane %v1027_v29, 5  ;;  %v4877_v36 = vld [vmem:[%s6216_s5 + $0x90] sm:$0xff]  }
  0x5b   : > { %4412 = vmatpush3.bf16.msra.mxu1 %v4871_v47  ;;  %v1033_v31 = vshrl.u32 %v3922_v17, 16  ;;  %v1036_v39 = vshll.u32 %v3922_v17, 16  ;;  %v1664_v18 = vor.u32 %v1663_v25, %v1660_v19  ;;  %vm896_vm1 = vcmp.le.s32.totalorder %v770_v55, 14 }
  0x5c   : > { %4542 = vmatmul.mubr.bf16.vlgmr.msra.gmra.mrb[0].mxu0 %v5503_v33  ;;  %4429 = vmatprep.subr.bf16.mxu1 %v4873_v48  ;;  %v5591_v23 = vsel %vm1299_vm11, %v5319_v35, %v1655_v14  ;;  %v1667_v45 = vshrl.u32 %v3963_v63, 16  ;;  %v1670_v47 = vshll.u32 %v3963_v63, 16  ;;  %v1030_v57 = vor.u32 %v1029_v38, %v1026_v34  ;;  %vm1579_vm2 = vmpackc.low %vm896_vm1, %vm896_vm1 }
  0x5d   : > { %4558 = vmatpush3.bf16.msra.mxu0 %v5496_v26  ;;  %vm6224_vm7 = vcmp.ne.s16.totalorder %v5591_v23, 0  ;;  %v1035_v58 = vrot.slane %v1033_v31, 4  ;;  %v1038_v28 = vrot.slane %v1036_v39, 5  ;;  %v5608_v33 = vsel %vm1299_vm11, %v1655_v14, %v1664_v18  ;;  %v4874_v26 = vld [vmem:[%s6216_s5 + $0x190] sm:$0xff]  }
  0x5e   : > { %4559 = vmatprep.subr.bf16.mxu0 %v4872_v40  ;;  %4414 = vmatmul.mubr.bf16.vlgmr.msra.gmra.mrb[0].mxu1 %v5540_v8  ;;  %v2478_v35 = vsel %vm6224_vm7, %v5408_v56, 0  ;;  %v1669_v4 = vrot.slane %v1667_v45, 3  ;;  %v1672_v3 = vrot.slane %v1670_v47, 4  ;;  %vm1697_vm9 = vcmp.ne.s16.totalorder %v5608_v33, 0  ;;  %v4878_v45 = vld [vmem:[%s6216_s5 + $0x1a0] sm:$0xff]  }
  0x5f   : > { %4430 = vmatpush3.bf16.msra.mxu1 %v4873_v48  ;;  %v2528_v43 = vshrl.u32 %v2478_v35, 16  ;;  %v2531_v6 = vshll.u32 %v2478_v35, 16  ;;  %v5616_v8 = vsel %vm996_vm12, %v5309_v30, %v1030_v57  ;;  %v2479_v0 = vsel %vm1697_vm9, %v5436_v20, 0  ;;  %v4876_v48 = vld [vmem:[%s6216_s5 + $0x198] sm:$0xff]  }
  0x60   : > { %4431 = vmatprep.subr.bf16.mxu1 %v4875_v49  ;;  %vm1071_vm15 = vcmp.ne.s16.totalorder %v5616_v8, 0  ;;  %v5628_v60 = vor.u32 %v1038_v28, %v1035_v58  ;;  %v5630_v13 = vor.u32 %v1672_v3, %v1669_v4  ;;  %v2537_v17 = vshrl.u32 %v2479_v0, 16  ;;  %v4881_v4 = vld [vmem:[%s6216_s5 + $0xa0] sm:$0xff]  }
  0x61   : > { %4560 = vmatpush3.bf16.msra.mxu0 %v4872_v40  ;;  %v2530_v30 = vrot.slane %v2528_v43, 4  ;;  %v2533_v29 = vrot.slane %v2531_v6, 5  ;;  %v2540_v5 = vshll.u32 %v2479_v0, 16  ;;  %v1080_v14 = vsel %vm1071_vm15, %v5297_v10, 0  ;;  %v4879_v10 = vld [vmem:[%s6216_s5 + $0x98] sm:$0xff]  }
  0x62   : > { %4561 = vmatprep.subr.bf16.mxu0 %v4874_v26  ;;  %v5637_v19 = vsel %vm996_vm12, %v1030_v57, %v5628_v60  ;;  %v5641_v25 = vsel %vm1299_vm11, %v1664_v18, %v5630_v13  ;;  %v2539_v63 = vrot.slane %v2537_v17, 4  ;;  %v1327_v38 = vshrl.u32 %v1080_v14, 16 }
  0x63   : > { %v2534_v40 = vor.u32 %v2533_v29, %v2530_v30  ;;  %v2542_v34 = vrot.slane %v2540_v5, 5  ;;  %4432 = vmatpush3.bf16.msra.mxu1 %v4875_v49  ;;  %v1330_v31 = vshll.u32 %v1080_v14, 16  ;;  %vm1072_vm3 = vcmp.ne.s16.totalorder %v5637_v19, 0  ;;  %v4211_v30 = vld [vmem:[%s443_s11] sm:$0xff]   ;;  %s466_s11 = scalar_lea.vmem %s6218_s7, %s3915_s22 }
  0x64   : > { %4433 = vmatprep.subr.bf16.mxu1 %v4877_v36  ;;  %vm1698_vm6 = vcmp.ne.s16.totalorder %v5641_v25, 0  ;;  %v1595_v53 = vsel %vm1579_vm2, 65537, %v4960_v7  ;;  %v1329_v18 = vrot.slane %v1327_v38, 3  ;;  %v1081_v49 = vsel %vm1072_vm3, %v5408_v56, 0 }
  0x65   : > { %v2535_v55 = vsel %vm996_vm12, %v5483_v15, %v2534_v40  ;;  %v2543_v39 = vor.u32 %v2542_v34, %v2539_v63  ;;  %4562 = vmatpush3.bf16.msra.mxu0 %v4874_v26  ;;  %v1332_v47 = vrot.slane %v1330_v31, 4  ;;  %v1336_v15 = vshrl.u32 %v1081_v49, 16 }
  0x66   : > { %4545 = vmatprep.mubr.bf16.mxu0 %v2535_v55  ;;  %4563 = vmatprep.subr.bf16.mxu0 %v4876_v48  ;;  %v1339_v57 = vshll.u32 %v1081_v49, 16  ;;  %v2480_v58 = vsel %vm1698_vm6, %v5460_v51, 0  ;;  %v3964_v26 = vcombine.low %v5143_v41, %v1595_v53  ;;  %v749_v0 = vand.u32 15, %v5566_v37 }
  0x67   : > { %v2544_v56 = vsel %vm996_vm12, %v2534_v40, %v2543_v39  ;;  %4434 = vmatpush3.bf16.msra.mxu1 %v4877_v36  ;;  %v2546_v28 = vshrl.u32 %v2480_v58, 16  ;;  %v2549_v35 = vshll.u32 %v2480_v58, 16  ;;  %v1333_v3 = vor.u32 %v1332_v47, %v1329_v18  ;;  %v4880_v36 = vld [vmem:[%s6216_s5 + $0x1a8] sm:$0xff]  }
  0x68   : > { %4546 = vmatmul.mubr.bf16.gmra.mrb[4].mxu0 %v2544_v56  ;;  %v1338_v43 = vrot.slane %v1336_v15, 3  ;;  %v1341_v6 = vrot.slane %v1339_v57, 4  ;;  %4435 = vmatprep.subr.bf16.mxu1 %v4879_v10  ;;  %v1676_v5 = vshrl.u32 %v3964_v26, 16  ;;  %v1679_v14 = vshll.u32 %v3964_v26, 16  ;;  %v4911_v57 = vld [vmem:[%s6214_s3] ss:$0 sm:$0xff] }
  0x69   : > { %4564 = vmatpush3.bf16.msra.mxu0 %v4876_v48  ;;  %v2548_v29 = vrot.slane %v2546_v28, 4  ;;  %v2551_v17 = vrot.slane %v2549_v35, 5  ;;  %v1334_v40 = vsel %vm1299_vm11, %v5523_v11, %v1333_v3  ;;  %vm877_vm1 = vcmp.ge.s32.totalorder %v749_v0, 1  ;;  %v4883_v11 = vld [vmem:[%s6216_s5 + $0xa8] sm:$0xff]  }
  0x6a   : > { %v5678_v63 = vor.u32 %v1341_v6, %v1338_v43  ;;  %4565 = vmatprep.subr.bf16.mxu0 %v4878_v45  ;;  %v763_v34 = vand.u32 15, %v5569_v50  ;;  %4417 = vmatprep.mubr.bf16.mxu1 %v1334_v40  ;;  %v1678_v48 = vrot.slane %v1676_v5, 3  ;;  %v1681_v38 = vrot.slane %v1679_v14, 4  ;;  %vm950_vm2 = vmpackc.low %vm877_vm1, %vm877_vm1  ;;  %v4912_v6 = vld [vmem:[%s6215_s4] ss:$0 sm:$0xff] }
  0x6b   : > { %v5685_v37 = vor.u32 %v2551_v17, %v2548_v29  ;;  %4436 = vmatpush3.bf16.msra.mxu1 %v4879_v10  ;;  %v674_v31 = vadd.s32 120, %v5066_v9  ;;  %v966_v50 = vsel %vm950_vm2, 65537, %v4960_v7  ;;  %v4212_v55 = vunpack.c.l.bf16 %v4211_v30 }
  0x6c   : > { %v1343_v53 = vsel %vm1299_vm11, %v1333_v3, %v5678_v63  ;;  %vm879_vm13 = vcmp.ge.s32.totalorder %v763_v34, 1  ;;  %4437 = vmatprep.subr.bf16.mxu1 %v4881_v4  ;;  %v5696_v18 = vor.u32 %v1681_v38, %v1678_v48  ;;  %v3923_v9 = vcombine.low %v966_v50, %v5143_v41  ;;  %v4885_v3 = vld [vmem:[%s6216_s5 + $0xb0] sm:$0xff]   ;;  %v4884_v34 = vld [vmem:[%s6216_s5 + $0x1b8] sm:$0xff]  }
  0x6d   : > { %4418 = vmatmul.mubr.bf16.gmra.mrb[4].mxu1 %v1343_v53  ;;  %v2553_v10 = vsel %vm996_vm12, %v2543_v39, %v5685_v37  ;;  %4566 = vmatpush3.bf16.msra.mxu0 %v4878_v45  ;;  %vm952_vm1 = vmpackc.low %vm879_vm13, %vm879_vm13  ;;  %v784_v49 = vand.u32 15, %v674_v31  ;;  %v4213_v15 = vunpack.c.h.bf16 %v4211_v30  ;;  %v641_v58 = vmul.f32 %v4911_v57, %v4212_v55  ;;  %v4882_v39 = vld [vmem:[%s6216_s5 + $0x1b0] sm:$0xff]  }
  0x6e   : > { %4549 = vmatprep.mubr.bf16.mxu0 %v2553_v10  ;;  %4567 = vmatprep.subr.bf16.mxu0 %v4880_v36  ;;  %v968_v47 = vsel %vm952_vm1, 65537, %v4960_v7  ;;  %v650_v56 = vstv %s5683_s19  ;;  %v5710_v45 = vsel %vm1299_vm11, %v5630_v13, %v5696_v18  ;;  %v1042_v28 = vshrl.u32 %v3923_v9, 16 }
  0x6f   : > { %v1045_v35 = vshll.u32 %v3923_v9, 16  ;;  %v3924_v26 = vcombine.low %v968_v47, %v5143_v41  ;;  %4438 = vmatpush3.bf16.msra.mxu1 %v4881_v4  ;;  %vm1699_vm13 = vcmp.ne.s16.totalorder %v5710_v45, 0  ;;  %vm898_vm2 = vcmp.le.s32.totalorder %v784_v49, 14  ;;  %v4907_v45 = vld [vmem:[%s6216_s5 + $0x220] sm:$0xff]  }
  0x70   : > { %v642_v43 = vmul.f32 %v4911_v57, %v4213_v15  ;;  %v643_v0 = vadd.f32 %v4912_v6, %v641_v58  ;;  %4439 = vmatprep.subr.bf16.mxu1 %v4883_v11  ;;  %v2481_v13 = vsel %vm1699_vm13, %v5467_v12, 0  ;;  %v1044_v30 = vrot.slane %v1042_v28, 4  ;;  %vm1581_vm1 = vmpackc.low %vm898_vm2, %vm898_vm2 }
  0x71   : > { %v1047_v4 = vrot.slane %v1045_v35, 5  ;;  %v1051_v29 = vshrl.u32 %v3924_v26, 16  ;;  %4568 = vmatpush3.bf16.msra.mxu0 %v4880_v36  ;;  %v2555_v17 = vshrl.u32 %v2481_v13, 16  ;;  %v2558_v5 = vshll.u32 %v2481_v13, 16 }
  0x72   : > { %v1054_v14 = vshll.u32 %v3924_v26, 16  ;;  %v1597_v40 = vsel %vm1581_vm1, 65537, %v4960_v7  ;;  %4569 = vmatprep.subr.bf16.mxu0 %v4882_v39  ;;  %v644_v53 = vadd.f32 %v4912_v6, %v642_v43  ;;  %v645_v10 = vmax.f32 %v643_v0, 0.0  ;;  %v4887_v7 = vld [vmem:[%s6216_s5 + $0xb8] sm:$0xff]  }
  0x73   : > { %v1048_v48 = vor.u32 %v1047_v4, %v1044_v30  ;;  %v1053_v38 = vrot.slane %v1051_v29, 4  ;;  %v3965_v31 = vcombine.low %v5143_v41, %v1597_v40  ;;  %4440 = vmatpush3.bf16.msra.mxu1 %v4883_v11  ;;  %v2557_v50 = vrot.slane %v2555_v17, 4 }
  0x74   : > { %v2560_v55 = vrot.slane %v2558_v5, 5  ;;  %v1056_v36 = vrot.slane %v1054_v14, 5  ;;  %4441 = vmatprep.subr.bf16.mxu1 %v4885_v3  ;;  %v646_v15 = vmax.f32 %v644_v53, 0.0  ;;  %vm5738_vm1 = vcmp.eq.s32.totalorder %v650_v56, 1 }
  0x75   : > { %v5733_v9 = vsel %vm996_vm12, %v5628_v60, %v1048_v48  ;;  %v1685_v49 = vshrl.u32 %v3965_v31, 16  ;;  %v1688_v47 = vshll.u32 %v3965_v31, 16  ;;  %4570 = vmatpush3.bf16.msra.mxu0 %v4882_v39  ;;  %v5748_v39 = vld [vmem:[%s6216_s5 + $0x1c0] sm:$0xff]   ;;  %v2750_v31 = vld [vmem:[#allocation2 + $0x10] sm:$0xf8] }
  0x76   : > { %v5735_v41 = vor.u32 %v2560_v55, %v2557_v50  ;;  %vm1073_vm2 = vcmp.ne.s16.totalorder %v5733_v9, 0  ;;  %v1057_v11 = vor.u32 %v1056_v36, %v1053_v38  ;;  %4571 = vmatprep.subr.bf16.mxu0 %v4884_v34  ;;  %v647_v35 = vpack.c.bf16 %v646_v15, %v645_v10  ;;  %v5792_v10 = vld [vmem:[#allocation2 + $0x18] sm:$0xff]  ;;  %v4902_v9 = vld [vmem:[%s6216_s5 + $0x200] sm:$0xff]  }
  0x77   : > { %v1082_v58 = vsel %vm1073_vm2, %v5436_v20, 0  ;;  %v1687_v60 = vrot.slane %v1685_v49, 3  ;;  %v1690_v28 = vrot.slane %v1688_v47, 4  ;;  %4442 = vmatpush3.bf16.msra.mxu1 %v4885_v3  ;;  %v5759_v20 = vld [vmem:[%s6216_s5 + $0xc0] sm:$0xff]   ;;  %v1375_v15 = vshll.u32 %v5535_v24, 16 }
  0x78   : > { %v2562_v56 = vsel %vm996_vm12, %v5685_v37, %v5735_v41  ;;  %v1345_v26 = vshrl.u32 %v1082_v58, 16  ;;  %v1348_v43 = vshll.u32 %v1082_v58, 16  ;;  %v5754_v6 = vsel %vm996_vm12, %v1048_v48, %v1057_v11  ;;  %4443 = vmatprep.subr.bf16.mxu1 %v4887_v7  ;;  %v5797_v58 = vld [vmem:[#allocation2 + $0x20] sm:$0xff] }
  0x79   : > { %4550 = vmatmul.mubr.bf16.gmra.mrb[8].mxu0 %v2562_v56  ;;  %vm1074_vm0 = vcmp.ne.s16.totalorder %v5754_v6, 0  ;;  %v5762_v3 = vor.u32 %v1690_v28, %v1687_v60  ;;  %v652_v0 = vsel %vm5738_vm1, %v647_v35, 0  ;;  %v5768_v37 = vsel %vm996_vm12, %v1057_v11, %v5513_v21 }
  0x7a   : > { %v1347_v13 = vrot.slane %v1345_v26, 3  ;;  %v1350_v30 = vrot.slane %v1348_v43, 4  ;;  %v1083_v4 = vsel %vm1074_vm0, %v5460_v51, 0  ;;  %v654_v29 = vrot.slane %v652_v0, 4  ;;  %4572 = vmatpush3.bf16.msra.mxu0 %v4884_v34 }
  0x7b   : > { %v1354_v17 = vshrl.u32 %v1083_v4, 16  ;;  %v1357_v5 = vshll.u32 %v1083_v4, 16  ;;  %v5776_v14 = vsel %vm1299_vm11, %v5696_v18, %v5762_v3  ;;  %vm1701_vm1 = vcmp.ne.s16.totalorder %v5762_v3, 0  ;;  %4589 = vmatprep.subr.bf16.mxu0 %v5748_v39  ;;  %4444 = vmatpush3.bf16.msra.mxu1 %v4887_v7 }
  0x7c   : > { %v1351_v40 = vor.u32 %v1350_v30, %v1347_v13  ;;  %vm1700_vm8 = vcmp.ne.s16.totalorder %v5776_v14, 0  ;;  %656 = vst [vmem:[#allocation2 + $0x50] ss:$-4 sps:$4 sm:$0xff] %v654_v29   ;;  %vm1075_vm14 = vcmp.ne.s16.totalorder %v5768_v37, 0  ;;  %v1372_v51 = vshrl.u32 %v5535_v24, 16  ;;  %4461 = vmatprep.subr.bf16.mxu1 %v5759_v20  ;;  %v4904_v37 = vld [vmem:[%s6216_s5 + $0x208] sm:$0xff]  }
  0x7d   : > { %v1356_v34 = vrot.slane %v1354_v17, 3  ;;  %v1359_v48 = vrot.slane %v1357_v5, 4  ;;  %v2482_v18 = vsel %vm1700_vm8, %v5491_v27, 0  ;;  %v1084_v38 = vsel %vm1075_vm14, %v5467_v12, 0 }
  0x7e   : > { %v1352_v53 = vsel %vm1299_vm11, %v5678_v63, %v1351_v40  ;;  %v2564_v50 = vshrl.u32 %v2482_v18, 16  ;;  %v2567_v55 = vshll.u32 %v2482_v18, 16  ;;  %v1363_v36 = vshrl.u32 %v1084_v38, 16 }
  0x7f   : > { %4421 = vmatprep.mubr.bf16.mxu1 %v1352_v53  ;;  %v1360_v7 = vor.u32 %v1359_v48, %v1356_v34  ;;  %v1366_v49 = vshll.u32 %v1084_v38, 16  ;;  %v1374_v47 = vrot.slane %v1372_v51, 3  ;;  %v2759_v12 = vsel %vm1068_vm10, %v2750_v31, 0 }
  0x80   : > { %v2566_v27 = vrot.slane %v2564_v50, 4  ;;  %v2569_v11 = vrot.slane %v2567_v55, 5  ;;  %v1365_v57 = vrot.slane %v1363_v36, 3  ;;  %v1377_v28 = vrot.slane %v1375_v15, 4  ;;  %v5814_v15 = vld [vmem:[#allocation2 + $0x28] sm:$0xff] }
  0x81   : > { %v1361_v63 = vsel %vm1299_vm11, %v1351_v40, %v1360_v7  ;;  %v1368_v60 = vrot.slane %v1366_v49, 4  ;;  %v2760_v35 = vsel %vm1069_vm4, %v5792_v10, 0  ;;  %v2786_v26 = vshrl.u32 %v2759_v12, 16 }
  0x82   : > { %4422 = vmatmul.mubr.bf16.gmra.mrb[8].mxu1 %v1361_v63  ;;  %v2570_v56 = vor.u32 %v2569_v11, %v2566_v27  ;;  %v2789_v24 = vshll.u32 %v2759_v12, 16  ;;  %v2794_v43 = vshrl.u32 %v2760_v35, 16  ;;  %v1378_v30 = vor.u32 %v1377_v28, %v1374_v47 }
  0x83   : > { %v2474_v0 = vld [vmem:[#allocation2 + $0x48] sm:$0x1f]  ;;  %v1369_v13 = vor.u32 %v1368_v60, %v1365_v57  ;;  %v2797_v4 = vshll.u32 %v2760_v35, 16  ;;  %v2761_v29 = vsel %vm1070_vm5, %v5797_v58, 0  ;;  %v2788_v40 = vrot.slane %v2786_v26, 3  ;;  %v5822_v35 = vld [vmem:[#allocation2 + $0x30] sm:$0xff] }
  0x84   : > { %v2571_v17 = vsel %vm996_vm12, %v5735_v41, %v2570_v56  ;;  %v2483_v5 = vsel %vm1701_vm1, %v2474_v0, 0  ;;  %v2791_v51 = vrot.slane %v2789_v24, 4  ;;  %v2796_v53 = vrot.slane %v2794_v43, 3 }
  0x85   : > { %4553 = vmatprep.mubr.bf16.mxu0 %v2571_v17  ;;  %v2573_v34 = vshrl.u32 %v2483_v5, 16  ;;  %v2576_v48 = vshll.u32 %v2483_v5, 16  ;;  %v1370_v18 = vsel %vm1299_vm11, %v1360_v7, %v1369_v13  ;;  %v1379_v38 = vsel %vm1299_vm11, %v1369_v13, %v1378_v30  ;;  %v5832_v30 = vld [vmem:[#allocation2 + $0x18] sm:$0xff] }
  0x86   : > { %4425 = vmatprep.mubr.bf16.mxu1 %v1370_v18  ;;  %v2792_v31 = vor.u32 %v2791_v51, %v2788_v40  ;;  %v2799_v50 = vrot.slane %v2797_v4, 4  ;;  %v2803_v55 = vshrl.u32 %v2761_v29, 16  ;;  %v2806_v41 = vshll.u32 %v2761_v29, 16  ;;  %v5840_v18 = vld [vmem:[#allocation2 + $0x38] sm:$0xff] }
  0x87   : > { %v2575_v36 = vrot.slane %v2573_v34, 4  ;;  %v2578_v49 = vrot.slane %v2576_v48, 5  ;;  %v1735_v47 = vor.u32 %v5420_v62, %v5418_v54  ;;  %v1737_v57 = vshrl.u32 %v5403_v16, 16 }
  0x88   : > { %v2800_v27 = vor.u32 %v2799_v50, %v2796_v53  ;;  %v2805_v11 = vrot.slane %v2803_v55, 3  ;;  %v1740_v7 = vshll.u32 %v5403_v16, 16  ;;  %v2808_v63 = vrot.slane %v2806_v41, 4  ;;  %v5844_v55 = vld [vmem:[#allocation2 + $0x20] sm:$0xff]  ;;  %v4891_v41 = vld [vmem:[%s6216_s5 + $0xc8] sm:$0xff]  }
  0x89   : > { %v2579_v12 = vor.u32 %v2578_v49, %v2575_v36  ;;  %v1748_v60 = vrot.slane %v1746_v1, 4  ;;  %v1751_v28 = vrot.slane %v1749_v2, 5  ;;  %v1739_v62 = vrot.slane %v1737_v57, 4 }
  0x8a   : > { %4426 = vmatmul.mubr.bf16.gmra.mrb[12].mxu1 %v1379_v38  ;;  %v2801_v54 = vsel %vm1299_vm11, %v2792_v31, %v2800_v27  ;;  %v1742_v26 = vrot.slane %v1740_v7, 5  ;;  %v2762_v24 = vsel %vm1071_vm15, %v5814_v15, 0  ;;  %v2809_v43 = vor.u32 %v2808_v63, %v2805_v11  ;;  %v5842_v38 = vld [vmem:[#allocation2 + $0x40] sm:$0xff] }
  0x8b   : > { %v2580_v16 = vsel %vm996_vm12, %v2570_v56, %v2579_v12  ;;  %v1752_v0 = vor.u32 %v1751_v28, %v1748_v60  ;;  %v2812_v13 = vshrl.u32 %v2762_v24, 16  ;;  %v2815_v59 = vshll.u32 %v2762_v24, 16  ;;  %v4888_v60 = vld [vmem:[%s6216_s5 + $0x1c8] sm:$0xff]  }
  0x8c   : > { %4554 = vmatmul.mubr.bf16.gmra.mrb[12].mxu0 %v2580_v16  ;;  %v1743_v1 = vor.u32 %v1742_v26, %v1739_v62  ;;  %v2763_v2 = vsel %vm1072_vm3, %v5822_v35, 0  ;;  %v1705_v4 = vsel %vm6224_vm7, %v5832_v30, 0  ;;  %v2810_v29 = vsel %vm1299_vm11, %v2800_v27, %v2809_v43 }
  0x8d   : > { %4573 = vmatprep.mubr.bf16.mxu0 %v2801_v54  ;;  %v2814_v56 = vrot.slane %v2812_v13, 3  ;;  %v2821_v17 = vshrl.u32 %v2763_v2, 16  ;;  %v2824_v5 = vshll.u32 %v2763_v2, 16  ;;  %v2817_v34 = vrot.slane %v2815_v59, 4 }
  0x8e   : > { %v1744_v40 = vsel %vm996_vm12, %v1735_v47, %v1743_v1  ;;  %v1753_v51 = vsel %vm996_vm12, %v1743_v1, %v1752_v0  ;;  %v1755_v48 = vshrl.u32 %v1705_v4, 16  ;;  %v1758_v50 = vshll.u32 %v1705_v4, 16  ;;  %v4893_v1 = vld [vmem:[%s6216_s5 + $0xd0] sm:$0xff]   ;;  %v5866_v4 = vld [vmem:[#allocation2 + $0x28] sm:$0xff] }
  0x8f   : > { %4445 = vmatprep.mubr.bf16.mxu1 %v1744_v40  ;;  %v2823_v31 = vrot.slane %v2821_v17, 3  ;;  %v2826_v53 = vrot.slane %v2824_v5, 4  ;;  %v1706_v36 = vsel %vm1697_vm9, %v5844_v55, 0  ;;  %v2818_v49 = vor.u32 %v2817_v34, %v2814_v56  ;;  %v5873_v5 = vld [vmem:[#allocation2 + $0x48] sm:$0xff]  ;;  %v5875_v40 = vld [vmem:[#allocation2 + $0x50] sm:$0xf] }
  0x90   : > { %v1757_v47 = vrot.slane %v1755_v48, 4  ;;  %v1764_v27 = vshrl.u32 %v1706_v36, 16  ;;  %v1767_v11 = vshll.u32 %v1706_v36, 16  ;;  %v1760_v7 = vrot.slane %v1758_v50, 5  ;;  %v4890_v34 = vld [vmem:[%s6216_s5 + $0x1d0] sm:$0xff]  }
  0x91   : > { %v2827_v57 = vor.u32 %v2826_v53, %v2823_v31  ;;  %v2764_v12 = vsel %vm1073_vm2, %v5840_v18, 0  ;;  %v2765_v63 = vsel %vm1074_vm0, %v5842_v38, 0  ;;  %v2819_v28 = vsel %vm1299_vm11, %v2809_v43, %v2818_v49  ;;  %v5882_v31 = vld [vmem:[#allocation2 + $0x30] sm:$0xff] }
  0x92   : > { %4446 = vmatmul.mubr.bf16.vlgmr.msra.gmra.mrb[0].mxu1 %v1753_v51  ;;  %v1766_v54 = vrot.slane %v1764_v27, 4  ;;  %v1769_v62 = vrot.slane %v1767_v11, 5  ;;  %v2830_v26 = vshrl.u32 %v2764_v12, 16  ;;  %v1761_v24 = vor.u32 %v1760_v7, %v1757_v47  ;;  %v4895_v27 = vld [vmem:[%s6216_s5 + $0xd8] sm:$0xff]  }
  0x93   : > { %4462 = vmatpush3.bf16.msra.mxu1 %v5759_v20  ;;  %v2833_v16 = vshll.u32 %v2764_v12, 16  ;;  %v2839_v2 = vshrl.u32 %v2765_v63, 16  ;;  %v1707_v43 = vsel %vm1698_vm6, %v5866_v4, 0  ;;  %v2842_v56 = vshll.u32 %v2765_v63, 16 }
  0x94   : > { %4574 = vmatmul.mubr.bf16.vlgmr.msra.gmra.mrb[0].mxu0 %v2810_v29  ;;  %4463 = vmatprep.subr.bf16.mxu1 %v4891_v41  ;;  %v1770_v13 = vor.u32 %v1769_v62, %v1766_v54  ;;  %v2832_v59 = vrot.slane %v2830_v26, 3  ;;  %v1762_v20 = vsel %vm996_vm12, %v1752_v0, %v1761_v24  ;;  %v1773_v17 = vshrl.u32 %v1707_v43, 16  ;;  %v4892_v62 = vld [vmem:[%s6216_s5 + $0x1d8] sm:$0xff]  }
  0x95   : > { %4590 = vmatpush3.bf16.msra.mxu0 %v5748_v39  ;;  %4577 = vmatprep.mubr.bf16.mxu0 %v2819_v28  ;;  %v2835_v29 = vrot.slane %v2833_v16, 4  ;;  %v2828_v51 = vsel %vm1299_vm11, %v2818_v49, %v2827_v57  ;;  %v1776_v48 = vshll.u32 %v1707_v43, 16  ;;  %v1708_v0 = vsel %vm1699_vm13, %v5882_v31, 0  ;;  %v5903_v43 = vld [vmem:[#allocation2 + $0x38] sm:$0xff] }
  0x96   : > { %4591 = vmatprep.subr.bf16.mxu0 %v4888_v60  ;;  %4449 = vmatprep.mubr.bf16.mxu1 %v1762_v20  ;;  %v1771_v39 = vsel %vm996_vm12, %v1761_v24, %v1770_v13  ;;  %v1775_v50 = vrot.slane %v1773_v17, 4  ;;  %v1782_v36 = vshrl.u32 %v1708_v0, 16  ;;  %v1785_v49 = vshll.u32 %v1708_v0, 16 }
  0x97   : > { %4464 = vmatpush3.bf16.msra.mxu1 %v4891_v41  ;;  %v5887_v53 = vor.u32 %v2835_v29, %v2832_v59  ;;  %v2841_v47 = vrot.slane %v2839_v2, 3  ;;  %v1778_v11 = vrot.slane %v1776_v48, 5  ;;  %v2766_v7 = vsel %vm1075_vm14, %v5873_v5, 0  ;;  %v1533_v59 = vld [vmem:[#allocation2 + $0x40] sm:$0x1f] }
  0x98   : > { %4465 = vmatprep.subr.bf16.mxu1 %v4893_v1  ;;  %vm6246_vm7 = vcmp.ne.s16.totalorder %v5513_v21, 0  ;;  %v2844_v12 = vrot.slane %v2842_v56, 4  ;;  %v1784_v63 = vrot.slane %v1782_v36, 4  ;;  %v1787_v28 = vrot.slane %v1785_v49, 5 }
  0x99   : > { %v2767_v41 = vsel %vm6246_vm7, %v5875_v40, 0  ;;  %4592 = vmatpush3.bf16.msra.mxu0 %v4888_v60  ;;  %v2848_v54 = vshrl.u32 %v2766_v7, 16  ;;  %v2837_v26 = vsel %vm1299_vm11, %v2827_v57, %v5887_v53  ;;  %v1779_v24 = vor.u32 %v1778_v11, %v1775_v50  ;;  %v4897_v57 = vld [vmem:[%s6216_s5 + $0xe0] sm:$0xff]  }
  0x9a   : > { %4593 = vmatprep.subr.bf16.mxu0 %v4890_v34  ;;  %4450 = vmatmul.mubr.bf16.gmra.mrb[4].mxu1 %v1771_v39  ;;  %v2851_v16 = vshll.u32 %v2766_v7, 16  ;;  %v1788_v21 = vor.u32 %v1787_v28, %v1784_v63  ;;  %v2857_v60 = vshrl.u32 %v2767_v41, 16  ;;  %v1709_v20 = vsel %vm1700_vm8, %v5903_v43, 0  ;;  %v1977_v7 = vld [vmem:[#allocation2 + $0x8] sm:$0xf8] }
  0x9b   : > { %4466 = vmatpush3.bf16.msra.mxu1 %v4893_v1  ;;  %v2850_v2 = vrot.slane %v2848_v54, 3  ;;  %v1780_v29 = vsel %vm996_vm12, %v1770_v13, %v1779_v24  ;;  %v2860_v17 = vshll.u32 %v2767_v41, 16  ;;  %v1791_v1 = vshrl.u32 %v1709_v20, 16  ;;  %v4894_v13 = vld [vmem:[%s6216_s5 + $0x1e0] sm:$0xff]   ;;  %v4899_v63 = vld [vmem:[%s6216_s5 + $0xe8] sm:$0xff]  }
  0x9c   : > { %4578 = vmatmul.mubr.bf16.gmra.mrb[4].mxu0 %v2828_v51  ;;  %4467 = vmatprep.subr.bf16.mxu1 %v4895_v27  ;;  %v2853_v56 = vrot.slane %v2851_v16, 4  ;;  %v1988_v39 = vsel %vm1070_vm5, %v5832_v30, 0  ;;  %v2845_v48 = vor.u32 %v2844_v12, %v2841_v47  ;;  %v1794_v0 = vshll.u32 %v1709_v20, 16 }
  0x9d   : > { %4594 = vmatpush3.bf16.msra.mxu0 %v4890_v34  ;;  %4581 = vmatprep.mubr.bf16.mxu0 %v2837_v26  ;;  %v1710_v51 = vsel %vm1701_vm1, %v1533_v59, 0  ;;  %v1793_v36 = vrot.slane %v1791_v1, 4  ;;  %v1987_v30 = vsel %vm1069_vm4, %v4918_v42, 0  ;;  %v1789_v34 = vsel %vm996_vm12, %v1779_v24, %v1788_v21  ;;  %v4896_v24 = vld [vmem:[%s6216_s5 + $0x1e8] sm:$0xff]  }
  0x9e   : > { %4595 = vmatprep.subr.bf16.mxu0 %v4892_v62  ;;  %4453 = vmatprep.mubr.bf16.mxu1 %v1780_v29  ;;  %v5920_v50 = vor.u32 %v2853_v56, %v2850_v2  ;;  %v1800_v49 = vshrl.u32 %v1710_v51, 16  ;;  %v1803_v11 = vshll.u32 %v1710_v51, 16  ;;  %v1796_v47 = vrot.slane %v1794_v0, 5  ;;  %v5935_v2 = vld [vmem:[#allocation2 + $0x10] sm:$0xf0] }
  0x9f   : > { %4468 = vmatpush3.bf16.msra.mxu1 %v4895_v27  ;;  %v2859_v41 = vrot.slane %v2857_v60, 3  ;;  %v2862_v12 = vrot.slane %v2860_v17, 4  ;;  %v2030_v26 = vshrl.u32 %v1988_v39, 16  ;;  %v2033_v16 = vshll.u32 %v1988_v39, 16  ;;  %v4901_v39 = vld [vmem:[%s6216_s5 + $0xf0] sm:$0xff]  }
  0xa0   : > { %4469 = vmatprep.subr.bf16.mxu1 %v4897_v57  ;;  %v1802_v28 = vrot.slane %v1800_v49, 4  ;;  %v1805_v54 = vrot.slane %v1803_v11, 5  ;;  %v2846_v52 = vsel %vm1299_vm11, %v5887_v53, %v2845_v48  ;;  %v1797_v27 = vor.u32 %v1796_v47, %v1793_v36  ;;  %v4898_v36 = vld [vmem:[%s6216_s5 + $0x1f0] sm:$0xff]  }
  0xa1   : > { %4596 = vmatpush3.bf16.msra.mxu0 %v4892_v62  ;;  %v2855_v59 = vsel %vm1299_vm11, %v2845_v48, %v5920_v50  ;;  %v1986_v60 = vsel %vm1068_vm10, %v1977_v7, 0  ;;  %v2021_v20 = vshrl.u32 %v1987_v30, 16  ;;  %v2024_v62 = vshll.u32 %v1987_v30, 16 }
  0xa2   : > { %4597 = vmatprep.subr.bf16.mxu0 %v4894_v13  ;;  %4454 = vmatmul.mubr.bf16.gmra.mrb[8].mxu1 %v1789_v34  ;;  %v1798_v53 = vsel %vm996_vm12, %v1788_v21, %v1797_v27  ;;  %v1806_v29 = vor.u32 %v1805_v54, %v1802_v28  ;;  %v2013_v56 = vshrl.u32 %v1986_v60, 16  ;;  %v2016_v17 = vshll.u32 %v1986_v60, 16  ;;  %v4900_v28 = vld [vmem:[%s6216_s5 + $0x1f8] sm:$0xff]  }
  0xa3   : > { %4470 = vmatpush3.bf16.msra.mxu1 %v4897_v57  ;;  %v2863_v1 = vor.u32 %v2862_v12, %v2859_v41  ;;  %v2023_v48 = vrot.slane %v2021_v20, 3  ;;  %v2026_v0 = vrot.slane %v2024_v62, 4  ;;  %v3061_v22 = vrot.slane %v5935_v2, 4  ;;  %4457 = vmatprep.mubr.bf16.mxu1 %v1798_v53  ;;  %v4903_v41 = vld [vmem:[%s6216_s5 + $0xf8] sm:$0xff]  }
  0xa4   : > { %4582 = vmatmul.mubr.bf16.gmra.mrb[8].mxu0 %v2846_v52  ;;  %4471 = vmatprep.subr.bf16.mxu1 %v4899_v63  ;;  %v3062_v57 = vrot.slane %v5792_v10, 4  ;;  %v2015_v51 = vrot.slane %v2013_v56, 3  ;;  %v2018_v21 = vrot.slane %v2016_v17, 4  ;;  %v2032_v11 = vrot.slane %v2030_v26, 3 }
  0xa5   : > { %4598 = vmatpush3.bf16.msra.mxu0 %v4894_v13  ;;  %4585 = vmatprep.mubr.bf16.mxu0 %v2855_v59  ;;  %v2027_v49 = vor.u32 %v2026_v0, %v2023_v48  ;;  %v2035_v42 = vrot.slane %v2033_v16, 4  ;;  %v1989_v13 = vsel %vm1071_vm15, %v5844_v55, 0  ;;  %v1807_v30 = vsel %vm996_vm12, %v1797_v27, %v1806_v29 }
  0xa6   : > { %4599 = vmatprep.subr.bf16.mxu0 %v4896_v24  ;;  %v2019_v34 = vor.u32 %v2018_v21, %v2015_v51  ;;  %v2039_v47 = vshrl.u32 %v1989_v13, 16  ;;  %v1990_v7 = vsel %vm1072_vm3, %v5866_v4, 0  ;;  %v2042_v12 = vshll.u32 %v1989_v13, 16 }
  0xa7   : > { %4472 = vmatpush3.bf16.msra.mxu1 %v4899_v63  ;;  %v2864_v8 = vsel %vm1299_vm11, %v5920_v50, %v2863_v1  ;;  %vm6247_vm4 = vcmask 1043456   ;;  %v2036_v4 = vor.u32 %v2035_v42, %v2032_v11  ;;  %v2048_v26 = vshrl.u32 %v1990_v7, 16  ;;  %v4919_v1 = vld [vmem:[#allocation2 + $0x40] sm:$0xff] }
  0xa8   : > { %4473 = vmatprep.subr.bf16.mxu1 %v4901_v39  ;;  %v2028_v55 = vsel %vm1299_vm11, %v2019_v34, %v2027_v49  ;;  %v2041_v63 = vrot.slane %v2039_v47, 3  ;;  %v3063_v19 = vsel %vm6247_vm4, %v3061_v22, %v3062_v57  ;;  %v2044_v54 = vrot.slane %v2042_v12, 4 }
  0xa9   : > { %4600 = vmatpush3.bf16.msra.mxu0 %v4896_v24  ;;  %v2051_v16 = vshll.u32 %v1990_v7, 16  ;;  %v1991_v50 = vsel %vm1073_vm2, %v5882_v31, 0  ;;  %v1992_v52 = vsel %vm1074_vm0, %v5903_v43, 0  ;;  %v3064_v59 = vrot.slane %v5797_v58, 4  ;;  %vm6248_vm0 = vmmov %vm6247_vm4 }
  0xaa   : > { %4601 = vmatprep.subr.bf16.mxu0 %v4898_v36  ;;  %4458 = vmatmul.mubr.bf16.gmra.mrb[12].mxu1 %v1807_v30  ;;  %v2045_v27 = vor.u32 %v2044_v54, %v2041_v63  ;;  %v2057_v24 = vshrl.u32 %v1991_v50, 16  ;;  %v2060_v60 = vshll.u32 %v1991_v50, 16  ;;  %v2066_v20 = vshrl.u32 %v1992_v52, 16  ;;  %vm6252_vm7 = vmmov %vm6248_vm0 }
  0xab   : > { %4474 = vmatpush3.bf16.msra.mxu1 %v4901_v39  ;;  %4477 = vmatprep.mubr.bf16.mxu1 %v2028_v55  ;;  %v2069_v62 = vshll.u32 %v1992_v52, 16  ;;  %v2037_v31 = vsel %vm1299_vm11, %v2027_v49, %v2036_v4  ;;  %v3066_v6 = vrot.slane %v5814_v15, 4  ;;  %v3068_v43 = vrot.slane %v5822_v35, 4  ;;  %v4905_v55 = vld [vmem:[%s6216_s5 + $0x210] sm:$0xff]   ;;  %vm6254_vm3 = vmmov %vm6248_vm0 }
  0xac   : > { %4586 = vmatmul.mubr.bf16.gmra.mrb[12].mxu0 %v2864_v8  ;;  %4475 = vmatprep.subr.bf16.mxu1 %v4903_v41  ;;  %v2050_v53 = vrot.slane %v2048_v26, 3  ;;  %v2053_v29 = vrot.slane %v2051_v16, 4  ;;  %v2059_v56 = vrot.slane %v2057_v24, 3  ;;  %v2062_v17 = vrot.slane %v2060_v60, 4 }
  0xad   : > { %4602 = vmatpush3.bf16.msra.mxu0 %v4898_v36  ;;  %4605 = vmatprep.mubr.bf16.mxu0 %v3063_v19  ;;  %v1993_v39 = vsel %vm1075_vm14, %v4919_v1, 0  ;;  %v2046_v48 = vsel %vm1299_vm11, %v2036_v4, %v2045_v27  ;;  %v3065_v51 = vsel %vm6248_vm0, %v3062_v57, %v3064_v59  ;;  %v2068_v21 = vrot.slane %v2066_v20, 3  ;;  %vm6251_vm14 = vmmov %vm6248_vm0 }
  0xae   : > { %4603 = vmatprep.subr.bf16.mxu0 %v4900_v28  ;;  %v2075_v0 = vshrl.u32 %v1993_v39, 16  ;;  %v2078_v22 = vshll.u32 %v1993_v39, 16  ;;  %v2071_v36 = vrot.slane %v2069_v62, 4  ;;  %vm6249_vm5 = vcmp.ne.s16.totalorder %v5257_v44, 0 }
  0xaf   : > { %4476 = vmatpush3.bf16.msra.mxu1 %v4903_v41  ;;  %v3249_v49 = vsel %vm6249_vm5, %v5792_v10, 0  ;;  %vm6250_vm10 = vcmp.ne.s16.totalorder %v5232_v32, 0  ;;  %v3067_v42 = vsel %vm6251_vm14, %v3064_v59, %v3066_v6  ;;  %v3069_v57 = vsel %vm6252_vm7, %v3066_v6, %v3068_v43  ;;  %v4906_v59 = vld [vmem:[%s6216_s5 + $0x218] sm:$0xff]  }
  0xb0   : > { %4653 = vmatprep.subr.bf16.mxu1 %v4902_v9  ;;  %v5988_v11 = vsel %vm6250_vm10, %v5935_v2, 0  ;;  %v2054_v13 = vor.u32 %v2053_v29, %v2050_v53  ;;  %v3070_v44 = vrot.slane %v5840_v18, 4  ;;  %v3072_v10 = vrot.slane %v5842_v38, 4  ;;  %v3247_v53 = vld [vmem:[#allocation2 + $0x50] sm:$0x1f] }
  0xb1   : > { %4604 = vmatpush3.bf16.msra.mxu0 %v4900_v28  ;;  %v2063_v32 = vor.u32 %v2062_v17, %v2059_v56  ;;  %v2077_v2 = vrot.slane %v2075_v0, 3  ;;  %v2080_v30 = vrot.slane %v2078_v22, 4  ;;  %v3283_v34 = vshrl.u32 %v3249_v49, 16 }
  0xb2   : > { %4621 = vmatprep.subr.bf16.mxu0 %v4902_v9  ;;  %4478 = vmatmul.mubr.bf16.vlgmr.msra.gmra.mrb[0].mxu1 %v2037_v31  ;;  %v3286_v47 = vshll.u32 %v3249_v49, 16  ;;  %v2072_v7 = vor.u32 %v2071_v36, %v2068_v21  ;;  %v2084_v41 = vshrl.u32 %v5530_v61, 16  ;;  %v2087_v12 = vshll.u32 %v5530_v61, 16 }
  0xb3   : > { %4661 = vmatpush3.bf16.msra.mxu1 %v4902_v9  ;;  %4481 = vmatprep.mubr.bf16.mxu1 %v2046_v48  ;;  %vm6253_vm15 = vcmp.ne.s16.totalorder %v5341_v46, 0  ;;  %v3285_v63 = vrot.slane %v3283_v34, 4  ;;  %v3252_v4 = vsel %vm1697_vm9, %v5822_v35, 0  ;;  %v2055_v54 = vsel %vm1299_vm11, %v2045_v27, %v2054_v13  ;;  %vm6257_vm9 = vmmov %vm6248_vm0 }
  0xb4   : > { %4606 = vmatmul.mubr.bf16.vlgmr.msra.gmra.mrb[0].mxu0 %v3065_v51  ;;  %4654 = vmatprep.subr.bf16.mxu1 %v4904_v37  ;;  %v3250_v8 = vsel %vm6253_vm15, %v5797_v58, 0  ;;  %v3288_v28 = vrot.slane %v3286_v47, 5  ;;  %v3071_v46 = vsel %vm6254_vm3, %v3068_v43, %v3070_v44  ;;  %v3074_v61 = vrot.slane %v5873_v5, 4 }
  0xb5   : > { %4622 = vmatpush3.bf16.msra.mxu0 %v4902_v9  ;;  %4609 = vmatprep.mubr.bf16.mxu0 %v3067_v42  ;;  %v3292_v19 = vshrl.u32 %v3250_v8, 16  ;;  %v3295_v58 = vshll.u32 %v3250_v8, 16  ;;  %v2064_v26 = vsel %vm1299_vm11, %v2054_v13, %v2063_v32  ;;  %v6014_v16 = vor.u32 %v2080_v30, %v2077_v2  ;;  %v4908_v30 = vld [vmem:[%s6216_s5 + $0x228] sm:$0xff]  }
  0xb6   : > { %4623 = vmatprep.subr.bf16.mxu0 %v4904_v37  ;;  %v3253_v33 = vsel %vm1698_vm6, %v5840_v18, 0  ;;  %v6019_v35 = vor.u32 %v3288_v28, %v3285_v63  ;;  %v3310_v27 = vshrl.u32 %v3252_v4, 16  ;;  %v3313_v24 = vshll.u32 %v3252_v4, 16 }
  0xb7   : > { %4662 = vmatpush3.bf16.msra.mxu1 %v4904_v37  ;;  %v3294_v50 = vrot.slane %v3292_v19, 4  ;;  %v3297_v52 = vrot.slane %v3295_v58, 5  ;;  %v2073_v60 = vsel %vm1299_vm11, %v2063_v32, %v2072_v7  ;;  %v6025_v20 = vrot.slane %v2084_v41, 3  ;;  %v4909_v19 = vld [vmem:[%s6216_s5 + $0x230] sm:$0xff]  }
  0xb8   : > { %4655 = vmatprep.subr.bf16.mxu1 %v4905_v55  ;;  %v6027_v62 = vrot.slane %v2087_v12, 4  ;;  %v3275_v25 = vshrl.u32 %v5988_v11, 16  ;;  %v3278_v9 = vshll.u32 %v5988_v11, 16  ;;  %v3319_v6 = vshrl.u32 %v3253_v33, 16 }
  0xb9   : > { %4624 = vmatpush3.bf16.msra.mxu0 %v4904_v37  ;;  %v3298_v31 = vor.u32 %v3297_v52, %v3294_v50  ;;  %v3322_v43 = vshll.u32 %v3253_v33, 16  ;;  %v2082_v29 = vsel %vm1299_vm11, %v2072_v7, %v6014_v16  ;;  %v3254_v56 = vsel %vm1699_vm13, %v5842_v38, 0  ;;  %vm6258_vm13 = vmmov %vm6248_vm0  ;;  %v4910_v33 = vld [vmem:[%s6216_s5 + $0x238] sm:$0xff]  }
  0xba   : > { %4625 = vmatprep.subr.bf16.mxu0 %v4905_v55  ;;  %4482 = vmatmul.mubr.bf16.gmra.mrb[4].mxu1 %v2055_v54  ;;  %vm6255_vm6 = vcmp.ne.s16.totalorder %v5591_v23, 0  ;;  %v3255_v1 = vsel %vm1700_vm8, %v5873_v5, 0  ;;  %v3312_v48 = vrot.slane %v3310_v27, 4  ;;  %v3315_v0 = vrot.slane %v3313_v24, 5  ;;  %vm6256_vm8 = vmmov %vm6248_vm0 }
  0xbb   : > { %4663 = vmatpush3.bf16.msra.mxu1 %v4905_v55  ;;  %4485 = vmatprep.mubr.bf16.mxu1 %v2064_v26  ;;  %v3251_v17 = vsel %vm6255_vm6, %v5814_v15, 0  ;;  %v6044_v39 = vsel %vm996_vm12, %v6019_v35, %v3298_v31  ;;  %v3337_v15 = vshrl.u32 %v3255_v1, 16  ;;  %v3340_v51 = vshll.u32 %v3255_v1, 16 }
  0xbc   : > { %4610 = vmatmul.mubr.bf16.gmra.mrb[4].mxu0 %v3069_v57  ;;  %4656 = vmatprep.subr.bf16.mxu1 %v4906_v59  ;;  %v3301_v22 = vshrl.u32 %v3251_v17, 16  ;;  %v3304_v23 = vshll.u32 %v3251_v17, 16  ;;  %v3256_v14 = vsel %vm1701_vm1, %v3247_v53, 0  ;;  %v3321_v21 = vrot.slane %v3319_v6, 4 }
  0xbd   : > { %4626 = vmatpush3.bf16.msra.mxu0 %v4905_v55  ;;  %4613 = vmatprep.mubr.bf16.mxu0 %v3071_v46  ;;  %v3324_v36 = vrot.slane %v3322_v43, 5  ;;  %v3346_v11 = vshrl.u32 %v3256_v14, 16  ;;  %v3339_v42 = vrot.slane %v3337_v15, 4  ;;  %v3342_v57 = vrot.slane %v3340_v51, 5 }
  0xbe   : > { %4627 = vmatprep.subr.bf16.mxu0 %v4906_v59  ;;  %v3303_v49 = vrot.slane %v3301_v22, 4  ;;  %v3306_v37 = vrot.slane %v3304_v23, 5  ;;  %v3349_v13 = vshll.u32 %v3256_v14, 16  ;;  %v3073_v32 = vsel %vm6256_vm8, %v3070_v44, %v3072_v10 }
  0xbf   : > { %4664 = vmatpush3.bf16.msra.mxu1 %v4906_v59  ;;  %v3075_v3 = vsel %vm6257_vm9, %v3072_v10, %v3074_v61  ;;  %v3348_v2 = vrot.slane %v3346_v11, 4  ;;  %v3277_v34 = vrot.slane %v3275_v25, 4  ;;  %v3280_v47 = vrot.slane %v3278_v9, 5 }
  0xc0   : > { %4657 = vmatprep.subr.bf16.mxu1 %v4907_v45  ;;  %v3307_v7 = vor.u32 %v3306_v37, %v3303_v49  ;;  %v3351_v41 = vrot.slane %v3349_v13, 5  ;;  %v2090_v18 = vor.u32 %v6027_v62, %v6025_v20  ;;  %v3328_v44 = vshrl.u32 %v3254_v56, 16 }
  0xc1   : > { %4628 = vmatpush3.bf16.msra.mxu0 %v4906_v59  ;;  %v3331_v38 = vshll.u32 %v3254_v56, 16  ;;  %v3343_v12 = vor.u32 %v3342_v57, %v3339_v42  ;;  %v3316_v10 = vor.u32 %v3315_v0, %v3312_v48  ;;  %v3325_v8 = vor.u32 %v3324_v36, %v3321_v21 }
  0xc2   : > { %4629 = vmatprep.subr.bf16.mxu0 %v4907_v45  ;;  %4486 = vmatmul.mubr.bf16.gmra.mrb[8].mxu1 %v2073_v60  ;;  %v3308_v55 = vsel %vm996_vm12, %v3298_v31, %v3307_v7  ;;  %v3076_v63 = vrot.slane %v5875_v40, 4  ;;  %v3352_v28 = vor.u32 %v3351_v41, %v3348_v2  ;;  %v3281_v4 = vor.u32 %v3280_v47, %v3277_v34 }
  0xc3   : > { %4665 = vmatpush3.bf16.msra.mxu1 %v4907_v45  ;;  %4489 = vmatprep.mubr.bf16.mxu1 %v2082_v29  ;;  %v2091_v54 = vsel %vm1299_vm11, %v6014_v16, %v2090_v18  ;;  %v3330_v46 = vrot.slane %v3328_v44, 4  ;;  %v3333_v58 = vrot.slane %v3331_v38, 5  ;;  %v3326_v50 = vsel %vm996_vm12, %v3316_v10, %v3325_v8 }
  0xc4   : > { %4614 = vmatmul.mubr.bf16.gmra.mrb[8].mxu0 %v3073_v32  ;;  %4658 = vmatprep.subr.bf16.mxu1 %v4908_v30  ;;  %v3353_v26 = vsel %vm996_vm12, %v3343_v12, %v3352_v28  ;;  %v3077_v40 = vsel %vm6258_vm13, %v3074_v61, %v3076_v63  ;;  %v3290_v16 = vsel %vm996_vm12, %v3281_v4, %v6019_v35  ;;  %vm3587_vm11 = vcmask 27648  }
  0xc5   : > { %4630 = vmatpush3.bf16.msra.mxu0 %v4907_v45  ;;  %4617 = vmatprep.mubr.bf16.mxu0 %v3075_v3  ;;  %v3334_v52 = vor.u32 %v3333_v58, %v3330_v46  ;;  %v3317_v35 = vsel %vm996_vm12, %v3307_v7, %v3316_v10  ;;  %vm3711_vm2 = vcmask 1040384   ;;  %vm3713_vm1 = vcmask 25600  }
  0xc6   : > { %4631 = vmatprep.subr.bf16.mxu0 %v4908_v30 }
  0xc7   : > { %4666 = vmatpush3.bf16.msra.mxu1 %v4908_v30  ;;  %v3335_v5 = vsel %vm996_vm12, %v3325_v8, %v3334_v52  ;;  %v3344_v61 = vsel %vm996_vm12, %v3334_v52, %v3343_v12  ;;  %vm3620_vm12 = vcmask 31744  }
  0xc8   : > { %4659 = vmatprep.subr.bf16.mxu1 %v4909_v19 }
  0xc9   : > { %4632 = vmatpush3.bf16.msra.mxu0 %v4908_v30 }
  0xca   : > { %4633 = vmatprep.subr.bf16.mxu0 %v4909_v19  ;;  %4490 = vmatmul.mubr.bf16.gmra.mrb[12].mxu1 %v2091_v54 }
  0xcb   : > { %4667 = vmatpush3.bf16.msra.mxu1 %v4909_v19  ;;  %4645 = vmatprep.mubr.bf16.mxu1 %v3326_v50 }
  0xcc   : > { %4618 = vmatmul.mubr.bf16.gmra.mrb[12].mxu0 %v3077_v40  ;;  %4660 = vmatprep.subr.bf16.mxu1 %v4910_v33 }
  0xcd   : > { %4634 = vmatpush3.bf16.msra.mxu0 %v4909_v19  ;;  %4637 = vmatprep.mubr.bf16.mxu0 %v3290_v16 }
  0xce   : > { %4635 = vmatprep.subr.bf16.mxu0 %v4910_v33 }
  0xcf   : > { %4668 = vmatpush3.bf16.msra.mxu1 %v4910_v33 }
  0xd1   : > { %4636 = vmatpush3.bf16.msra.mxu0 %v4910_v33 }
  0xd2   : > { %4646 = vmatmul.mubr.bf16.vlgmr.msra.gmra.mrb[16].mxu1 %v3335_v5 }
  0xd3   : > { %4649 = vmatprep.mubr.bf16.mxu1 %v3344_v61 }
  0xd4   : > { %4638 = vmatmul.mubr.bf16.vlgmr.msra.gmra.mrb[0].mxu0 %v6044_v39 }
  0xd5   : > { %4641 = vmatprep.mubr.bf16.mxu0 %v3308_v55 }
  0xda   : > { %4650 = vmatmul.mubr.bf16.gmra.mrb[20].mxu1 %v3353_v26 }
  0xdc   : > { %4642 = vmatmul.mubr.bf16.gmra.mrb[4].mxu0 %v3317_v35 }
 0x185   : > { %v4479_v27 = vpop.f32.mrb[0].mxu1 }
 0x186   : > { %v2182_v24 = vpop.f32.mrb[1].mxu1 }
 0x187   : > { %v4480_v59 = vpop.f32.mrb[2].mxu1 }
 0x188   : > { %v2185_v60 = vpop.f32.mrb[3].mxu1 }
 0x18d   : > { %v6087_v20 = vpop.f32.mrb[4].mxu1 }
 0x18e   : > { %v6089_v62 = vpop.f32.mrb[5].mxu1 }
 0x18f   : > { %v6091_v25 = vpop.f32.mrb[6].mxu1 }
 0x190   : > { %v6093_v9 = vpop.f32.mrb[7].mxu1 }
 0x195   : > { %v4487_v31 = vpop.f32.mrb[8].mxu1 }
 0x196   : > { %v2214_v6 = vpop.f32.mrb[9].mxu1 }
 0x197   : > { %v4615_v43 = vpop.f32.mrb[8].mxu0  ;;  %v4488_v53 = vpop.f32.mrb[10].mxu1 }
 0x198   : > { %v3200_v29 = vpop.f32.mrb[9].mxu0  ;;  %v4677_v56 = vadd.f32 %v4615_v43, %v4487_v31  ;;  %v2217_v17 = vpop.f32.mrb[11].mxu1 }
 0x199   : > { %v4616_v1 = vpop.f32.mrb[10].mxu0  ;;  %v4679_v39 = vadd.f32 %v3200_v29, %v2214_v6 }
 0x19a   : > { %v3203_v48 = vpop.f32.mrb[11].mxu0  ;;  %v4681_v0 = vadd.f32 %v4616_v1, %v4488_v53 }
 0x19b   : > { %v4683_v22 = vadd.f32 %v3203_v48, %v2217_v17 }
 0x19d   : > { %v4491_v45 = vpop.f32.mrb[12].mxu1 }
 0x19e   : > { %v2230_v23 = vpop.f32.mrb[13].mxu1 }
 0x19f   : > { %v4619_v15 = vpop.f32.mrb[12].mxu0  ;;  %v4492_v51 = vpop.f32.mrb[14].mxu1 }
 0x1a0   : > { %v3216_v14 = vpop.f32.mrb[13].mxu0  ;;  %v6095_v21 = vadd.f32 %v4619_v15, %v4491_v45  ;;  %v2233_v36 = vpop.f32.mrb[15].mxu1 }
 0x1a1   : > { %v4620_v49 = vpop.f32.mrb[14].mxu0  ;;  %v6097_v11 = vadd.f32 %v3216_v14, %v2230_v23 }
 0x1a2   : > { %v3219_v37 = vpop.f32.mrb[15].mxu0  ;;  %v6099_v42 = vadd.f32 %v4620_v49, %v4492_v51 }
 0x1a3   : > { %v6101_v57 = vadd.f32 %v3219_v37, %v2233_v36 }
 0x1a5   : > { %v4647_v13 = vpop.f32.mrb[16].mxu1 }
 0x1a6   : > { %v4678_v32 = vadd.f32 %v4677_v56, %v4647_v13  ;;  %v3476_v3 = vpop.f32.mrb[17].mxu1 }
 0x1a7   : > { %v4639_v2 = vpop.f32.mrb[0].mxu0  ;;  %v4680_v30 = vadd.f32 %v4679_v39, %v3476_v3  ;;  %v4648_v34 = vpop.f32.mrb[18].mxu1 }
 0x1a8   : > { %v4669_v47 = vadd.f32 %v4639_v2, %v4479_v27  ;;  %v3444_v7 = vpop.f32.mrb[1].mxu0  ;;  %v4168_v41 = vpack.c.bf16 %v4678_v32, %v4678_v32  ;;  %v4682_v18 = vadd.f32 %v4681_v0, %v4648_v34  ;;  %v3479_v44 = vpop.f32.mrb[19].mxu1 }
 0x1a9   : > { %v4670_v38 = vadd.f32 %v3444_v7, %v2182_v24  ;;  %v4640_v12 = vpop.f32.mrb[2].mxu0  ;;  %v4166_v10 = vpack.c.bf16 %v4680_v30, %v4680_v30  ;;  %v4684_v8 = vadd.f32 %v4683_v22, %v3479_v44 }
 0x1aa   : > { %v4160_v55 = vpack.c.bf16 %v4669_v47, %v4669_v47  ;;  %v4671_v63 = vadd.f32 %v4640_v12, %v4480_v59  ;;  %v3447_v28 = vpop.f32.mrb[3].mxu0  ;;  %3598 = vst.msk [vmem:[%s6107_s20 + $0x28] sm:$0xf] %vm3587_vm11, %v4168_v41  ;;  %v6111_v19 = vpack.c.bf16 %v4682_v18, %v4678_v32  ;;  %v4169_v4 = vpack.c.bf16 %v4682_v18, %v4682_v18 }
 0x1ab   : > { %v4158_v54 = vpack.c.bf16 %v4670_v38, %v4670_v38  ;;  %v4672_v46 = vadd.f32 %v3447_v28, %v2185_v60  ;;  %3596 = vst.msk [vmem:[%s6107_s20 + $0x20] sm:$0xf] %vm3587_vm11, %v4166_v10  ;;  %v6115_v58 = vpack.c.bf16 %v4684_v8, %v4680_v30  ;;  %v4167_v26 = vpack.c.bf16 %v4684_v8, %v4684_v8 }
 0x1ac   : > { %3590 = vst.msk [vmem:[%s6107_s20 + $0x8] sm:$0xf] %vm3587_vm11, %v4160_v55  ;;  %v3524_v50 = vpack.c.bf16 %v4671_v63, %v4669_v47  ;;  %v4161_v40 = vpack.c.bf16 %v4671_v63, %v4671_v63  ;;  %3599 = vst.msk [vmem:[%s6107_s20 + $0x2c] sm:$0xf] %vm3587_vm11, %v4169_v4 }
 0x1ad   : > { %3588 = vst.msk [vmem:[%s6107_s20] sm:$0xf] %vm3587_vm11, %v4158_v54  ;;  %v3523_v33 = vpack.c.bf16 %v4672_v46, %v4670_v38  ;;  %v4159_v16 = vpack.c.bf16 %v4672_v46, %v4672_v46  ;;  %3597 = vst.msk [vmem:[%s6107_s20 + $0x24] sm:$0xf] %vm3587_vm11, %v4167_v26  ;;  %v4651_v52 = vpop.f32.mrb[20].mxu1  ;;  %v3612_v46 = vunpack.c.l.bf16 %v6115_v58 }
 0x1ae   : > { %3591 = vst.msk [vmem:[%s6107_s20 + $0xc] sm:$0xf] %vm3587_vm11, %v4161_v40  ;;  %v3606_v5 = vunpack.c.l.bf16 %v3524_v50  ;;  %v3492_v61 = vpop.f32.mrb[21].mxu1  ;;  %v3607_v35 = vunpack.c.h.bf16 %v3524_v50  ;;  %v4686_v47 = vadd.f32 %v6095_v21, %v4651_v52 }
 0x1af   : > { %3589 = vst.msk [vmem:[%s6107_s20 + $0x4] sm:$0xf] %vm3587_vm11, %v4159_v16  ;;  %v3604_v27 = vunpack.c.l.bf16 %v3523_v33  ;;  %v3605_v24 = vunpack.c.h.bf16 %v3523_v33  ;;  %v4643_v59 = vpop.f32.mrb[4].mxu0  ;;  %v4652_v60 = vpop.f32.mrb[22].mxu1 }
 0x1b0   : > { %v3660_v31 = vmul.f32 %v3606_v5, %v3606_v5  ;;  %v3460_v6 = vpop.f32.mrb[5].mxu0  ;;  %v3495_v43 = vpop.f32.mrb[23].mxu1  ;;  %v3624_v39 = vsel %vm3620_vm12, %v3606_v5, 0.0  ;;  %v3661_v22 = vmul.f32 %v3607_v35, %v3607_v35  ;;  %v4673_v15 = vadd.f32 %v4643_v59, %v6087_v20 }
 0x1b1   : > { %v3621_v53 = vsel %vm3620_vm12, %v3604_v27, 0.0  ;;  %v3622_v29 = vsel %vm3620_vm12, %v3605_v24, 0.0  ;;  %v3658_v56 = vmul.f32 %v3604_v27, %v3604_v27  ;;  %v3659_v17 = vmul.f32 %v3605_v24, %v3605_v24  ;;  %v4644_v1 = vpop.f32.mrb[6].mxu0 }
 0x1b2   : > { %v3623_v48 = vadd.f32 %v3622_v29, %v3621_v53  ;;  %v3463_v0 = vpop.f32.mrb[7].mxu0  ;;  %v3626_v36 = vsel %vm3620_vm12, %v3607_v35, 0.0  ;;  %v3677_v49 = vsel %vm3620_vm12, %v3660_v31, 0.0  ;;  %v4164_v37 = vpack.c.bf16 %v4673_v15, %v4673_v15 }
 0x1b3   : > { %v3674_v45 = vsel %vm3620_vm12, %v3658_v56, 0.0  ;;  %v3675_v23 = vsel %vm3620_vm12, %v3659_v17, 0.0  ;;  %v4674_v13 = vadd.f32 %v3460_v6, %v6089_v62  ;;  %v4675_v3 = vadd.f32 %v4644_v1, %v6091_v25 }
 0x1b4   : > { %v3625_v51 = vadd.f32 %v3624_v39, %v3623_v48  ;;  %v3676_v14 = vadd.f32 %v3675_v23, %v3674_v45  ;;  %v4676_v2 = vadd.f32 %v3463_v0, %v6093_v9  ;;  %v3679_v20 = vsel %vm3620_vm12, %v3661_v22, 0.0  ;;  %3594 = vst.msk [vmem:[%s6107_s20 + $0x18] sm:$0xf] %vm3587_vm11, %v4164_v37 }
 0x1b5   : > { %v4162_v34 = vpack.c.bf16 %v4674_v13, %v4674_v13  ;;  %v3526_v7 = vpack.c.bf16 %v4675_v3, %v4673_v15  ;;  %v4165_v41 = vpack.c.bf16 %v4675_v3, %v4675_v3  ;;  %v4172_v44 = vpack.c.bf16 %v4686_v47, %v4686_v47 }
 0x1b6   : > { %v3678_v32 = vadd.f32 %v3677_v49, %v3676_v14  ;;  %v3627_v30 = vadd.f32 %v3626_v36, %v3625_v51  ;;  %v3525_v18 = vpack.c.bf16 %v4676_v2, %v4674_v13  ;;  %v4163_v62 = vpack.c.bf16 %v4676_v2, %v4676_v2 }
 0x1b7   : > { %3592 = vst.msk [vmem:[%s6107_s20 + $0x10] sm:$0xf] %vm3587_vm11, %v4162_v34  ;;  %v4688_v9 = vadd.f32 %v6097_v11, %v3492_v61  ;;  %v4690_v38 = vadd.f32 %v6099_v42, %v4652_v60  ;;  %3595 = vst.msk [vmem:[%s6107_s20 + $0x1c] sm:$0xf] %vm3587_vm11, %v4165_v41  ;;  %v3610_v12 = vunpack.c.l.bf16 %v3526_v7  ;;  %v4692_v28 = vadd.f32 %v6101_v57, %v3495_v43 }
 0x1b8   : > { %v3680_v25 = vadd.f32 %v3679_v20, %v3678_v32  ;;  %3593 = vst.msk [vmem:[%s6107_s20 + $0x14] sm:$0xf] %vm3587_vm11, %v4163_v62  ;;  %v3608_v21 = vunpack.c.l.bf16 %v3525_v18  ;;  %v3609_v10 = vunpack.c.h.bf16 %v3525_v18  ;;  %3602 = vst.msk [vmem:[%s6107_s20 + $0x38] sm:$0xf] %vm3587_vm11, %v4172_v44  ;;  %v3611_v4 = vunpack.c.h.bf16 %v3526_v7 }
 0x1b9   : > { %v4170_v8 = vpack.c.bf16 %v4688_v9, %v4688_v9  ;;  %v3530_v55 = vpack.c.bf16 %v4690_v38, %v4686_v47  ;;  %v4173_v63 = vpack.c.bf16 %v4690_v38, %v4690_v38  ;;  %v3664_v50 = vmul.f32 %v3610_v12, %v3610_v12 }
 0x1ba   : > { %v3628_v11 = vsel %vm3620_vm12, %v3608_v21, 0.0  ;;  %v3662_v54 = vmul.f32 %v3608_v21, %v3608_v21  ;;  %v3663_v42 = vmul.f32 %v3609_v10, %v3609_v10  ;;  %v3630_v40 = vsel %vm3620_vm12, %v3609_v10, 0.0 }
 0x1bb   : > { %3600 = vst.msk [vmem:[%s6107_s20 + $0x30] sm:$0xf] %vm3587_vm11, %v4170_v8  ;;  %3603 = vst.msk [vmem:[%s6107_s20 + $0x3c] sm:$0xf] %vm3587_vm11, %v4173_v63  ;;  %v3629_v26 = vadd.f32 %v3628_v11, %v3627_v30  ;;  %v3529_v16 = vpack.c.bf16 %v4692_v28, %v4688_v9  ;;  %v3613_v57 = vunpack.c.h.bf16 %v6115_v58  ;;  %v3632_v61 = vsel %vm3620_vm12, %v3610_v12, 0.0 }
 0x1bc   : > { %v3681_v33 = vsel %vm3620_vm12, %v3662_v54, 0.0  ;;  %v3665_v35 = vmul.f32 %v3611_v4, %v3611_v4  ;;  %v3683_v27 = vsel %vm3620_vm12, %v3663_v42, 0.0  ;;  %v4171_v24 = vpack.c.bf16 %v4692_v28, %v4692_v28 }
 0x1bd   : > { %v3631_v52 = vadd.f32 %v3630_v40, %v3629_v26  ;;  %v3682_v5 = vadd.f32 %v3681_v33, %v3680_v25  ;;  %v3614_v31 = vunpack.c.l.bf16 %v6111_v19  ;;  %v3666_v6 = vmul.f32 %v3612_v46, %v3612_v46 }
 0x1be   : > { %v3634_v43 = vsel %vm3620_vm12, %v3611_v4, 0.0  ;;  %v3685_v53 = vsel %vm3620_vm12, %v3664_v50, 0.0  ;;  %3601 = vst.msk [vmem:[%s6107_s20 + $0x34] sm:$0xf] %vm3587_vm11, %v4171_v24  ;;  %v3615_v56 = vunpack.c.h.bf16 %v6111_v19  ;;  %v3636_v17 = vsel %vm3620_vm12, %v3612_v46, 0.0 }
 0x1bf   : > { %v3633_v59 = vadd.f32 %v3632_v61, %v3631_v52  ;;  %v3684_v60 = vadd.f32 %v3683_v27, %v3682_v5  ;;  %v3667_v1 = vmul.f32 %v3613_v57, %v3613_v57  ;;  %v3687_v39 = vsel %vm3620_vm12, %v3665_v35, 0.0 }
 0x1c0   : > { %v3668_v22 = vmul.f32 %v3614_v31, %v3614_v31  ;;  %v3638_v45 = vsel %vm3620_vm12, %v3613_v57, 0.0  ;;  %v3689_v23 = vsel %vm3620_vm12, %v3666_v6, 0.0  ;;  %v3616_v15 = vunpack.c.l.bf16 %v3529_v16 }
 0x1c1   : > { %v3635_v58 = vadd.f32 %v3634_v43, %v3633_v59  ;;  %v3686_v29 = vadd.f32 %v3685_v53, %v3684_v60  ;;  %v3640_v36 = vsel %vm3620_vm12, %v3614_v31, 0.0  ;;  %v3669_v49 = vmul.f32 %v3615_v56, %v3615_v56 }
 0x1c2   : > { %v3691_v19 = vsel %vm3620_vm12, %v3667_v1, 0.0  ;;  %v3617_v37 = vunpack.c.h.bf16 %v3529_v16  ;;  %v3642_v3 = vsel %vm3620_vm12, %v3615_v56, 0.0  ;;  %v3693_v2 = vsel %vm3620_vm12, %v3668_v22, 0.0 }
 0x1c3   : > { %v3637_v48 = vadd.f32 %v3636_v17, %v3635_v58  ;;  %v3688_v0 = vadd.f32 %v3687_v39, %v3686_v29  ;;  %v3618_v30 = vunpack.c.l.bf16 %v3530_v55  ;;  %v3670_v20 = vmul.f32 %v3616_v15, %v3616_v15 }
 0x1c4   : > { %v3695_v7 = vsel %vm3620_vm12, %v3669_v49, 0.0  ;;  %v3619_v41 = vunpack.c.h.bf16 %v3530_v55  ;;  %v3644_v18 = vsel %vm3620_vm12, %v3616_v15, 0.0  ;;  %v3671_v62 = vmul.f32 %v3617_v37, %v3617_v37 }
 0x1c5   : > { %v3690_v51 = vadd.f32 %v3689_v23, %v3688_v0  ;;  %v3639_v14 = vadd.f32 %v3638_v45, %v3637_v48  ;;  %v3672_v9 = vmul.f32 %v3618_v30, %v3618_v30  ;;  %v3646_v38 = vsel %vm3620_vm12, %v3617_v37, 0.0 }
 0x1c6   : > { %v3697_v12 = vsel %vm3620_vm12, %v3670_v20, 0.0  ;;  %v3648_v8 = vsel %vm3620_vm12, %v3618_v30, 0.0  ;;  %v3673_v63 = vmul.f32 %v3619_v41, %v3619_v41  ;;  %v3699_v55 = vsel %vm3620_vm12, %v3671_v62, 0.0 }
 0x1c7   : > { %v3641_v13 = vadd.f32 %v3640_v36, %v3639_v14  ;;  %v3692_v32 = vadd.f32 %v3691_v19, %v3690_v51  ;;  %v3650_v11 = vsel %vm3620_vm12, %v3619_v41, 0.0  ;;  %v3701_v54 = vsel %vm3620_vm12, %v3672_v9, 0.0 }
 0x1c8   : > { %v3703_v26 = vsel %vm3620_vm12, %v3673_v63, 0.0 }
 0x1c9   : > { %v3643_v34 = vadd.f32 %v3642_v3, %v3641_v13  ;;  %v3694_v47 = vadd.f32 %v3693_v2, %v3692_v32 }
 0x1cb   : > { %v3645_v25 = vadd.f32 %v3644_v18, %v3643_v34  ;;  %v3696_v44 = vadd.f32 %v3695_v7, %v3694_v47 }
 0x1cd   : > { %v3647_v21 = vadd.f32 %v3646_v38, %v3645_v25  ;;  %v3698_v10 = vadd.f32 %v3697_v12, %v3696_v44 }
 0x1cf   : > { %v3649_v28 = vadd.f32 %v3648_v8, %v3647_v21  ;;  %v3700_v4 = vadd.f32 %v3699_v55, %v3698_v10 }
 0x1d1   : > { %v3651_v42 = vadd.f32 %v3650_v11, %v3649_v28  ;;  %v3702_v46 = vadd.f32 %v3701_v54, %v3700_v4 }
 0x1d3   : > { %v3652_v50 = vrot.slane %v3651_v42, 4  ;;  %v3704_v40 = vadd.f32 %v3703_v26, %v3702_v46 }
 0x1d5   : > { %v3653_v33 = vadd.f32 %v3652_v50, %v3651_v42  ;;  %v3705_v16 = vrot.slane %v3704_v40, 4 }
 0x1d7   : > { %v3654_v57 = vrot.slane %v3653_v33, 2  ;;  %v3706_v52 = vadd.f32 %v3705_v16, %v3704_v40 }
 0x1d9   : > { %v3655_v5 = vadd.f32 %v3654_v57, %v3653_v33  ;;  %v3707_v61 = vrot.slane %v3706_v52, 2 }
 0x1db   : > { %v3656_v35 = vrot.slane %v3655_v5, 1  ;;  %v3708_v27 = vadd.f32 %v3707_v61, %v3706_v52 }
 0x1dd   : > { %v3709_v24 = vrot.slane %v3708_v27, 1  ;;  %v3657_v59 = vadd.f32 %v3656_v35, %v3655_v5 }
 0x1df   : > { %v3710_v60 = vadd.f32 %v3709_v24, %v3708_v27 }
 0x1e1   : > { %v3712_v31 = vsel %vm3711_vm2, %v3657_v59, %v3710_v60 }
 0x1e2   : > { %3714 = vst.msk [vmem:[%s466_s11] sm:$0x3] %vm3713_vm1, %v3712_v31 }
 0x1e3 PF: > { %s18_s28 = sadd.s32 1, %s4958_s28   ;;  %s6259_s24 = smov %s4950_s26 }
 0x1e4   : > { %p15_p13 = scmp.ge.s32.totalorder %s18_s28, 6   ;;  %s6260_s25 = smov %s4954_s27 }
 0x1e5   : > { %s6261_s26 = smov %s6264_s29  ;;  %s6262_s27 = smov %s6268_s30 }
 0x1e6   :  { %17 = sbr.rel (!%p15_p13) target bundleno = 3 (0x3), region = 100 }

// kernel: denseblock_forward.8
= control target key start
LH: loop header
LB: loop body
LE: loop exit
PB: predicated region body
PF: predicated region fallthrough
CT: control target
= control target key end

     0   :  { %s2036_s30 = smov 0   ;;  %s2328_s0 = inlined_call_operand.vmem [shape: f32[512,4], index: 0, kind: input, shape index: {}]   ;;  %s2329_s1 = inlined_call_operand.vmem [shape: f32[1,4], index: 1, kind: input, shape index: {}]   ;;  %s2330_s2 = inlined_call_operand.vmem [shape: f32[1,4], index: 2, kind: input, shape index: {}]   ;;  %s2331_s3 = inlined_call_operand.vmem [shape: bf16[4,128], index: 3, kind: input, shape index: {}]   ;;  %s2332_s4 = inlined_call_operand.vmem [shape: bf16[512,4], index: 4, kind: input, shape index: {}]   ;;  %s2333_s5 = inlined_call_operand.vmem [shape: f32[1,4], index: 5, kind: input, shape index: {}]   ;;  %s2334_s6 = inlined_call_operand.vmem [shape: f32[1,4], index: 6, kind: input, shape index: {}]   ;;  %s2335_s7 = inlined_call_operand.vmem [shape: bf16[4,128], index: 7, kind: input, shape index: {}]   ;;  %s2336_s8 = inlined_call_operand.vmem [shape: bf16[512,128], index: 8, kind: output, shape index: {0}]   ;;  %s2337_s9 = inlined_call_operand.vmem [shape: f32[2,2,128], index: 9, kind: output, shape index: {1}]  }
   0x1 LB: > { %s2042_s10 = sadd.s32 4294967295, %s1984_s30   ;;  %p1550_p0 = scmp.ge.s32.totalorder %s1984_s30, 1  ;;  %s1984_s30 = sphi %s2036_s30, %s20_s30  }
   0x2   : > { %p302_p1 = scmp.lt.s32.totalorder %s1984_s30, 3 }
   0x4   : > { %p303_p2 = pnand %p1550_p0, %p302_p1 }
   0x5   : > { %v528_v0 = vld [vmem:[%s2331_s3] sm:$0x3] (!%p303_p2)  ;;  %vm769_vm0 = vcmask (!%p303_p2), 1041408   ;;  %s1551_s15 = sshll.u32 (!%p303_p2), %s2042_s10, 5  ;;  %vm720_vm1 = vcmask (!%p303_p2), 31744   ;;  %p365_p4 = scmp.lt.s32.totalorder (!%p303_p2), %s2042_s10, 1 }
   0x6   : > { %306 = sbr.rel (%p303_p2) target bundleno = 332 (0x14c), region = 52  ;;  %v719_v1 = vld [vmem:[%s2335_s7] sm:$0x3] (!%p303_p2)  ;;  %1969 = vmatprep.subr.msk.bf16.mxu0 (!%p303_p2), %vm769_vm0, %v528_v0  ;;  %v983_v2 = vsel (!%p303_p2), %vm769_vm0, %v528_v0, 0  ;;  %p348_p3 = scmp.lt.s32.totalorder (!%p303_p2), %s1551_s15, 63  ;;  %vm1444_vm2 = vcmask (!%p303_p2), 1040384  }
   0x7   : > { %1968 = vmatprep.subr.msk.bf16.mxu1 (!%p303_p2), %vm769_vm0, %v719_v1  ;;  %v771_v3 = vsel (!%p303_p2), %vm769_vm0, %v719_v1, 0  ;;  %1903 = vmatpush3.bf16.msra.mxu0 (!%p303_p2), %v983_v2  ;;  %v2059_v4 = vld [vmem:[%s2329_s1] ss:$0 sm:$0xff] (!%p303_p2) }
   0x8   : > { %1869 = vmatpush3.bf16.msra.mxu1 (!%p303_p2), %v771_v3  ;;  %v2070_v5 = vld [vmem:[%s2330_s2] ss:$0 sm:$0xff] (!%p303_p2) }
   0x9   : > { %v2082_v6 = vld [vmem:[%s2333_s5] ss:$0 sm:$0xff] (!%p303_p2) }
   0xa   : > { %v2100_v23 = vld [vmem:[%s2334_s6] ss:$0 sm:$0xff] (!%p303_p2) }
   0xd   : > { %s2339_s15 = smov (!%p348_p3, %s1551_s15), 63  ;;  %s2341_s10 = smov (!%p365_p4, %s2042_s10), 1 }
   0xe   : > { %s1552_s16 = sshll.u32 %s2339_s15, 3  ;;  %s1554_s19 = sshll.u32 %s2339_s15, 2 }
   0xf   : > { %s2065_s22 = scalar_lea.vmem %s2328_s0, %s1552_s16  ;;  %s2077_s27 = scalar_lea.vmem %s2332_s4, %s1554_s19 }
  0x10   : > { %v370_v7 = vld [vmem:[%s2065_s22] sm:$0xff]  ;;  %v371_v8 = vld [vmem:[%s2065_s22 + $0x8] sm:$0xff]  ;;  %v372_v9 = vld [vmem:[%s2065_s22 + $0x10] sm:$0xff]  ;;  %s2302_s16 = scalar_lea.vmem %s2336_s8, %s1554_s19  ;;  %s1557_s15 = sshll.u32 %s2341_s10, 1 }
  0x11   : > { %v409_v10 = vmul.f32 %v2059_v4, %v370_v7  ;;  %v410_v11 = vmul.f32 %v2059_v4, %v371_v8  ;;  %v373_v12 = vld [vmem:[%s2065_s22 + $0x18] sm:$0xff]  ;;  %v411_v13 = vmul.f32 %v2059_v4, %v372_v9  ;;  %v1661_v14 = vld [vmem:[%s2077_s27] sm:$0xff]   ;;  %v1804_v15 = vld [vmem:[%s2077_s27 + $0x8] sm:$0xff]   ;;  %s368_s19 = scalar_lea.vmem %s2337_s9, %s1557_s15 }
  0x12   : > { %v412_v16 = vmul.f32 %v2059_v4, %v373_v12  ;;  %v1662_v17 = vunpack.c.l.bf16 %v1661_v14  ;;  %v1663_v18 = vunpack.c.h.bf16 %v1661_v14  ;;  %v1666_v19 = vunpack.c.l.bf16 %v1804_v15  ;;  %v374_v29 = vld [vmem:[%s2065_s22 + $0x20] sm:$0xff]  ;;  %v375_v30 = vld [vmem:[%s2065_s22 + $0x28] sm:$0xff]  ;;  %v376_v39 = vld [vmem:[%s2065_s22 + $0x30] sm:$0xff] }
  0x13   : > { %v448_v20 = vadd.f32 %v2070_v5, %v409_v10  ;;  %v449_v21 = vadd.f32 %v2070_v5, %v410_v11  ;;  %v450_v22 = vadd.f32 %v2070_v5, %v411_v13  ;;  %v1667_v24 = vunpack.c.h.bf16 %v1804_v15  ;;  %v377_v44 = vld [vmem:[%s2065_s22 + $0x38] sm:$0xff]  ;;  %v1805_v45 = vld [vmem:[%s2077_s27 + $0x10] sm:$0xff]   ;;  %v378_v59 = vld [vmem:[%s2065_s22 + $0x40] sm:$0xff] }
  0x14   : > { %v451_v25 = vadd.f32 %v2070_v5, %v412_v16  ;;  %v600_v26 = vmul.f32 %v1662_v17, %v2082_v6  ;;  %v601_v27 = vmul.f32 %v1663_v18, %v2082_v6  ;;  %v602_v28 = vmul.f32 %v1666_v19, %v2082_v6  ;;  %v1806_v54 = vld [vmem:[%s2077_s27 + $0x18] sm:$0xff]   ;;  %v379_v7 = vld [vmem:[%s2065_s22 + $0x48] sm:$0xff]  ;;  %v380_v8 = vld [vmem:[%s2065_s22 + $0x50] sm:$0xff] }
  0x15   : > { %v480_v31 = vmax.f32 %v448_v20, 0.0  ;;  %v481_v32 = vmax.f32 %v449_v21, 0.0  ;;  %v482_v33 = vmax.f32 %v450_v22, 0.0  ;;  %v603_v34 = vmul.f32 %v1667_v24, %v2082_v6  ;;  %v381_v17 = vld [vmem:[%s2065_s22 + $0x58] sm:$0xff]  ;;  %v1807_v22 = vld [vmem:[%s2077_s27 + $0x20] sm:$0xff]  }
  0x16   : > { %v483_v35 = vmax.f32 %v451_v25, 0.0  ;;  %v639_v36 = vadd.f32 %v2100_v23, %v600_v26  ;;  %v640_v37 = vadd.f32 %v2100_v23, %v601_v27  ;;  %v641_v38 = vadd.f32 %v2100_v23, %v602_v28 }
  0x17   : > { %v512_v40 = vpack.c.bf16 %v481_v32, %v480_v31  ;;  %v642_v41 = vadd.f32 %v2100_v23, %v603_v34  ;;  %v413_v42 = vmul.f32 %v2059_v4, %v374_v29  ;;  %v414_v43 = vmul.f32 %v2059_v4, %v375_v30  ;;  %v1808_v32 = vld [vmem:[%s2077_s27 + $0x28] sm:$0xff]  }
  0x18   : > { %v513_v46 = vpack.c.bf16 %v483_v35, %v482_v33  ;;  %v671_v47 = vmax.f32 %v639_v36, 0.0  ;;  %v672_v48 = vmax.f32 %v640_v37, 0.0  ;;  %v673_v49 = vmax.f32 %v641_v38, 0.0 }
  0x19   : > { %1904 = vmatprep.mubr.msk.bf16.mxu0 %vm720_vm1, %v512_v40  ;;  %v674_v50 = vmax.f32 %v642_v41, 0.0  ;;  %v452_v51 = vadd.f32 %v2070_v5, %v413_v42  ;;  %v453_v52 = vadd.f32 %v2070_v5, %v414_v43  ;;  %v415_v53 = vmul.f32 %v2059_v4, %v376_v39  ;;  %v382_v41 = vld [vmem:[%s2065_s22 + $0x60] sm:$0xff] }
  0x1a   : > { %1905 = vmatmul.mubr.msk.bf16.vlgmr.msra.gmra.mrb[0].mxu0 %vm720_vm1, %v513_v46  ;;  %v703_v55 = vpack.c.bf16 %v672_v48, %v671_v47  ;;  %v416_v56 = vmul.f32 %v2059_v4, %v377_v44  ;;  %v1670_v57 = vunpack.c.l.bf16 %v1805_v45  ;;  %v1671_v58 = vunpack.c.h.bf16 %v1805_v45  ;;  %v383_v46 = vld [vmem:[%s2065_s22 + $0x68] sm:$0xff]  ;;  %v1809_v47 = vld [vmem:[%s2077_s27 + $0x30] sm:$0xff]  }
  0x1b   : > { %v704_v60 = vpack.c.bf16 %v674_v50, %v673_v49  ;;  %v484_v61 = vmax.f32 %v452_v51, 0.0  ;;  %v485_v62 = vmax.f32 %v453_v52, 0.0  ;;  %v454_v63 = vadd.f32 %v2070_v5, %v415_v53 }
  0x1c   : > { %1870 = vmatprep.mubr.msk.bf16.mxu1 %vm720_vm1, %v703_v55  ;;  %v455_v0 = vadd.f32 %v2070_v5, %v416_v56  ;;  %v604_v1 = vmul.f32 %v1670_v57, %v2082_v6  ;;  %v605_v2 = vmul.f32 %v1671_v58, %v2082_v6  ;;  %v1674_v3 = vunpack.c.l.bf16 %v1806_v54  ;;  %v384_v56 = vld [vmem:[%s2065_s22 + $0x70] sm:$0xff]  ;;  %v385_v57 = vld [vmem:[%s2065_s22 + $0x78] sm:$0xff] }
  0x1d   : > { %1871 = vmatmul.mubr.msk.bf16.vlgmr.msra.gmra.mrb[0].mxu1 %vm720_vm1, %v704_v60  ;;  %v514_v9 = vpack.c.bf16 %v485_v62, %v484_v61  ;;  %v486_v10 = vmax.f32 %v454_v63, 0.0  ;;  %v1675_v11 = vunpack.c.h.bf16 %v1806_v54  ;;  %v417_v12 = vmul.f32 %v2059_v4, %v378_v59 }
  0x1e   : > { %v487_v13 = vmax.f32 %v455_v0, 0.0  ;;  %v643_v14 = vadd.f32 %v2100_v23, %v604_v1  ;;  %v644_v15 = vadd.f32 %v2100_v23, %v605_v2  ;;  %v606_v16 = vmul.f32 %v1674_v3, %v2082_v6 }
  0x1f   : > { %1908 = vmatprep.mubr.msk.bf16.mxu0 %vm720_vm1, %v514_v9  ;;  %v607_v18 = vmul.f32 %v1675_v11, %v2082_v6  ;;  %v418_v19 = vmul.f32 %v2059_v4, %v379_v7  ;;  %v456_v20 = vadd.f32 %v2070_v5, %v417_v12  ;;  %v419_v21 = vmul.f32 %v2059_v4, %v380_v8  ;;  %v1810_v9 = vld [vmem:[%s2077_s27 + $0x38] sm:$0xff]  }
  0x20   : > { %v515_v24 = vpack.c.bf16 %v487_v13, %v486_v10  ;;  %v675_v25 = vmax.f32 %v643_v14, 0.0  ;;  %v676_v26 = vmax.f32 %v644_v15, 0.0  ;;  %v645_v27 = vadd.f32 %v2100_v23, %v606_v16 }
  0x21   : > { %v646_v28 = vadd.f32 %v2100_v23, %v607_v18  ;;  %v457_v29 = vadd.f32 %v2070_v5, %v418_v19  ;;  %v488_v30 = vmax.f32 %v456_v20, 0.0  ;;  %v420_v31 = vmul.f32 %v2059_v4, %v381_v17  ;;  %v386_v18 = vld [vmem:[%s2065_s22 + $0x80] sm:$0xff] }
  0x22   : > { %1909 = vmatmul.mubr.msk.bf16.gmra.mrb[4].mxu0 %vm720_vm1, %v515_v24  ;;  %v705_v33 = vpack.c.bf16 %v676_v26, %v675_v25  ;;  %v677_v34 = vmax.f32 %v645_v27, 0.0  ;;  %v458_v35 = vadd.f32 %v2070_v5, %v419_v21  ;;  %v1678_v36 = vunpack.c.l.bf16 %v1807_v22  ;;  %v387_v24 = vld [vmem:[%s2065_s22 + $0x88] sm:$0xff]  ;;  %v1811_v25 = vld [vmem:[%s2077_s27 + $0x40] sm:$0xff]  }
  0x23   : > { %v678_v37 = vmax.f32 %v646_v28, 0.0  ;;  %v489_v38 = vmax.f32 %v457_v29, 0.0  ;;  %v459_v39 = vadd.f32 %v2070_v5, %v420_v31  ;;  %v1679_v40 = vunpack.c.h.bf16 %v1807_v22 }
  0x24   : > { %1874 = vmatprep.mubr.msk.bf16.mxu1 %vm720_vm1, %v705_v33  ;;  %v490_v42 = vmax.f32 %v458_v35, 0.0  ;;  %v608_v43 = vmul.f32 %v1678_v36, %v2082_v6  ;;  %v1682_v44 = vunpack.c.l.bf16 %v1808_v32  ;;  %v1683_v45 = vunpack.c.h.bf16 %v1808_v32  ;;  %v389_v35 = vld [vmem:[%s2065_s22 + $0x98] sm:$0xff] }
  0x25   : > { %v706_v48 = vpack.c.bf16 %v678_v37, %v677_v34  ;;  %v516_v49 = vpack.c.bf16 %v489_v38, %v488_v30  ;;  %v491_v50 = vmax.f32 %v459_v39, 0.0  ;;  %v609_v51 = vmul.f32 %v1679_v40, %v2082_v6  ;;  %v388_v34 = vld [vmem:[%s2065_s22 + $0x90] sm:$0xff] }
  0x26   : > { %v647_v52 = vadd.f32 %v2100_v23, %v608_v43  ;;  %v610_v53 = vmul.f32 %v1682_v44, %v2082_v6  ;;  %v611_v54 = vmul.f32 %v1683_v45, %v2082_v6  ;;  %v421_v55 = vmul.f32 %v2059_v4, %v382_v41 }
  0x27   : > { %1875 = vmatmul.mubr.msk.bf16.gmra.mrb[4].mxu1 %vm720_vm1, %v706_v48  ;;  %1912 = vmatprep.mubr.msk.bf16.mxu0 %vm720_vm1, %v516_v49  ;;  %v517_v58 = vpack.c.bf16 %v491_v50, %v490_v42  ;;  %v648_v59 = vadd.f32 %v2100_v23, %v609_v51  ;;  %v422_v60 = vmul.f32 %v2059_v4, %v383_v46  ;;  %v1686_v61 = vunpack.c.l.bf16 %v1809_v47  ;;  %v1812_v48 = vld [vmem:[%s2077_s27 + $0x48] sm:$0xff]  }
  0x28   : > { %v679_v62 = vmax.f32 %v647_v52, 0.0  ;;  %v649_v63 = vadd.f32 %v2100_v23, %v610_v53  ;;  %v650_v0 = vadd.f32 %v2100_v23, %v611_v54  ;;  %v460_v1 = vadd.f32 %v2070_v5, %v421_v55 }
  0x29   : > { %v680_v2 = vmax.f32 %v648_v59, 0.0  ;;  %v461_v3 = vadd.f32 %v2070_v5, %v422_v60  ;;  %v423_v7 = vmul.f32 %v2059_v4, %v384_v56  ;;  %v424_v8 = vmul.f32 %v2059_v4, %v385_v57 }
  0x2a   : > { %1913 = vmatmul.mubr.msk.bf16.gmra.mrb[8].mxu0 %vm720_vm1, %v517_v58  ;;  %v681_v10 = vmax.f32 %v649_v63, 0.0  ;;  %v682_v11 = vmax.f32 %v650_v0, 0.0  ;;  %v492_v12 = vmax.f32 %v460_v1, 0.0  ;;  %v1687_v13 = vunpack.c.h.bf16 %v1809_v47  ;;  %v1813_v63 = vld [vmem:[%s2077_s27 + $0x50] sm:$0xff]  }
  0x2b   : > { %v707_v14 = vpack.c.bf16 %v680_v2, %v679_v62  ;;  %v493_v15 = vmax.f32 %v461_v3, 0.0  ;;  %v462_v16 = vadd.f32 %v2070_v5, %v423_v7  ;;  %v463_v17 = vadd.f32 %v2070_v5, %v424_v8  ;;  %v391_v62 = vld [vmem:[%s2065_s22 + $0xa8] sm:$0xff] }
  0x2c   : > { %v708_v19 = vpack.c.bf16 %v682_v11, %v681_v10  ;;  %v612_v20 = vmul.f32 %v1686_v61, %v2082_v6  ;;  %v613_v21 = vmul.f32 %v1687_v13, %v2082_v6  ;;  %v1690_v22 = vunpack.c.l.bf16 %v1810_v9  ;;  %v390_v61 = vld [vmem:[%s2065_s22 + $0xa0] sm:$0xff]  ;;  %v392_v11 = vld [vmem:[%s2065_s22 + $0xb0] sm:$0xff] }
  0x2d   : > { %1878 = vmatprep.mubr.msk.bf16.mxu1 %vm720_vm1, %v707_v14  ;;  %v518_v26 = vpack.c.bf16 %v493_v15, %v492_v12  ;;  %v494_v27 = vmax.f32 %v462_v16, 0.0  ;;  %v495_v28 = vmax.f32 %v463_v17, 0.0  ;;  %v1691_v29 = vunpack.c.h.bf16 %v1810_v9  ;;  %v393_v12 = vld [vmem:[%s2065_s22 + $0xb8] sm:$0xff] }
  0x2e   : > { %v651_v30 = vadd.f32 %v2100_v23, %v612_v20  ;;  %v652_v31 = vadd.f32 %v2100_v23, %v613_v21  ;;  %v614_v32 = vmul.f32 %v1690_v22, %v2082_v6  ;;  %v425_v33 = vmul.f32 %v2059_v4, %v386_v18 }
  0x2f   : > { %1879 = vmatmul.mubr.msk.bf16.gmra.mrb[8].mxu1 %vm720_vm1, %v708_v19  ;;  %1916 = vmatprep.mubr.msk.bf16.mxu0 %vm720_vm1, %v518_v26  ;;  %v519_v36 = vpack.c.bf16 %v495_v28, %v494_v27  ;;  %v615_v37 = vmul.f32 %v1691_v29, %v2082_v6  ;;  %v426_v38 = vmul.f32 %v2059_v4, %v387_v24  ;;  %v1694_v39 = vunpack.c.l.bf16 %v1811_v25  ;;  %v1814_v26 = vld [vmem:[%s2077_s27 + $0x58] sm:$0xff]  }
  0x30   : > { %v683_v40 = vmax.f32 %v651_v30, 0.0  ;;  %v684_v41 = vmax.f32 %v652_v31, 0.0  ;;  %v653_v42 = vadd.f32 %v2100_v23, %v614_v32  ;;  %v464_v43 = vadd.f32 %v2070_v5, %v425_v33 }
  0x31   : > { %v654_v44 = vadd.f32 %v2100_v23, %v615_v37  ;;  %v465_v45 = vadd.f32 %v2070_v5, %v426_v38  ;;  %v427_v46 = vmul.f32 %v2059_v4, %v388_v34  ;;  %v428_v47 = vmul.f32 %v2059_v4, %v389_v35  ;;  %v394_v35 = vld [vmem:[%s2065_s22 + $0xc0] sm:$0xff] }
  0x32   : > { %1917 = vmatmul.mubr.msk.bf16.gmra.mrb[12].mxu0 %vm720_vm1, %v519_v36  ;;  %v709_v49 = vpack.c.bf16 %v684_v41, %v683_v40  ;;  %v685_v50 = vmax.f32 %v653_v42, 0.0  ;;  %v496_v51 = vmax.f32 %v464_v43, 0.0  ;;  %v1695_v52 = vunpack.c.h.bf16 %v1811_v25  ;;  %v395_v40 = vld [vmem:[%s2065_s22 + $0xc8] sm:$0xff]  ;;  %v1815_v41 = vld [vmem:[%s2077_s27 + $0x60] sm:$0xff]  }
  0x33   : > { %v686_v53 = vmax.f32 %v654_v44, 0.0  ;;  %v497_v54 = vmax.f32 %v465_v45, 0.0  ;;  %v466_v55 = vadd.f32 %v2070_v5, %v427_v46  ;;  %v467_v56 = vadd.f32 %v2070_v5, %v428_v47 }
  0x34   : > { %1882 = vmatprep.mubr.msk.bf16.mxu1 %vm720_vm1, %v709_v49  ;;  %v616_v57 = vmul.f32 %v1694_v39, %v2082_v6  ;;  %v617_v58 = vmul.f32 %v1695_v52, %v2082_v6  ;;  %v1698_v59 = vunpack.c.l.bf16 %v1812_v48  ;;  %v1699_v60 = vunpack.c.h.bf16 %v1812_v48 }
  0x35   : > { %v710_v0 = vpack.c.bf16 %v686_v53, %v685_v50  ;;  %v520_v1 = vpack.c.bf16 %v497_v54, %v496_v51  ;;  %v498_v2 = vmax.f32 %v466_v55, 0.0  ;;  %v499_v3 = vmax.f32 %v467_v56, 0.0  ;;  %v396_v50 = vld [vmem:[%s2065_s22 + $0xd0] sm:$0xff]  ;;  %v397_v51 = vld [vmem:[%s2065_s22 + $0xd8] sm:$0xff] }
  0x36   : > { %v655_v7 = vadd.f32 %v2100_v23, %v616_v57  ;;  %v656_v8 = vadd.f32 %v2100_v23, %v617_v58  ;;  %v618_v9 = vmul.f32 %v1698_v59, %v2082_v6  ;;  %v619_v10 = vmul.f32 %v1699_v60, %v2082_v6 }
  0x37   : > { %1883 = vmatmul.mubr.msk.bf16.gmra.mrb[12].mxu1 %vm720_vm1, %v710_v0  ;;  %1920 = vmatprep.mubr.msk.bf16.mxu0 %vm720_vm1, %v520_v1  ;;  %v521_v13 = vpack.c.bf16 %v499_v3, %v498_v2  ;;  %v429_v14 = vmul.f32 %v2059_v4, %v390_v61  ;;  %v430_v15 = vmul.f32 %v2059_v4, %v391_v62  ;;  %v1702_v16 = vunpack.c.l.bf16 %v1813_v63  ;;  %v1816_v0 = vld [vmem:[%s2077_s27 + $0x68] sm:$0xff]  }
  0x38   : > { %v687_v17 = vmax.f32 %v655_v7, 0.0  ;;  %v688_v18 = vmax.f32 %v656_v8, 0.0  ;;  %v657_v19 = vadd.f32 %v2100_v23, %v618_v9  ;;  %v658_v20 = vadd.f32 %v2100_v23, %v619_v10 }
  0x39   : > { %v468_v21 = vadd.f32 %v2070_v5, %v429_v14  ;;  %v469_v22 = vadd.f32 %v2070_v5, %v430_v15  ;;  %v431_v24 = vmul.f32 %v2059_v4, %v392_v11  ;;  %v432_v25 = vmul.f32 %v2059_v4, %v393_v12 }
  0x3a   : > { %1921 = vmatmul.mubr.msk.bf16.gmra.mrb[16].mxu0 %vm720_vm1, %v521_v13  ;;  %v711_v27 = vpack.c.bf16 %v688_v18, %v687_v17  ;;  %v689_v28 = vmax.f32 %v657_v19, 0.0  ;;  %v690_v29 = vmax.f32 %v658_v20, 0.0  ;;  %v1703_v30 = vunpack.c.h.bf16 %v1813_v63  ;;  %v399_v17 = vld [vmem:[%s2065_s22 + $0xe8] sm:$0xff]  ;;  %v1817_v18 = vld [vmem:[%s2077_s27 + $0x70] sm:$0xff]  }
  0x3b   : > { %v500_v31 = vmax.f32 %v468_v21, 0.0  ;;  %v501_v32 = vmax.f32 %v469_v22, 0.0  ;;  %v470_v33 = vadd.f32 %v2070_v5, %v431_v24  ;;  %v471_v34 = vadd.f32 %v2070_v5, %v432_v25 }
  0x3c   : > { %1886 = vmatprep.mubr.msk.bf16.mxu1 %vm720_vm1, %v711_v27  ;;  %v712_v36 = vpack.c.bf16 %v690_v29, %v689_v28  ;;  %v620_v37 = vmul.f32 %v1702_v16, %v2082_v6  ;;  %v621_v38 = vmul.f32 %v1703_v30, %v2082_v6  ;;  %v1706_v39 = vunpack.c.l.bf16 %v1814_v26  ;;  %v398_v16 = vld [vmem:[%s2065_s22 + $0xe0] sm:$0xff]  ;;  %v400_v28 = vld [vmem:[%s2065_s22 + $0xf0] sm:$0xff]  ;;  %v401_v29 = vld [vmem:[%s2065_s22 + $0xf8] sm:$0xff] }
  0x3d   : > { %v522_v42 = vpack.c.bf16 %v501_v32, %v500_v31  ;;  %v502_v43 = vmax.f32 %v470_v33, 0.0  ;;  %v503_v44 = vmax.f32 %v471_v34, 0.0  ;;  %v1707_v45 = vunpack.c.h.bf16 %v1814_v26 }
  0x3e   : > { %v659_v46 = vadd.f32 %v2100_v23, %v620_v37  ;;  %v660_v47 = vadd.f32 %v2100_v23, %v621_v38  ;;  %v622_v48 = vmul.f32 %v1706_v39, %v2082_v6  ;;  %v433_v49 = vmul.f32 %v2059_v4, %v394_v35 }
  0x3f   : > { %1887 = vmatmul.mubr.msk.bf16.gmra.mrb[16].mxu1 %vm720_vm1, %v712_v36  ;;  %1924 = vmatprep.mubr.msk.bf16.mxu0 %vm720_vm1, %v522_v42  ;;  %v523_v52 = vpack.c.bf16 %v503_v44, %v502_v43  ;;  %v623_v53 = vmul.f32 %v1707_v45, %v2082_v6  ;;  %v434_v54 = vmul.f32 %v2059_v4, %v395_v40  ;;  %v1710_v55 = vunpack.c.l.bf16 %v1815_v41  ;;  %v1818_v42 = vld [vmem:[%s2077_s27 + $0x78] sm:$0xff]  }
  0x40   : > { %v691_v56 = vmax.f32 %v659_v46, 0.0  ;;  %v692_v57 = vmax.f32 %v660_v47, 0.0  ;;  %v661_v58 = vadd.f32 %v2100_v23, %v622_v48  ;;  %v472_v59 = vadd.f32 %v2070_v5, %v433_v49 }
  0x41   : > { %v662_v60 = vadd.f32 %v2100_v23, %v623_v53  ;;  %v473_v61 = vadd.f32 %v2070_v5, %v434_v54  ;;  %v435_v62 = vmul.f32 %v2059_v4, %v396_v50  ;;  %v436_v63 = vmul.f32 %v2059_v4, %v397_v51 }
  0x42   : > { %1925 = vmatmul.mubr.msk.bf16.gmra.mrb[20].mxu0 %vm720_vm1, %v523_v52  ;;  %v713_v1 = vpack.c.bf16 %v692_v57, %v691_v56  ;;  %v693_v2 = vmax.f32 %v661_v58, 0.0  ;;  %v504_v3 = vmax.f32 %v472_v59, 0.0  ;;  %v1711_v7 = vunpack.c.h.bf16 %v1815_v41 }
  0x43   : > { %v694_v8 = vmax.f32 %v662_v60, 0.0  ;;  %v505_v9 = vmax.f32 %v473_v61, 0.0  ;;  %v474_v10 = vadd.f32 %v2070_v5, %v435_v62  ;;  %v475_v11 = vadd.f32 %v2070_v5, %v436_v63 }
  0x44   : > { %1890 = vmatprep.mubr.msk.bf16.mxu1 %vm720_vm1, %v713_v1  ;;  %v624_v12 = vmul.f32 %v1710_v55, %v2082_v6  ;;  %v625_v13 = vmul.f32 %v1711_v7, %v2082_v6  ;;  %v1714_v14 = vunpack.c.l.bf16 %v1816_v0  ;;  %v1715_v15 = vunpack.c.h.bf16 %v1816_v0 }
  0x45   : > { %v714_v19 = vpack.c.bf16 %v694_v8, %v693_v2  ;;  %v524_v20 = vpack.c.bf16 %v505_v9, %v504_v3  ;;  %v506_v21 = vmax.f32 %v474_v10, 0.0  ;;  %v507_v22 = vmax.f32 %v475_v11, 0.0 }
  0x46   : > { %v663_v24 = vadd.f32 %v2100_v23, %v624_v12  ;;  %v664_v25 = vadd.f32 %v2100_v23, %v625_v13  ;;  %v626_v26 = vmul.f32 %v1714_v14, %v2082_v6  ;;  %v627_v27 = vmul.f32 %v1715_v15, %v2082_v6 }
  0x47   : > { %1891 = vmatmul.mubr.msk.bf16.gmra.mrb[20].mxu1 %vm720_vm1, %v714_v19  ;;  %1928 = vmatprep.mubr.msk.bf16.mxu0 %vm720_vm1, %v524_v20  ;;  %v525_v30 = vpack.c.bf16 %v507_v22, %v506_v21  ;;  %v437_v31 = vmul.f32 %v2059_v4, %v398_v16  ;;  %v438_v32 = vmul.f32 %v2059_v4, %v399_v17  ;;  %v1718_v33 = vunpack.c.l.bf16 %v1817_v18 }
  0x48   : > { %v695_v34 = vmax.f32 %v663_v24, 0.0  ;;  %v696_v35 = vmax.f32 %v664_v25, 0.0  ;;  %v665_v36 = vadd.f32 %v2100_v23, %v626_v26  ;;  %v666_v37 = vadd.f32 %v2100_v23, %v627_v27 }
  0x49   : > { %v476_v38 = vadd.f32 %v2070_v5, %v437_v31  ;;  %v477_v39 = vadd.f32 %v2070_v5, %v438_v32  ;;  %v439_v40 = vmul.f32 %v2059_v4, %v400_v28  ;;  %v440_v41 = vmul.f32 %v2059_v4, %v401_v29 }
  0x4a   : > { %1929 = vmatmul.mubr.msk.bf16.gmra.mrb[24].mxu0 %vm720_vm1, %v525_v30  ;;  %v715_v43 = vpack.c.bf16 %v696_v35, %v695_v34  ;;  %v697_v44 = vmax.f32 %v665_v36, 0.0  ;;  %v698_v45 = vmax.f32 %v666_v37, 0.0  ;;  %v1719_v46 = vunpack.c.h.bf16 %v1817_v18 }
  0x4b   : > { %v508_v47 = vmax.f32 %v476_v38, 0.0  ;;  %v509_v48 = vmax.f32 %v477_v39, 0.0  ;;  %v478_v49 = vadd.f32 %v2070_v5, %v439_v40  ;;  %v479_v50 = vadd.f32 %v2070_v5, %v440_v41 }
  0x4c   : > { %1894 = vmatprep.mubr.msk.bf16.mxu1 %vm720_vm1, %v715_v43  ;;  %v716_v51 = vpack.c.bf16 %v698_v45, %v697_v44  ;;  %v628_v52 = vmul.f32 %v1718_v33, %v2082_v6  ;;  %v629_v4 = vmul.f32 %v1719_v46, %v2082_v6  ;;  %v1722_v53 = vunpack.c.l.bf16 %v1818_v42 }
  0x4d   : > { %v526_v54 = vpack.c.bf16 %v509_v48, %v508_v47  ;;  %v510_v55 = vmax.f32 %v478_v49, 0.0  ;;  %v511_v56 = vmax.f32 %v479_v50, 0.0  ;;  %v1723_v57 = vunpack.c.h.bf16 %v1818_v42 }
  0x4e   : > { %v667_v58 = vadd.f32 %v2100_v23, %v628_v52  ;;  %v668_v59 = vadd.f32 %v2100_v23, %v629_v4  ;;  %v630_v60 = vmul.f32 %v1722_v53, %v2082_v6 }
  0x4f   : > { %1895 = vmatmul.mubr.msk.bf16.gmra.mrb[24].mxu1 %vm720_vm1, %v716_v51  ;;  %1932 = vmatprep.mubr.msk.bf16.mxu0 %vm720_vm1, %v526_v54  ;;  %v527_v5 = vpack.c.bf16 %v511_v56, %v510_v55  ;;  %v631_v61 = vmul.f32 %v1723_v57, %v2082_v6 }
  0x50   : > { %v699_v62 = vmax.f32 %v667_v58, 0.0  ;;  %v700_v63 = vmax.f32 %v668_v59, 0.0  ;;  %v669_v0 = vadd.f32 %v2100_v23, %v630_v60 }
  0x51   : > { %v670_v1 = vadd.f32 %v2100_v23, %v631_v61 }
  0x52   : > { %1933 = vmatmul.mubr.msk.bf16.gmra.mrb[28].mxu0 %vm720_vm1, %v527_v5  ;;  %v717_v2 = vpack.c.bf16 %v700_v63, %v699_v62  ;;  %v701_v3 = vmax.f32 %v669_v0, 0.0 }
  0x53   : > { %v702_v7 = vmax.f32 %v670_v1, 0.0 }
  0x54   : > { %1898 = vmatprep.mubr.msk.bf16.mxu1 %vm720_vm1, %v717_v2 }
  0x55   : > { %v718_v8 = vpack.c.bf16 %v702_v7, %v701_v3 }
  0x57   : > { %1899 = vmatmul.mubr.msk.bf16.gmra.mrb[28].mxu1 %vm720_vm1, %v718_v8 }
  0xed   : > { %v1906_v9 = vpop.f32.mrb[0].mxu0 }
  0xee   : > { %v1019_v10 = vpop.f32.mrb[1].mxu0 }
  0xef   : > { %v1907_v6 = vpop.f32.mrb[2].mxu0 }
  0xf0   : > { %v1872_v11 = vpop.f32.mrb[0].mxu1  ;;  %v1022_v12 = vpop.f32.mrb[3].mxu0 }
  0xf1   : > { %v1028_v13 = vadd.f32 %v1906_v9, %v1872_v11  ;;  %v807_v14 = vpop.f32.mrb[1].mxu1 }
  0xf2   : > { %v1020_v15 = vadd.f32 %v1019_v10, %v807_v14  ;;  %v1873_v23 = vpop.f32.mrb[2].mxu1 }
  0xf3   : > { %v1031_v16 = vadd.f32 %v1907_v6, %v1873_v23  ;;  %v810_v17 = vpop.f32.mrb[3].mxu1 }
  0xf4   : > { %v1023_v18 = vadd.f32 %v1022_v12, %v810_v17 }
  0xf5   : > { %v1147_v19 = vpack.c.bf16 %v1031_v16, %v1028_v13  ;;  %v1910_v20 = vpop.f32.mrb[4].mxu0 }
  0xf6   : > { %v1146_v21 = vpack.c.bf16 %v1023_v18, %v1020_v15  ;;  %v1035_v22 = vpop.f32.mrb[5].mxu0 }
  0xf7   : > { %1819 = vst [vmem:[%s2302_s16 + $0x8] sm:$0xff] %v1147_v19   ;;  %v1911_v24 = vpop.f32.mrb[6].mxu0  ;;  %v1308_v25 = vunpack.c.l.bf16 %v1147_v19  ;;  %v1309_v29 = vunpack.c.h.bf16 %v1147_v19 }
  0xf8   : > { %1728 = vst [vmem:[%s2302_s16] sm:$0xff] %v1146_v21   ;;  %v1306_v26 = vunpack.c.l.bf16 %v1146_v21  ;;  %v1307_v27 = vunpack.c.h.bf16 %v1146_v21  ;;  %v1038_v28 = vpop.f32.mrb[7].mxu0 }
  0xf9   : > { %v1377_v36 = vmul.f32 %v1308_v25, %v1308_v25  ;;  %v1378_v44 = vmul.f32 %v1309_v29, %v1309_v29 }
  0xfa   : > { %v1338_v30 = vadd.f32 %v1307_v27, %v1306_v26  ;;  %v1375_v31 = vmul.f32 %v1306_v26, %v1306_v26  ;;  %v1376_v32 = vmul.f32 %v1307_v27, %v1307_v27  ;;  %v1876_v33 = vpop.f32.mrb[4].mxu1 }
  0xfb   : > { %v1044_v34 = vadd.f32 %v1910_v20, %v1876_v33  ;;  %v823_v35 = vpop.f32.mrb[5].mxu1 }
  0xfc   : > { %v1339_v37 = vadd.f32 %v1338_v30, %v1308_v25  ;;  %v1407_v38 = vadd.f32 %v1376_v32, %v1375_v31  ;;  %v1036_v39 = vadd.f32 %v1035_v22, %v823_v35  ;;  %v1877_v40 = vpop.f32.mrb[6].mxu1 }
  0xfd   : > { %v1047_v41 = vadd.f32 %v1911_v24, %v1877_v40  ;;  %v826_v42 = vpop.f32.mrb[7].mxu1  ;;  %v1914_v43 = vpop.f32.mrb[8].mxu0 }
  0xfe   : > { %v1408_v45 = vadd.f32 %v1407_v38, %v1377_v36  ;;  %v1039_v46 = vadd.f32 %v1038_v28, %v826_v42  ;;  %v1340_v47 = vadd.f32 %v1339_v37, %v1309_v29  ;;  %v1051_v48 = vpop.f32.mrb[9].mxu0 }
  0xff   : > { %v1149_v49 = vpack.c.bf16 %v1047_v41, %v1044_v34  ;;  %v1915_v50 = vpop.f32.mrb[10].mxu0 }
 0x100   : > { %v1148_v51 = vpack.c.bf16 %v1039_v46, %v1036_v39  ;;  %v1409_v52 = vadd.f32 %v1408_v45, %v1378_v44  ;;  %v1054_v4 = vpop.f32.mrb[11].mxu0 }
 0x101   : > { %1821 = vst [vmem:[%s2302_s16 + $0x18] sm:$0xff] %v1149_v49   ;;  %v1312_v58 = vunpack.c.l.bf16 %v1149_v49  ;;  %v1313_v62 = vunpack.c.h.bf16 %v1149_v49 }
 0x102   : > { %1820 = vst [vmem:[%s2302_s16 + $0x10] sm:$0xff] %v1148_v51   ;;  %v1310_v53 = vunpack.c.l.bf16 %v1148_v51  ;;  %v1311_v54 = vunpack.c.h.bf16 %v1148_v51  ;;  %v1880_v55 = vpop.f32.mrb[8].mxu1 }
 0x103   : > { %v1060_v56 = vadd.f32 %v1914_v43, %v1880_v55  ;;  %v839_v57 = vpop.f32.mrb[9].mxu1  ;;  %v1381_v11 = vmul.f32 %v1312_v58, %v1312_v58  ;;  %v1382_v23 = vmul.f32 %v1313_v62, %v1313_v62 }
 0x104   : > { %v1341_v59 = vadd.f32 %v1340_v47, %v1310_v53  ;;  %v1379_v60 = vmul.f32 %v1310_v53, %v1310_v53  ;;  %v1052_v5 = vadd.f32 %v1051_v48, %v839_v57  ;;  %v1881_v61 = vpop.f32.mrb[10].mxu1  ;;  %v1380_v3 = vmul.f32 %v1311_v54, %v1311_v54 }
 0x105   : > { %v1063_v63 = vadd.f32 %v1915_v50, %v1881_v61  ;;  %v842_v0 = vpop.f32.mrb[11].mxu1  ;;  %v1918_v1 = vpop.f32.mrb[12].mxu0 }
 0x106   : > { %v1342_v2 = vadd.f32 %v1341_v59, %v1311_v54  ;;  %v1410_v7 = vadd.f32 %v1409_v52, %v1379_v60  ;;  %v1055_v8 = vadd.f32 %v1054_v4, %v842_v0  ;;  %v1067_v9 = vpop.f32.mrb[13].mxu0 }
 0x107   : > { %v1151_v10 = vpack.c.bf16 %v1063_v63, %v1060_v56  ;;  %v1919_v6 = vpop.f32.mrb[14].mxu0 }
 0x108   : > { %v1343_v12 = vadd.f32 %v1342_v2, %v1312_v58  ;;  %v1411_v13 = vadd.f32 %v1410_v7, %v1380_v3  ;;  %v1150_v14 = vpack.c.bf16 %v1055_v8, %v1052_v5  ;;  %v1070_v15 = vpop.f32.mrb[15].mxu0 }
 0x109   : > { %1823 = vst [vmem:[%s2302_s16 + $0x28] sm:$0xff] %v1151_v10   ;;  %v1316_v24 = vunpack.c.l.bf16 %v1151_v10  ;;  %v1317_v29 = vunpack.c.h.bf16 %v1151_v10 }
 0x10a   : > { %v1412_v16 = vadd.f32 %v1411_v13, %v1381_v11  ;;  %1822 = vst [vmem:[%s2302_s16 + $0x20] sm:$0xff] %v1150_v14   ;;  %v1314_v17 = vunpack.c.l.bf16 %v1150_v14  ;;  %v1315_v18 = vunpack.c.h.bf16 %v1150_v14  ;;  %v1344_v19 = vadd.f32 %v1343_v12, %v1313_v62  ;;  %v1884_v20 = vpop.f32.mrb[12].mxu1 }
 0x10b   : > { %v1076_v21 = vadd.f32 %v1918_v1, %v1884_v20  ;;  %v855_v22 = vpop.f32.mrb[13].mxu1  ;;  %v1385_v41 = vmul.f32 %v1316_v24, %v1316_v24  ;;  %v1386_v46 = vmul.f32 %v1317_v29, %v1317_v29 }
 0x10c   : > { %v1345_v25 = vadd.f32 %v1344_v19, %v1314_v17  ;;  %v1383_v26 = vmul.f32 %v1314_v17, %v1314_v17  ;;  %v1413_v27 = vadd.f32 %v1412_v16, %v1382_v23  ;;  %v1885_v28 = vpop.f32.mrb[14].mxu1  ;;  %v1068_v30 = vadd.f32 %v1067_v9, %v855_v22 }
 0x10d   : > { %v1079_v31 = vadd.f32 %v1919_v6, %v1885_v28  ;;  %v858_v32 = vpop.f32.mrb[15].mxu1  ;;  %v1922_v33 = vpop.f32.mrb[16].mxu0  ;;  %v1384_v35 = vmul.f32 %v1315_v18, %v1315_v18 }
 0x10e   : > { %v1346_v34 = vadd.f32 %v1345_v25, %v1315_v18  ;;  %v1414_v36 = vadd.f32 %v1413_v27, %v1383_v26  ;;  %v1071_v37 = vadd.f32 %v1070_v15, %v858_v32  ;;  %v1083_v38 = vpop.f32.mrb[17].mxu0 }
 0x10f   : > { %v1153_v39 = vpack.c.bf16 %v1079_v31, %v1076_v21  ;;  %v1923_v40 = vpop.f32.mrb[18].mxu0 }
 0x110   : > { %v1347_v42 = vadd.f32 %v1346_v34, %v1316_v24  ;;  %v1415_v43 = vadd.f32 %v1414_v36, %v1384_v35  ;;  %v1152_v44 = vpack.c.bf16 %v1071_v37, %v1068_v30  ;;  %v1086_v45 = vpop.f32.mrb[19].mxu0 }
 0x111   : > { %1825 = vst [vmem:[%s2302_s16 + $0x38] sm:$0xff] %v1153_v39   ;;  %v1320_v53 = vunpack.c.l.bf16 %v1153_v39  ;;  %v1321_v58 = vunpack.c.h.bf16 %v1153_v39 }
 0x112   : > { %v1416_v47 = vadd.f32 %v1415_v43, %v1385_v41  ;;  %1824 = vst [vmem:[%s2302_s16 + $0x30] sm:$0xff] %v1152_v44   ;;  %v1318_v48 = vunpack.c.l.bf16 %v1152_v44  ;;  %v1319_v49 = vunpack.c.h.bf16 %v1152_v44  ;;  %v1348_v50 = vadd.f32 %v1347_v42, %v1317_v29  ;;  %v1888_v51 = vpop.f32.mrb[16].mxu1 }
 0x113   : > { %v1092_v52 = vadd.f32 %v1922_v33, %v1888_v51  ;;  %v871_v4 = vpop.f32.mrb[17].mxu1  ;;  %v1389_v8 = vmul.f32 %v1320_v53, %v1320_v53  ;;  %v1390_v12 = vmul.f32 %v1321_v58, %v1321_v58 }
 0x114   : > { %v1349_v54 = vadd.f32 %v1348_v50, %v1318_v48  ;;  %v1387_v55 = vmul.f32 %v1318_v48, %v1318_v48  ;;  %v1417_v56 = vadd.f32 %v1416_v47, %v1386_v46  ;;  %v1889_v57 = vpop.f32.mrb[18].mxu1  ;;  %v1084_v59 = vadd.f32 %v1083_v38, %v871_v4 }
 0x115   : > { %v1095_v60 = vadd.f32 %v1923_v40, %v1889_v57  ;;  %v874_v5 = vpop.f32.mrb[19].mxu1  ;;  %v1926_v61 = vpop.f32.mrb[20].mxu0  ;;  %v1388_v63 = vmul.f32 %v1319_v49, %v1319_v49 }
 0x116   : > { %v1350_v62 = vadd.f32 %v1349_v54, %v1319_v49  ;;  %v1418_v0 = vadd.f32 %v1417_v56, %v1387_v55  ;;  %v1087_v1 = vadd.f32 %v1086_v45, %v874_v5  ;;  %v1099_v2 = vpop.f32.mrb[21].mxu0 }
 0x117   : > { %v1155_v3 = vpack.c.bf16 %v1095_v60, %v1092_v52  ;;  %v1927_v7 = vpop.f32.mrb[22].mxu0 }
 0x118   : > { %v1351_v9 = vadd.f32 %v1350_v62, %v1320_v53  ;;  %v1419_v10 = vadd.f32 %v1418_v0, %v1388_v63  ;;  %v1154_v6 = vpack.c.bf16 %v1087_v1, %v1084_v59  ;;  %v1102_v11 = vpop.f32.mrb[23].mxu0 }
 0x119   : > { %1827 = vst [vmem:[%s2302_s16 + $0x48] sm:$0xff] %v1155_v3   ;;  %v1324_v19 = vunpack.c.l.bf16 %v1155_v3  ;;  %v1325_v25 = vunpack.c.h.bf16 %v1155_v3 }
 0x11a   : > { %v1420_v13 = vadd.f32 %v1419_v10, %v1389_v8  ;;  %1826 = vst [vmem:[%s2302_s16 + $0x40] sm:$0xff] %v1154_v6   ;;  %v1322_v14 = vunpack.c.l.bf16 %v1154_v6  ;;  %v1323_v15 = vunpack.c.h.bf16 %v1154_v6  ;;  %v1352_v23 = vadd.f32 %v1351_v9, %v1321_v58  ;;  %v1892_v16 = vpop.f32.mrb[20].mxu1 }
 0x11b   : > { %v1108_v17 = vadd.f32 %v1926_v61, %v1892_v16  ;;  %v887_v18 = vpop.f32.mrb[21].mxu1  ;;  %v1393_v37 = vmul.f32 %v1324_v19, %v1324_v19  ;;  %v1394_v42 = vmul.f32 %v1325_v25, %v1325_v25 }
 0x11c   : > { %v1353_v20 = vadd.f32 %v1352_v23, %v1322_v14  ;;  %v1391_v21 = vmul.f32 %v1322_v14, %v1322_v14  ;;  %v1421_v22 = vadd.f32 %v1420_v13, %v1390_v12  ;;  %v1893_v24 = vpop.f32.mrb[22].mxu1  ;;  %v1100_v26 = vadd.f32 %v1099_v2, %v887_v18 }
 0x11d   : > { %v1111_v27 = vadd.f32 %v1927_v7, %v1893_v24  ;;  %v890_v28 = vpop.f32.mrb[23].mxu1  ;;  %v1930_v29 = vpop.f32.mrb[24].mxu0  ;;  %v1392_v31 = vmul.f32 %v1323_v15, %v1323_v15 }
 0x11e   : > { %v1354_v30 = vadd.f32 %v1353_v20, %v1323_v15  ;;  %v1422_v32 = vadd.f32 %v1421_v22, %v1391_v21  ;;  %v1103_v33 = vadd.f32 %v1102_v11, %v890_v28  ;;  %v1115_v34 = vpop.f32.mrb[25].mxu0 }
 0x11f   : > { %v1157_v35 = vpack.c.bf16 %v1111_v27, %v1108_v17  ;;  %v1931_v36 = vpop.f32.mrb[26].mxu0 }
 0x120   : > { %v1355_v38 = vadd.f32 %v1354_v30, %v1324_v19  ;;  %v1423_v39 = vadd.f32 %v1422_v32, %v1392_v31  ;;  %v1156_v40 = vpack.c.bf16 %v1103_v33, %v1100_v26  ;;  %v1118_v41 = vpop.f32.mrb[27].mxu0 }
 0x121   : > { %1829 = vst [vmem:[%s2302_s16 + $0x58] sm:$0xff] %v1157_v35   ;;  %v1328_v50 = vunpack.c.l.bf16 %v1157_v35  ;;  %v1329_v54 = vunpack.c.h.bf16 %v1157_v35 }
 0x122   : > { %v1424_v43 = vadd.f32 %v1423_v39, %v1393_v37  ;;  %1828 = vst [vmem:[%s2302_s16 + $0x50] sm:$0xff] %v1156_v40   ;;  %v1326_v44 = vunpack.c.l.bf16 %v1156_v40  ;;  %v1327_v45 = vunpack.c.h.bf16 %v1156_v40  ;;  %v1356_v46 = vadd.f32 %v1355_v38, %v1325_v25  ;;  %v1896_v47 = vpop.f32.mrb[24].mxu1 }
 0x123   : > { %v1124_v48 = vadd.f32 %v1930_v29, %v1896_v47  ;;  %v903_v49 = vpop.f32.mrb[25].mxu1  ;;  %v1397_v1 = vmul.f32 %v1328_v50, %v1328_v50  ;;  %v1398_v9 = vmul.f32 %v1329_v54, %v1329_v54 }
 0x124   : > { %v1357_v51 = vadd.f32 %v1356_v46, %v1326_v44  ;;  %v1395_v52 = vmul.f32 %v1326_v44, %v1326_v44  ;;  %v1425_v4 = vadd.f32 %v1424_v43, %v1394_v42  ;;  %v1897_v53 = vpop.f32.mrb[26].mxu1  ;;  %v1116_v55 = vadd.f32 %v1115_v34, %v903_v49 }
 0x125   : > { %v1127_v56 = vadd.f32 %v1931_v36, %v1897_v53  ;;  %v906_v57 = vpop.f32.mrb[27].mxu1  ;;  %v1934_v58 = vpop.f32.mrb[28].mxu0  ;;  %v1396_v60 = vmul.f32 %v1327_v45, %v1327_v45 }
 0x126   : > { %v1358_v59 = vadd.f32 %v1357_v51, %v1327_v45  ;;  %v1426_v5 = vadd.f32 %v1425_v4, %v1395_v52  ;;  %v1119_v61 = vadd.f32 %v1118_v41, %v906_v57  ;;  %v1131_v62 = vpop.f32.mrb[29].mxu0 }
 0x127   : > { %v1159_v63 = vpack.c.bf16 %v1127_v56, %v1124_v48  ;;  %v1935_v0 = vpop.f32.mrb[30].mxu0 }
 0x128   : > { %v1359_v2 = vadd.f32 %v1358_v59, %v1328_v50  ;;  %v1427_v3 = vadd.f32 %v1426_v5, %v1396_v60  ;;  %v1158_v7 = vpack.c.bf16 %v1119_v61, %v1116_v55  ;;  %v1134_v8 = vpop.f32.mrb[31].mxu0 }
 0x129   : > { %1831 = vst [vmem:[%s2302_s16 + $0x68] sm:$0xff] %v1159_v63   ;;  %v1332_v23 = vunpack.c.l.bf16 %v1159_v63  ;;  %v1333_v20 = vunpack.c.h.bf16 %v1159_v63 }
 0x12a   : > { %v1428_v10 = vadd.f32 %v1427_v3, %v1397_v1  ;;  %1830 = vst [vmem:[%s2302_s16 + $0x60] sm:$0xff] %v1158_v7   ;;  %v1330_v6 = vunpack.c.l.bf16 %v1158_v7  ;;  %v1331_v11 = vunpack.c.h.bf16 %v1158_v7  ;;  %v1360_v12 = vadd.f32 %v1359_v2, %v1329_v54  ;;  %v1900_v13 = vpop.f32.mrb[28].mxu1 }
 0x12b   : > { %v1140_v14 = vadd.f32 %v1934_v58, %v1900_v13  ;;  %v919_v15 = vpop.f32.mrb[29].mxu1  ;;  %v1401_v30 = vmul.f32 %v1332_v23, %v1332_v23  ;;  %v1402_v34 = vmul.f32 %v1333_v20, %v1333_v20 }
 0x12c   : > { %v1361_v16 = vadd.f32 %v1360_v12, %v1330_v6  ;;  %v1399_v17 = vmul.f32 %v1330_v6, %v1330_v6  ;;  %v1429_v18 = vadd.f32 %v1428_v10, %v1398_v9  ;;  %v1901_v19 = vpop.f32.mrb[30].mxu1  ;;  %v1132_v21 = vadd.f32 %v1131_v62, %v919_v15 }
 0x12d   : > { %v1143_v22 = vadd.f32 %v1935_v0, %v1901_v19  ;;  %v922_v24 = vpop.f32.mrb[31].mxu1  ;;  %v1400_v26 = vmul.f32 %v1331_v11, %v1331_v11 }
 0x12e   : > { %v1362_v25 = vadd.f32 %v1361_v16, %v1331_v11  ;;  %v1430_v27 = vadd.f32 %v1429_v18, %v1399_v17  ;;  %v1135_v28 = vadd.f32 %v1134_v8, %v922_v24 }
 0x12f   : > { %v1161_v29 = vpack.c.bf16 %v1143_v22, %v1140_v14 }
 0x130   : > { %v1363_v31 = vadd.f32 %v1362_v25, %v1332_v23  ;;  %v1431_v32 = vadd.f32 %v1430_v27, %v1400_v26  ;;  %v1160_v33 = vpack.c.bf16 %v1135_v28, %v1132_v21 }
 0x131   : > { %1833 = vst [vmem:[%s2302_s16 + $0x78] sm:$0xff] %v1161_v29   ;;  %v1336_v39 = vunpack.c.l.bf16 %v1161_v29  ;;  %v1337_v43 = vunpack.c.h.bf16 %v1161_v29 }
 0x132   : > { %v1432_v35 = vadd.f32 %v1431_v32, %v1401_v30  ;;  %1832 = vst [vmem:[%s2302_s16 + $0x70] sm:$0xff] %v1160_v33   ;;  %v1334_v36 = vunpack.c.l.bf16 %v1160_v33  ;;  %v1335_v37 = vunpack.c.h.bf16 %v1160_v33  ;;  %v1364_v38 = vadd.f32 %v1363_v31, %v1333_v20 }
 0x133   : > { %v1405_v47 = vmul.f32 %v1336_v39, %v1336_v39  ;;  %v1406_v50 = vmul.f32 %v1337_v43, %v1337_v43 }
 0x134   : > { %v1365_v40 = vadd.f32 %v1364_v38, %v1334_v36  ;;  %v1403_v41 = vmul.f32 %v1334_v36, %v1334_v36  ;;  %v1433_v42 = vadd.f32 %v1432_v35, %v1402_v34  ;;  %v1404_v45 = vmul.f32 %v1335_v37, %v1335_v37 }
 0x136   : > { %v1366_v44 = vadd.f32 %v1365_v40, %v1335_v37  ;;  %v1434_v46 = vadd.f32 %v1433_v42, %v1403_v41 }
 0x138   : > { %v1367_v48 = vadd.f32 %v1366_v44, %v1336_v39  ;;  %v1435_v49 = vadd.f32 %v1434_v46, %v1404_v45 }
 0x13a   : > { %v1368_v51 = vadd.f32 %v1367_v48, %v1337_v43  ;;  %v1436_v52 = vadd.f32 %v1435_v49, %v1405_v47 }
 0x13c   : > { %v1369_v4 = vrot.slane %v1368_v51, 4  ;;  %v1437_v53 = vadd.f32 %v1436_v52, %v1406_v50 }
 0x13e   : > { %v1370_v54 = vadd.f32 %v1369_v4, %v1368_v51  ;;  %v1438_v55 = vrot.slane %v1437_v53, 4 }
 0x140   : > { %v1371_v56 = vrot.slane %v1370_v54, 2  ;;  %v1439_v57 = vadd.f32 %v1438_v55, %v1437_v53 }
 0x142   : > { %v1372_v58 = vadd.f32 %v1371_v56, %v1370_v54  ;;  %v1440_v59 = vrot.slane %v1439_v57, 2 }
 0x144   : > { %v1373_v60 = vrot.slane %v1372_v58, 1  ;;  %v1441_v5 = vadd.f32 %v1440_v59, %v1439_v57 }
 0x146   : > { %v1442_v61 = vrot.slane %v1441_v5, 1  ;;  %v1374_v62 = vadd.f32 %v1373_v60, %v1372_v58 }
 0x148   : > { %v1443_v63 = vadd.f32 %v1442_v61, %v1441_v5 }
 0x14a   : > { %v1445_v0 = vsel %vm1444_vm2, %v1374_v62, %v1443_v63 }
 0x14b   : > { %1446 = vst [vmem:[%s368_s19] sm:$0x3] %v1445_v0 }
 0x14c PF: > { %s20_s30 = sadd.s32 1, %s1984_s30  }
 0x14d   : > { %p17_p5 = scmp.ge.s32.totalorder %s20_s30, 4  }
 0x14f   :  { %19 = sbr.rel (!%p17_p5) target bundleno = 1 (0x1), region = 97 }

// kernel: denseblock_forward.10
= control target key start
LH: loop header
LB: loop body
LE: loop exit
PB: predicated region body
PF: predicated region fallthrough
CT: control target
= control target key end

     0   :  { %s2820_s25 = smov 0   ;;  %s3248_s0 = inlined_call_operand.vmem [shape: f32[512,4], index: 0, kind: input, shape index: {}]   ;;  %s3249_s1 = inlined_call_operand.vmem [shape: f32[1,4], index: 1, kind: input, shape index: {}]   ;;  %s3250_s2 = inlined_call_operand.vmem [shape: f32[1,4], index: 2, kind: input, shape index: {}]   ;;  %s3251_s3 = inlined_call_operand.vmem [shape: bf16[4,128], index: 3, kind: input, shape index: {}]   ;;  %s3252_s4 = inlined_call_operand.vmem [shape: bf16[512,4], index: 4, kind: input, shape index: {}]   ;;  %s3253_s5 = inlined_call_operand.vmem [shape: f32[1,4], index: 5, kind: input, shape index: {}]   ;;  %s3254_s6 = inlined_call_operand.vmem [shape: f32[1,4], index: 6, kind: input, shape index: {}]   ;;  %s3255_s7 = inlined_call_operand.vmem [shape: bf16[4,128], index: 7, kind: input, shape index: {}]   ;;  %s3256_s8 = inlined_call_operand.vmem [shape: bf16[512,4], index: 8, kind: input, shape index: {}]   ;;  %s3257_s9 = inlined_call_operand.vmem [shape: f32[1,4], index: 9, kind: input, shape index: {}]   ;;  %s3258_s10 = inlined_call_operand.vmem [shape: f32[1,4], index: 10, kind: input, shape index: {}]   ;;  %s3259_s11 = inlined_call_operand.vmem [shape: bf16[4,128], index: 11, kind: input, shape index: {}]   ;;  %s3260_s12 = inlined_call_operand.vmem [shape: bf16[512,128], index: 12, kind: output, shape index: {0}]   ;;  %s3261_s13 = inlined_call_operand.vmem [shape: f32[2,2,128], index: 13, kind: output, shape index: {1}]  }
   0x1 LB: > { %s2826_s26 = sadd.s32 4294967295, %s2748_s25   ;;  %p2127_p0 = scmp.ge.s32.totalorder %s2748_s25, 1  ;;  %s2748_s25 = sphi %s2820_s25, %s24_s25  }
   0x2   : > { %p413_p1 = scmp.lt.s32.totalorder %s2748_s25, 3 }
   0x4   : > { %p414_p2 = pnand %p2127_p0, %p413_p1 }
   0x5   : > { %v658_v0 = vld [vmem:[%s3251_s3] sm:$0x3] (!%p414_p2)  ;;  %vm899_vm0 = vcmask (!%p414_p2), 1041408   ;;  %s2128_s14 = sshll.u32 (!%p414_p2), %s2826_s26, 5  ;;  %vm850_vm1 = vcmask (!%p414_p2), 31744   ;;  %p495_p4 = scmp.lt.s32.totalorder (!%p414_p2), %s2826_s26, 1 }
   0x6   : > { %417 = sbr.rel (%p414_p2) target bundleno = 368 (0x170), region = 68  ;;  %v849_v1 = vld [vmem:[%s3255_s7] sm:$0x3] (!%p414_p2)  ;;  %2730 = vmatprep.subr.msk.bf16.mxu0 (!%p414_p2), %vm899_vm0, %v658_v0  ;;  %v2840_v2 = vsel (!%p414_p2), %vm899_vm0, %v658_v0, 0  ;;  %p472_p3 = scmp.lt.s32.totalorder (!%p414_p2), %s2128_s14, 63  ;;  %vm2009_vm2 = vcmask (!%p414_p2), 1040384  }
   0x7   : > { %2729 = vmatprep.subr.msk.bf16.mxu1 (!%p414_p2), %vm899_vm0, %v849_v1  ;;  %v901_v3 = vsel (!%p414_p2), %vm899_vm0, %v849_v1, 0  ;;  %2596 = vmatpush3.bf16.msra.mxu0 (!%p414_p2), %v2840_v2  ;;  %v1466_v4 = vld [vmem:[%s3259_s11] sm:$0x3] (!%p414_p2) }
   0x8   : > { %2562 = vmatpush3.bf16.msra.mxu1 (!%p414_p2), %v901_v3  ;;  %2732 = vmatprep.subr.msk.bf16.mxu0 (!%p414_p2), %vm899_vm0, %v1466_v4  ;;  %v2852_v5 = vld [vmem:[%s3249_s1] ss:$0 sm:$0xff] (!%p414_p2)  ;;  %v1516_v17 = vsel (!%p414_p2), %vm899_vm0, %v1466_v4, 0 }
   0x9   : > { %2731 = vmatprep.subr.msk.bf16.mxu1 (!%p414_p2), %vm899_vm0, %v658_v0  ;;  %v2864_v6 = vld [vmem:[%s3250_s2] ss:$0 sm:$0xff] (!%p414_p2) }
   0xa   : > { %v2875_v7 = vld [vmem:[%s3253_s5] ss:$0 sm:$0xff] (!%p414_p2) }
   0xb   : > { %v2894_v25 = vld [vmem:[%s3254_s6] ss:$0 sm:$0xff] (!%p414_p2) }
   0xd   : > { %s3263_s14 = smov (!%p472_p3, %s2128_s14), 63  ;;  %s3265_s26 = smov (!%p495_p4, %s2826_s26), 1 }
   0xe   : > { %s2129_s17 = sshll.u32 %s3263_s14, 3  ;;  %s2854_s20 = sshll.u32 %s3263_s14, 2 }
   0xf   : > { %s2859_s23 = scalar_lea.vmem %s3248_s0, %s2129_s17  ;;  %s2870_s30 = scalar_lea.vmem %s3252_s4, %s2854_s20 }
  0x10   : > { %v500_v8 = vld [vmem:[%s2859_s23] sm:$0xff]  ;;  %v501_v9 = vld [vmem:[%s2859_s23 + $0x8] sm:$0xff]  ;;  %v502_v10 = vld [vmem:[%s2859_s23 + $0x10] sm:$0xff]  ;;  %s2968_s21 = scalar_lea.vmem %s3256_s8, %s2854_s20  ;;  %s3218_s15 = scalar_lea.vmem %s3260_s12, %s2854_s20 }
  0x11   : > { %v539_v11 = vmul.f32 %v2852_v5, %v500_v8  ;;  %v540_v12 = vmul.f32 %v2852_v5, %v501_v9  ;;  %v503_v13 = vld [vmem:[%s2859_s23 + $0x18] sm:$0xff]  ;;  %v541_v14 = vmul.f32 %v2852_v5, %v502_v10  ;;  %v2258_v15 = vld [vmem:[%s2870_s30] sm:$0xff]   ;;  %v2465_v16 = vld [vmem:[%s2870_s30 + $0x8] sm:$0xff]   ;;  %s2136_s20 = sshll.u32 %s3265_s26, 1 }
  0x12   : > { %v542_v18 = vmul.f32 %v2852_v5, %v503_v13  ;;  %v2259_v19 = vunpack.c.l.bf16 %v2258_v15  ;;  %v2260_v20 = vunpack.c.h.bf16 %v2258_v15  ;;  %v2263_v21 = vunpack.c.l.bf16 %v2465_v16  ;;  %v504_v31 = vld [vmem:[%s2859_s23 + $0x20] sm:$0xff]  ;;  %v505_v32 = vld [vmem:[%s2859_s23 + $0x28] sm:$0xff]  ;;  %v506_v41 = vld [vmem:[%s2859_s23 + $0x30] sm:$0xff]  ;;  %s498_s18 = scalar_lea.vmem %s3261_s13, %s2136_s20 }
  0x13   : > { %v578_v22 = vadd.f32 %v2864_v6, %v539_v11  ;;  %v579_v23 = vadd.f32 %v2864_v6, %v540_v12  ;;  %v580_v24 = vadd.f32 %v2864_v6, %v541_v14  ;;  %v2264_v26 = vunpack.c.h.bf16 %v2465_v16  ;;  %v507_v46 = vld [vmem:[%s2859_s23 + $0x38] sm:$0xff]  ;;  %v2466_v47 = vld [vmem:[%s2870_s30 + $0x10] sm:$0xff]   ;;  %v508_v61 = vld [vmem:[%s2859_s23 + $0x40] sm:$0xff] }
  0x14   : > { %v581_v27 = vadd.f32 %v2864_v6, %v542_v18  ;;  %v730_v28 = vmul.f32 %v2259_v19, %v2875_v7  ;;  %v731_v29 = vmul.f32 %v2260_v20, %v2875_v7  ;;  %v732_v30 = vmul.f32 %v2263_v21, %v2875_v7  ;;  %v2467_v56 = vld [vmem:[%s2870_s30 + $0x18] sm:$0xff]   ;;  %v509_v10 = vld [vmem:[%s2859_s23 + $0x48] sm:$0xff]  ;;  %v510_v11 = vld [vmem:[%s2859_s23 + $0x50] sm:$0xff] }
  0x15   : > { %v610_v33 = vmax.f32 %v578_v22, 0.0  ;;  %v611_v34 = vmax.f32 %v579_v23, 0.0  ;;  %v612_v35 = vmax.f32 %v580_v24, 0.0  ;;  %v733_v36 = vmul.f32 %v2264_v26, %v2875_v7  ;;  %v511_v20 = vld [vmem:[%s2859_s23 + $0x58] sm:$0xff] }
  0x16   : > { %v613_v37 = vmax.f32 %v581_v27, 0.0  ;;  %v769_v38 = vadd.f32 %v2894_v25, %v730_v28  ;;  %v770_v39 = vadd.f32 %v2894_v25, %v731_v29  ;;  %v771_v40 = vadd.f32 %v2894_v25, %v732_v30 }
  0x17   : > { %v642_v42 = vpack.c.bf16 %v611_v34, %v610_v33  ;;  %v772_v43 = vadd.f32 %v2894_v25, %v733_v36  ;;  %v543_v44 = vmul.f32 %v2852_v5, %v504_v31  ;;  %v544_v45 = vmul.f32 %v2852_v5, %v505_v32  ;;  %v2469_v34 = vld [vmem:[%s2870_s30 + $0x28] sm:$0xff]  }
  0x18   : > { %v643_v48 = vpack.c.bf16 %v613_v37, %v612_v35  ;;  %v801_v49 = vmax.f32 %v769_v38, 0.0  ;;  %v802_v50 = vmax.f32 %v770_v39, 0.0  ;;  %v803_v51 = vmax.f32 %v771_v40, 0.0 }
  0x19   : > { %2597 = vmatprep.mubr.msk.bf16.mxu0 %vm850_vm1, %v642_v42  ;;  %v804_v52 = vmax.f32 %v772_v43, 0.0  ;;  %v582_v53 = vadd.f32 %v2864_v6, %v543_v44  ;;  %v583_v54 = vadd.f32 %v2864_v6, %v544_v45  ;;  %v545_v55 = vmul.f32 %v2852_v5, %v506_v41  ;;  %v512_v43 = vld [vmem:[%s2859_s23 + $0x60] sm:$0xff] }
  0x1a   : > { %2598 = vmatmul.mubr.msk.bf16.vlgmr.msra.gmra.mrb[0].mxu0 %vm850_vm1, %v643_v48  ;;  %v833_v57 = vpack.c.bf16 %v802_v50, %v801_v49  ;;  %v546_v58 = vmul.f32 %v2852_v5, %v507_v46  ;;  %v2267_v59 = vunpack.c.l.bf16 %v2466_v47  ;;  %v2268_v60 = vunpack.c.h.bf16 %v2466_v47  ;;  %v513_v48 = vld [vmem:[%s2859_s23 + $0x68] sm:$0xff]  ;;  %v2470_v49 = vld [vmem:[%s2870_s30 + $0x30] sm:$0xff]  }
  0x1b   : > { %v834_v62 = vpack.c.bf16 %v804_v52, %v803_v51  ;;  %2630 = vmatpush3.bf16.msra.mxu0 %v1516_v17  ;;  %v614_v63 = vmax.f32 %v582_v53, 0.0  ;;  %v615_v0 = vmax.f32 %v583_v54, 0.0  ;;  %v584_v1 = vadd.f32 %v2864_v6, %v545_v55 }
  0x1c   : > { %2563 = vmatprep.mubr.msk.bf16.mxu1 %vm850_vm1, %v833_v57  ;;  %v585_v3 = vadd.f32 %v2864_v6, %v546_v58  ;;  %v734_v4 = vmul.f32 %v2267_v59, %v2875_v7  ;;  %v735_v8 = vmul.f32 %v2268_v60, %v2875_v7  ;;  %v2271_v9 = vunpack.c.l.bf16 %v2467_v56  ;;  %v514_v58 = vld [vmem:[%s2859_s23 + $0x70] sm:$0xff]  ;;  %v515_v59 = vld [vmem:[%s2859_s23 + $0x78] sm:$0xff] }
  0x1d   : > { %2564 = vmatmul.mubr.msk.bf16.vlgmr.msra.gmra.mrb[0].mxu1 %vm850_vm1, %v834_v62  ;;  %v644_v12 = vpack.c.bf16 %v615_v0, %v614_v63  ;;  %v616_v13 = vmax.f32 %v584_v1, 0.0  ;;  %v2272_v14 = vunpack.c.h.bf16 %v2467_v56  ;;  %v547_v15 = vmul.f32 %v2852_v5, %v508_v61 }
  0x1e   : > { %2664 = vmatpush3.bf16.msra.mxu1 %v2840_v2  ;;  %v617_v16 = vmax.f32 %v585_v3, 0.0  ;;  %v773_v17 = vadd.f32 %v2894_v25, %v734_v4  ;;  %v774_v18 = vadd.f32 %v2894_v25, %v735_v8  ;;  %v736_v19 = vmul.f32 %v2271_v9, %v2875_v7  ;;  %v2468_v2 = vld [vmem:[%s2870_s30 + $0x20] sm:$0xff]  }
  0x1f   : > { %2601 = vmatprep.mubr.msk.bf16.mxu0 %vm850_vm1, %v644_v12  ;;  %v737_v21 = vmul.f32 %v2272_v14, %v2875_v7  ;;  %v548_v22 = vmul.f32 %v2852_v5, %v509_v10  ;;  %v586_v23 = vadd.f32 %v2864_v6, %v547_v15  ;;  %v549_v24 = vmul.f32 %v2852_v5, %v510_v11  ;;  %v2471_v12 = vld [vmem:[%s2870_s30 + $0x38] sm:$0xff]  }
  0x20   : > { %v645_v26 = vpack.c.bf16 %v617_v16, %v616_v13  ;;  %v805_v27 = vmax.f32 %v773_v17, 0.0  ;;  %v806_v28 = vmax.f32 %v774_v18, 0.0  ;;  %v775_v29 = vadd.f32 %v2894_v25, %v736_v19 }
  0x21   : > { %v776_v30 = vadd.f32 %v2894_v25, %v737_v21  ;;  %v587_v31 = vadd.f32 %v2864_v6, %v548_v22  ;;  %v618_v32 = vmax.f32 %v586_v23, 0.0  ;;  %v550_v33 = vmul.f32 %v2852_v5, %v511_v20  ;;  %v2322_v21 = vld [vmem:[%s2968_s21] sm:$0xff]  }
  0x22   : > { %2602 = vmatmul.mubr.msk.bf16.gmra.mrb[4].mxu0 %vm850_vm1, %v645_v26  ;;  %v835_v35 = vpack.c.bf16 %v806_v28, %v805_v27  ;;  %v807_v36 = vmax.f32 %v775_v29, 0.0  ;;  %v588_v37 = vadd.f32 %v2864_v6, %v549_v24  ;;  %v2275_v38 = vunpack.c.l.bf16 %v2468_v2  ;;  %v2480_v26 = vld [vmem:[%s2968_s21 + $0x8] sm:$0xff]  }
  0x23   : > { %v808_v39 = vmax.f32 %v776_v30, 0.0  ;;  %v619_v40 = vmax.f32 %v587_v31, 0.0  ;;  %v589_v41 = vadd.f32 %v2864_v6, %v550_v33  ;;  %v2276_v42 = vunpack.c.h.bf16 %v2468_v2  ;;  %v2988_v31 = vld [vmem:[%s3257_s9] ss:$0 sm:$0xff] }
  0x24   : > { %2567 = vmatprep.mubr.msk.bf16.mxu1 %vm850_vm1, %v835_v35  ;;  %v620_v44 = vmax.f32 %v588_v37, 0.0  ;;  %v738_v45 = vmul.f32 %v2275_v38, %v2875_v7  ;;  %v2279_v46 = vunpack.c.l.bf16 %v2469_v34  ;;  %v2280_v47 = vunpack.c.h.bf16 %v2469_v34 }
  0x25   : > { %v836_v50 = vpack.c.bf16 %v808_v39, %v807_v36  ;;  %v646_v51 = vpack.c.bf16 %v619_v40, %v618_v32  ;;  %v621_v52 = vmax.f32 %v589_v41, 0.0  ;;  %v739_v53 = vmul.f32 %v2276_v42, %v2875_v7  ;;  %v2999_v39 = vld [vmem:[%s3258_s10] ss:$0 sm:$0xff] }
  0x26   : > { %v777_v54 = vadd.f32 %v2894_v25, %v738_v45  ;;  %v740_v55 = vmul.f32 %v2279_v46, %v2875_v7  ;;  %v741_v56 = vmul.f32 %v2280_v47, %v2875_v7  ;;  %v551_v57 = vmul.f32 %v2852_v5, %v512_v43  ;;  %v2472_v41 = vld [vmem:[%s2870_s30 + $0x40] sm:$0xff]  }
  0x27   : > { %2568 = vmatmul.mubr.msk.bf16.gmra.mrb[4].mxu1 %vm850_vm1, %v836_v50  ;;  %2605 = vmatprep.mubr.msk.bf16.mxu0 %vm850_vm1, %v646_v51  ;;  %v647_v60 = vpack.c.bf16 %v621_v52, %v620_v44  ;;  %v778_v61 = vadd.f32 %v2894_v25, %v739_v53  ;;  %v552_v62 = vmul.f32 %v2852_v5, %v513_v48  ;;  %v2283_v63 = vunpack.c.l.bf16 %v2470_v49  ;;  %v2473_v50 = vld [vmem:[%s2870_s30 + $0x48] sm:$0xff]  }
  0x28   : > { %v809_v0 = vmax.f32 %v777_v54, 0.0  ;;  %v779_v1 = vadd.f32 %v2894_v25, %v740_v55  ;;  %v780_v3 = vadd.f32 %v2894_v25, %v741_v56  ;;  %v590_v4 = vadd.f32 %v2864_v6, %v551_v57 }
  0x29   : > { %v810_v8 = vmax.f32 %v778_v61, 0.0  ;;  %v591_v9 = vadd.f32 %v2864_v6, %v552_v62  ;;  %v553_v10 = vmul.f32 %v2852_v5, %v514_v58  ;;  %v554_v11 = vmul.f32 %v2852_v5, %v515_v59 }
  0x2a   : > { %2606 = vmatmul.mubr.msk.bf16.gmra.mrb[8].mxu0 %vm850_vm1, %v647_v60  ;;  %v811_v13 = vmax.f32 %v779_v1, 0.0  ;;  %v812_v14 = vmax.f32 %v780_v3, 0.0  ;;  %v622_v15 = vmax.f32 %v590_v4, 0.0  ;;  %v2284_v16 = vunpack.c.h.bf16 %v2470_v49 }
  0x2b   : > { %v837_v17 = vpack.c.bf16 %v810_v8, %v809_v0  ;;  %v623_v18 = vmax.f32 %v591_v9, 0.0  ;;  %v592_v19 = vadd.f32 %v2864_v6, %v553_v10  ;;  %v593_v20 = vadd.f32 %v2864_v6, %v554_v11 }
  0x2c   : > { %v838_v22 = vpack.c.bf16 %v812_v14, %v811_v13  ;;  %v742_v23 = vmul.f32 %v2283_v63, %v2875_v7  ;;  %v743_v24 = vmul.f32 %v2284_v16, %v2875_v7  ;;  %v2287_v2 = vunpack.c.l.bf16 %v2471_v12  ;;  %v2481_v63 = vld [vmem:[%s2968_s21 + $0x10] sm:$0xff]  }
  0x2d   : > { %2571 = vmatprep.mubr.msk.bf16.mxu1 %vm850_vm1, %v837_v17  ;;  %v648_v27 = vpack.c.bf16 %v623_v18, %v622_v15  ;;  %v624_v28 = vmax.f32 %v592_v19, 0.0  ;;  %v625_v29 = vmax.f32 %v593_v20, 0.0  ;;  %v2288_v30 = vunpack.c.h.bf16 %v2471_v12  ;;  %v2482_v12 = vld [vmem:[%s2968_s21 + $0x18] sm:$0xff]  }
  0x2e   : > { %v781_v32 = vadd.f32 %v2894_v25, %v742_v23  ;;  %v782_v33 = vadd.f32 %v2894_v25, %v743_v24  ;;  %v744_v34 = vmul.f32 %v2287_v2, %v2875_v7  ;;  %v2323_v35 = vunpack.c.l.bf16 %v2322_v21 }
  0x2f   : > { %2572 = vmatmul.mubr.msk.bf16.gmra.mrb[8].mxu1 %vm850_vm1, %v838_v22  ;;  %2609 = vmatprep.mubr.msk.bf16.mxu0 %vm850_vm1, %v648_v27  ;;  %v649_v36 = vpack.c.bf16 %v625_v29, %v624_v28  ;;  %v745_v37 = vmul.f32 %v2288_v30, %v2875_v7  ;;  %v2324_v38 = vunpack.c.h.bf16 %v2322_v21  ;;  %v2327_v40 = vunpack.c.l.bf16 %v2480_v26  ;;  %v2474_v21 = vld [vmem:[%s2870_s30 + $0x50] sm:$0xff]  }
  0x30   : > { %v813_v42 = vmax.f32 %v781_v32, 0.0  ;;  %v814_v43 = vmax.f32 %v782_v33, 0.0  ;;  %v783_v44 = vadd.f32 %v2894_v25, %v744_v34  ;;  %v1347_v45 = vmul.f32 %v2323_v35, %v2988_v31  ;;  %v2475_v35 = vld [vmem:[%s2870_s30 + $0x58] sm:$0xff]  }
  0x31   : > { %v784_v46 = vadd.f32 %v2894_v25, %v745_v37  ;;  %v1348_v47 = vmul.f32 %v2324_v38, %v2988_v31  ;;  %v2328_v48 = vunpack.c.h.bf16 %v2480_v26  ;;  %v1349_v49 = vmul.f32 %v2327_v40, %v2988_v31 }
  0x32   : > { %2610 = vmatmul.mubr.msk.bf16.gmra.mrb[12].mxu0 %vm850_vm1, %v649_v36  ;;  %v839_v51 = vpack.c.bf16 %v814_v43, %v813_v42  ;;  %v815_v52 = vmax.f32 %v783_v44, 0.0  ;;  %v1386_v53 = vadd.f32 %v2999_v39, %v1347_v45  ;;  %v2291_v54 = vunpack.c.l.bf16 %v2472_v41  ;;  %v2483_v45 = vld [vmem:[%s2968_s21 + $0x20] sm:$0xff]  }
  0x33   : > { %v816_v55 = vmax.f32 %v784_v46, 0.0  ;;  %v1387_v56 = vadd.f32 %v2999_v39, %v1348_v47  ;;  %v1350_v57 = vmul.f32 %v2328_v48, %v2988_v31  ;;  %v1388_v58 = vadd.f32 %v2999_v39, %v1349_v49 }
  0x34   : > { %2575 = vmatprep.mubr.msk.bf16.mxu1 %vm850_vm1, %v839_v51  ;;  %v1418_v59 = vmax.f32 %v1386_v53, 0.0  ;;  %v2292_v60 = vunpack.c.h.bf16 %v2472_v41  ;;  %v746_v61 = vmul.f32 %v2291_v54, %v2875_v7  ;;  %v2295_v62 = vunpack.c.l.bf16 %v2473_v50 }
  0x35   : > { %v840_v0 = vpack.c.bf16 %v816_v55, %v815_v52  ;;  %v1419_v1 = vmax.f32 %v1387_v56, 0.0  ;;  %v1389_v3 = vadd.f32 %v2999_v39, %v1350_v57  ;;  %v1420_v4 = vmax.f32 %v1388_v58, 0.0 }
  0x36   : > { %v747_v8 = vmul.f32 %v2292_v60, %v2875_v7  ;;  %v785_v9 = vadd.f32 %v2894_v25, %v746_v61  ;;  %v2296_v10 = vunpack.c.h.bf16 %v2473_v50  ;;  %v748_v11 = vmul.f32 %v2295_v62, %v2875_v7  ;;  %v2484_v50 = vld [vmem:[%s2968_s21 + $0x28] sm:$0xff]  }
  0x37   : > { %2576 = vmatmul.mubr.msk.bf16.gmra.mrb[12].mxu1 %vm850_vm1, %v840_v0  ;;  %v1450_v13 = vpack.c.bf16 %v1419_v1, %v1418_v59  ;;  %v1421_v14 = vmax.f32 %v1389_v3, 0.0  ;;  %v2331_v15 = vunpack.c.l.bf16 %v2481_v63  ;;  %v2332_v16 = vunpack.c.h.bf16 %v2481_v63  ;;  %v2476_v63 = vld [vmem:[%s2870_s30 + $0x60] sm:$0xff]  }
  0x38   : > { %v786_v17 = vadd.f32 %v2894_v25, %v747_v8  ;;  %v817_v18 = vmax.f32 %v785_v9, 0.0  ;;  %v749_v19 = vmul.f32 %v2296_v10, %v2875_v7  ;;  %v787_v20 = vadd.f32 %v2894_v25, %v748_v11 }
  0x39   : > { %2631 = vmatprep.mubr.msk.bf16.mxu0 %vm850_vm1, %v1450_v13  ;;  %v1451_v22 = vpack.c.bf16 %v1421_v14, %v1420_v4  ;;  %v1351_v23 = vmul.f32 %v2331_v15, %v2988_v31  ;;  %v1352_v24 = vmul.f32 %v2332_v16, %v2988_v31  ;;  %v2335_v2 = vunpack.c.l.bf16 %v2482_v12 }
  0x3a   : > { %v818_v26 = vmax.f32 %v786_v17, 0.0  ;;  %v788_v27 = vadd.f32 %v2894_v25, %v749_v19  ;;  %v819_v28 = vmax.f32 %v787_v20, 0.0  ;;  %v2336_v29 = vunpack.c.h.bf16 %v2482_v12  ;;  %v2477_v12 = vld [vmem:[%s2870_s30 + $0x68] sm:$0xff]  }
  0x3b   : > { %2632 = vmatmul.mubr.msk.bf16.vlgmr.msra.gmra.mrb[0].mxu0 %vm850_vm1, %v1451_v22  ;;  %v1390_v30 = vadd.f32 %v2999_v39, %v1351_v23  ;;  %v1391_v32 = vadd.f32 %v2999_v39, %v1352_v24  ;;  %v1353_v33 = vmul.f32 %v2335_v2, %v2988_v31  ;;  %v2299_v34 = vunpack.c.l.bf16 %v2474_v21  ;;  %v2485_v2 = vld [vmem:[%s2968_s21 + $0x30] sm:$0xff]  }
  0x3c   : > { %v841_v36 = vpack.c.bf16 %v818_v26, %v817_v18  ;;  %v820_v37 = vmax.f32 %v788_v27, 0.0  ;;  %v1354_v38 = vmul.f32 %v2336_v29, %v2988_v31  ;;  %v2300_v40 = vunpack.c.h.bf16 %v2474_v21 }
  0x3d   : > { %v1422_v41 = vmax.f32 %v1390_v30, 0.0  ;;  %v1423_v42 = vmax.f32 %v1391_v32, 0.0  ;;  %v1392_v43 = vadd.f32 %v2999_v39, %v1353_v33  ;;  %v750_v44 = vmul.f32 %v2299_v34, %v2875_v7 }
  0x3e   : > { %2579 = vmatprep.mubr.msk.bf16.mxu1 %vm850_vm1, %v841_v36  ;;  %v842_v46 = vpack.c.bf16 %v820_v37, %v819_v28  ;;  %v1393_v47 = vadd.f32 %v2999_v39, %v1354_v38  ;;  %v751_v48 = vmul.f32 %v2300_v40, %v2875_v7  ;;  %v2303_v49 = vunpack.c.l.bf16 %v2475_v35 }
  0x3f   : > { %v1452_v51 = vpack.c.bf16 %v1423_v42, %v1422_v41  ;;  %v1424_v52 = vmax.f32 %v1392_v43, 0.0  ;;  %v789_v53 = vadd.f32 %v2894_v25, %v750_v44  ;;  %v2304_v54 = vunpack.c.h.bf16 %v2475_v35  ;;  %v2486_v35 = vld [vmem:[%s2968_s21 + $0x38] sm:$0xff]  }
  0x40   : > { %2580 = vmatmul.mubr.msk.bf16.gmra.mrb[16].mxu1 %vm850_vm1, %v842_v46  ;;  %v1425_v55 = vmax.f32 %v1393_v47, 0.0  ;;  %v790_v56 = vadd.f32 %v2894_v25, %v751_v48  ;;  %v752_v57 = vmul.f32 %v2303_v49, %v2875_v7  ;;  %v2339_v58 = vunpack.c.l.bf16 %v2483_v45 }
  0x41   : > { %2635 = vmatprep.mubr.msk.bf16.mxu0 %vm850_vm1, %v1452_v51  ;;  %v821_v59 = vmax.f32 %v789_v53, 0.0  ;;  %v753_v60 = vmul.f32 %v2304_v54, %v2875_v7  ;;  %v2340_v61 = vunpack.c.h.bf16 %v2483_v45  ;;  %v2343_v62 = vunpack.c.l.bf16 %v2484_v50  ;;  %v2478_v45 = vld [vmem:[%s2870_s30 + $0x70] sm:$0xff]  }
  0x42   : > { %v1453_v0 = vpack.c.bf16 %v1425_v55, %v1424_v52  ;;  %v822_v1 = vmax.f32 %v790_v56, 0.0  ;;  %v791_v3 = vadd.f32 %v2894_v25, %v752_v57  ;;  %v1355_v4 = vmul.f32 %v2339_v58, %v2988_v31  ;;  %v2479_v58 = vld [vmem:[%s2870_s30 + $0x78] sm:$0xff]  }
  0x43   : > { %v792_v8 = vadd.f32 %v2894_v25, %v753_v60  ;;  %v1356_v9 = vmul.f32 %v2340_v61, %v2988_v31  ;;  %v2344_v10 = vunpack.c.h.bf16 %v2484_v50  ;;  %v1357_v11 = vmul.f32 %v2343_v62, %v2988_v31 }
  0x44   : > { %2636 = vmatmul.mubr.msk.bf16.gmra.mrb[4].mxu0 %vm850_vm1, %v1453_v0  ;;  %v843_v13 = vpack.c.bf16 %v822_v1, %v821_v59  ;;  %v823_v14 = vmax.f32 %v791_v3, 0.0  ;;  %v1394_v15 = vadd.f32 %v2999_v39, %v1355_v4  ;;  %v2307_v16 = vunpack.c.l.bf16 %v2476_v63  ;;  %v2487_v4 = vld [vmem:[%s2968_s21 + $0x40] sm:$0xff]  }
  0x45   : > { %v824_v17 = vmax.f32 %v792_v8, 0.0  ;;  %v1395_v18 = vadd.f32 %v2999_v39, %v1356_v9  ;;  %v1358_v19 = vmul.f32 %v2344_v10, %v2988_v31  ;;  %v1396_v20 = vadd.f32 %v2999_v39, %v1357_v11 }
  0x46   : > { %2583 = vmatprep.mubr.msk.bf16.mxu1 %vm850_vm1, %v843_v13  ;;  %v1426_v21 = vmax.f32 %v1394_v15, 0.0  ;;  %v2308_v22 = vunpack.c.h.bf16 %v2476_v63  ;;  %v754_v23 = vmul.f32 %v2307_v16, %v2875_v7  ;;  %v2311_v24 = vunpack.c.l.bf16 %v2477_v12 }
  0x47   : > { %v844_v26 = vpack.c.bf16 %v824_v17, %v823_v14  ;;  %v1427_v27 = vmax.f32 %v1395_v18, 0.0  ;;  %v1397_v28 = vadd.f32 %v2999_v39, %v1358_v19  ;;  %v1428_v29 = vmax.f32 %v1396_v20, 0.0 }
  0x48   : > { %v755_v30 = vmul.f32 %v2308_v22, %v2875_v7  ;;  %v793_v32 = vadd.f32 %v2894_v25, %v754_v23  ;;  %v2312_v33 = vunpack.c.h.bf16 %v2477_v12  ;;  %v756_v34 = vmul.f32 %v2311_v24, %v2875_v7  ;;  %v2488_v12 = vld [vmem:[%s2968_s21 + $0x48] sm:$0xff]  }
  0x49   : > { %2584 = vmatmul.mubr.msk.bf16.gmra.mrb[20].mxu1 %vm850_vm1, %v844_v26  ;;  %v1454_v36 = vpack.c.bf16 %v1427_v27, %v1426_v21  ;;  %v1429_v37 = vmax.f32 %v1397_v28, 0.0  ;;  %v2347_v38 = vunpack.c.l.bf16 %v2485_v2  ;;  %v2348_v40 = vunpack.c.h.bf16 %v2485_v2  ;;  %v516_v2 = vld [vmem:[%s2859_s23 + $0x80] sm:$0xff] }
  0x4a   : > { %v794_v41 = vadd.f32 %v2894_v25, %v755_v30  ;;  %v825_v42 = vmax.f32 %v793_v32, 0.0  ;;  %v757_v43 = vmul.f32 %v2312_v33, %v2875_v7  ;;  %v795_v44 = vadd.f32 %v2894_v25, %v756_v34 }
  0x4b   : > { %2639 = vmatprep.mubr.msk.bf16.mxu0 %vm850_vm1, %v1454_v36  ;;  %v1455_v46 = vpack.c.bf16 %v1429_v37, %v1428_v29  ;;  %v1359_v47 = vmul.f32 %v2347_v38, %v2988_v31  ;;  %v1360_v48 = vmul.f32 %v2348_v40, %v2988_v31  ;;  %v2351_v49 = vunpack.c.l.bf16 %v2486_v35  ;;  %v518_v36 = vld [vmem:[%s2859_s23 + $0x90] sm:$0xff] }
  0x4c   : > { %v826_v50 = vmax.f32 %v794_v41, 0.0  ;;  %v796_v51 = vadd.f32 %v2894_v25, %v757_v43  ;;  %v827_v52 = vmax.f32 %v795_v44, 0.0  ;;  %v2352_v53 = vunpack.c.h.bf16 %v2486_v35  ;;  %v517_v35 = vld [vmem:[%s2859_s23 + $0x88] sm:$0xff]  ;;  %v519_v44 = vld [vmem:[%s2859_s23 + $0x98] sm:$0xff] }
  0x4d   : > { %2640 = vmatmul.mubr.msk.bf16.gmra.mrb[8].mxu0 %vm850_vm1, %v1455_v46  ;;  %v1398_v54 = vadd.f32 %v2999_v39, %v1359_v47  ;;  %v1399_v55 = vadd.f32 %v2999_v39, %v1360_v48  ;;  %v1361_v56 = vmul.f32 %v2351_v49, %v2988_v31  ;;  %v2315_v57 = vunpack.c.l.bf16 %v2478_v45  ;;  %v2489_v49 = vld [vmem:[%s2968_s21 + $0x50] sm:$0xff]  }
  0x4e   : > { %v845_v59 = vpack.c.bf16 %v826_v50, %v825_v42  ;;  %v828_v60 = vmax.f32 %v796_v51, 0.0  ;;  %v1362_v61 = vmul.f32 %v2352_v53, %v2988_v31  ;;  %v2316_v62 = vunpack.c.h.bf16 %v2478_v45 }
  0x4f   : > { %v1430_v63 = vmax.f32 %v1398_v54, 0.0  ;;  %v1431_v0 = vmax.f32 %v1399_v55, 0.0  ;;  %v1400_v1 = vadd.f32 %v2999_v39, %v1361_v56  ;;  %v758_v3 = vmul.f32 %v2315_v57, %v2875_v7  ;;  %v2490_v54 = vld [vmem:[%s2968_s21 + $0x58] sm:$0xff]  }
  0x50   : > { %2587 = vmatprep.mubr.msk.bf16.mxu1 %vm850_vm1, %v845_v59  ;;  %v846_v8 = vpack.c.bf16 %v828_v60, %v827_v52  ;;  %v1401_v9 = vadd.f32 %v2999_v39, %v1362_v61  ;;  %v759_v10 = vmul.f32 %v2316_v62, %v2875_v7  ;;  %v2319_v11 = vunpack.c.l.bf16 %v2479_v58 }
  0x51   : > { %v1456_v13 = vpack.c.bf16 %v1431_v0, %v1430_v63  ;;  %v1432_v14 = vmax.f32 %v1400_v1, 0.0  ;;  %v797_v15 = vadd.f32 %v2894_v25, %v758_v3  ;;  %v2320_v16 = vunpack.c.h.bf16 %v2479_v58  ;;  %v520_v63 = vld [vmem:[%s2859_s23 + $0xa0] sm:$0xff] }
  0x52   : > { %2588 = vmatmul.mubr.msk.bf16.gmra.mrb[24].mxu1 %vm850_vm1, %v846_v8  ;;  %v1433_v17 = vmax.f32 %v1401_v9, 0.0  ;;  %v798_v18 = vadd.f32 %v2894_v25, %v759_v10  ;;  %v760_v19 = vmul.f32 %v2319_v11, %v2875_v7  ;;  %v2355_v20 = vunpack.c.l.bf16 %v2487_v4  ;;  %v521_v8 = vld [vmem:[%s2859_s23 + $0xa8] sm:$0xff] }
  0x53   : > { %2643 = vmatprep.mubr.msk.bf16.mxu0 %vm850_vm1, %v1456_v13  ;;  %v829_v21 = vmax.f32 %v797_v15, 0.0  ;;  %v761_v22 = vmul.f32 %v2320_v16, %v2875_v7  ;;  %v2356_v23 = vunpack.c.h.bf16 %v2487_v4  ;;  %v2359_v24 = vunpack.c.l.bf16 %v2488_v12  ;;  %v522_v13 = vld [vmem:[%s2859_s23 + $0xb0] sm:$0xff] }
  0x54   : > { %v1457_v26 = vpack.c.bf16 %v1433_v17, %v1432_v14  ;;  %v830_v27 = vmax.f32 %v798_v18, 0.0  ;;  %v799_v28 = vadd.f32 %v2894_v25, %v760_v19  ;;  %v1363_v29 = vmul.f32 %v2355_v20, %v2988_v31 }
  0x55   : > { %v800_v30 = vadd.f32 %v2894_v25, %v761_v22  ;;  %v1364_v32 = vmul.f32 %v2356_v23, %v2988_v31  ;;  %v2360_v33 = vunpack.c.h.bf16 %v2488_v12  ;;  %v1365_v34 = vmul.f32 %v2359_v24, %v2988_v31  ;;  %v523_v22 = vld [vmem:[%s2859_s23 + $0xb8] sm:$0xff] }
  0x56   : > { %2644 = vmatmul.mubr.msk.bf16.gmra.mrb[12].mxu0 %vm850_vm1, %v1457_v26  ;;  %v847_v7 = vpack.c.bf16 %v830_v27, %v829_v21  ;;  %v831_v37 = vmax.f32 %v799_v28, 0.0  ;;  %v1402_v38 = vadd.f32 %v2999_v39, %v1363_v29  ;;  %v555_v40 = vmul.f32 %v2852_v5, %v516_v2  ;;  %v2491_v27 = vld [vmem:[%s2968_s21 + $0x60] sm:$0xff]  }
  0x57   : > { %v832_v41 = vmax.f32 %v800_v30, 0.0  ;;  %v1403_v25 = vadd.f32 %v2999_v39, %v1364_v32  ;;  %v1366_v42 = vmul.f32 %v2360_v33, %v2988_v31  ;;  %v1404_v43 = vadd.f32 %v2999_v39, %v1365_v34  ;;  %v2492_v33 = vld [vmem:[%s2968_s21 + $0x68] sm:$0xff]  }
  0x58   : > { %2591 = vmatprep.mubr.msk.bf16.mxu1 %vm850_vm1, %v847_v7  ;;  %v1434_v45 = vmax.f32 %v1402_v38, 0.0  ;;  %v556_v46 = vmul.f32 %v2852_v5, %v517_v35  ;;  %v594_v47 = vadd.f32 %v2864_v6, %v555_v40  ;;  %v557_v48 = vmul.f32 %v2852_v5, %v518_v36 }
  0x59   : > { %v848_v50 = vpack.c.bf16 %v832_v41, %v831_v37  ;;  %v1435_v51 = vmax.f32 %v1403_v25, 0.0  ;;  %v1405_v52 = vadd.f32 %v2999_v39, %v1366_v42  ;;  %v1436_v53 = vmax.f32 %v1404_v43, 0.0  ;;  %v524_v25 = vld [vmem:[%s2859_s23 + $0xc0] sm:$0xff] }
  0x5a   : > { %v595_v55 = vadd.f32 %v2864_v6, %v556_v46  ;;  %v626_v56 = vmax.f32 %v594_v47, 0.0  ;;  %v558_v57 = vmul.f32 %v2852_v5, %v519_v44  ;;  %v596_v58 = vadd.f32 %v2864_v6, %v557_v48  ;;  %v525_v46 = vld [vmem:[%s2859_s23 + $0xc8] sm:$0xff]  ;;  %v2493_v47 = vld [vmem:[%s2968_s21 + $0x70] sm:$0xff]  }
  0x5b   : > { %2592 = vmatmul.mubr.msk.bf16.gmra.mrb[28].mxu1 %vm850_vm1, %v848_v50  ;;  %v1458_v59 = vpack.c.bf16 %v1435_v51, %v1434_v45  ;;  %v1437_v60 = vmax.f32 %v1405_v52, 0.0  ;;  %v2363_v61 = vunpack.c.l.bf16 %v2489_v49  ;;  %v2364_v62 = vunpack.c.h.bf16 %v2489_v49 }
  0x5c   : > { %v627_v0 = vmax.f32 %v595_v55, 0.0  ;;  %v597_v1 = vadd.f32 %v2864_v6, %v558_v57  ;;  %v628_v3 = vmax.f32 %v596_v58, 0.0  ;;  %v2367_v4 = vunpack.c.l.bf16 %v2490_v54 }
  0x5d   : > { %2647 = vmatprep.mubr.msk.bf16.mxu0 %vm850_vm1, %v1458_v59  ;;  %v1459_v9 = vpack.c.bf16 %v1437_v60, %v1436_v53  ;;  %v1367_v10 = vmul.f32 %v2363_v61, %v2988_v31  ;;  %v1368_v11 = vmul.f32 %v2364_v62, %v2988_v31  ;;  %v2368_v12 = vunpack.c.h.bf16 %v2490_v54  ;;  %v527_v60 = vld [vmem:[%s2859_s23 + $0xd8] sm:$0xff] }
  0x5e   : > { %v650_v14 = vpack.c.bf16 %v627_v0, %v626_v56  ;;  %v629_v15 = vmax.f32 %v597_v1, 0.0  ;;  %v1369_v16 = vmul.f32 %v2367_v4, %v2988_v31  ;;  %v559_v17 = vmul.f32 %v2852_v5, %v520_v63  ;;  %v526_v56 = vld [vmem:[%s2859_s23 + $0xd0] sm:$0xff] }
  0x5f   : > { %2648 = vmatmul.mubr.msk.bf16.gmra.mrb[16].mxu0 %vm850_vm1, %v1459_v9  ;;  %v1406_v18 = vadd.f32 %v2999_v39, %v1367_v10  ;;  %v1407_v19 = vadd.f32 %v2999_v39, %v1368_v11  ;;  %v1370_v20 = vmul.f32 %v2368_v12, %v2988_v31  ;;  %v560_v21 = vmul.f32 %v2852_v5, %v521_v8  ;;  %v2494_v10 = vld [vmem:[%s2968_s21 + $0x78] sm:$0xff]  }
  0x60   : > { %2613 = vmatprep.mubr.msk.bf16.mxu1 %vm850_vm1, %v650_v14  ;;  %v651_v23 = vpack.c.bf16 %v629_v15, %v628_v3  ;;  %v1408_v24 = vadd.f32 %v2999_v39, %v1369_v16  ;;  %v598_v2 = vadd.f32 %v2864_v6, %v559_v17  ;;  %v561_v26 = vmul.f32 %v2852_v5, %v522_v13 }
  0x61   : > { %v1438_v28 = vmax.f32 %v1406_v18, 0.0  ;;  %v1439_v29 = vmax.f32 %v1407_v19, 0.0  ;;  %v1409_v30 = vadd.f32 %v2999_v39, %v1370_v20  ;;  %v599_v32 = vadd.f32 %v2864_v6, %v560_v21 }
  0x62   : > { %v1440_v34 = vmax.f32 %v1408_v24, 0.0  ;;  %v630_v35 = vmax.f32 %v598_v2, 0.0  ;;  %v562_v36 = vmul.f32 %v2852_v5, %v523_v22  ;;  %v600_v7 = vadd.f32 %v2864_v6, %v561_v26  ;;  %v529_v24 = vld [vmem:[%s2859_s23 + $0xe8] sm:$0xff] }
  0x63   : > { %2614 = vmatmul.mubr.msk.bf16.vlgmr.msra.gmra.mrb[16].mxu1 %vm850_vm1, %v651_v23  ;;  %v1460_v37 = vpack.c.bf16 %v1439_v29, %v1438_v28  ;;  %v1441_v38 = vmax.f32 %v1409_v30, 0.0  ;;  %v631_v40 = vmax.f32 %v599_v32, 0.0  ;;  %v2371_v41 = vunpack.c.l.bf16 %v2491_v27  ;;  %v528_v23 = vld [vmem:[%s2859_s23 + $0xe0] sm:$0xff] }
  0x64   : > { %v601_v42 = vadd.f32 %v2864_v6, %v562_v36  ;;  %v632_v43 = vmax.f32 %v600_v7, 0.0  ;;  %v2372_v44 = vunpack.c.h.bf16 %v2491_v27  ;;  %v2375_v45 = vunpack.c.l.bf16 %v2492_v33 }
  0x65   : > { %2651 = vmatprep.mubr.msk.bf16.mxu0 %vm850_vm1, %v1460_v37  ;;  %v1461_v48 = vpack.c.bf16 %v1441_v38, %v1440_v34  ;;  %v652_v49 = vpack.c.bf16 %v631_v40, %v630_v35  ;;  %v1371_v50 = vmul.f32 %v2371_v41, %v2988_v31  ;;  %v2376_v51 = vunpack.c.h.bf16 %v2492_v33  ;;  %v530_v34 = vld [vmem:[%s2859_s23 + $0xf0] sm:$0xff]  ;;  %v531_v37 = vld [vmem:[%s2859_s23 + $0xf8] sm:$0xff] }
  0x66   : > { %v633_v52 = vmax.f32 %v601_v42, 0.0  ;;  %v1372_v53 = vmul.f32 %v2372_v44, %v2988_v31  ;;  %v1373_v54 = vmul.f32 %v2375_v45, %v2988_v31  ;;  %v563_v55 = vmul.f32 %v2852_v5, %v524_v25 }
  0x67   : > { %2652 = vmatmul.mubr.msk.bf16.gmra.mrb[20].mxu0 %vm850_vm1, %v1461_v48  ;;  %2617 = vmatprep.mubr.msk.bf16.mxu1 %vm850_vm1, %v652_v49  ;;  %v1410_v57 = vadd.f32 %v2999_v39, %v1371_v50  ;;  %v1374_v58 = vmul.f32 %v2376_v51, %v2988_v31  ;;  %v564_v59 = vmul.f32 %v2852_v5, %v525_v46  ;;  %v2379_v61 = vunpack.c.l.bf16 %v2493_v47 }
  0x68   : > { %v653_v62 = vpack.c.bf16 %v633_v52, %v632_v43  ;;  %v1411_v63 = vadd.f32 %v2999_v39, %v1372_v53  ;;  %v1412_v0 = vadd.f32 %v2999_v39, %v1373_v54  ;;  %v602_v1 = vadd.f32 %v2864_v6, %v563_v55  ;;  %v2741_v53 = vld [vmem:[%s3250_s2] ss:$0 sm:$0xff] }
  0x69   : > { %v1442_v3 = vmax.f32 %v1410_v57, 0.0  ;;  %v1413_v4 = vadd.f32 %v2999_v39, %v1374_v58  ;;  %v603_v8 = vadd.f32 %v2864_v6, %v564_v59  ;;  %v565_v9 = vmul.f32 %v2852_v5, %v526_v56 }
  0x6a   : > { %v1443_v11 = vmax.f32 %v1411_v63, 0.0  ;;  %v1444_v12 = vmax.f32 %v1412_v0, 0.0  ;;  %v634_v13 = vmax.f32 %v602_v1, 0.0  ;;  %v566_v14 = vmul.f32 %v2852_v5, %v527_v60 }
  0x6b   : > { %2618 = vmatmul.mubr.msk.bf16.gmra.mrb[20].mxu1 %vm850_vm1, %v653_v62  ;;  %v1445_v15 = vmax.f32 %v1413_v4, 0.0  ;;  %v635_v16 = vmax.f32 %v603_v8, 0.0  ;;  %v604_v17 = vadd.f32 %v2864_v6, %v565_v9  ;;  %v2380_v18 = vunpack.c.h.bf16 %v2493_v47 }
  0x6c   : > { %v1462_v19 = vpack.c.bf16 %v1443_v11, %v1442_v3  ;;  %v605_v20 = vadd.f32 %v2864_v6, %v566_v14  ;;  %v1375_v21 = vmul.f32 %v2379_v61, %v2988_v31  ;;  %v2383_v22 = vunpack.c.l.bf16 %v2494_v10 }
  0x6d   : > { %v1463_v2 = vpack.c.bf16 %v1445_v15, %v1444_v12  ;;  %v654_v26 = vpack.c.bf16 %v635_v16, %v634_v13  ;;  %v636_v27 = vmax.f32 %v604_v17, 0.0  ;;  %v1376_v28 = vmul.f32 %v2380_v18, %v2988_v31 }
  0x6e   : > { %2655 = vmatprep.mubr.msk.bf16.mxu0 %vm850_vm1, %v1462_v19  ;;  %v637_v29 = vmax.f32 %v605_v20, 0.0  ;;  %v1414_v30 = vadd.f32 %v2999_v39, %v1375_v21  ;;  %v2384_v32 = vunpack.c.h.bf16 %v2494_v10  ;;  %v1377_v33 = vmul.f32 %v2383_v22, %v2988_v31 }
  0x6f   : > { %2656 = vmatmul.mubr.msk.bf16.gmra.mrb[24].mxu0 %vm850_vm1, %v1463_v2  ;;  %2621 = vmatprep.mubr.msk.bf16.mxu1 %vm850_vm1, %v654_v26  ;;  %v1415_v35 = vadd.f32 %v2999_v39, %v1376_v28  ;;  %v567_v36 = vmul.f32 %v2852_v5, %v528_v23  ;;  %v568_v7 = vmul.f32 %v2852_v5, %v529_v24 }
  0x70   : > { %v655_v38 = vpack.c.bf16 %v637_v29, %v636_v27  ;;  %v1446_v40 = vmax.f32 %v1414_v30, 0.0  ;;  %v1378_v41 = vmul.f32 %v2384_v32, %v2988_v31  ;;  %v1416_v25 = vadd.f32 %v2999_v39, %v1377_v33 }
  0x71   : > { %v1447_v42 = vmax.f32 %v1415_v35, 0.0  ;;  %v606_v43 = vadd.f32 %v2864_v6, %v567_v36  ;;  %v607_v44 = vadd.f32 %v2864_v6, %v568_v7  ;;  %v569_v45 = vmul.f32 %v2852_v5, %v530_v34 }
  0x72   : > { %v1417_v46 = vadd.f32 %v2999_v39, %v1378_v41  ;;  %v1448_v47 = vmax.f32 %v1416_v25, 0.0  ;;  %v570_v48 = vmul.f32 %v2852_v5, %v531_v37 }
  0x73   : > { %2622 = vmatmul.mubr.msk.bf16.gmra.mrb[24].mxu1 %vm850_vm1, %v655_v38  ;;  %v1464_v49 = vpack.c.bf16 %v1447_v42, %v1446_v40  ;;  %v638_v50 = vmax.f32 %v606_v43, 0.0  ;;  %v639_v51 = vmax.f32 %v607_v44, 0.0  ;;  %v608_v31 = vadd.f32 %v2864_v6, %v569_v45 }
  0x74   : > { %v1449_v52 = vmax.f32 %v1417_v46, 0.0  ;;  %v609_v54 = vadd.f32 %v2741_v53, %v570_v48 }
  0x75   : > { %2659 = vmatprep.mubr.msk.bf16.mxu0 %vm850_vm1, %v1464_v49  ;;  %v656_v55 = vpack.c.bf16 %v639_v51, %v638_v50  ;;  %v640_v39 = vmax.f32 %v608_v31, 0.0 }
  0x76   : > { %v1465_v56 = vpack.c.bf16 %v1449_v52, %v1448_v47  ;;  %v641_v57 = vmax.f32 %v609_v54, 0.0 }
  0x77   : > { %2625 = vmatprep.mubr.msk.bf16.mxu1 %vm850_vm1, %v656_v55 }
  0x78   : > { %2660 = vmatmul.mubr.msk.bf16.gmra.mrb[28].mxu0 %vm850_vm1, %v1465_v56  ;;  %v657_v5 = vpack.c.bf16 %v641_v57, %v640_v39 }
  0x7b   : > { %2626 = vmatmul.mubr.msk.bf16.gmra.mrb[28].mxu1 %vm850_vm1, %v657_v5 }
  0xf0   : > { %v2565_v6 = vpop.f32.mrb[0].mxu1 }
  0xf1   : > { %v937_v58 = vpop.f32.mrb[1].mxu1 }
  0xf2   : > { %v2566_v59 = vpop.f32.mrb[2].mxu1 }
  0xf3   : > { %v940_v60 = vpop.f32.mrb[3].mxu1 }
  0xfa   : > { %v2569_v61 = vpop.f32.mrb[4].mxu1 }
  0xfb   : > { %v953_v62 = vpop.f32.mrb[5].mxu1 }
  0xfc   : > { %v2570_v63 = vpop.f32.mrb[6].mxu1 }
  0xfd   : > { %v956_v0 = vpop.f32.mrb[7].mxu1 }
 0x102   : > { %v2573_v1 = vpop.f32.mrb[8].mxu1 }
 0x103   : > { %v969_v3 = vpop.f32.mrb[9].mxu1 }
 0x104   : > { %v2574_v4 = vpop.f32.mrb[10].mxu1 }
 0x105   : > { %v972_v8 = vpop.f32.mrb[11].mxu1 }
 0x10a   : > { %v3206_v9 = vpop.f32.mrb[12].mxu1 }
 0x10b   : > { %v3208_v10 = vpop.f32.mrb[13].mxu1 }
 0x10c   : > { %v3210_v11 = vpop.f32.mrb[14].mxu1 }
 0x10d   : > { %v3212_v12 = vpop.f32.mrb[15].mxu1 }
 0x10e   : > { %v2633_v13 = vpop.f32.mrb[0].mxu0 }
 0x10f   : > { %v2665_v14 = vadd.f32 %v2633_v13, %v2565_v6  ;;  %v1552_v15 = vpop.f32.mrb[1].mxu0 }
 0x110   : > { %v2666_v16 = vadd.f32 %v1552_v15, %v937_v58  ;;  %v2634_v17 = vpop.f32.mrb[2].mxu0 }
 0x111   : > { %v2667_v18 = vadd.f32 %v2634_v17, %v2566_v59  ;;  %v1555_v19 = vpop.f32.mrb[3].mxu0 }
 0x112   : > { %v2668_v20 = vadd.f32 %v1555_v19, %v940_v60 }
 0x113   : > { %v1712_v21 = vpack.c.bf16 %v2667_v18, %v2665_v14 }
 0x114   : > { %v1711_v22 = vpack.c.bf16 %v2668_v20, %v2666_v16 }
 0x115   : > { %2495 = vst [vmem:[%s3218_s15 + $0x8] sm:$0xff] %v1712_v21   ;;  %v1873_v23 = vunpack.c.l.bf16 %v1712_v21  ;;  %v1874_v26 = vunpack.c.h.bf16 %v1712_v21 }
 0x116   : > { %2389 = vst [vmem:[%s3218_s15] sm:$0xff] %v1711_v22   ;;  %v1871_v24 = vunpack.c.l.bf16 %v1711_v22  ;;  %v1872_v2 = vunpack.c.h.bf16 %v1711_v22 }
 0x117   : > { %v2637_v27 = vpop.f32.mrb[4].mxu0  ;;  %v1942_v36 = vmul.f32 %v1873_v23, %v1873_v23  ;;  %v1943_v25 = vmul.f32 %v1874_v26, %v1874_v26 }
 0x118   : > { %v1903_v28 = vadd.f32 %v1872_v2, %v1871_v24  ;;  %v1940_v29 = vmul.f32 %v1871_v24, %v1871_v24  ;;  %v1941_v30 = vmul.f32 %v1872_v2, %v1872_v2  ;;  %v2669_v32 = vadd.f32 %v2637_v27, %v2569_v61  ;;  %v1568_v33 = vpop.f32.mrb[5].mxu0 }
 0x119   : > { %v2670_v34 = vadd.f32 %v1568_v33, %v953_v62  ;;  %v2638_v35 = vpop.f32.mrb[6].mxu0 }
 0x11a   : > { %v1904_v7 = vadd.f32 %v1903_v28, %v1873_v23  ;;  %v1972_v37 = vadd.f32 %v1941_v30, %v1940_v29  ;;  %v2671_v38 = vadd.f32 %v2638_v35, %v2570_v63  ;;  %v1571_v40 = vpop.f32.mrb[7].mxu0 }
 0x11b   : > { %v2672_v41 = vadd.f32 %v1571_v40, %v956_v0 }
 0x11c   : > { %v1973_v42 = vadd.f32 %v1972_v37, %v1942_v36  ;;  %v1714_v43 = vpack.c.bf16 %v2671_v38, %v2669_v32  ;;  %v1905_v44 = vadd.f32 %v1904_v7, %v1874_v26 }
 0x11d   : > { %v1713_v45 = vpack.c.bf16 %v2672_v41, %v2670_v34 }
 0x11e   : > { %2497 = vst [vmem:[%s3218_s15 + $0x18] sm:$0xff] %v1714_v43   ;;  %v1974_v46 = vadd.f32 %v1973_v42, %v1943_v25  ;;  %v1877_v50 = vunpack.c.l.bf16 %v1714_v43  ;;  %v1878_v54 = vunpack.c.h.bf16 %v1714_v43 }
 0x11f   : > { %2496 = vst [vmem:[%s3218_s15 + $0x10] sm:$0xff] %v1713_v45   ;;  %v1875_v47 = vunpack.c.l.bf16 %v1713_v45  ;;  %v1876_v48 = vunpack.c.h.bf16 %v1713_v45 }
 0x120   : > { %v2641_v49 = vpop.f32.mrb[8].mxu0  ;;  %v1946_v60 = vmul.f32 %v1877_v50, %v1877_v50  ;;  %v1947_v13 = vmul.f32 %v1878_v54, %v1878_v54 }
 0x121   : > { %v1906_v51 = vadd.f32 %v1905_v44, %v1875_v47  ;;  %v1944_v31 = vmul.f32 %v1875_v47, %v1875_v47  ;;  %v2673_v52 = vadd.f32 %v2641_v49, %v2573_v1  ;;  %v1584_v53 = vpop.f32.mrb[9].mxu0  ;;  %v1945_v57 = vmul.f32 %v1876_v48, %v1876_v48 }
 0x122   : > { %v2674_v55 = vadd.f32 %v1584_v53, %v969_v3  ;;  %v2642_v39 = vpop.f32.mrb[10].mxu0 }
 0x123   : > { %v1907_v56 = vadd.f32 %v1906_v51, %v1876_v48  ;;  %v1975_v5 = vadd.f32 %v1974_v46, %v1944_v31  ;;  %v2675_v6 = vadd.f32 %v2642_v39, %v2574_v4  ;;  %v1587_v58 = vpop.f32.mrb[11].mxu0 }
 0x124   : > { %v2676_v59 = vadd.f32 %v1587_v58, %v972_v8 }
 0x125   : > { %v1908_v61 = vadd.f32 %v1907_v56, %v1877_v50  ;;  %v1976_v62 = vadd.f32 %v1975_v5, %v1945_v57  ;;  %v1716_v63 = vpack.c.bf16 %v2675_v6, %v2673_v52 }
 0x126   : > { %v1715_v0 = vpack.c.bf16 %v2676_v59, %v2674_v55 }
 0x127   : > { %v1977_v14 = vadd.f32 %v1976_v62, %v1946_v60  ;;  %2499 = vst [vmem:[%s3218_s15 + $0x28] sm:$0xff] %v1716_v63   ;;  %v1909_v1 = vadd.f32 %v1908_v61, %v1878_v54  ;;  %v1881_v18 = vunpack.c.l.bf16 %v1716_v63  ;;  %v1882_v21 = vunpack.c.h.bf16 %v1716_v63 }
 0x128   : > { %2498 = vst [vmem:[%s3218_s15 + $0x20] sm:$0xff] %v1715_v0   ;;  %v1879_v15 = vunpack.c.l.bf16 %v1715_v0  ;;  %v1880_v3 = vunpack.c.h.bf16 %v1715_v0 }
 0x129   : > { %v1978_v16 = vadd.f32 %v1977_v14, %v1947_v13  ;;  %v2645_v17 = vpop.f32.mrb[12].mxu0  ;;  %v1950_v30 = vmul.f32 %v1881_v18, %v1881_v18  ;;  %v1951_v35 = vmul.f32 %v1882_v21, %v1882_v21 }
 0x12a   : > { %v1910_v19 = vadd.f32 %v1909_v1, %v1879_v15  ;;  %v1948_v20 = vmul.f32 %v1879_v15, %v1879_v15  ;;  %v2677_v4 = vadd.f32 %v2645_v17, %v3206_v9  ;;  %v1600_v8 = vpop.f32.mrb[13].mxu0  ;;  %v1949_v2 = vmul.f32 %v1880_v3, %v1880_v3 }
 0x12b   : > { %v2678_v22 = vadd.f32 %v1600_v8, %v3208_v10  ;;  %v2646_v23 = vpop.f32.mrb[14].mxu0 }
 0x12c   : > { %v1911_v24 = vadd.f32 %v1910_v19, %v1880_v3  ;;  %v1979_v26 = vadd.f32 %v1978_v16, %v1948_v20  ;;  %v2679_v27 = vadd.f32 %v2646_v23, %v3210_v11  ;;  %v1603_v28 = vpop.f32.mrb[15].mxu0 }
 0x12d   : > { %v2680_v29 = vadd.f32 %v1603_v28, %v3212_v12 }
 0x12e   : > { %v1912_v32 = vadd.f32 %v1911_v24, %v1881_v18  ;;  %v1980_v33 = vadd.f32 %v1979_v26, %v1949_v2  ;;  %v1718_v34 = vpack.c.bf16 %v2679_v27, %v2677_v4 }
 0x12f   : > { %v1717_v9 = vpack.c.bf16 %v2680_v29, %v2678_v22 }
 0x130   : > { %v1981_v36 = vadd.f32 %v1980_v33, %v1950_v30  ;;  %2501 = vst [vmem:[%s3218_s15 + $0x38] sm:$0xff] %v1718_v34   ;;  %v1913_v7 = vadd.f32 %v1912_v32, %v1882_v21  ;;  %v1885_v41 = vunpack.c.l.bf16 %v1718_v34  ;;  %v1886_v12 = vunpack.c.h.bf16 %v1718_v34 }
 0x131   : > { %2500 = vst [vmem:[%s3218_s15 + $0x30] sm:$0xff] %v1717_v9   ;;  %v1883_v10 = vunpack.c.l.bf16 %v1717_v9  ;;  %v1884_v37 = vunpack.c.h.bf16 %v1717_v9 }
 0x132   : > { %v1982_v38 = vadd.f32 %v1981_v36, %v1951_v35  ;;  %v2649_v40 = vpop.f32.mrb[16].mxu0  ;;  %v1954_v49 = vmul.f32 %v1885_v41, %v1885_v41  ;;  %v1955_v55 = vmul.f32 %v1886_v12, %v1886_v12 }
 0x133   : > { %v1914_v25 = vadd.f32 %v1913_v7, %v1883_v10  ;;  %v1952_v11 = vmul.f32 %v1883_v10, %v1883_v10  ;;  %v1616_v42 = vpop.f32.mrb[17].mxu0  ;;  %v1953_v45 = vmul.f32 %v1884_v37, %v1884_v37 }
 0x134   : > { %v2650_v43 = vpop.f32.mrb[18].mxu0 }
 0x135   : > { %v1915_v44 = vadd.f32 %v1914_v25, %v1884_v37  ;;  %v1983_v46 = vadd.f32 %v1982_v38, %v1952_v11  ;;  %v1619_v47 = vpop.f32.mrb[19].mxu0 }
 0x136   : > { %v2615_v48 = vpop.f32.mrb[16].mxu1 }
 0x137   : > { %v1916_v50 = vadd.f32 %v1915_v44, %v1885_v41  ;;  %v1984_v51 = vadd.f32 %v1983_v46, %v1953_v45  ;;  %v2681_v31 = vadd.f32 %v2649_v40, %v2615_v48  ;;  %v1213_v52 = vpop.f32.mrb[17].mxu1 }
 0x138   : > { %v2682_v53 = vadd.f32 %v1616_v42, %v1213_v52  ;;  %v2616_v54 = vpop.f32.mrb[18].mxu1 }
 0x139   : > { %v1985_v39 = vadd.f32 %v1984_v51, %v1954_v49  ;;  %v2683_v56 = vadd.f32 %v2650_v43, %v2616_v54  ;;  %v1216_v57 = vpop.f32.mrb[19].mxu1  ;;  %v1917_v5 = vadd.f32 %v1916_v50, %v1886_v12 }
 0x13a   : > { %v2684_v6 = vadd.f32 %v1619_v47, %v1216_v57  ;;  %v2653_v58 = vpop.f32.mrb[20].mxu0 }
 0x13b   : > { %v1720_v59 = vpack.c.bf16 %v2683_v56, %v2681_v31  ;;  %v1986_v60 = vadd.f32 %v1985_v39, %v1955_v55  ;;  %v1632_v61 = vpop.f32.mrb[21].mxu0 }
 0x13c   : > { %v1719_v62 = vpack.c.bf16 %v2684_v6, %v2682_v53  ;;  %v2654_v63 = vpop.f32.mrb[22].mxu0 }
 0x13d   : > { %2503 = vst [vmem:[%s3218_s15 + $0x48] sm:$0xff] %v1720_v59   ;;  %v1635_v0 = vpop.f32.mrb[23].mxu0  ;;  %v1889_v16 = vunpack.c.l.bf16 %v1720_v59  ;;  %v1890_v4 = vunpack.c.h.bf16 %v1720_v59 }
 0x13e   : > { %2502 = vst [vmem:[%s3218_s15 + $0x40] sm:$0xff] %v1719_v62   ;;  %v1887_v13 = vunpack.c.l.bf16 %v1719_v62  ;;  %v1888_v14 = vunpack.c.h.bf16 %v1719_v62  ;;  %v2619_v1 = vpop.f32.mrb[20].mxu1 }
 0x13f   : > { %v2685_v15 = vadd.f32 %v2653_v58, %v2619_v1  ;;  %v1229_v3 = vpop.f32.mrb[21].mxu1  ;;  %v1958_v29 = vmul.f32 %v1889_v16, %v1889_v16  ;;  %v1959_v9 = vmul.f32 %v1890_v4, %v1890_v4 }
 0x140   : > { %v1918_v17 = vadd.f32 %v1917_v5, %v1887_v13  ;;  %v1956_v18 = vmul.f32 %v1887_v13, %v1887_v13  ;;  %v2686_v19 = vadd.f32 %v1632_v61, %v1229_v3  ;;  %v2620_v20 = vpop.f32.mrb[22].mxu1  ;;  %v1957_v23 = vmul.f32 %v1888_v14, %v1888_v14 }
 0x141   : > { %v2687_v8 = vadd.f32 %v2654_v63, %v2620_v20  ;;  %v1232_v21 = vpop.f32.mrb[23].mxu1 }
 0x142   : > { %v1919_v22 = vadd.f32 %v1918_v17, %v1888_v14  ;;  %v1987_v24 = vadd.f32 %v1986_v60, %v1956_v18  ;;  %v2688_v2 = vadd.f32 %v1635_v0, %v1232_v21  ;;  %v2657_v26 = vpop.f32.mrb[24].mxu0 }
 0x143   : > { %v1722_v27 = vpack.c.bf16 %v2687_v8, %v2685_v15  ;;  %v1648_v28 = vpop.f32.mrb[25].mxu0 }
 0x144   : > { %v1920_v30 = vadd.f32 %v1919_v22, %v1889_v16  ;;  %v1988_v32 = vadd.f32 %v1987_v24, %v1957_v23  ;;  %v1721_v33 = vpack.c.bf16 %v2688_v2, %v2686_v19  ;;  %v2658_v34 = vpop.f32.mrb[26].mxu0 }
 0x145   : > { %2505 = vst [vmem:[%s3218_s15 + $0x58] sm:$0xff] %v1722_v27   ;;  %v1651_v35 = vpop.f32.mrb[27].mxu0  ;;  %v1893_v25 = vunpack.c.l.bf16 %v1722_v27  ;;  %v1894_v44 = vunpack.c.h.bf16 %v1722_v27 }
 0x146   : > { %v1989_v36 = vadd.f32 %v1988_v32, %v1958_v29  ;;  %2504 = vst [vmem:[%s3218_s15 + $0x50] sm:$0xff] %v1721_v33   ;;  %v1891_v7 = vunpack.c.l.bf16 %v1721_v33  ;;  %v1892_v10 = vunpack.c.h.bf16 %v1721_v33  ;;  %v1921_v37 = vadd.f32 %v1920_v30, %v1890_v4  ;;  %v2623_v38 = vpop.f32.mrb[24].mxu1 }
 0x147   : > { %v2689_v40 = vadd.f32 %v2657_v26, %v2623_v38  ;;  %v1245_v41 = vpop.f32.mrb[25].mxu1  ;;  %v1962_v53 = vmul.f32 %v1893_v25, %v1893_v25  ;;  %v1963_v57 = vmul.f32 %v1894_v44, %v1894_v44 }
 0x148   : > { %v1922_v11 = vadd.f32 %v1921_v37, %v1891_v7  ;;  %v1960_v42 = vmul.f32 %v1891_v7, %v1891_v7  ;;  %v1990_v43 = vadd.f32 %v1989_v36, %v1959_v9  ;;  %v2624_v12 = vpop.f32.mrb[26].mxu1  ;;  %v2690_v45 = vadd.f32 %v1648_v28, %v1245_v41 }
 0x149   : > { %v2691_v46 = vadd.f32 %v2658_v34, %v2624_v12  ;;  %v1248_v47 = vpop.f32.mrb[27].mxu1  ;;  %v1961_v49 = vmul.f32 %v1892_v10, %v1892_v10 }
 0x14a   : > { %v1923_v48 = vadd.f32 %v1922_v11, %v1892_v10  ;;  %v1991_v50 = vadd.f32 %v1990_v43, %v1960_v42  ;;  %v2692_v51 = vadd.f32 %v1651_v35, %v1248_v47 }
 0x14b   : > { %v1724_v31 = vpack.c.bf16 %v2691_v46, %v2689_v40  ;;  %v2661_v52 = vpop.f32.mrb[28].mxu0 }
 0x14c   : > { %v1924_v54 = vadd.f32 %v1923_v48, %v1893_v25  ;;  %v1992_v55 = vadd.f32 %v1991_v50, %v1961_v49  ;;  %v1723_v39 = vpack.c.bf16 %v2692_v51, %v2690_v45  ;;  %v1664_v56 = vpop.f32.mrb[29].mxu0 }
 0x14d   : > { %2507 = vst [vmem:[%s3218_s15 + $0x68] sm:$0xff] %v1724_v31   ;;  %v2662_v5 = vpop.f32.mrb[30].mxu0  ;;  %v1897_v13 = vunpack.c.l.bf16 %v1724_v31  ;;  %v1898_v16 = vunpack.c.h.bf16 %v1724_v31 }
 0x14e   : > { %v1993_v6 = vadd.f32 %v1992_v55, %v1962_v53  ;;  %2506 = vst [vmem:[%s3218_s15 + $0x60] sm:$0xff] %v1723_v39   ;;  %v1895_v58 = vunpack.c.l.bf16 %v1723_v39  ;;  %v1896_v59 = vunpack.c.h.bf16 %v1723_v39  ;;  %v1925_v60 = vadd.f32 %v1924_v54, %v1894_v44  ;;  %v2627_v61 = vpop.f32.mrb[28].mxu1  ;;  %v1667_v62 = vpop.f32.mrb[31].mxu0 }
 0x14f   : > { %v2693_v63 = vadd.f32 %v2661_v52, %v2627_v61  ;;  %v1261_v0 = vpop.f32.mrb[29].mxu1  ;;  %v1966_v23 = vmul.f32 %v1897_v13, %v1897_v13  ;;  %v1967_v27 = vmul.f32 %v1898_v16, %v1898_v16 }
 0x150   : > { %v1926_v14 = vadd.f32 %v1925_v60, %v1895_v58  ;;  %v1964_v1 = vmul.f32 %v1895_v58, %v1895_v58  ;;  %v1994_v15 = vadd.f32 %v1993_v6, %v1963_v57  ;;  %v2628_v3 = vpop.f32.mrb[30].mxu1  ;;  %v2694_v17 = vadd.f32 %v1664_v56, %v1261_v0 }
 0x151   : > { %v2695_v18 = vadd.f32 %v2662_v5, %v2628_v3  ;;  %v1264_v19 = vpop.f32.mrb[31].mxu1  ;;  %v1965_v4 = vmul.f32 %v1896_v59, %v1896_v59 }
 0x152   : > { %v1927_v20 = vadd.f32 %v1926_v14, %v1896_v59  ;;  %v1995_v8 = vadd.f32 %v1994_v15, %v1964_v1  ;;  %v2696_v21 = vadd.f32 %v1667_v62, %v1264_v19 }
 0x153   : > { %v1726_v22 = vpack.c.bf16 %v2695_v18, %v2693_v63 }
 0x154   : > { %v1928_v24 = vadd.f32 %v1927_v20, %v1897_v13  ;;  %v1996_v2 = vadd.f32 %v1995_v8, %v1965_v4  ;;  %v1725_v26 = vpack.c.bf16 %v2696_v21, %v2694_v17 }
 0x155   : > { %2509 = vst [vmem:[%s3218_s15 + $0x78] sm:$0xff] %v1726_v22   ;;  %v1901_v33 = vunpack.c.l.bf16 %v1726_v22  ;;  %v1902_v36 = vunpack.c.h.bf16 %v1726_v22 }
 0x156   : > { %v1997_v28 = vadd.f32 %v1996_v2, %v1966_v23  ;;  %2508 = vst [vmem:[%s3218_s15 + $0x70] sm:$0xff] %v1725_v26   ;;  %v1899_v29 = vunpack.c.l.bf16 %v1725_v26  ;;  %v1900_v30 = vunpack.c.h.bf16 %v1725_v26  ;;  %v1929_v32 = vadd.f32 %v1928_v24, %v1898_v16 }
 0x157   : > { %v1970_v38 = vmul.f32 %v1901_v33, %v1901_v33  ;;  %v1971_v25 = vmul.f32 %v1902_v36, %v1902_v36 }
 0x158   : > { %v1930_v34 = vadd.f32 %v1929_v32, %v1899_v29  ;;  %v1968_v9 = vmul.f32 %v1899_v29, %v1899_v29  ;;  %v1998_v35 = vadd.f32 %v1997_v28, %v1967_v27  ;;  %v1969_v10 = vmul.f32 %v1900_v30, %v1900_v30 }
 0x15a   : > { %v1931_v7 = vadd.f32 %v1930_v34, %v1900_v30  ;;  %v1999_v37 = vadd.f32 %v1998_v35, %v1968_v9 }
 0x15c   : > { %v1932_v40 = vadd.f32 %v1931_v7, %v1901_v33  ;;  %v2000_v41 = vadd.f32 %v1999_v37, %v1969_v10 }
 0x15e   : > { %v1933_v11 = vadd.f32 %v1932_v40, %v1902_v36  ;;  %v2001_v42 = vadd.f32 %v2000_v41, %v1970_v38 }
 0x160   : > { %v1934_v43 = vrot.slane %v1933_v11, 4  ;;  %v2002_v12 = vadd.f32 %v2001_v42, %v1971_v25 }
 0x162   : > { %v1935_v44 = vadd.f32 %v1934_v43, %v1933_v11  ;;  %v2003_v45 = vrot.slane %v2002_v12, 4 }
 0x164   : > { %v1936_v46 = vrot.slane %v1935_v44, 2  ;;  %v2004_v47 = vadd.f32 %v2003_v45, %v2002_v12 }
 0x166   : > { %v1937_v48 = vadd.f32 %v1936_v46, %v1935_v44  ;;  %v2005_v49 = vrot.slane %v2004_v47, 2 }
 0x168   : > { %v1938_v50 = vrot.slane %v1937_v48, 1  ;;  %v2006_v51 = vadd.f32 %v2005_v49, %v2004_v47 }
 0x16a   : > { %v2007_v31 = vrot.slane %v2006_v51, 1  ;;  %v1939_v52 = vadd.f32 %v1938_v50, %v1937_v48 }
 0x16c   : > { %v2008_v53 = vadd.f32 %v2007_v31, %v2006_v51 }
 0x16e   : > { %v2010_v54 = vsel %vm2009_vm2, %v1939_v52, %v2008_v53 }
 0x16f   : > { %2011 = vst [vmem:[%s498_s18] sm:$0x3] %v2010_v54 }
 0x170 PF: > { %s24_s25 = sadd.s32 1, %s2748_s25  }
 0x171   : > { %p21_p5 = scmp.ge.s32.totalorder %s24_s25, 4  }
 0x173   :  { %23 = sbr.rel (!%p21_p5) target bundleno = 1 (0x1), region = 116 }

// kernel: denseblock_forward.11
= control target key start
LH: loop header
LB: loop body
LE: loop exit
PB: predicated region body
PF: predicated region fallthrough
CT: control target
= control target key end

     0   :  { %s6375_s0 = inlined_call_operand.vmem [shape: bf16[2,256,128], index: 0, kind: input, shape index: {}, may-alias: {0,1,2}]   ;;  %s6376_s1 = inlined_call_operand.vmem [shape: bf16[2,256,128], index: 1, kind: input, shape index: {}, may-alias: {0,1,2}]   ;;  %s6377_s2 = inlined_call_operand.vmem [shape: bf16[2,256,128], index: 2, kind: input, shape index: {}, may-alias: {0,1,2}]   ;;  %s6378_s3 = inlined_call_operand.vmem [shape: f32[1,128], index: 3, kind: input, shape index: {}]   ;;  %s6379_s4 = inlined_call_operand.vmem [shape: f32[1,128], index: 4, kind: input, shape index: {}]   ;;  %s6380_s5 = inlined_call_operand.vmem [shape: bf16[9,128,4], index: 5, kind: input, shape index: {}]   ;;  %s6381_s6 = inlined_call_operand.vmem [shape: bf16[2,256,4], index: 6, kind: output, shape index: {0}]   ;;  %s6382_s7 = inlined_call_operand.hbm [shape: f32[2,2,2,4], index: 7, kind: output, shape index: {1}]  }
   0x1   :  { %6390 = sst [smem:[#allocation7_spill]] %s6375_s0 }
   0x2   :  { %13 = vsyncpa [#allocation4], 0 }
   0x3   :  { %15 = vsyncpa [#allocation4 + $0x1], 0  ;;  %s5091_s24 = smov 0   ;;  %s5093_s25 = smov 0  }
   0x4   :  { %s5095_s26 = smov 0   ;;  %s5097_s27 = smov 0  }
   0x5   :  { %s5099_s28 = smov 0   ;;  %s5101_s29 = smov 0  }
   0x6   :  { %s5103_s30 = smov 0   ;;  %s5105_s8 = smov 0  }
   0x7 LB: > { %s3887_s9 = sadd.s32 4294967295, %s5046_s8   ;;  %s3888_s10 = sadd.s32 4294967294, %s5046_s8   ;;  %s5046_s8 = sphi %s5105_s8, %s21_s8   ;;  %s5042_s30 = sphi %s5103_s30, %s6436_s30   ;;  %s5038_s29 = sphi %s5101_s29, %s6435_s29   ;;  %s5034_s28 = sphi %s5099_s28, %s6434_s28   ;;  %s5030_s27 = sphi %s5097_s27, %s6433_s27   ;;  %s5026_s26 = sphi %s5095_s26, %s6432_s26   ;;  %s5022_s25 = sphi %s5093_s25, %s6431_s25   ;;  %s5018_s24 = sphi %s5091_s24, %s6430_s24  }
   0x8   : > { %s30_s11 = sadd.s32 1, %s5038_s29  ;;  %s33_s12 = sadd.s32 1, %s5042_s30 }
   0x9   : > { %p31_p0 = scmp.ge.s32.totalorder %s30_s11, 2  ;;  %p243_p1 = scmp.ne.s32.totalorder %s5026_s26, %s5022_s25 }
   0xa   : > { %p244_p2 = scmp.eq.s32.totalorder %s3887_s9, 3  ;;  %p249_p5 = scmp.ne.s32.totalorder %s5022_s25, %s5018_s24 }
   0xb   : > { %s6438_s11 = smov (%p31_p0, %s30_s11), 0  ;;  %s6440_s12 = smov (!%p31_p0, %s33_s12), %s5042_s30 }
   0xc   : > { %s229_s13 = ssub.s32 %s5038_s29, %s6438_s11  ;;  %p5142_p3 = por %p244_p2, %p243_p1 }
   0xd   : > { %p35_p4 = scmp.ge.s32.totalorder %s6440_s12, 2  ;;  %p250_p6 = scmp.eq.s32.totalorder %s3888_s10, 3 }
   0xe   : > { %p3897_p7 = scmp.ge.s32.totalorder %s5046_s8, 1  ;;  %p332_p9 = scmp.lt.s32.totalorder %s5046_s8, 5 }
   0xf   : > { %s6442_s12 = smov (%p35_p4, %s6440_s12), 0  ;;  %p5151_p8 = por %p250_p6, %p249_p5 }
  0x10   : > { %6392 = sst [smem:[#allocation6_spill]] %s6442_s12  ;;  %s228_s16 = ssub.s32 %s5042_s30, %s6442_s12 }
  0x11   : > { %s233_s17 = sadd.s32 1, %s5026_s26  ;;  %s230_s18 = sor.u32 %s229_s13, %s228_s16 }
  0x12   : > { %p333_p10 = pnand %p3897_p7, %p332_p9  ;;  %p231_p11 = scmp.eq.s32.totalorder %s230_s18, 0 }
  0x13   : > { %v4871_v0 = vld [vmem:[%s6380_s5 + $0x100] sm:$0xff] (!%p333_p10)   ;;  %s3899_s22 = sshll.u32 (!%p333_p10), %s5030_s27, 4  ;;  %v4872_v1 = vld [vmem:[%s6380_s5 + $0x108] sm:$0xff] (!%p333_p10)   ;;  %p404_p12 = scmp.lt.s32.totalorder (!%p333_p10), %s5034_s28, 1  ;;  %v4874_v3 = vld [vmem:[%s6380_s5 + $0x110] sm:$0xff] (!%p333_p10)   ;;  %v650_v5 = vlaneseq (!%p333_p10)  ;;  %v5048_v7 = vmov (!%p333_p10), 0  }
  0x14   : > { %s5160_s19 = scalar_select %p231_p11, %s5026_s26, %s233_s17  }
  0x15   : > { %336 = sbr.rel (%p333_p10) target bundleno = 507 (0x1fb), region = 44  ;;  %4494 = vmatprep.subr.bf16.mxu0 (!%p333_p10), %v4871_v0  ;;  %v4873_v2 = vld [vmem:[%s6380_s5 + $0x40] sm:$0xff] (!%p333_p10)   ;;  %p406_p13 = scmp.lt.s32.totalorder (!%p333_p10), %s3899_s22, 31  ;;  %v4875_v4 = vld [vmem:[%s6380_s5 + $0x48] sm:$0xff] (!%p333_p10)   ;;  %v4877_v6 = vld [vmem:[%s6380_s5 + $0x50] sm:$0xff] (!%p333_p10)   ;;  %v5193_v9 = vshrl.u32 (!%p333_p10), %v650_v5, 7 }
  0x16   : > { %4495 = vmatpush3.bf16.msra.mxu0 (!%p333_p10), %v4871_v0  ;;  %4366 = vmatprep.subr.bf16.mxu1 (!%p333_p10), %v4873_v2  ;;  %464 = vst [vmem:[#allocation2] sm:$0xf] (!%p333_p10), %v5048_v7  ;;  %465 = vst [vmem:[#allocation2 + $0x50] sm:$0xf0] (!%p333_p10), %v5048_v7  ;;  %v4876_v8 = vld [vmem:[%s6380_s5 + $0x118] sm:$0xff] (!%p333_p10)   ;;  %v4878_v12 = vld [vmem:[%s6380_s5 + $0x120] sm:$0xff] (!%p333_p10)  }
  0x17   : > { %4496 = vmatprep.subr.bf16.mxu0 (!%p333_p10), %v4872_v1  ;;  %4367 = vmatpush3.bf16.msra.mxu1 (!%p333_p10), %v4873_v2  ;;  %v4879_v10 = vld [vmem:[%s6380_s5 + $0x58] sm:$0xff] (!%p333_p10)   ;;  %v652_v11 = vadd.s32 (!%p333_p10), 8, %v5193_v9  ;;  %s6394_s0 = sld [smem:[#allocation7_spill]] (!%p333_p10)  ;;  %v653_v13 = vadd.s32 (!%p333_p10), 16, %v5193_v9  ;;  %v654_v14 = vadd.s32 (!%p333_p10), 24, %v5193_v9  ;;  %v4881_v15 = vld [vmem:[%s6380_s5 + $0x60] sm:$0xff] (!%p333_p10)  }
  0x18   : > { %4368 = vmatprep.subr.bf16.mxu1 (!%p333_p10), %v4875_v4  ;;  %v671_v16 = vand.u32 (!%p333_p10), 15, %v5193_v9  ;;  %v4880_v17 = vld [vmem:[%s6380_s5 + $0x128] sm:$0xff] (!%p333_p10)   ;;  %v5220_v18 = vld [vmem:[%s6378_s3] ss:$0 sm:$0xff] (!%p333_p10)  ;;  %vm5049_vm0 = vmmov (!%p333_p10), 1   ;;  %s3902_s17 = sshll.u32 (!%p333_p10), %s5030_s27, 3 }
  0x19   : > { %v678_v20 = vand.u32 (!%p333_p10), 15, %v652_v11  ;;  %v5226_v21 = vld [vmem:[%s6379_s4] ss:$0 sm:$0xff] (!%p333_p10)  ;;  %v685_v25 = vand.u32 (!%p333_p10), 15, %v653_v13  ;;  %v692_v26 = vand.u32 (!%p333_p10), 15, %v654_v14  ;;  %vm5229_vm1 = vmpackc.low (!%p333_p10), %vm5049_vm0, %vm5049_vm0  ;;  %v4883_v32 = vld [vmem:[%s6380_s5 + $0x68] sm:$0xff] (!%p333_p10)  }
  0x1a   : > { %4497 = vmatpush3.bf16.msra.mxu0 (!%p333_p10), %v4872_v1  ;;  %vm5234_vm2 = vcmp.ge.s32.totalorder (!%p333_p10), %v671_v16, 1  ;;  %v4882_v37 = vld [vmem:[%s6380_s5 + $0x130] sm:$0xff] (!%p333_p10)   ;;  %v5270_v41 = vsel (!%p333_p10), %vm5229_vm1, 65537, %v5048_v7  ;;  %s5276_s10 = sadd.s32 (!%p333_p10), 8, %s3902_s17  ;;  %vm6387_vm8 = vcmask (!%p333_p10), 1043456   ;;  %v4884_v54 = vld [vmem:[%s6380_s5 + $0x138] sm:$0xff] (!%p333_p10)  }
  0x1b   : > { %4498 = vmatprep.subr.bf16.mxu0 (!%p333_p10), %v4874_v3  ;;  %4369 = vmatpush3.bf16.msra.mxu1 (!%p333_p10), %v4875_v4  ;;  %vm5238_vm3 = vcmp.le.s32.totalorder (!%p333_p10), %v678_v20, 14  ;;  %vm5247_vm4 = vcmp.ge.s32.totalorder (!%p333_p10), %v685_v25, 1  ;;  %vm5251_vm5 = vcmp.le.s32.totalorder (!%p333_p10), %v692_v26, 14  ;;  %vm932_vm6 = vmpackc.low (!%p333_p10), %vm5234_vm2, %vm5234_vm2  ;;  %v4885_v49 = vld [vmem:[%s6380_s5 + $0x70] sm:$0xff] (!%p333_p10)   ;;  %p433_p1 = scmp.lt.s32.totalorder (!%p333_p10), %s5276_s10, 15  ;;  %v4887_v62 = vld [vmem:[%s6380_s5 + $0x78] sm:$0xff] (!%p333_p10)  }
  0x1c   : > { %s405_s18 = scalar_select %p404_p12, %s5034_s28, 1  ;;  %4370 = vmatprep.subr.bf16.mxu1 %v4877_v6  ;;  %vm934_vm7 = vmpackc.low %vm5247_vm4, %vm5247_vm4  ;;  %v948_v40 = vsel %vm932_vm6, 65537, %v5048_v7  ;;  %vm1291_vm11 = vsmask.f32 4352  ;;  %vm988_vm12 = vsmask.f32 3328 }
  0x1d   : > { %s6444_s22 = smov (!%p406_p13, %s3899_s22), 31  ;;  %v950_v44 = vsel %vm934_vm7, 65537, %v5048_v7  ;;  %v3916_v45 = vcombine.low %v948_v40, %v5270_v41  ;;  %vm1559_vm9 = vmpackc.low %vm5238_vm3, %vm5238_vm3  ;;  %s6448_s10 = smov (!%p433_p1, %s5276_s10), 15  ;;  %v5328_v16 = vld [vmem:[%s6380_s5 + $0x140] sm:$0xff]  }
  0x1e   : > { %s5180_s23 = sshll.u32 %s405_s18, 5  ;;  %4499 = vmatpush3.bf16.msra.mxu0 %v4874_v3  ;;  %v3917_v48 = vcombine.low %v950_v44, %v5270_v41  ;;  %vm1561_vm10 = vmpackc.low %vm5251_vm5, %vm5251_vm5  ;;  %v1575_v2 = vsel %vm1559_vm9, 65537, %v5048_v7  ;;  %v5353_v26 = vld [vmem:[%s6380_s5] sm:$0xff]   ;;  %p619_p5 = scmp.gt.s32.totalorder %s5030_s27, 0 }
  0x1f   : > { %s409_s13 = sadd.s32 %s5180_s23, %s6444_s22  ;;  %4500 = vmatprep.subr.bf16.mxu0 %v4876_v8  ;;  %4371 = vmatpush3.bf16.msra.mxu1 %v4877_v6  ;;  %s3903_s22 = sadd.s32 4294967295, %s3902_s17  ;;  %v990_v52 = vshrl.u32 %v3916_v45, 16  ;;  %v993_v53 = vshll.u32 %v3916_v45, 16  ;;  %v1577_v5 = vsel %vm1561_vm10, 65537, %v5048_v7  ;;  %v3956_v6 = vcombine.low %v5270_v41, %v1575_v2 }
  0x20   : > { %s5191_s18 = sshll.u32 %s409_s13, 2  ;;  %4372 = vmatprep.subr.bf16.mxu1 %v4879_v10  ;;  %p415_p0 = scmp.gt.s32.totalorder %s3903_s22, 0  ;;  %v998_v57 = vshrl.u32 %v3917_v48, 16  ;;  %v1001_v58 = vshll.u32 %v3917_v48, 16 }
  0x21   : > { %s5206_s13 = scalar_lea.vmem %s6394_s0, %s5191_s18  ;;  %v992_v60 = vrot.slane %v990_v52, 4  ;;  %v995_v0 = vrot.slane %v993_v53, 5  ;;  %v1618_v13 = vshll.u32 %v3956_v6, 16  ;;  %p640_p6 = scmp.lt.s32.totalorder %s5030_s27, 1 }
  0x22   : > { %4501 = vmatpush3.bf16.msra.mxu0 %v4876_v8  ;;  %v4176_v19 = vld [vmem:[%s5206_s13] sm:$0xff]   ;;  %v4215_v24 = vld [vmem:[%s5206_s13 + $0x8] sm:$0xff]   ;;  %s6446_s22 = smov (!%p415_p0, %s3903_s22), 0  ;;  %v4216_v61 = vld [vmem:[%s5206_s13 + $0x10] sm:$0xff]   ;;  %v1000_v1 = vrot.slane %v998_v57, 4  ;;  %v1003_v4 = vrot.slane %v1001_v58, 5 }
  0x23   : > { %4502 = vmatprep.subr.bf16.mxu0 %v4878_v12  ;;  %v4177_v22 = vunpack.c.l.bf16 %v4176_v19  ;;  %v4178_v23 = vunpack.c.h.bf16 %v4176_v19  ;;  %4373 = vmatpush3.bf16.msra.mxu1 %v4879_v10  ;;  %v4181_v28 = vunpack.c.l.bf16 %v4215_v24  ;;  %v4182_v29 = vunpack.c.h.bf16 %v4215_v24  ;;  %s3904_s21 = sshll.u32 %s6446_s22, 1  ;;  %s3908_s22 = sshll.u32 %s6448_s10, 1  ;;  %v4217_v57 = vld [vmem:[%s5206_s13 + $0x18] sm:$0xff]  }
  0x24   : > { %4374 = vmatprep.subr.bf16.mxu1 %v4881_v15  ;;  %p420_p2 = scmp.lt.s32.totalorder %s3904_s21, 31  ;;  %v3957_v10 = vcombine.low %v5270_v41, %v1577_v5  ;;  %v4185_v11 = vunpack.c.l.bf16 %v4216_v61  ;;  %v4186_v14 = vunpack.c.h.bf16 %v4216_v61  ;;  %p5338_p4 = scmp.lt.s32.totalorder %s3908_s22, 31  ;;  %v1620_v25 = vrot.slane %v1618_v13, 4 }
  0x25   : > { %v504_v33 = vmul.f32 %v4177_v22, %v5220_v18  ;;  %v505_v34 = vmul.f32 %v4178_v23, %v5220_v18  ;;  %v506_v38 = vmul.f32 %v4181_v28, %v5220_v18  ;;  %v507_v39 = vmul.f32 %v4182_v29, %v5220_v18  ;;  %s620_s10 = scalar_select %p619_p5, 1, 0 }
  0x26   : > { %4503 = vmatpush3.bf16.msra.mxu0 %v4878_v12  ;;  %s6450_s21 = smov (!%p420_p2, %s3904_s21), 31  ;;  %v1615_v12 = vshrl.u32 %v3956_v6, 16  ;;  %v1623_v19 = vshrl.u32 %v3957_v10, 16  ;;  %v1626_v20 = vshll.u32 %v3957_v10, 16  ;;  %v5343_v22 = vor.u32 %v995_v0, %v992_v60  ;;  %s6452_s22 = smov (!%p5338_p4, %s3908_s22), 31 }
  0x27   : > { %4504 = vmatprep.subr.bf16.mxu0 %v4880_v17  ;;  %v526_v42 = vadd.f32 %v5226_v21, %v504_v33  ;;  %v527_v43 = vadd.f32 %v5226_v21, %v505_v34  ;;  %4375 = vmatpush3.bf16.msra.mxu1 %v4881_v15  ;;  %v528_v46 = vadd.f32 %v5226_v21, %v506_v38  ;;  %v655_v15 = vadd.s32 32, %v5193_v9  ;;  %s423_s20 = sadd.s32 %s5180_s23, %s6450_s21  ;;  %s441_s12 = sadd.s32 %s5180_s23, %s6452_s22 }
  0x28   : > { %v529_v47 = vadd.f32 %v5226_v21, %v507_v39  ;;  %4376 = vmatprep.subr.bf16.mxu1 %v4883_v32  ;;  %s3906_s9 = sshll.u32 %s423_s20, 2  ;;  %v5345_v23 = vor.u32 %v1003_v4, %v1000_v1  ;;  %v1617_v24 = vrot.slane %v1615_v12, 3  ;;  %v1625_v27 = vrot.slane %v1623_v19, 3  ;;  %s4149_s16 = sshll.u32 %s5034_s28, 1 }
  0x29   : > { %v542_v50 = vmax.f32 %v526_v42, 0.0  ;;  %v543_v51 = vmax.f32 %v527_v43, 0.0  ;;  %v544_v55 = vmax.f32 %v528_v46, 0.0  ;;  %s425_s17 = scalar_lea.vmem %s6376_s1, %s3906_s9  ;;  %v1628_v28 = vrot.slane %v1626_v20, 4  ;;  %s3732_s21 = sadd.s32 %s5030_s27, %s4149_s16 }
  0x2a   : > { %4505 = vmatpush3.bf16.msra.mxu0 %v4880_v17  ;;  %v545_v56 = vmax.f32 %v529_v47, 0.0  ;;  %v508_v30 = vmul.f32 %v4185_v11, %v5220_v18  ;;  %v4208_v31 = vld [vmem:[%s425_s17] sm:$0xff]   ;;  %v509_v33 = vmul.f32 %v4186_v14, %v5220_v18  ;;  %v656_v34 = vadd.s32 40, %v5193_v9  ;;  %s5810_s9 = scalar_select %p640_p6, 1, 0 }
  0x2b   : > { %4506 = vmatprep.subr.bf16.mxu0 %v4882_v37  ;;  %v558_v59 = vpack.c.bf16 %v543_v51, %v542_v50  ;;  %4377 = vmatpush3.bf16.msra.mxu1 %v4883_v32  ;;  %v5359_v32 = vor.u32 %v1620_v25, %v1617_v24  ;;  %v699_v35 = vand.u32 15, %v655_v15  ;;  %v5365_v36 = vor.u32 %v1628_v28, %v1625_v27  ;;  %v4218_v14 = vld [vmem:[%s5206_s13 + $0x20] sm:$0xff]   ;;  %s4150_s0 = sshll.u32 %s3732_s21, 5 }
  0x2c   : > { %v5301_v63 = vpack.c.bf16 %v545_v56, %v544_v55  ;;  %4378 = vmatprep.subr.bf16.mxu1 %v4885_v49  ;;  %v4209_v38 = vunpack.c.l.bf16 %v4208_v31  ;;  %v4210_v39 = vunpack.c.h.bf16 %v4208_v31  ;;  %v531_v40 = vadd.f32 %v5226_v21, %v509_v33 }
  0x2d   : > { %v575_v3 = vrot.slane %v558_v59, 4  ;;  %vm6385_vm13 = vcmp.ne.s16.totalorder %v5359_v32, 0  ;;  %v706_v42 = vand.u32 15, %v656_v34  ;;  %vm5376_vm14 = vcmp.ge.s32.totalorder %v699_v35, 1 }
  0x2e   : > { %4507 = vmatpush3.bf16.msra.mxu0 %v4882_v37  ;;  %v576_v8 = vrot.slane %v5301_v63, 4  ;;  %v530_v37 = vadd.f32 %v5226_v21, %v508_v30  ;;  %v5384_v44 = vsel %vm1291_vm11, %v5359_v32, %v5365_v36  ;;  %vm936_vm15 = vmpackc.low %vm5376_vm14, %vm5376_vm14  ;;  %v612_v47 = vmul.f32 %v4209_v38, %v5220_v18 }
  0x2f   : > { %4508 = vmatprep.subr.bf16.mxu0 %v4884_v54  ;;  %599 = vst [vmem:[#allocation2 + $0x8] sm:$0xf0] %v575_v3  ;;  %4379 = vmatpush3.bf16.msra.mxu1 %v4885_v49  ;;  %v547_v50 = vmax.f32 %v531_v40, 0.0  ;;  %v613_v51 = vmul.f32 %v4210_v39, %v5220_v18  ;;  %v5400_v52 = vsel %vm988_vm12, %v5343_v22, %v5345_v23  ;;  %vm6386_vm0 = vcmp.ne.s16.totalorder %v5384_v44, 0 }
  0x30   : > { %v5334_v17 = vsel %vm6387_vm8, %v575_v3, %v576_v8  ;;  %4380 = vmatprep.subr.bf16.mxu1 %v4887_v62  ;;  %v546_v46 = vmax.f32 %v530_v37, 0.0  ;;  %vm880_vm1 = vcmp.le.s32.totalorder %v706_v42, 14  ;;  %v952_v55 = vsel %vm936_vm15, 65537, %v5048_v7 }
  0x31   : > { %600 = vst [vmem:[#allocation2 + $0x10] sm:$0xff] %v5334_v17  ;;  %v5356_v29 = vrot.slane %v5334_v17, 4  ;;  %vm1563_vm2 = vmpackc.low %vm880_vm1, %vm880_vm1  ;;  %v614_v56 = vadd.f32 %v5226_v21, %v612_v47  ;;  %v3918_v60 = vcombine.low %v952_v55, %v5270_v41  ;;  %v615_v1 = vadd.f32 %v5226_v21, %v613_v51 }
  0x32   : > { %4509 = vmatpush3.bf16.msra.mxu0 %v4884_v54  ;;  %v5407_v54 = vpack.c.bf16 %v547_v50, %v546_v46  ;;  %v1579_v61 = vsel %vm1563_vm2, 65537, %v5048_v7  ;;  %v621_v5 = vstv %s620_s10  ;;  %v4189_v6 = vunpack.c.l.bf16 %v4217_v57  ;;  %v4219_v50 = vld [vmem:[%s5206_s13 + $0x28] sm:$0xff]   ;;  %s6234_s10 = scalar_lea.vmem %s6381_s6, %s5191_s18  ;;  %s400_s18 = sand.u32 1, %s5022_s25  }
  0x33   : > { %4526 = vmatprep.subr.bf16.mxu0 %v5328_v16  ;;  %4381 = vmatpush3.bf16.msra.mxu1 %v4887_v62  ;;  %v3958_v0 = vcombine.low %v5270_v41, %v1579_v61  ;;  %v616_v2 = vmax.f32 %v614_v56, 0.0  ;;  %v1007_v3 = vshrl.u32 %v3918_v60, 16  ;;  %v1010_v4 = vshll.u32 %v3918_v60, 16  ;;  %s3717_s27 = scalar_lea.sflag [#allocation4], %s400_s18 }
  0x34   : > { %4398 = vmatprep.subr.bf16.mxu1 %v5353_v26  ;;  %v578_v62 = vrot.slane %v5407_v54, 4  ;;  %v617_v13 = vmax.f32 %v615_v1, 0.0  ;;  %vm5429_vm3 = vcmp.eq.s32.totalorder %v621_v5, 1  ;;  %v4190_v28 = vunpack.c.h.bf16 %v4217_v57  ;;  %v4220_v57 = vld [vmem:[%s5206_s13 + $0x30] sm:$0xff]   ;;  %v4892_v5 = vld [vmem:[%s6380_s5 + $0x158] sm:$0xff]  }
  0x35   : > { %v1632_v11 = vshrl.u32 %v3958_v0, 16  ;;  %v1635_v12 = vshll.u32 %v3958_v0, 16  ;;  %v1009_v15 = vrot.slane %v1007_v3, 4  ;;  %v1012_v19 = vrot.slane %v1010_v4, 5 }
  0x36   : > { %v2253_v45 = vld [vmem:[#allocation2 + $0x8] sm:$0xf0]  ;;  %v5424_v10 = vsel %vm6387_vm8, %v576_v8, %v578_v62  ;;  %v618_v63 = vpack.c.bf16 %v617_v13, %v616_v2  ;;  %v510_v33 = vmul.f32 %v4189_v6, %v5220_v18  ;;  %v4193_v34 = vunpack.c.l.bf16 %v4218_v14 }
  0x37   : > { %v2280_v48 = vrot.slane %v2253_v45, 4  ;;  %v5394_v49 = vsel %vm6385_vm13, %v2253_v45, 0  ;;  %601 = vst [vmem:[#allocation2 + $0x18] sm:$0xff] %v5424_v10  ;;  %v2283_v20 = vrot.slane %v5424_v10, 4  ;;  %v1634_v25 = vrot.slane %v1632_v11, 3  ;;  %v4888_v8 = vld [vmem:[%s6380_s5 + $0x148] sm:$0xff]  }
  0x38   : > { %v2494_v58 = vshrl.u32 %v5394_v49, 16  ;;  %v2497_v59 = vshll.u32 %v5394_v49, 16  ;;  %v1637_v27 = vrot.slane %v1635_v12, 4  ;;  %v5436_v30 = vor.u32 %v1012_v19, %v1009_v15 }
  0x39   : > { %v2282_v53 = vsel %vm6387_vm8, %v2280_v48, %v5356_v29  ;;  %v5442_v31 = vsel %vm6387_vm8, %v5356_v29, %v2283_v20  ;;  %vm1061_vm4 = vcmp.ne.s16.totalorder %v5400_v52, 0  ;;  %v623_v37 = vsel %vm5429_vm3, %v618_v63, 0 }
  0x3a   : > { %4510 = vmatprep.mubr.bf16.mxu0 %v2282_v53  ;;  %v5446_v35 = vor.u32 %v1637_v27, %v1634_v25  ;;  %v511_v38 = vmul.f32 %v4190_v28, %v5220_v18  ;;  %v4194_v39 = vunpack.c.h.bf16 %v4218_v14  ;;  %v5455_v40 = vsel %vm6386_vm0, %v5334_v17, 0 }
  0x3b   : > { %4511 = vmatmul.mubr.bf16.vlgmr.msra.gmra.mrb[0].mxu0 %v5442_v31  ;;  %v5460_v42 = vsel %vm988_vm12, %v5345_v23, %v5436_v30  ;;  %v625_v43 = vrot.slane %v623_v37, 4  ;;  %v532_v45 = vadd.f32 %v5226_v21, %v510_v33  ;;  %v512_v23 = vmul.f32 %v4193_v34, %v5220_v18  ;;  %v4894_v37 = vld [vmem:[%s6380_s5 + $0x160] sm:$0xff]  }
  0x3c   : > { %4527 = vmatpush3.bf16.msra.mxu0 %v5328_v16  ;;  %vm1062_vm5 = vcmp.ne.s16.totalorder %v5460_v42, 0  ;;  %v5468_v46 = vsel %vm1291_vm11, %v5365_v36, %v5446_v35  ;;  %v533_v47 = vadd.f32 %v5226_v21, %v511_v38  ;;  %v4890_v16 = vld [vmem:[%s6380_s5 + $0x150] sm:$0xff]   ;;  %v5475_v48 = vrot.slane %v2494_v58, 4  ;;  %v5495_v58 = vld [vmem:[%s5206_s13 + $0x38] sm:$0xff]   ;;  %s5728_s13 = sshll.u32 %s441_s12, 2  ;;  %s6322_s12 = scalar_lea.hbm %s6382_s7, %s4150_s0 }
  0x3d   : > { %4528 = vmatprep.subr.bf16.mxu0 %v4888_v8  ;;  %vm6384_vm6 = vcmp.ne.s16.totalorder %v5468_v46, 0  ;;  %627 = vst [vmem:[#allocation2 + $0x8] ss:$-4 sps:$4 sm:$0xff] %v625_v43   ;;  %v5481_v36 = vsel %vm1062_vm5, %v5334_v17, 0  ;;  %v513_v49 = vmul.f32 %v4194_v39, %v5220_v18  ;;  %v5485_v51 = vrot.slane %v2497_v59, 5  ;;  %s443_s23 = scalar_lea.vmem %s6377_s2, %s5728_s13  ;;  %v4950_v42 = vld [vmem:[#allocation2 + $0x10] sm:$0xff] }
  0x3e   : > { %v5490_v53 = vsel %vm6384_vm6, %v5424_v10, 0  ;;  %v1310_v55 = vshrl.u32 %v5481_v36, 16  ;;  %v548_v56 = vmax.f32 %v532_v45, 0.0  ;;  %v1313_v0 = vshll.u32 %v5481_v36, 16  ;;  %s5050_s13 = smov [#allocation3]  }
  0x3f   : > { %v2511_v60 = vshrl.u32 %v5490_v53, 16  ;;  %v2514_v61 = vshll.u32 %v5490_v53, 16  ;;  %v5503_v59 = vsel %vm6384_vm6, %v5334_v17, 0  ;;  %v549_v3 = vmax.f32 %v533_v47, 0.0 }
  0x40   : > { %4529 = vmatpush3.bf16.msra.mxu0 %v4888_v8  ;;  %v1738_v1 = vshrl.u32 %v5503_v59, 16  ;;  %v1741_v2 = vshll.u32 %v5503_v59, 16  ;;  %v534_v4 = vadd.f32 %v5226_v21, %v512_v23  ;;  %v535_v6 = vadd.f32 %v5226_v21, %v513_v49 }
  0x41   : > { %4530 = vmatprep.subr.bf16.mxu0 %v4890_v16  ;;  %v4197_v11 = vunpack.c.l.bf16 %v4219_v50  ;;  %v4198_v12 = vunpack.c.h.bf16 %v4219_v50  ;;  %v4201_v13 = vunpack.c.l.bf16 %v4220_v57  ;;  %v561_v17 = vpack.c.bf16 %v549_v3, %v548_v56 }
  0x42   : > { %v550_v14 = vmax.f32 %v534_v4, 0.0  ;;  %v4202_v15 = vunpack.c.h.bf16 %v4220_v57  ;;  %v4205_v19 = vunpack.c.l.bf16 %v5495_v58  ;;  %v551_v24 = vmax.f32 %v535_v6, 0.0  ;;  %v4891_v6 = vld [vmem:[%s6380_s5 + $0x8] sm:$0xff]  }
  0x43   : > { %v514_v25 = vmul.f32 %v4197_v11, %v5220_v18  ;;  %v515_v27 = vmul.f32 %v4198_v12, %v5220_v18  ;;  %v516_v63 = vmul.f32 %v4201_v13, %v5220_v18  ;;  %v580_v33 = vrot.slane %v561_v17, 4 }
  0x44   : > { %4531 = vmatpush3.bf16.msra.mxu0 %v4890_v16  ;;  %v892_v8 = vld [vmem:[#allocation2 + $0x8] sm:$0xff]  ;;  %v1094_v28 = vld [vmem:[#allocation2] sm:$0xf0]  ;;  %v517_v34 = vmul.f32 %v4202_v15, %v5220_v18  ;;  %v4206_v38 = vunpack.c.h.bf16 %v5495_v58  ;;  %v518_v39 = vmul.f32 %v4205_v19, %v5220_v18  ;;  %v562_v4 = vpack.c.bf16 %v551_v24, %v550_v14 }
  0x45   : > { %4532 = vmatprep.subr.bf16.mxu0 %v4892_v5  ;;  %v5524_v43 = vsel %vm1061_vm4, %v892_v8, 0  ;;  %v1121_v45 = vrot.slane %v1094_v28, 4  ;;  %v1122_v47 = vrot.slane %v892_v8, 4  ;;  %v1694_v23 = vsel %vm6385_vm13, %v1094_v28, 0  ;;  %v4896_v14 = vld [vmem:[%s6380_s5 + $0x168] sm:$0xff]  }
  0x46   : > { %v5530_v16 = vsel %vm6386_vm0, %v892_v8, 0  ;;  %v1721_v49 = vshrl.u32 %v1694_v23, 16  ;;  %v1724_v50 = vshll.u32 %v1694_v23, 16  ;;  %v5535_v56 = vsel %vm6387_vm8, %v578_v62, %v580_v33 }
  0x47   : > { %v1123_v57 = vsel %vm6387_vm8, %v1121_v45, %v1122_v47  ;;  %v1125_v58 = vsel %vm6387_vm8, %v1122_v47, %v5356_v29  ;;  %602 = vst [vmem:[#allocation2 + $0x20] sm:$0xff] %v5535_v56  ;;  %v2285_v3 = vrot.slane %v5535_v56, 4  ;;  %v536_v11 = vadd.f32 %v5226_v21, %v514_v25 }
  0x48   : > { %4533 = vmatpush3.bf16.msra.mxu0 %v4892_v5  ;;  %4382 = vmatprep.mubr.bf16.mxu1 %v1123_v57  ;;  %v5545_v54 = vrot.slane %v1721_v49, 4  ;;  %v5547_v62 = vrot.slane %v1724_v50, 5  ;;  %v537_v12 = vadd.f32 %v5226_v21, %v515_v27  ;;  %v582_v13 = vrot.slane %v562_v4, 4  ;;  %v4893_v27 = vld [vmem:[%s6380_s5 + $0x10] sm:$0xff]   ;;  %v891_v57 = vld [vmem:[#allocation2] sm:$0xf8] }
  0x49   : > { %4534 = vmatprep.subr.bf16.mxu0 %v4894_v37  ;;  %4383 = vmatmul.mubr.bf16.vlgmr.msra.gmra.mrb[0].mxu1 %v1125_v58  ;;  %v2286_v29 = vsel %vm6387_vm8, %v2283_v20, %v2285_v3  ;;  %v538_v17 = vadd.f32 %v5226_v21, %v516_v63  ;;  %v539_v5 = vadd.f32 %v5226_v21, %v517_v34  ;;  %v552_v15 = vmax.f32 %v536_v11, 0.0 }
  0x4a   : > { %4399 = vmatpush3.bf16.msra.mxu1 %v5353_v26  ;;  %4514 = vmatprep.mubr.bf16.mxu0 %v2286_v29  ;;  %v553_v19 = vmax.f32 %v537_v12, 0.0  ;;  %v519_v24 = vmul.f32 %v4206_v38, %v5220_v18  ;;  %v540_v25 = vadd.f32 %v5226_v21, %v518_v39  ;;  %v5563_v20 = vsel %vm6387_vm8, %v580_v33, %v582_v13  ;;  %v4898_v39 = vld [vmem:[%s6380_s5 + $0x170] sm:$0xff]  }
  0x4b   : > { %4400 = vmatprep.subr.bf16.mxu1 %v4891_v6  ;;  %4386 = vmatprep.mubr.bf16.mxu1 %v5442_v31  ;;  %v554_v63 = vmax.f32 %v538_v17, 0.0  ;;  %v555_v8 = vmax.f32 %v539_v5, 0.0  ;;  %v665_v26 = vadd.s32 112, %v5193_v9  ;;  %603 = vst [vmem:[#allocation2 + $0x28] sm:$0xff] %v5563_v20  ;;  %v2287_v18 = vrot.slane %v5563_v20, 4 }
  0x4c   : > { %v563_v28 = vpack.c.bf16 %v553_v19, %v552_v15  ;;  %4535 = vmatpush3.bf16.msra.mxu0 %v4894_v37  ;;  %v541_v33 = vadd.f32 %v5226_v21, %v519_v24  ;;  %v556_v34 = vmax.f32 %v540_v25, 0.0  ;;  %v2500_v45 = vor.u32 %v5485_v51, %v5475_v48  ;;  %v4895_v21 = vld [vmem:[%s6380_s5 + $0x18] sm:$0xff]  }
  0x4d   : > { %v564_v38 = vpack.c.bf16 %v555_v8, %v554_v63  ;;  %4536 = vmatprep.subr.bf16.mxu0 %v4896_v14  ;;  %v769_v31 = vand.u32 15, %v665_v26  ;;  %v2502_v47 = vshrl.u32 %v5455_v40, 16  ;;  %v2288_v23 = vsel %vm6387_vm8, %v2285_v3, %v2287_v18  ;;  %v5623_v26 = vld [vmem:[%s6380_s5 + $0x180] sm:$0xff]  }
  0x4e   : > { %4401 = vmatpush3.bf16.msra.mxu1 %v4891_v6  ;;  %v584_v49 = vrot.slane %v563_v28, 4  ;;  %v557_v37 = vmax.f32 %v541_v33, 0.0  ;;  %v2505_v50 = vshll.u32 %v5455_v40, 16  ;;  %4515 = vmatmul.mubr.bf16.gmra.mrb[4].mxu0 %v2288_v23  ;;  %v2513_v48 = vrot.slane %v2511_v60, 4 }
  0x4f   : > { %4402 = vmatprep.subr.bf16.mxu1 %v4893_v27  ;;  %v586_v58 = vrot.slane %v564_v38, 4  ;;  %vm873_vm7 = vcmp.ge.s32.totalorder %v769_v31, 1  ;;  %v2504_v4 = vrot.slane %v2502_v47, 4  ;;  %v2516_v11 = vrot.slane %v2514_v61, 5  ;;  %v4897_v61 = vld [vmem:[%s6380_s5 + $0x20] sm:$0xff]  }
  0x50   : > { %v5587_v51 = vsel %vm6387_vm8, %v582_v13, %v584_v49  ;;  %4537 = vmatpush3.bf16.msra.mxu0 %v4896_v14  ;;  %v565_v3 = vpack.c.bf16 %v557_v37, %v556_v34  ;;  %vm946_vm9 = vmpackc.low %vm873_vm7, %vm873_vm7  ;;  %v2507_v6 = vrot.slane %v2505_v50, 5  ;;  %v4900_v13 = vld [vmem:[%s6380_s5 + $0x178] sm:$0xff]   ;;  %vm1060_vm10 = vcmp.ne.s16.totalorder %v5343_v22, 0 }
  0x51   : > { %4387 = vmatmul.mubr.bf16.gmra.mrb[4].mxu1 %v2286_v29  ;;  %604 = vst [vmem:[#allocation2 + $0x30] sm:$0xff] %v5587_v51  ;;  %v2289_v40 = vrot.slane %v5587_v51, 4  ;;  %v5594_v12 = vsel %vm6387_vm8, %v584_v49, %v586_v58  ;;  %v962_v60 = vsel %vm946_vm9, 65537, %v5048_v7  ;;  %4538 = vmatprep.subr.bf16.mxu0 %v4898_v39  ;;  %v5610_v15 = vor.u32 %v2516_v11, %v2513_v48  ;;  %v4899_v49 = vld [vmem:[%s6380_s5 + $0x28] sm:$0xff]  }
  0x52   : > { %4403 = vmatpush3.bf16.msra.mxu1 %v4893_v27  ;;  %605 = vst [vmem:[#allocation2 + $0x38] sm:$0xff] %v5594_v12  ;;  %v5603_v53 = vrot.slane %v5594_v12, 4  ;;  %4390 = vmatprep.mubr.bf16.mxu1 %v2288_v23  ;;  %v588_v29 = vrot.slane %v565_v3, 4  ;;  %v3923_v17 = vcombine.low %v962_v60, %v5270_v41  ;;  %v2508_v5 = vor.u32 %v2507_v6, %v2504_v4 }
  0x53   : > { %v2290_v14 = vsel %vm6387_vm8, %v2287_v18, %v2289_v40  ;;  %4404 = vmatprep.subr.bf16.mxu1 %v4895_v21  ;;  %v1069_v19 = vsel %vm1060_vm10, %v891_v57, 0  ;;  %v1301_v24 = vshrl.u32 %v5524_v43, 16  ;;  %v1304_v37 = vshll.u32 %v5524_v43, 16 }
  0x54   : > { %4518 = vmatprep.mubr.bf16.mxu0 %v2290_v14  ;;  %v2292_v25 = vsel %vm6387_vm8, %v2289_v40, %v5603_v53  ;;  %v5618_v27 = vsel %vm6387_vm8, %v586_v58, %v588_v29  ;;  %607 = vst [vmem:[#allocation2 + $0x48] sm:$0xf] %v588_v29  ;;  %v1052_v63 = vshrl.u32 %v3923_v17, 16  ;;  %v1055_v8 = vshll.u32 %v3923_v17, 16  ;;  %4539 = vmatpush3.bf16.msra.mxu0 %v4898_v39  ;;  %v4901_v40 = vld [vmem:[%s6380_s5 + $0x30] sm:$0xff]  }
  0x55   : > { %606 = vst [vmem:[#allocation2 + $0x40] sm:$0xff] %v5618_v27  ;;  %v2293_v18 = vrot.slane %v5618_v27, 4  ;;  %4540 = vmatprep.subr.bf16.mxu0 %v4900_v13  ;;  %v2509_v28 = vsel %vm988_vm12, %v2500_v45, %v2508_v5  ;;  %v5630_v33 = vsel %vm988_vm12, %v2508_v5, %v5610_v15  ;;  %v1293_v34 = vshrl.u32 %v1069_v19, 16 }
  0x56   : > { %4405 = vmatpush3.bf16.msra.mxu1 %v4895_v21  ;;  %v1054_v38 = vrot.slane %v1052_v63, 4  ;;  %v1057_v31 = vrot.slane %v1055_v8, 5  ;;  %v1296_v39 = vshll.u32 %v1069_v19, 16  ;;  %v1303_v47 = vrot.slane %v1301_v24, 3  ;;  %4519 = vmatmul.mubr.bf16.gmra.mrb[8].mxu0 %v2292_v25 }
  0x57   : > { %4406 = vmatprep.subr.bf16.mxu1 %v4897_v61  ;;  %v2294_v23 = vsel %vm6387_vm8, %v5603_v53, %v2293_v18  ;;  %v1295_v45 = vrot.slane %v1293_v34, 3  ;;  %v1312_v50 = vrot.slane %v1310_v55, 3  ;;  %v1315_v58 = vrot.slane %v1313_v0, 4 }
  0x58   : > { %4522 = vmatprep.mubr.bf16.mxu0 %v2294_v23  ;;  %v5640_v21 = vor.u32 %v1057_v31, %v1054_v38  ;;  %4541 = vmatpush3.bf16.msra.mxu0 %v4900_v13  ;;  %v1298_v57 = vrot.slane %v1296_v39, 4  ;;  %v658_v4 = vadd.s32 56, %v5193_v9  ;;  %v1306_v48 = vrot.slane %v1304_v37, 4 }
  0x59   : > { %4391 = vmatmul.mubr.bf16.gmra.mrb[8].mxu1 %v2290_v14  ;;  %4558 = vmatprep.subr.bf16.mxu0 %v5623_v26  ;;  %v660_v3 = vadd.s32 72, %v5193_v9  ;;  %v657_v43 = vadd.s32 48, %v5193_v9  ;;  %v659_v55 = vadd.s32 64, %v5193_v9  ;;  %v5650_v11 = vor.u32 %v1315_v58, %v1312_v50 }
  0x5a   : > { %4407 = vmatpush3.bf16.msra.mxu1 %v4897_v61  ;;  %vm6388_vm14 = vcmp.ne.s16.totalorder %v5640_v21, 0  ;;  %4394 = vmatprep.mubr.bf16.mxu1 %v2292_v25  ;;  %v1299_v6 = vor.u32 %v1298_v57, %v1295_v45  ;;  %v720_v36 = vand.u32 15, %v658_v4  ;;  %v1307_v60 = vor.u32 %v1306_v48, %v1303_v47  ;;  %v4903_v47 = vld [vmem:[%s6380_s5 + $0x38] sm:$0xff]   ;;  %v4905_v48 = vld [vmem:[%s6380_s5 + $0x80] sm:$0xff]  }
  0x5b   : > { %v1977_v0 = vld [vmem:[#allocation2 + $0x48] sm:$0xf]  ;;  %4408 = vmatprep.subr.bf16.mxu1 %v4899_v49  ;;  %v734_v13 = vand.u32 15, %v660_v3  ;;  %v713_v29 = vand.u32 15, %v657_v43  ;;  %v727_v17 = vand.u32 15, %v659_v55  ;;  %v662_v19 = vadd.s32 88, %v5193_v9 }
  0x5c   : > { %v5657_v61 = vsel %vm6388_vm14, %v1977_v0, 0  ;;  %v2295_v5 = vrot.slane %v1977_v0, 4  ;;  %v899_v14 = vld [vmem:[#allocation2 + $0x40] sm:$0xf]  ;;  %vm882_vm15 = vcmp.le.s32.totalorder %v720_v36, 14  ;;  %v1308_v63 = vsel %vm1291_vm11, %v1299_v6, %v1307_v60 }
  0x5d   : > { %v5662_v24 = vsel %vm6388_vm14, %v899_v14, 0  ;;  %v1136_v25 = vrot.slane %v899_v14, 4  ;;  %v5667_v8 = vsel %vm1291_vm11, %v1307_v60, %v5650_v11  ;;  %vm1565_vm1 = vmpackc.low %vm882_vm15, %vm882_vm15  ;;  %vm884_vm2 = vcmp.le.s32.totalorder %v734_v13, 14 }
  0x5e   : > { %v2296_v34 = vsel %vm6387_vm8, %v2293_v18, %v2295_v5  ;;  %4409 = vmatpush3.bf16.msra.mxu1 %v4899_v49  ;;  %v1581_v38 = vsel %vm1565_vm1, 65537, %v5048_v7  ;;  %vm5671_vm3 = vcmp.ge.s32.totalorder %v713_v29, 1  ;;  %vm1567_vm7 = vmpackc.low %vm884_vm2, %vm884_vm2  ;;  %vm5681_vm9 = vcmp.ge.s32.totalorder %v727_v17, 1 }
  0x5f   : > { %4523 = vmatmul.mubr.bf16.gmra.mrb[12].mxu0 %v2296_v34  ;;  %v1137_v39 = vsel %vm6387_vm8, %v5603_v53, %v1136_v25  ;;  %4410 = vmatprep.subr.bf16.mxu1 %v4901_v40  ;;  %v3959_v23 = vcombine.low %v5270_v41, %v1581_v38  ;;  %v748_v49 = vand.u32 15, %v662_v19  ;;  %v1583_v45 = vsel %vm1567_vm7, 65537, %v5048_v7  ;;  %vm938_vm15 = vmpackc.low %vm5671_vm3, %vm5671_vm3 }
  0x60   : > { %4542 = vmatprep.mubr.bf16.mxu0 %v2509_v28  ;;  %v5690_v53 = vadd.s32 104, %v5193_v9  ;;  %v5693_v37 = vadd.s32 80, %v5193_v9  ;;  %v5696_v50 = vadd.s32 96, %v5193_v9  ;;  %v3960_v28 = vcombine.low %v5270_v41, %v1583_v45  ;;  %vm940_vm1 = vmpackc.low %vm5681_vm9, %vm5681_vm9 }
  0x61   : > { %4395 = vmatmul.mubr.bf16.gmra.mrb[12].mxu1 %v1137_v39  ;;  %v1641_v57 = vshrl.u32 %v3959_v23, 16  ;;  %v1644_v58 = vshll.u32 %v3959_v23, 16  ;;  %v954_v4 = vsel %vm938_vm15, 65537, %v5048_v7  ;;  %v956_v43 = vsel %vm940_vm1, 65537, %v5048_v7 }
  0x62   : > { %4411 = vmatpush3.bf16.msra.mxu1 %v4901_v40  ;;  %4414 = vmatprep.mubr.bf16.mxu1 %v1308_v63  ;;  %v3919_v3 = vcombine.low %v954_v4, %v5270_v41  ;;  %vm886_vm2 = vcmp.le.s32.totalorder %v748_v49, 14  ;;  %v762_v55 = vand.u32 15, %v5690_v53  ;;  %v1650_v0 = vshrl.u32 %v3960_v28, 16  ;;  %v4904_v40 = vld [vmem:[%s6380_s5 + $0x188] sm:$0xff]  }
  0x63   : > { %4412 = vmatprep.subr.bf16.mxu1 %v4903_v47  ;;  %v1643_v6 = vrot.slane %v1641_v57, 3  ;;  %v1646_v36 = vrot.slane %v1644_v58, 4  ;;  %v1653_v60 = vshll.u32 %v3960_v28, 16  ;;  %vm1569_vm3 = vmpackc.low %vm886_vm2, %vm886_vm2  ;;  %v3920_v17 = vcombine.low %v956_v43, %v5270_v41  ;;  %v4907_v49 = vld [vmem:[%s6380_s5 + $0x88] sm:$0xff]  }
  0x64   : > { %v1016_v13 = vshrl.u32 %v3919_v3, 16  ;;  %v1019_v29 = vshll.u32 %v3919_v3, 16  ;;  %v1585_v5 = vsel %vm1569_vm3, 65537, %v5048_v7  ;;  %v1652_v19 = vrot.slane %v1650_v0, 3 }
  0x65   : > { %v1647_v14 = vor.u32 %v1646_v36, %v1643_v6  ;;  %v1655_v25 = vrot.slane %v1653_v60, 4  ;;  %v3961_v63 = vcombine.low %v5270_v41, %v1585_v5  ;;  %v1025_v31 = vshrl.u32 %v3920_v17, 16  ;;  %v4909_v36 = vld [vmem:[%s6380_s5 + $0x90] sm:$0xff]  }
  0x66   : > { %4413 = vmatpush3.bf16.msra.mxu1 %v4903_v47  ;;  %v1018_v34 = vrot.slane %v1016_v13, 4  ;;  %v1021_v38 = vrot.slane %v1019_v29, 5  ;;  %v1028_v39 = vshll.u32 %v3920_v17, 16  ;;  %vm888_vm1 = vcmp.le.s32.totalorder %v762_v55, 14 }
  0x67   : > { %4543 = vmatmul.mubr.bf16.vlgmr.msra.gmra.mrb[0].mxu0 %v5630_v33  ;;  %4430 = vmatprep.subr.bf16.mxu1 %v4905_v48  ;;  %v5718_v23 = vsel %vm1291_vm11, %v5446_v35, %v1647_v14  ;;  %v1656_v18 = vor.u32 %v1655_v25, %v1652_v19  ;;  %v1659_v45 = vshrl.u32 %v3961_v63, 16  ;;  %v1662_v47 = vshll.u32 %v3961_v63, 16  ;;  %vm1571_vm2 = vmpackc.low %vm888_vm1, %vm888_vm1 }
  0x68   : > { %4559 = vmatpush3.bf16.msra.mxu0 %v5623_v26  ;;  %vm6389_vm7 = vcmp.ne.s16.totalorder %v5718_v23, 0  ;;  %v1022_v57 = vor.u32 %v1021_v38, %v1018_v34  ;;  %v1027_v58 = vrot.slane %v1025_v31, 4  ;;  %v1030_v28 = vrot.slane %v1028_v39, 5  ;;  %v4906_v26 = vld [vmem:[%s6380_s5 + $0x190] sm:$0xff]  }
  0x69   : > { %4560 = vmatprep.subr.bf16.mxu0 %v4904_v40  ;;  %4415 = vmatmul.mubr.bf16.vlgmr.msra.gmra.mrb[0].mxu1 %v5667_v8  ;;  %v2470_v35 = vsel %vm6389_vm7, %v5535_v56, 0  ;;  %v5735_v33 = vsel %vm1291_vm11, %v1647_v14, %v1656_v18  ;;  %v1661_v4 = vrot.slane %v1659_v45, 3  ;;  %v1664_v3 = vrot.slane %v1662_v47, 4  ;;  %v4910_v45 = vld [vmem:[%s6380_s5 + $0x1a0] sm:$0xff]  }
  0x6a   : > { %4431 = vmatpush3.bf16.msra.mxu1 %v4905_v48  ;;  %v2520_v43 = vshrl.u32 %v2470_v35, 16  ;;  %v2523_v6 = vshll.u32 %v2470_v35, 16  ;;  %vm1689_vm9 = vcmp.ne.s16.totalorder %v5735_v33, 0  ;;  %v5743_v8 = vsel %vm988_vm12, %v5436_v30, %v1022_v57  ;;  %v4908_v48 = vld [vmem:[%s6380_s5 + $0x198] sm:$0xff]  }
  0x6b   : > { %v2471_v0 = vsel %vm1689_vm9, %v5563_v20, 0  ;;  %4432 = vmatprep.subr.bf16.mxu1 %v4907_v49  ;;  %vm1063_vm15 = vcmp.ne.s16.totalorder %v5743_v8, 0  ;;  %v5755_v60 = vor.u32 %v1030_v28, %v1027_v58  ;;  %v5757_v13 = vor.u32 %v1664_v3, %v1661_v4  ;;  %v4913_v4 = vld [vmem:[%s6380_s5 + $0xa0] sm:$0xff]  }
  0x6c   : > { %4561 = vmatpush3.bf16.msra.mxu0 %v4904_v40  ;;  %v2522_v30 = vrot.slane %v2520_v43, 4  ;;  %v2525_v29 = vrot.slane %v2523_v6, 5  ;;  %v2529_v17 = vshrl.u32 %v2471_v0, 16  ;;  %v2532_v5 = vshll.u32 %v2471_v0, 16 }
  0x6d   : > { %4562 = vmatprep.subr.bf16.mxu0 %v4906_v26  ;;  %v1072_v14 = vsel %vm1063_vm15, %v5424_v10, 0  ;;  %v5764_v19 = vsel %vm988_vm12, %v1022_v57, %v5755_v60  ;;  %v5768_v25 = vsel %vm1291_vm11, %v1656_v18, %v5757_v13  ;;  %v4911_v10 = vld [vmem:[%s6380_s5 + $0x98] sm:$0xff]   ;;  %v1587_v53 = vsel %vm1571_vm2, 65537, %v5048_v7 }
  0x6e   : > { %v2526_v40 = vor.u32 %v2525_v29, %v2522_v30  ;;  %v2531_v63 = vrot.slane %v2529_v17, 4  ;;  %v2534_v34 = vrot.slane %v2532_v5, 5  ;;  %4433 = vmatpush3.bf16.msra.mxu1 %v4907_v49  ;;  %v1319_v38 = vshrl.u32 %v1072_v14, 16  ;;  %v4212_v30 = vld [vmem:[%s443_s23] sm:$0xff]  }
  0x6f   : > { %v1322_v31 = vshll.u32 %v1072_v14, 16  ;;  %vm1064_vm3 = vcmp.ne.s16.totalorder %v5764_v19, 0  ;;  %4434 = vmatprep.subr.bf16.mxu1 %v4909_v36  ;;  %vm1690_vm6 = vcmp.ne.s16.totalorder %v5768_v25, 0  ;;  %v741_v0 = vand.u32 15, %v5693_v37 }
  0x70   : > { %v2527_v55 = vsel %vm988_vm12, %v5610_v15, %v2526_v40  ;;  %v2535_v39 = vor.u32 %v2534_v34, %v2531_v63  ;;  %4563 = vmatpush3.bf16.msra.mxu0 %v4906_v26  ;;  %v1321_v18 = vrot.slane %v1319_v38, 3  ;;  %v1073_v49 = vsel %vm1064_vm3, %v5535_v56, 0 }
  0x71   : > { %4546 = vmatprep.mubr.bf16.mxu0 %v2527_v55  ;;  %v1324_v47 = vrot.slane %v1322_v31, 4  ;;  %4564 = vmatprep.subr.bf16.mxu0 %v4908_v48  ;;  %v1328_v15 = vshrl.u32 %v1073_v49, 16  ;;  %v1331_v57 = vshll.u32 %v1073_v49, 16  ;;  %v2472_v58 = vsel %vm1690_vm6, %v5587_v51, 0 }
  0x72   : > { %v2536_v56 = vsel %vm988_vm12, %v2526_v40, %v2535_v39  ;;  %4435 = vmatpush3.bf16.msra.mxu1 %v4909_v36  ;;  %v2538_v28 = vshrl.u32 %v2472_v58, 16  ;;  %v2541_v35 = vshll.u32 %v2472_v58, 16  ;;  %v3962_v26 = vcombine.low %v5270_v41, %v1587_v53  ;;  %v4912_v36 = vld [vmem:[%s6380_s5 + $0x1a8] sm:$0xff]  }
  0x73   : > { %4547 = vmatmul.mubr.bf16.gmra.mrb[4].mxu0 %v2536_v56  ;;  %v1325_v3 = vor.u32 %v1324_v47, %v1321_v18  ;;  %v1330_v43 = vrot.slane %v1328_v15, 3  ;;  %v1333_v6 = vrot.slane %v1331_v57, 4  ;;  %4436 = vmatprep.subr.bf16.mxu1 %v4911_v10  ;;  %vm869_vm1 = vcmp.ge.s32.totalorder %v741_v0, 1  ;;  %v4943_v57 = vld [vmem:[%s6378_s3] ss:$0 sm:$0xff] }
  0x74   : > { %4565 = vmatpush3.bf16.msra.mxu0 %v4908_v48  ;;  %v2540_v29 = vrot.slane %v2538_v28, 4  ;;  %v2543_v17 = vrot.slane %v2541_v35, 5  ;;  %v1668_v5 = vshrl.u32 %v3962_v26, 16  ;;  %v1671_v14 = vshll.u32 %v3962_v26, 16  ;;  %vm942_vm2 = vmpackc.low %vm869_vm1, %vm869_vm1 }
  0x75   : > { %v1326_v40 = vsel %vm1291_vm11, %v5650_v11, %v1325_v3  ;;  %v5805_v63 = vor.u32 %v1333_v6, %v1330_v43  ;;  %4566 = vmatprep.subr.bf16.mxu0 %v4910_v45  ;;  %v755_v34 = vand.u32 15, %v5696_v50  ;;  %v666_v31 = vadd.s32 120, %v5193_v9  ;;  %v4915_v11 = vld [vmem:[%s6380_s5 + $0xa8] sm:$0xff]   ;;  %v4944_v6 = vld [vmem:[%s6379_s4] ss:$0 sm:$0xff] }
  0x76   : > { %4418 = vmatprep.mubr.bf16.mxu1 %v1326_v40  ;;  %v5812_v37 = vor.u32 %v2543_v17, %v2540_v29  ;;  %v1670_v48 = vrot.slane %v1668_v5, 3  ;;  %v1673_v38 = vrot.slane %v1671_v14, 4  ;;  %4437 = vmatpush3.bf16.msra.mxu1 %v4911_v10  ;;  %v958_v50 = vsel %vm942_vm2, 65537, %v5048_v7 }
  0x77   : > { %v1335_v53 = vsel %vm1291_vm11, %v1325_v3, %v5805_v63  ;;  %vm871_vm13 = vcmp.ge.s32.totalorder %v755_v34, 1  ;;  %4438 = vmatprep.subr.bf16.mxu1 %v4913_v4  ;;  %v4213_v55 = vunpack.c.l.bf16 %v4212_v30  ;;  %v3921_v9 = vcombine.low %v958_v50, %v5270_v41  ;;  %v4917_v3 = vld [vmem:[%s6380_s5 + $0xb0] sm:$0xff]   ;;  %v4916_v34 = vld [vmem:[%s6380_s5 + $0x1b8] sm:$0xff]  }
  0x78   : > { %4419 = vmatmul.mubr.bf16.gmra.mrb[4].mxu1 %v1335_v53  ;;  %v2545_v10 = vsel %vm988_vm12, %v2535_v39, %v5812_v37  ;;  %v5823_v18 = vor.u32 %v1673_v38, %v1670_v48  ;;  %4567 = vmatpush3.bf16.msra.mxu0 %v4910_v45  ;;  %vm944_vm1 = vmpackc.low %vm871_vm13, %vm871_vm13  ;;  %v776_v49 = vand.u32 15, %v666_v31  ;;  %v4214_v15 = vunpack.c.h.bf16 %v4212_v30  ;;  %v4914_v39 = vld [vmem:[%s6380_s5 + $0x1b0] sm:$0xff]  }
  0x79   : > { %4550 = vmatprep.mubr.bf16.mxu0 %v2545_v10  ;;  %4568 = vmatprep.subr.bf16.mxu0 %v4912_v36  ;;  %v960_v47 = vsel %vm944_vm1, 65537, %v5048_v7  ;;  %v633_v58 = vmul.f32 %v4943_v57, %v4213_v55  ;;  %v642_v56 = vstv %s5810_s9  ;;  %v1034_v28 = vshrl.u32 %v3921_v9, 16  ;;  %s3898_s9 = sshll.u32 %s400_s18, 1 }
  0x7a   : > { %v5837_v45 = vsel %vm1291_vm11, %v5757_v13, %v5823_v18  ;;  %v1037_v35 = vshll.u32 %v3921_v9, 16  ;;  %v3922_v26 = vcombine.low %v960_v47, %v5270_v41  ;;  %4439 = vmatpush3.bf16.msra.mxu1 %v4913_v4  ;;  %vm890_vm2 = vcmp.le.s32.totalorder %v776_v49, 14  ;;  %s402_s17 = scalar_lea.vmem [#allocation3], %s3898_s9 }
  0x7b   : > { %vm1691_vm13 = vcmp.ne.s16.totalorder %v5837_v45, 0  ;;  %v634_v43 = vmul.f32 %v4943_v57, %v4214_v15  ;;  %v635_v0 = vadd.f32 %v4944_v6, %v633_v58  ;;  %4440 = vmatprep.subr.bf16.mxu1 %v4915_v11  ;;  %v1036_v30 = vrot.slane %v1034_v28, 4  ;;  %vm1573_vm1 = vmpackc.low %vm890_vm2, %vm890_vm2  ;;  %v4939_v45 = vld [vmem:[%s6380_s5 + $0x220] sm:$0xff]   ;;  %s3736_s20 = sshll.u32 %s402_s17, 4  ;;  %s6324_s20 = int_to_ptr.vmem [resolvable:$true] %s3736_s20 }
  0x7c   : > { %v2473_v13 = vsel %vm1691_vm13, %v5594_v12, 0  ;;  %v1039_v4 = vrot.slane %v1037_v35, 5  ;;  %v1043_v29 = vshrl.u32 %v3922_v26, 16  ;;  %4569 = vmatpush3.bf16.msra.mxu0 %v4912_v36  ;;  %v1046_v14 = vshll.u32 %v3922_v26, 16  ;;  %s4952_s28 = scalar_lea.vmem %s6324_s20, 32 }
  0x7d   : > { %v2547_v17 = vshrl.u32 %v2473_v13, 16  ;;  %v2550_v5 = vshll.u32 %v2473_v13, 16  ;;  %v1589_v40 = vsel %vm1573_vm1, 65537, %v5048_v7  ;;  %4570 = vmatprep.subr.bf16.mxu0 %v4914_v39  ;;  %v636_v53 = vadd.f32 %v4944_v6, %v634_v43  ;;  %v4919_v7 = vld [vmem:[%s6380_s5 + $0xb8] sm:$0xff]   ;;  %p4953_p7 = scmp.ne.s32.totalorder %s6324_s20, %s4952_s28 }
  0x7e   : > { %v1040_v48 = vor.u32 %v1039_v4, %v1036_v30  ;;  %v1045_v38 = vrot.slane %v1043_v29, 4  ;;  %v3963_v31 = vcombine.low %v5270_v41, %v1589_v40  ;;  %4441 = vmatpush3.bf16.msra.mxu1 %v4915_v11  ;;  %v1048_v36 = vrot.slane %v1046_v14, 5 }
  0x7f   : > { %v2549_v50 = vrot.slane %v2547_v17, 4  ;;  %v2552_v55 = vrot.slane %v2550_v5, 5  ;;  %v637_v10 = vmax.f32 %v635_v0, 0.0  ;;  %4442 = vmatprep.subr.bf16.mxu1 %v4917_v3  ;;  %v638_v15 = vmax.f32 %v636_v53, 0.0  ;;  %p4954_p9 = pnand %p4953_p7, %p5142_p3 }
  0x80   : > { %v5860_v9 = vsel %vm988_vm12, %v5755_v60, %v1040_v48  ;;  %v1677_v49 = vshrl.u32 %v3963_v31, 16  ;;  %v1680_v47 = vshll.u32 %v3963_v31, 16  ;;  %4571 = vmatpush3.bf16.msra.mxu0 %v4914_v39  ;;  %v1049_v11 = vor.u32 %v1048_v36, %v1045_v38  ;;  %v5875_v39 = vld [vmem:[%s6380_s5 + $0x1c0] sm:$0xff]   ;;  %v2742_v31 = vld [vmem:[#allocation2 + $0x10] sm:$0xf8] }
  0x81   : > { %v5862_v41 = vor.u32 %v2552_v55, %v2549_v50  ;;  %vm1065_vm2 = vcmp.ne.s16.totalorder %v5860_v9, 0  ;;  %vm5865_vm1 = vcmp.eq.s32.totalorder %v642_v56, 1  ;;  %4572 = vmatprep.subr.bf16.mxu0 %v4916_v34  ;;  %v639_v35 = vpack.c.bf16 %v638_v15, %v637_v10  ;;  %v5919_v10 = vld [vmem:[#allocation2 + $0x18] sm:$0xff]  ;;  %v4934_v9 = vld [vmem:[%s6380_s5 + $0x200] sm:$0xff]   ;;  %p4955_p10 = pneg %p4954_p9 }
  0x82   : > { %v1074_v58 = vsel %vm1065_vm2, %v5563_v20, 0  ;;  %v1679_v60 = vrot.slane %v1677_v49, 3  ;;  %v1682_v28 = vrot.slane %v1680_v47, 4  ;;  %4443 = vmatpush3.bf16.msra.mxu1 %v4917_v3  ;;  %v5881_v6 = vsel %vm988_vm12, %v1040_v48, %v1049_v11  ;;  %v5886_v20 = vld [vmem:[%s6380_s5 + $0xc0] sm:$0xff]  }
  0x83   : > { %v2554_v56 = vsel %vm988_vm12, %v5812_v37, %v5862_v41  ;;  %v1337_v26 = vshrl.u32 %v1074_v58, 16  ;;  %v1340_v43 = vshll.u32 %v1074_v58, 16  ;;  %4444 = vmatprep.subr.bf16.mxu1 %v4919_v7  ;;  %vm1066_vm0 = vcmp.ne.s16.totalorder %v5881_v6, 0  ;;  %v5924_v58 = vld [vmem:[#allocation2 + $0x20] sm:$0xff] }
  0x84   : > { %4551 = vmatmul.mubr.bf16.gmra.mrb[8].mxu0 %v2554_v56  ;;  %v5889_v3 = vor.u32 %v1682_v28, %v1679_v60  ;;  %v644_v0 = vsel %vm5865_vm1, %v639_v35, 0  ;;  %v5895_v37 = vsel %vm988_vm12, %v1049_v11, %v5640_v21  ;;  %v1075_v4 = vsel %vm1066_vm0, %v5587_v51, 0 }
  0x85   : > { %v1339_v13 = vrot.slane %v1337_v26, 3  ;;  %v1342_v30 = vrot.slane %v1340_v43, 4  ;;  %v646_v29 = vrot.slane %v644_v0, 4  ;;  %4573 = vmatpush3.bf16.msra.mxu0 %v4916_v34  ;;  %v1346_v17 = vshrl.u32 %v1075_v4, 16 }
  0x86   : > { %v1349_v5 = vshll.u32 %v1075_v4, 16  ;;  %v5903_v14 = vsel %vm1291_vm11, %v5823_v18, %v5889_v3  ;;  %vm1693_vm1 = vcmp.ne.s16.totalorder %v5889_v3, 0  ;;  %4590 = vmatprep.subr.bf16.mxu0 %v5875_v39  ;;  %4445 = vmatpush3.bf16.msra.mxu1 %v4919_v7  ;;  %vm1067_vm14 = vcmp.ne.s16.totalorder %v5895_v37, 0  ;;  %v4936_v37 = vld [vmem:[%s6380_s5 + $0x208] sm:$0xff]  }
  0x87   : > { %v1343_v40 = vor.u32 %v1342_v30, %v1339_v13  ;;  %vm1692_vm8 = vcmp.ne.s16.totalorder %v5903_v14, 0  ;;  %648 = vst [vmem:[#allocation2 + $0x50] ss:$-4 sps:$4 sm:$0xff] %v646_v29   ;;  %v1364_v51 = vshrl.u32 %v5662_v24, 16  ;;  %4462 = vmatprep.subr.bf16.mxu1 %v5886_v20  ;;  %v1348_v34 = vrot.slane %v1346_v17, 3 }
  0x88   : > { %v1351_v48 = vrot.slane %v1349_v5, 4  ;;  %v2474_v18 = vsel %vm1692_vm8, %v5618_v27, 0  ;;  %v1076_v38 = vsel %vm1067_vm14, %v5594_v12, 0  ;;  %v1367_v15 = vshll.u32 %v5662_v24, 16 }
  0x89   : > { %v1344_v53 = vsel %vm1291_vm11, %v5805_v63, %v1343_v40  ;;  %v2556_v50 = vshrl.u32 %v2474_v18, 16  ;;  %v2559_v55 = vshll.u32 %v2474_v18, 16  ;;  %v1355_v36 = vshrl.u32 %v1076_v38, 16 }
  0x8a   : > { %4422 = vmatprep.mubr.bf16.mxu1 %v1344_v53  ;;  %v1352_v7 = vor.u32 %v1351_v48, %v1348_v34  ;;  %v1358_v49 = vshll.u32 %v1076_v38, 16  ;;  %v1366_v47 = vrot.slane %v1364_v51, 3  ;;  %v2751_v12 = vsel %vm1060_vm10, %v2742_v31, 0 }
  0x8b   : > { %v2558_v27 = vrot.slane %v2556_v50, 4  ;;  %v2561_v11 = vrot.slane %v2559_v55, 5  ;;  %v1357_v57 = vrot.slane %v1355_v36, 3  ;;  %v1369_v28 = vrot.slane %v1367_v15, 4  ;;  %v5941_v15 = vld [vmem:[#allocation2 + $0x28] sm:$0xff] }
  0x8c   : > { %v1353_v63 = vsel %vm1291_vm11, %v1343_v40, %v1352_v7  ;;  %v1360_v60 = vrot.slane %v1358_v49, 4  ;;  %v2752_v35 = vsel %vm1061_vm4, %v5919_v10, 0  ;;  %v2778_v26 = vshrl.u32 %v2751_v12, 16 }
  0x8d   : > { %4423 = vmatmul.mubr.bf16.gmra.mrb[8].mxu1 %v1353_v63  ;;  %v2562_v56 = vor.u32 %v2561_v11, %v2558_v27  ;;  %v2781_v24 = vshll.u32 %v2751_v12, 16  ;;  %v2786_v43 = vshrl.u32 %v2752_v35, 16  ;;  %v1370_v30 = vor.u32 %v1369_v28, %v1366_v47 }
  0x8e   : > { %v2466_v0 = vld [vmem:[#allocation2 + $0x48] sm:$0x1f]  ;;  %v1361_v13 = vor.u32 %v1360_v60, %v1357_v57  ;;  %v2789_v4 = vshll.u32 %v2752_v35, 16  ;;  %v2753_v29 = vsel %vm1062_vm5, %v5924_v58, 0  ;;  %v2780_v40 = vrot.slane %v2778_v26, 3  ;;  %v5949_v35 = vld [vmem:[#allocation2 + $0x30] sm:$0xff] }
  0x8f   : > { %v2563_v17 = vsel %vm988_vm12, %v5862_v41, %v2562_v56  ;;  %v2475_v5 = vsel %vm1693_vm1, %v2466_v0, 0  ;;  %v2783_v51 = vrot.slane %v2781_v24, 4  ;;  %v2788_v53 = vrot.slane %v2786_v43, 3 }
  0x90   : > { %4554 = vmatprep.mubr.bf16.mxu0 %v2563_v17  ;;  %v2565_v34 = vshrl.u32 %v2475_v5, 16  ;;  %v2568_v48 = vshll.u32 %v2475_v5, 16  ;;  %v1362_v18 = vsel %vm1291_vm11, %v1352_v7, %v1361_v13  ;;  %v1371_v38 = vsel %vm1291_vm11, %v1361_v13, %v1370_v30  ;;  %v5959_v30 = vld [vmem:[#allocation2 + $0x18] sm:$0xff] }
  0x91   : > { %4426 = vmatprep.mubr.bf16.mxu1 %v1362_v18  ;;  %v2784_v31 = vor.u32 %v2783_v51, %v2780_v40  ;;  %v2791_v50 = vrot.slane %v2789_v4, 4  ;;  %v2795_v55 = vshrl.u32 %v2753_v29, 16  ;;  %v2798_v41 = vshll.u32 %v2753_v29, 16  ;;  %v5967_v18 = vld [vmem:[#allocation2 + $0x38] sm:$0xff] }
  0x92   : > { %v2567_v36 = vrot.slane %v2565_v34, 4  ;;  %v2570_v49 = vrot.slane %v2568_v48, 5  ;;  %v1727_v47 = vor.u32 %v5547_v62, %v5545_v54  ;;  %v1729_v57 = vshrl.u32 %v5530_v16, 16 }
  0x93   : > { %v2792_v27 = vor.u32 %v2791_v50, %v2788_v53  ;;  %v2797_v11 = vrot.slane %v2795_v55, 3  ;;  %v1732_v7 = vshll.u32 %v5530_v16, 16  ;;  %v2800_v63 = vrot.slane %v2798_v41, 4  ;;  %v5971_v55 = vld [vmem:[#allocation2 + $0x20] sm:$0xff]  ;;  %v4923_v41 = vld [vmem:[%s6380_s5 + $0xc8] sm:$0xff]  }
  0x94   : > { %v2571_v12 = vor.u32 %v2570_v49, %v2567_v36  ;;  %v1740_v60 = vrot.slane %v1738_v1, 4  ;;  %v1743_v28 = vrot.slane %v1741_v2, 5  ;;  %v1731_v62 = vrot.slane %v1729_v57, 4 }
  0x95   : > { %4427 = vmatmul.mubr.bf16.gmra.mrb[12].mxu1 %v1371_v38  ;;  %v2793_v54 = vsel %vm1291_vm11, %v2784_v31, %v2792_v27  ;;  %v1734_v26 = vrot.slane %v1732_v7, 5  ;;  %v2754_v24 = vsel %vm1063_vm15, %v5941_v15, 0  ;;  %v2801_v43 = vor.u32 %v2800_v63, %v2797_v11  ;;  %v5969_v38 = vld [vmem:[#allocation2 + $0x40] sm:$0xff] }
  0x96   : > { %v2572_v16 = vsel %vm988_vm12, %v2562_v56, %v2571_v12  ;;  %v1744_v0 = vor.u32 %v1743_v28, %v1740_v60  ;;  %v2804_v13 = vshrl.u32 %v2754_v24, 16  ;;  %v2807_v59 = vshll.u32 %v2754_v24, 16  ;;  %v4920_v60 = vld [vmem:[%s6380_s5 + $0x1c8] sm:$0xff]  }
  0x97   : > { %4555 = vmatmul.mubr.bf16.gmra.mrb[12].mxu0 %v2572_v16  ;;  %v1735_v1 = vor.u32 %v1734_v26, %v1731_v62  ;;  %v2755_v2 = vsel %vm1064_vm3, %v5949_v35, 0  ;;  %v1697_v4 = vsel %vm6389_vm7, %v5959_v30, 0  ;;  %v2802_v29 = vsel %vm1291_vm11, %v2792_v27, %v2801_v43 }
  0x98   : > { %4574 = vmatprep.mubr.bf16.mxu0 %v2793_v54  ;;  %v2806_v56 = vrot.slane %v2804_v13, 3  ;;  %v2813_v17 = vshrl.u32 %v2755_v2, 16  ;;  %v2816_v5 = vshll.u32 %v2755_v2, 16  ;;  %v2809_v34 = vrot.slane %v2807_v59, 4 }
  0x99   : > { %v1736_v40 = vsel %vm988_vm12, %v1727_v47, %v1735_v1  ;;  %v1745_v51 = vsel %vm988_vm12, %v1735_v1, %v1744_v0  ;;  %v1747_v48 = vshrl.u32 %v1697_v4, 16  ;;  %v1750_v50 = vshll.u32 %v1697_v4, 16  ;;  %v4925_v1 = vld [vmem:[%s6380_s5 + $0xd0] sm:$0xff]   ;;  %v5993_v4 = vld [vmem:[#allocation2 + $0x28] sm:$0xff] }
  0x9a   : > { %4446 = vmatprep.mubr.bf16.mxu1 %v1736_v40  ;;  %v2815_v31 = vrot.slane %v2813_v17, 3  ;;  %v2818_v53 = vrot.slane %v2816_v5, 4  ;;  %v1698_v36 = vsel %vm1689_vm9, %v5971_v55, 0  ;;  %v2810_v49 = vor.u32 %v2809_v34, %v2806_v56  ;;  %v6000_v5 = vld [vmem:[#allocation2 + $0x48] sm:$0xff]  ;;  %v6002_v40 = vld [vmem:[#allocation2 + $0x50] sm:$0xf] }
  0x9b   : > { %v1749_v47 = vrot.slane %v1747_v48, 4  ;;  %v1756_v27 = vshrl.u32 %v1698_v36, 16  ;;  %v1759_v11 = vshll.u32 %v1698_v36, 16  ;;  %v1752_v7 = vrot.slane %v1750_v50, 5  ;;  %v4922_v34 = vld [vmem:[%s6380_s5 + $0x1d0] sm:$0xff]  }
  0x9c   : > { %v2819_v57 = vor.u32 %v2818_v53, %v2815_v31  ;;  %v2756_v12 = vsel %vm1065_vm2, %v5967_v18, 0  ;;  %v2757_v63 = vsel %vm1066_vm0, %v5969_v38, 0  ;;  %v2811_v28 = vsel %vm1291_vm11, %v2801_v43, %v2810_v49  ;;  %v6009_v31 = vld [vmem:[#allocation2 + $0x30] sm:$0xff] }
  0x9d   : > { %4447 = vmatmul.mubr.bf16.vlgmr.msra.gmra.mrb[0].mxu1 %v1745_v51  ;;  %v1758_v54 = vrot.slane %v1756_v27, 4  ;;  %v1761_v62 = vrot.slane %v1759_v11, 5  ;;  %v2822_v26 = vshrl.u32 %v2756_v12, 16  ;;  %v1753_v24 = vor.u32 %v1752_v7, %v1749_v47  ;;  %v4927_v27 = vld [vmem:[%s6380_s5 + $0xd8] sm:$0xff]  }
  0x9e   : > { %4463 = vmatpush3.bf16.msra.mxu1 %v5886_v20  ;;  %v2825_v16 = vshll.u32 %v2756_v12, 16  ;;  %v2831_v2 = vshrl.u32 %v2757_v63, 16  ;;  %v1699_v43 = vsel %vm1690_vm6, %v5993_v4, 0  ;;  %v2834_v56 = vshll.u32 %v2757_v63, 16 }
  0x9f   : > { %4575 = vmatmul.mubr.bf16.vlgmr.msra.gmra.mrb[0].mxu0 %v2802_v29  ;;  %4464 = vmatprep.subr.bf16.mxu1 %v4923_v41  ;;  %v1762_v13 = vor.u32 %v1761_v62, %v1758_v54  ;;  %v2824_v59 = vrot.slane %v2822_v26, 3  ;;  %v1754_v20 = vsel %vm988_vm12, %v1744_v0, %v1753_v24  ;;  %v1765_v17 = vshrl.u32 %v1699_v43, 16  ;;  %v4924_v62 = vld [vmem:[%s6380_s5 + $0x1d8] sm:$0xff]  }
  0xa0   : > { %4591 = vmatpush3.bf16.msra.mxu0 %v5875_v39  ;;  %4578 = vmatprep.mubr.bf16.mxu0 %v2811_v28  ;;  %v2827_v29 = vrot.slane %v2825_v16, 4  ;;  %v2820_v51 = vsel %vm1291_vm11, %v2810_v49, %v2819_v57  ;;  %v1768_v48 = vshll.u32 %v1699_v43, 16  ;;  %v1700_v0 = vsel %vm1691_vm13, %v6009_v31, 0  ;;  %v6030_v43 = vld [vmem:[#allocation2 + $0x38] sm:$0xff] }
  0xa1   : > { %4592 = vmatprep.subr.bf16.mxu0 %v4920_v60  ;;  %4450 = vmatprep.mubr.bf16.mxu1 %v1754_v20  ;;  %v1763_v39 = vsel %vm988_vm12, %v1753_v24, %v1762_v13  ;;  %v1767_v50 = vrot.slane %v1765_v17, 4  ;;  %v1774_v36 = vshrl.u32 %v1700_v0, 16  ;;  %v1777_v49 = vshll.u32 %v1700_v0, 16 }
  0xa2   : > { %4465 = vmatpush3.bf16.msra.mxu1 %v4923_v41  ;;  %v6014_v53 = vor.u32 %v2827_v29, %v2824_v59  ;;  %v2833_v47 = vrot.slane %v2831_v2, 3  ;;  %v1770_v11 = vrot.slane %v1768_v48, 5  ;;  %v2758_v7 = vsel %vm1067_vm14, %v6000_v5, 0  ;;  %v1525_v59 = vld [vmem:[#allocation2 + $0x40] sm:$0x1f] }
  0xa3   : > { %4466 = vmatprep.subr.bf16.mxu1 %v4925_v1  ;;  %vm6416_vm7 = vcmp.ne.s16.totalorder %v5640_v21, 0  ;;  %v2836_v12 = vrot.slane %v2834_v56, 4  ;;  %v1776_v63 = vrot.slane %v1774_v36, 4  ;;  %v1779_v28 = vrot.slane %v1777_v49, 5 }
  0xa4   : > { %v2759_v41 = vsel %vm6416_vm7, %v6002_v40, 0  ;;  %4593 = vmatpush3.bf16.msra.mxu0 %v4920_v60  ;;  %v2840_v54 = vshrl.u32 %v2758_v7, 16  ;;  %v2829_v26 = vsel %vm1291_vm11, %v2819_v57, %v6014_v53  ;;  %v1771_v24 = vor.u32 %v1770_v11, %v1767_v50  ;;  %v4929_v57 = vld [vmem:[%s6380_s5 + $0xe0] sm:$0xff]  }
  0xa5   : > { %4594 = vmatprep.subr.bf16.mxu0 %v4922_v34  ;;  %4451 = vmatmul.mubr.bf16.gmra.mrb[4].mxu1 %v1763_v39  ;;  %v2843_v16 = vshll.u32 %v2758_v7, 16  ;;  %v1780_v21 = vor.u32 %v1779_v28, %v1776_v63  ;;  %v2849_v60 = vshrl.u32 %v2759_v41, 16  ;;  %v1701_v20 = vsel %vm1692_vm8, %v6030_v43, 0  ;;  %v1969_v7 = vld [vmem:[#allocation2 + $0x8] sm:$0xf8] }
  0xa6   : > { %4467 = vmatpush3.bf16.msra.mxu1 %v4925_v1  ;;  %v2842_v2 = vrot.slane %v2840_v54, 3  ;;  %v1772_v29 = vsel %vm988_vm12, %v1762_v13, %v1771_v24  ;;  %v2852_v17 = vshll.u32 %v2759_v41, 16  ;;  %v1783_v1 = vshrl.u32 %v1701_v20, 16  ;;  %v4926_v13 = vld [vmem:[%s6380_s5 + $0x1e0] sm:$0xff]   ;;  %v4931_v63 = vld [vmem:[%s6380_s5 + $0xe8] sm:$0xff]  }
  0xa7   : > { %4579 = vmatmul.mubr.bf16.gmra.mrb[4].mxu0 %v2820_v51  ;;  %4468 = vmatprep.subr.bf16.mxu1 %v4927_v27  ;;  %v2845_v56 = vrot.slane %v2843_v16, 4  ;;  %v1980_v39 = vsel %vm1062_vm5, %v5959_v30, 0  ;;  %v2837_v48 = vor.u32 %v2836_v12, %v2833_v47  ;;  %v1786_v0 = vshll.u32 %v1701_v20, 16 }
  0xa8   : > { %4595 = vmatpush3.bf16.msra.mxu0 %v4922_v34  ;;  %4582 = vmatprep.mubr.bf16.mxu0 %v2829_v26  ;;  %v1702_v51 = vsel %vm1693_vm1, %v1525_v59, 0  ;;  %v1785_v36 = vrot.slane %v1783_v1, 4  ;;  %v1979_v30 = vsel %vm1061_vm4, %v4950_v42, 0  ;;  %v1781_v34 = vsel %vm988_vm12, %v1771_v24, %v1780_v21  ;;  %v4928_v24 = vld [vmem:[%s6380_s5 + $0x1e8] sm:$0xff]  }
  0xa9   : > { %4596 = vmatprep.subr.bf16.mxu0 %v4924_v62  ;;  %4454 = vmatprep.mubr.bf16.mxu1 %v1772_v29  ;;  %v6047_v50 = vor.u32 %v2845_v56, %v2842_v2  ;;  %v1792_v49 = vshrl.u32 %v1702_v51, 16  ;;  %v1795_v11 = vshll.u32 %v1702_v51, 16  ;;  %v1788_v47 = vrot.slane %v1786_v0, 5  ;;  %v6062_v2 = vld [vmem:[#allocation2 + $0x10] sm:$0xf0] }
  0xaa   : > { %4469 = vmatpush3.bf16.msra.mxu1 %v4927_v27  ;;  %v2851_v41 = vrot.slane %v2849_v60, 3  ;;  %v2854_v12 = vrot.slane %v2852_v17, 4  ;;  %v2022_v26 = vshrl.u32 %v1980_v39, 16  ;;  %v2025_v16 = vshll.u32 %v1980_v39, 16  ;;  %v4933_v39 = vld [vmem:[%s6380_s5 + $0xf0] sm:$0xff]  }
  0xab   : > { %4470 = vmatprep.subr.bf16.mxu1 %v4929_v57  ;;  %v1794_v28 = vrot.slane %v1792_v49, 4  ;;  %v1797_v54 = vrot.slane %v1795_v11, 5  ;;  %v2838_v52 = vsel %vm1291_vm11, %v6014_v53, %v2837_v48  ;;  %v1789_v27 = vor.u32 %v1788_v47, %v1785_v36  ;;  %v4930_v36 = vld [vmem:[%s6380_s5 + $0x1f0] sm:$0xff]  }
  0xac   : > { %4597 = vmatpush3.bf16.msra.mxu0 %v4924_v62  ;;  %v2847_v59 = vsel %vm1291_vm11, %v2837_v48, %v6047_v50  ;;  %v1978_v60 = vsel %vm1060_vm10, %v1969_v7, 0  ;;  %v2013_v20 = vshrl.u32 %v1979_v30, 16  ;;  %v2016_v62 = vshll.u32 %v1979_v30, 16 }
  0xad   : > { %4598 = vmatprep.subr.bf16.mxu0 %v4926_v13  ;;  %4455 = vmatmul.mubr.bf16.gmra.mrb[8].mxu1 %v1781_v34  ;;  %v1790_v53 = vsel %vm988_vm12, %v1780_v21, %v1789_v27  ;;  %v1798_v29 = vor.u32 %v1797_v54, %v1794_v28  ;;  %v2005_v56 = vshrl.u32 %v1978_v60, 16  ;;  %v2008_v17 = vshll.u32 %v1978_v60, 16  ;;  %v4932_v28 = vld [vmem:[%s6380_s5 + $0x1f8] sm:$0xff]  }
  0xae   : > { %4471 = vmatpush3.bf16.msra.mxu1 %v4929_v57  ;;  %v2855_v1 = vor.u32 %v2854_v12, %v2851_v41  ;;  %v2015_v48 = vrot.slane %v2013_v20, 3  ;;  %v2018_v0 = vrot.slane %v2016_v62, 4  ;;  %v3053_v22 = vrot.slane %v6062_v2, 4  ;;  %4458 = vmatprep.mubr.bf16.mxu1 %v1790_v53  ;;  %v4935_v41 = vld [vmem:[%s6380_s5 + $0xf8] sm:$0xff]  }
  0xaf   : > { %4583 = vmatmul.mubr.bf16.gmra.mrb[8].mxu0 %v2838_v52  ;;  %4472 = vmatprep.subr.bf16.mxu1 %v4931_v63  ;;  %v3054_v57 = vrot.slane %v5919_v10, 4  ;;  %v2007_v51 = vrot.slane %v2005_v56, 3  ;;  %v2010_v21 = vrot.slane %v2008_v17, 4  ;;  %v2024_v11 = vrot.slane %v2022_v26, 3 }
  0xb0   : > { %4599 = vmatpush3.bf16.msra.mxu0 %v4926_v13  ;;  %4586 = vmatprep.mubr.bf16.mxu0 %v2847_v59  ;;  %v2019_v49 = vor.u32 %v2018_v0, %v2015_v48  ;;  %v2027_v42 = vrot.slane %v2025_v16, 4  ;;  %v1981_v13 = vsel %vm1063_vm15, %v5971_v55, 0  ;;  %v1799_v30 = vsel %vm988_vm12, %v1789_v27, %v1798_v29 }
  0xb1   : > { %4600 = vmatprep.subr.bf16.mxu0 %v4928_v24  ;;  %v2011_v34 = vor.u32 %v2010_v21, %v2007_v51  ;;  %v2031_v47 = vshrl.u32 %v1981_v13, 16  ;;  %v1982_v7 = vsel %vm1064_vm3, %v5993_v4, 0  ;;  %v2034_v12 = vshll.u32 %v1981_v13, 16 }
  0xb2   : > { %4473 = vmatpush3.bf16.msra.mxu1 %v4931_v63  ;;  %v2856_v8 = vsel %vm1291_vm11, %v6047_v50, %v2855_v1  ;;  %vm6417_vm4 = vcmask 1043456   ;;  %v2028_v4 = vor.u32 %v2027_v42, %v2024_v11  ;;  %v2040_v26 = vshrl.u32 %v1982_v7, 16  ;;  %v4951_v1 = vld [vmem:[#allocation2 + $0x40] sm:$0xff] }
  0xb3   : > { %4474 = vmatprep.subr.bf16.mxu1 %v4933_v39  ;;  %v2020_v55 = vsel %vm1291_vm11, %v2011_v34, %v2019_v49  ;;  %v2033_v63 = vrot.slane %v2031_v47, 3  ;;  %v3055_v19 = vsel %vm6417_vm4, %v3053_v22, %v3054_v57  ;;  %v2036_v54 = vrot.slane %v2034_v12, 4 }
  0xb4   : > { %4601 = vmatpush3.bf16.msra.mxu0 %v4928_v24  ;;  %v2043_v16 = vshll.u32 %v1982_v7, 16  ;;  %v1983_v50 = vsel %vm1065_vm2, %v6009_v31, 0  ;;  %v1984_v52 = vsel %vm1066_vm0, %v6030_v43, 0  ;;  %v3056_v59 = vrot.slane %v5924_v58, 4  ;;  %vm6418_vm0 = vmmov %vm6417_vm4 }
  0xb5   : > { %4602 = vmatprep.subr.bf16.mxu0 %v4930_v36  ;;  %4459 = vmatmul.mubr.bf16.gmra.mrb[12].mxu1 %v1799_v30  ;;  %v2037_v27 = vor.u32 %v2036_v54, %v2033_v63  ;;  %v2049_v24 = vshrl.u32 %v1983_v50, 16  ;;  %v2052_v60 = vshll.u32 %v1983_v50, 16  ;;  %v2058_v20 = vshrl.u32 %v1984_v52, 16  ;;  %vm6422_vm7 = vmmov %vm6418_vm0 }
  0xb6   : > { %4475 = vmatpush3.bf16.msra.mxu1 %v4933_v39  ;;  %4478 = vmatprep.mubr.bf16.mxu1 %v2020_v55  ;;  %v2061_v62 = vshll.u32 %v1984_v52, 16  ;;  %v2029_v31 = vsel %vm1291_vm11, %v2019_v49, %v2028_v4  ;;  %v3058_v6 = vrot.slane %v5941_v15, 4  ;;  %v3060_v43 = vrot.slane %v5949_v35, 4  ;;  %v4937_v55 = vld [vmem:[%s6380_s5 + $0x210] sm:$0xff]   ;;  %vm6424_vm3 = vmmov %vm6418_vm0 }
  0xb7   : > { %4587 = vmatmul.mubr.bf16.gmra.mrb[12].mxu0 %v2856_v8  ;;  %4476 = vmatprep.subr.bf16.mxu1 %v4935_v41  ;;  %v2042_v53 = vrot.slane %v2040_v26, 3  ;;  %v2045_v29 = vrot.slane %v2043_v16, 4  ;;  %v2051_v56 = vrot.slane %v2049_v24, 3  ;;  %v2054_v17 = vrot.slane %v2052_v60, 4 }
  0xb8   : > { %4603 = vmatpush3.bf16.msra.mxu0 %v4930_v36  ;;  %4606 = vmatprep.mubr.bf16.mxu0 %v3055_v19  ;;  %v1985_v39 = vsel %vm1067_vm14, %v4951_v1, 0  ;;  %v2038_v48 = vsel %vm1291_vm11, %v2028_v4, %v2037_v27  ;;  %v3057_v51 = vsel %vm6418_vm0, %v3054_v57, %v3056_v59  ;;  %v2060_v21 = vrot.slane %v2058_v20, 3  ;;  %vm6421_vm14 = vmmov %vm6418_vm0 }
  0xb9   : > { %4604 = vmatprep.subr.bf16.mxu0 %v4932_v28  ;;  %v2067_v0 = vshrl.u32 %v1985_v39, 16  ;;  %v2070_v22 = vshll.u32 %v1985_v39, 16  ;;  %v2063_v36 = vrot.slane %v2061_v62, 4  ;;  %vm6419_vm5 = vcmp.ne.s16.totalorder %v5384_v44, 0 }
  0xba   : > { %4477 = vmatpush3.bf16.msra.mxu1 %v4935_v41  ;;  %v3241_v49 = vsel %vm6419_vm5, %v5919_v10, 0  ;;  %vm6420_vm10 = vcmp.ne.s16.totalorder %v5359_v32, 0  ;;  %v3059_v42 = vsel %vm6421_vm14, %v3056_v59, %v3058_v6  ;;  %v3061_v57 = vsel %vm6422_vm7, %v3058_v6, %v3060_v43  ;;  %v4938_v59 = vld [vmem:[%s6380_s5 + $0x218] sm:$0xff]  }
  0xbb   : > { %4654 = vmatprep.subr.bf16.mxu1 %v4934_v9  ;;  %v6115_v11 = vsel %vm6420_vm10, %v6062_v2, 0  ;;  %v2046_v13 = vor.u32 %v2045_v29, %v2042_v53  ;;  %v3062_v44 = vrot.slane %v5967_v18, 4  ;;  %v3064_v10 = vrot.slane %v5969_v38, 4  ;;  %v3239_v53 = vld [vmem:[#allocation2 + $0x50] sm:$0x1f] }
  0xbc   : > { %4605 = vmatpush3.bf16.msra.mxu0 %v4932_v28  ;;  %v2055_v32 = vor.u32 %v2054_v17, %v2051_v56  ;;  %v2069_v2 = vrot.slane %v2067_v0, 3  ;;  %v2072_v30 = vrot.slane %v2070_v22, 4  ;;  %v3275_v34 = vshrl.u32 %v3241_v49, 16 }
  0xbd   : > { %4622 = vmatprep.subr.bf16.mxu0 %v4934_v9  ;;  %4479 = vmatmul.mubr.bf16.vlgmr.msra.gmra.mrb[0].mxu1 %v2029_v31  ;;  %v3278_v47 = vshll.u32 %v3241_v49, 16  ;;  %v2064_v7 = vor.u32 %v2063_v36, %v2060_v21  ;;  %v2076_v41 = vshrl.u32 %v5657_v61, 16  ;;  %v2079_v12 = vshll.u32 %v5657_v61, 16 }
  0xbe   : > { %4662 = vmatpush3.bf16.msra.mxu1 %v4934_v9  ;;  %4482 = vmatprep.mubr.bf16.mxu1 %v2038_v48  ;;  %vm6423_vm15 = vcmp.ne.s16.totalorder %v5468_v46, 0  ;;  %v3277_v63 = vrot.slane %v3275_v34, 4  ;;  %v3244_v4 = vsel %vm1689_vm9, %v5949_v35, 0  ;;  %v2047_v54 = vsel %vm1291_vm11, %v2037_v27, %v2046_v13  ;;  %vm6427_vm9 = vmmov %vm6418_vm0 }
  0xbf   : > { %4607 = vmatmul.mubr.bf16.vlgmr.msra.gmra.mrb[0].mxu0 %v3057_v51  ;;  %4655 = vmatprep.subr.bf16.mxu1 %v4936_v37  ;;  %v3242_v8 = vsel %vm6423_vm15, %v5924_v58, 0  ;;  %v3280_v28 = vrot.slane %v3278_v47, 5  ;;  %v3063_v46 = vsel %vm6424_vm3, %v3060_v43, %v3062_v44  ;;  %v3066_v61 = vrot.slane %v6000_v5, 4 }
  0xc0   : > { %4623 = vmatpush3.bf16.msra.mxu0 %v4934_v9  ;;  %4610 = vmatprep.mubr.bf16.mxu0 %v3059_v42  ;;  %v3284_v19 = vshrl.u32 %v3242_v8, 16  ;;  %v3287_v58 = vshll.u32 %v3242_v8, 16  ;;  %v2056_v26 = vsel %vm1291_vm11, %v2046_v13, %v2055_v32  ;;  %v6141_v16 = vor.u32 %v2072_v30, %v2069_v2  ;;  %v4940_v30 = vld [vmem:[%s6380_s5 + $0x228] sm:$0xff]  }
  0xc1   : > { %4624 = vmatprep.subr.bf16.mxu0 %v4936_v37  ;;  %v3245_v33 = vsel %vm1690_vm6, %v5967_v18, 0  ;;  %v6146_v35 = vor.u32 %v3280_v28, %v3277_v63  ;;  %v3302_v27 = vshrl.u32 %v3244_v4, 16  ;;  %v3305_v24 = vshll.u32 %v3244_v4, 16 }
  0xc2   : > { %4663 = vmatpush3.bf16.msra.mxu1 %v4936_v37  ;;  %v3286_v50 = vrot.slane %v3284_v19, 4  ;;  %v3289_v52 = vrot.slane %v3287_v58, 5  ;;  %v2065_v60 = vsel %vm1291_vm11, %v2055_v32, %v2064_v7  ;;  %v6152_v20 = vrot.slane %v2076_v41, 3  ;;  %v4941_v19 = vld [vmem:[%s6380_s5 + $0x230] sm:$0xff]  }
  0xc3   : > { %4656 = vmatprep.subr.bf16.mxu1 %v4937_v55  ;;  %v6154_v62 = vrot.slane %v2079_v12, 4  ;;  %v3267_v25 = vshrl.u32 %v6115_v11, 16  ;;  %v3270_v9 = vshll.u32 %v6115_v11, 16  ;;  %v3311_v6 = vshrl.u32 %v3245_v33, 16 }
  0xc4   : > { %4625 = vmatpush3.bf16.msra.mxu0 %v4936_v37  ;;  %v3290_v31 = vor.u32 %v3289_v52, %v3286_v50  ;;  %v3314_v43 = vshll.u32 %v3245_v33, 16  ;;  %v2074_v29 = vsel %vm1291_vm11, %v2064_v7, %v6141_v16  ;;  %v3246_v56 = vsel %vm1691_vm13, %v5969_v38, 0  ;;  %vm6428_vm13 = vmmov %vm6418_vm0  ;;  %v4942_v33 = vld [vmem:[%s6380_s5 + $0x238] sm:$0xff]  }
  0xc5   : > { %4626 = vmatprep.subr.bf16.mxu0 %v4937_v55  ;;  %4483 = vmatmul.mubr.bf16.gmra.mrb[4].mxu1 %v2047_v54  ;;  %vm6425_vm6 = vcmp.ne.s16.totalorder %v5718_v23, 0  ;;  %v3247_v1 = vsel %vm1692_vm8, %v6000_v5, 0  ;;  %v3304_v48 = vrot.slane %v3302_v27, 4  ;;  %v3307_v0 = vrot.slane %v3305_v24, 5  ;;  %vm6426_vm8 = vmmov %vm6418_vm0 }
  0xc6   : > { %4664 = vmatpush3.bf16.msra.mxu1 %v4937_v55  ;;  %4486 = vmatprep.mubr.bf16.mxu1 %v2056_v26  ;;  %v3243_v17 = vsel %vm6425_vm6, %v5941_v15, 0  ;;  %v6171_v39 = vsel %vm988_vm12, %v6146_v35, %v3290_v31  ;;  %v3329_v15 = vshrl.u32 %v3247_v1, 16  ;;  %v3332_v51 = vshll.u32 %v3247_v1, 16 }
  0xc7   : > { %4611 = vmatmul.mubr.bf16.gmra.mrb[4].mxu0 %v3061_v57  ;;  %4657 = vmatprep.subr.bf16.mxu1 %v4938_v59  ;;  %v3293_v22 = vshrl.u32 %v3243_v17, 16  ;;  %v3296_v23 = vshll.u32 %v3243_v17, 16  ;;  %v3248_v14 = vsel %vm1693_vm1, %v3239_v53, 0  ;;  %v3313_v21 = vrot.slane %v3311_v6, 4 }
  0xc8   : > { %4627 = vmatpush3.bf16.msra.mxu0 %v4937_v55  ;;  %4614 = vmatprep.mubr.bf16.mxu0 %v3063_v46  ;;  %v3316_v36 = vrot.slane %v3314_v43, 5  ;;  %v3338_v11 = vshrl.u32 %v3248_v14, 16  ;;  %v3331_v42 = vrot.slane %v3329_v15, 4  ;;  %v3334_v57 = vrot.slane %v3332_v51, 5 }
  0xc9   : > { %4628 = vmatprep.subr.bf16.mxu0 %v4938_v59  ;;  %v3295_v49 = vrot.slane %v3293_v22, 4  ;;  %v3298_v37 = vrot.slane %v3296_v23, 5  ;;  %v3341_v13 = vshll.u32 %v3248_v14, 16  ;;  %v3065_v32 = vsel %vm6426_vm8, %v3062_v44, %v3064_v10 }
  0xca   : > { %4665 = vmatpush3.bf16.msra.mxu1 %v4938_v59  ;;  %v3067_v3 = vsel %vm6427_vm9, %v3064_v10, %v3066_v61  ;;  %v3340_v2 = vrot.slane %v3338_v11, 4  ;;  %v3269_v34 = vrot.slane %v3267_v25, 4  ;;  %v3272_v47 = vrot.slane %v3270_v9, 5 }
  0xcb   : > { %4658 = vmatprep.subr.bf16.mxu1 %v4939_v45  ;;  %v3299_v7 = vor.u32 %v3298_v37, %v3295_v49  ;;  %v3343_v41 = vrot.slane %v3341_v13, 5  ;;  %v2082_v18 = vor.u32 %v6154_v62, %v6152_v20  ;;  %v3320_v44 = vshrl.u32 %v3246_v56, 16 }
  0xcc   : > { %4629 = vmatpush3.bf16.msra.mxu0 %v4938_v59  ;;  %v3323_v38 = vshll.u32 %v3246_v56, 16  ;;  %v3335_v12 = vor.u32 %v3334_v57, %v3331_v42  ;;  %v3308_v10 = vor.u32 %v3307_v0, %v3304_v48  ;;  %v3317_v8 = vor.u32 %v3316_v36, %v3313_v21 }
  0xcd   : > { %4630 = vmatprep.subr.bf16.mxu0 %v4939_v45  ;;  %4487 = vmatmul.mubr.bf16.gmra.mrb[8].mxu1 %v2065_v60  ;;  %v3300_v55 = vsel %vm988_vm12, %v3290_v31, %v3299_v7  ;;  %v3068_v63 = vrot.slane %v6002_v40, 4  ;;  %v3344_v28 = vor.u32 %v3343_v41, %v3340_v2  ;;  %v3273_v4 = vor.u32 %v3272_v47, %v3269_v34 }
  0xce   : > { %4666 = vmatpush3.bf16.msra.mxu1 %v4939_v45  ;;  %4490 = vmatprep.mubr.bf16.mxu1 %v2074_v29  ;;  %v2083_v54 = vsel %vm1291_vm11, %v6141_v16, %v2082_v18  ;;  %v3322_v46 = vrot.slane %v3320_v44, 4  ;;  %v3325_v58 = vrot.slane %v3323_v38, 5  ;;  %v3318_v50 = vsel %vm988_vm12, %v3308_v10, %v3317_v8 }
  0xcf   : > { %4615 = vmatmul.mubr.bf16.gmra.mrb[8].mxu0 %v3065_v32  ;;  %4659 = vmatprep.subr.bf16.mxu1 %v4940_v30  ;;  %v3345_v26 = vsel %vm988_vm12, %v3335_v12, %v3344_v28  ;;  %v3069_v40 = vsel %vm6428_vm13, %v3066_v61, %v3068_v63  ;;  %v3282_v16 = vsel %vm988_vm12, %v3273_v4, %v6146_v35  ;;  %vm3579_vm11 = vcmask 27648  }
  0xd0   : > { %4631 = vmatpush3.bf16.msra.mxu0 %v4939_v45  ;;  %4618 = vmatprep.mubr.bf16.mxu0 %v3067_v3  ;;  %v3326_v52 = vor.u32 %v3325_v58, %v3322_v46  ;;  %v3309_v35 = vsel %vm988_vm12, %v3299_v7, %v3308_v10  ;;  %vm3703_vm2 = vcmask 1040384   ;;  %vm3705_vm1 = vcmask 25600  }
  0xd1   : > { %4632 = vmatprep.subr.bf16.mxu0 %v4940_v30 }
  0xd2   : > { %4667 = vmatpush3.bf16.msra.mxu1 %v4940_v30  ;;  %v3327_v5 = vsel %vm988_vm12, %v3317_v8, %v3326_v52  ;;  %v3336_v61 = vsel %vm988_vm12, %v3326_v52, %v3335_v12  ;;  %vm3612_vm12 = vcmask 31744  }
  0xd3   : > { %4660 = vmatprep.subr.bf16.mxu1 %v4941_v19 }
  0xd4   : > { %4633 = vmatpush3.bf16.msra.mxu0 %v4940_v30 }
  0xd5   : > { %4634 = vmatprep.subr.bf16.mxu0 %v4941_v19  ;;  %4491 = vmatmul.mubr.bf16.gmra.mrb[12].mxu1 %v2083_v54 }
  0xd6   : > { %4668 = vmatpush3.bf16.msra.mxu1 %v4941_v19  ;;  %4646 = vmatprep.mubr.bf16.mxu1 %v3318_v50 }
  0xd7   : > { %4619 = vmatmul.mubr.bf16.gmra.mrb[12].mxu0 %v3069_v40  ;;  %4661 = vmatprep.subr.bf16.mxu1 %v4942_v33 }
  0xd8   : > { %4635 = vmatpush3.bf16.msra.mxu0 %v4941_v19  ;;  %4638 = vmatprep.mubr.bf16.mxu0 %v3282_v16 }
  0xd9   : > { %4636 = vmatprep.subr.bf16.mxu0 %v4942_v33 }
  0xda   : > { %4669 = vmatpush3.bf16.msra.mxu1 %v4942_v33 }
  0xdc   : > { %4637 = vmatpush3.bf16.msra.mxu0 %v4942_v33 }
  0xdd   : > { %4647 = vmatmul.mubr.bf16.vlgmr.msra.gmra.mrb[16].mxu1 %v3327_v5 }
  0xde   : > { %4650 = vmatprep.mubr.bf16.mxu1 %v3336_v61 }
  0xdf   : > { %4639 = vmatmul.mubr.bf16.vlgmr.msra.gmra.mrb[0].mxu0 %v6171_v39 }
  0xe0   : > { %4642 = vmatprep.mubr.bf16.mxu0 %v3300_v55 }
  0xe5   : > { %4651 = vmatmul.mubr.bf16.gmra.mrb[20].mxu1 %v3345_v26 }
  0xe7   : > { %4643 = vmatmul.mubr.bf16.gmra.mrb[4].mxu0 %v3309_v35 }
 0x190   : > { %v4480_v27 = vpop.f32.mrb[0].mxu1 }
 0x191   : > { %v2174_v24 = vpop.f32.mrb[1].mxu1 }
 0x192   : > { %v4481_v59 = vpop.f32.mrb[2].mxu1 }
 0x193   : > { %v2177_v60 = vpop.f32.mrb[3].mxu1 }
 0x198   : > { %v6214_v20 = vpop.f32.mrb[4].mxu1 }
 0x199   : > { %v6216_v62 = vpop.f32.mrb[5].mxu1 }
 0x19a   : > { %v6218_v25 = vpop.f32.mrb[6].mxu1 }
 0x19b   : > { %v6220_v9 = vpop.f32.mrb[7].mxu1 }
 0x1a0   : > { %v4488_v31 = vpop.f32.mrb[8].mxu1 }
 0x1a1   : > { %v2206_v6 = vpop.f32.mrb[9].mxu1 }
 0x1a2   : > { %v4616_v43 = vpop.f32.mrb[8].mxu0  ;;  %v4489_v53 = vpop.f32.mrb[10].mxu1 }
 0x1a3   : > { %v3192_v29 = vpop.f32.mrb[9].mxu0  ;;  %v4678_v56 = vadd.f32 %v4616_v43, %v4488_v31  ;;  %v2209_v17 = vpop.f32.mrb[11].mxu1 }
 0x1a4   : > { %v4617_v1 = vpop.f32.mrb[10].mxu0  ;;  %v4680_v39 = vadd.f32 %v3192_v29, %v2206_v6 }
 0x1a5   : > { %v3195_v48 = vpop.f32.mrb[11].mxu0  ;;  %v4682_v0 = vadd.f32 %v4617_v1, %v4489_v53 }
 0x1a6   : > { %v4684_v22 = vadd.f32 %v3195_v48, %v2209_v17 }
 0x1a8   : > { %v4492_v45 = vpop.f32.mrb[12].mxu1 }
 0x1a9   : > { %v2222_v23 = vpop.f32.mrb[13].mxu1 }
 0x1aa   : > { %v4620_v15 = vpop.f32.mrb[12].mxu0  ;;  %v4493_v51 = vpop.f32.mrb[14].mxu1 }
 0x1ab   : > { %v3208_v14 = vpop.f32.mrb[13].mxu0  ;;  %v6222_v21 = vadd.f32 %v4620_v15, %v4492_v45  ;;  %v2225_v36 = vpop.f32.mrb[15].mxu1 }
 0x1ac   : > { %v4621_v49 = vpop.f32.mrb[14].mxu0  ;;  %v6224_v11 = vadd.f32 %v3208_v14, %v2222_v23 }
 0x1ad   : > { %v3211_v37 = vpop.f32.mrb[15].mxu0  ;;  %v6226_v42 = vadd.f32 %v4621_v49, %v4493_v51 }
 0x1ae   : > { %v6228_v57 = vadd.f32 %v3211_v37, %v2225_v36 }
 0x1b0   : > { %v4648_v13 = vpop.f32.mrb[16].mxu1 }
 0x1b1   : > { %v4679_v32 = vadd.f32 %v4678_v56, %v4648_v13  ;;  %v3468_v3 = vpop.f32.mrb[17].mxu1 }
 0x1b2   : > { %v4640_v2 = vpop.f32.mrb[0].mxu0  ;;  %v4681_v30 = vadd.f32 %v4680_v39, %v3468_v3  ;;  %v4649_v34 = vpop.f32.mrb[18].mxu1 }
 0x1b3   : > { %v4670_v47 = vadd.f32 %v4640_v2, %v4480_v27  ;;  %v3436_v7 = vpop.f32.mrb[1].mxu0  ;;  %v4169_v41 = vpack.c.bf16 %v4679_v32, %v4679_v32  ;;  %v4683_v18 = vadd.f32 %v4682_v0, %v4649_v34  ;;  %v3471_v44 = vpop.f32.mrb[19].mxu1 }
 0x1b4   : > { %v4671_v38 = vadd.f32 %v3436_v7, %v2174_v24  ;;  %v4641_v12 = vpop.f32.mrb[2].mxu0  ;;  %v4167_v10 = vpack.c.bf16 %v4681_v30, %v4681_v30  ;;  %v4685_v8 = vadd.f32 %v4684_v22, %v3471_v44 }
 0x1b5   : > { %v4161_v55 = vpack.c.bf16 %v4670_v47, %v4670_v47  ;;  %v4672_v63 = vadd.f32 %v4641_v12, %v4481_v59  ;;  %v3439_v28 = vpop.f32.mrb[3].mxu0  ;;  %3590 = vst.msk [vmem:[%s6234_s10 + $0x28] sm:$0xf] %vm3579_vm11, %v4169_v41  ;;  %v6238_v19 = vpack.c.bf16 %v4683_v18, %v4679_v32  ;;  %v4170_v4 = vpack.c.bf16 %v4683_v18, %v4683_v18 }
 0x1b6   : > { %v4159_v54 = vpack.c.bf16 %v4671_v38, %v4671_v38  ;;  %v4673_v46 = vadd.f32 %v3439_v28, %v2177_v60  ;;  %3588 = vst.msk [vmem:[%s6234_s10 + $0x20] sm:$0xf] %vm3579_vm11, %v4167_v10  ;;  %v6242_v58 = vpack.c.bf16 %v4685_v8, %v4681_v30  ;;  %v4168_v26 = vpack.c.bf16 %v4685_v8, %v4685_v8 }
 0x1b7   : > { %3582 = vst.msk [vmem:[%s6234_s10 + $0x8] sm:$0xf] %vm3579_vm11, %v4161_v55  ;;  %v3516_v50 = vpack.c.bf16 %v4672_v63, %v4670_v47  ;;  %v4162_v40 = vpack.c.bf16 %v4672_v63, %v4672_v63  ;;  %3591 = vst.msk [vmem:[%s6234_s10 + $0x2c] sm:$0xf] %vm3579_vm11, %v4170_v4 }
 0x1b8   : > { %3580 = vst.msk [vmem:[%s6234_s10] sm:$0xf] %vm3579_vm11, %v4159_v54  ;;  %v3515_v33 = vpack.c.bf16 %v4673_v46, %v4671_v38  ;;  %v4160_v16 = vpack.c.bf16 %v4673_v46, %v4673_v46  ;;  %3589 = vst.msk [vmem:[%s6234_s10 + $0x24] sm:$0xf] %vm3579_vm11, %v4168_v26  ;;  %v4652_v52 = vpop.f32.mrb[20].mxu1  ;;  %v3604_v46 = vunpack.c.l.bf16 %v6242_v58 }
 0x1b9   : > { %3583 = vst.msk [vmem:[%s6234_s10 + $0xc] sm:$0xf] %vm3579_vm11, %v4162_v40  ;;  %v3598_v5 = vunpack.c.l.bf16 %v3516_v50  ;;  %v3484_v61 = vpop.f32.mrb[21].mxu1  ;;  %v3599_v35 = vunpack.c.h.bf16 %v3516_v50  ;;  %v4687_v47 = vadd.f32 %v6222_v21, %v4652_v52 }
 0x1ba   : > { %3581 = vst.msk [vmem:[%s6234_s10 + $0x4] sm:$0xf] %vm3579_vm11, %v4160_v16  ;;  %v3596_v27 = vunpack.c.l.bf16 %v3515_v33  ;;  %v3597_v24 = vunpack.c.h.bf16 %v3515_v33  ;;  %v4644_v59 = vpop.f32.mrb[4].mxu0  ;;  %v4653_v60 = vpop.f32.mrb[22].mxu1 }
 0x1bb   : > { %v3652_v31 = vmul.f32 %v3598_v5, %v3598_v5  ;;  %v3452_v6 = vpop.f32.mrb[5].mxu0  ;;  %v3487_v43 = vpop.f32.mrb[23].mxu1  ;;  %v3616_v39 = vsel %vm3612_vm12, %v3598_v5, 0.0  ;;  %v3653_v22 = vmul.f32 %v3599_v35, %v3599_v35  ;;  %v4674_v15 = vadd.f32 %v4644_v59, %v6214_v20 }
 0x1bc   : > { %v3613_v53 = vsel %vm3612_vm12, %v3596_v27, 0.0  ;;  %v3614_v29 = vsel %vm3612_vm12, %v3597_v24, 0.0  ;;  %v3650_v56 = vmul.f32 %v3596_v27, %v3596_v27  ;;  %v3651_v17 = vmul.f32 %v3597_v24, %v3597_v24  ;;  %v4645_v1 = vpop.f32.mrb[6].mxu0 }
 0x1bd   : > { %v3615_v48 = vadd.f32 %v3614_v29, %v3613_v53  ;;  %v3455_v0 = vpop.f32.mrb[7].mxu0  ;;  %v3618_v36 = vsel %vm3612_vm12, %v3599_v35, 0.0  ;;  %v3669_v49 = vsel %vm3612_vm12, %v3652_v31, 0.0  ;;  %v4165_v37 = vpack.c.bf16 %v4674_v15, %v4674_v15 }
 0x1be   : > { %v3666_v45 = vsel %vm3612_vm12, %v3650_v56, 0.0  ;;  %v3667_v23 = vsel %vm3612_vm12, %v3651_v17, 0.0  ;;  %v4675_v13 = vadd.f32 %v3452_v6, %v6216_v62  ;;  %v4676_v3 = vadd.f32 %v4645_v1, %v6218_v25 }
 0x1bf   : > { %v3617_v51 = vadd.f32 %v3616_v39, %v3615_v48  ;;  %v3668_v14 = vadd.f32 %v3667_v23, %v3666_v45  ;;  %v4677_v2 = vadd.f32 %v3455_v0, %v6220_v9  ;;  %v3671_v20 = vsel %vm3612_vm12, %v3653_v22, 0.0  ;;  %3586 = vst.msk [vmem:[%s6234_s10 + $0x18] sm:$0xf] %vm3579_vm11, %v4165_v37 }
 0x1c0   : > { %v4163_v34 = vpack.c.bf16 %v4675_v13, %v4675_v13  ;;  %v3518_v7 = vpack.c.bf16 %v4676_v3, %v4674_v15  ;;  %v4166_v41 = vpack.c.bf16 %v4676_v3, %v4676_v3  ;;  %v4173_v44 = vpack.c.bf16 %v4687_v47, %v4687_v47 }
 0x1c1   : > { %v3670_v32 = vadd.f32 %v3669_v49, %v3668_v14  ;;  %v3619_v30 = vadd.f32 %v3618_v36, %v3617_v51  ;;  %v3517_v18 = vpack.c.bf16 %v4677_v2, %v4675_v13  ;;  %v4164_v62 = vpack.c.bf16 %v4677_v2, %v4677_v2 }
 0x1c2   : > { %3584 = vst.msk [vmem:[%s6234_s10 + $0x10] sm:$0xf] %vm3579_vm11, %v4163_v34  ;;  %v4689_v9 = vadd.f32 %v6224_v11, %v3484_v61  ;;  %v4691_v38 = vadd.f32 %v6226_v42, %v4653_v60  ;;  %3587 = vst.msk [vmem:[%s6234_s10 + $0x1c] sm:$0xf] %vm3579_vm11, %v4166_v41  ;;  %v3602_v12 = vunpack.c.l.bf16 %v3518_v7  ;;  %v4693_v28 = vadd.f32 %v6228_v57, %v3487_v43 }
 0x1c3   : > { %v3672_v25 = vadd.f32 %v3671_v20, %v3670_v32  ;;  %3585 = vst.msk [vmem:[%s6234_s10 + $0x14] sm:$0xf] %vm3579_vm11, %v4164_v62  ;;  %v3600_v21 = vunpack.c.l.bf16 %v3517_v18  ;;  %v3601_v10 = vunpack.c.h.bf16 %v3517_v18  ;;  %3594 = vst.msk [vmem:[%s6234_s10 + $0x38] sm:$0xf] %vm3579_vm11, %v4173_v44  ;;  %v3603_v4 = vunpack.c.h.bf16 %v3518_v7 }
 0x1c4   : > { %v4171_v8 = vpack.c.bf16 %v4689_v9, %v4689_v9  ;;  %v3522_v55 = vpack.c.bf16 %v4691_v38, %v4687_v47  ;;  %v4174_v63 = vpack.c.bf16 %v4691_v38, %v4691_v38  ;;  %v3656_v50 = vmul.f32 %v3602_v12, %v3602_v12 }
 0x1c5   : > { %v3620_v11 = vsel %vm3612_vm12, %v3600_v21, 0.0  ;;  %v3654_v54 = vmul.f32 %v3600_v21, %v3600_v21  ;;  %v3655_v42 = vmul.f32 %v3601_v10, %v3601_v10  ;;  %v3622_v40 = vsel %vm3612_vm12, %v3601_v10, 0.0 }
 0x1c6   : > { %3592 = vst.msk [vmem:[%s6234_s10 + $0x30] sm:$0xf] %vm3579_vm11, %v4171_v8  ;;  %3595 = vst.msk [vmem:[%s6234_s10 + $0x3c] sm:$0xf] %vm3579_vm11, %v4174_v63  ;;  %v3621_v26 = vadd.f32 %v3620_v11, %v3619_v30  ;;  %v3521_v16 = vpack.c.bf16 %v4693_v28, %v4689_v9  ;;  %v3605_v57 = vunpack.c.h.bf16 %v6242_v58  ;;  %v3624_v61 = vsel %vm3612_vm12, %v3602_v12, 0.0 }
 0x1c7   : > { %v3673_v33 = vsel %vm3612_vm12, %v3654_v54, 0.0  ;;  %v3657_v35 = vmul.f32 %v3603_v4, %v3603_v4  ;;  %v3675_v27 = vsel %vm3612_vm12, %v3655_v42, 0.0  ;;  %v4172_v24 = vpack.c.bf16 %v4693_v28, %v4693_v28 }
 0x1c8   : > { %v3623_v52 = vadd.f32 %v3622_v40, %v3621_v26  ;;  %v3674_v5 = vadd.f32 %v3673_v33, %v3672_v25  ;;  %v3606_v31 = vunpack.c.l.bf16 %v6238_v19  ;;  %v3658_v6 = vmul.f32 %v3604_v46, %v3604_v46 }
 0x1c9   : > { %v3626_v43 = vsel %vm3612_vm12, %v3603_v4, 0.0  ;;  %v3677_v53 = vsel %vm3612_vm12, %v3656_v50, 0.0  ;;  %3593 = vst.msk [vmem:[%s6234_s10 + $0x34] sm:$0xf] %vm3579_vm11, %v4172_v24  ;;  %v3607_v56 = vunpack.c.h.bf16 %v6238_v19  ;;  %v3628_v17 = vsel %vm3612_vm12, %v3604_v46, 0.0  ;;  %s4956_s10 = sshll.u32 %s5050_s13, 4  ;;  %s4957_s10 = int_to_ptr.vmem [resolvable:$false] %s4956_s10 }
 0x1ca   : > { %v3625_v59 = vadd.f32 %v3624_v61, %v3623_v52  ;;  %v3676_v60 = vadd.f32 %v3675_v27, %v3674_v5  ;;  %v3659_v1 = vmul.f32 %v3605_v57, %v3605_v57  ;;  %v3679_v39 = vsel %vm3612_vm12, %v3657_v35, 0.0  ;;  %s4958_s9 = scalar_lea.vmem %s4957_s10, 64  ;;  %p4959_p11 = scmp.lt.s32.totalorder %s6324_s20, %s4957_s10 }
 0x1cb   : > { %v3660_v22 = vmul.f32 %v3606_v31, %v3606_v31  ;;  %v3630_v45 = vsel %vm3612_vm12, %v3605_v57, 0.0  ;;  %v3681_v23 = vsel %vm3612_vm12, %v3658_v6, 0.0  ;;  %v3608_v15 = vunpack.c.l.bf16 %v3521_v16  ;;  %p4960_p12 = scmp.lt.s32.totalorder %s4958_s9, %s4952_s28 }
 0x1cc   : > { %v3627_v58 = vadd.f32 %v3626_v43, %v3625_v59  ;;  %v3678_v29 = vadd.f32 %v3677_v53, %v3676_v60  ;;  %v3632_v36 = vsel %vm3612_vm12, %v3606_v31, 0.0  ;;  %v3661_v49 = vmul.f32 %v3607_v56, %v3607_v56 }
 0x1cd   : > { %v3683_v19 = vsel %vm3612_vm12, %v3659_v1, 0.0  ;;  %v3609_v37 = vunpack.c.h.bf16 %v3521_v16  ;;  %v3634_v3 = vsel %vm3612_vm12, %v3607_v56, 0.0  ;;  %v3685_v2 = vsel %vm3612_vm12, %v3660_v22, 0.0  ;;  %p4961_p13 = por %p4960_p12, %p4959_p11 }
 0x1ce   : > { %v3629_v48 = vadd.f32 %v3628_v17, %v3627_v58  ;;  %v3680_v0 = vadd.f32 %v3679_v39, %v3678_v29  ;;  %v3610_v30 = vunpack.c.l.bf16 %v3522_v55  ;;  %v3662_v20 = vmul.f32 %v3608_v15, %v3608_v15 }
 0x1cf   : > { %v3687_v7 = vsel %vm3612_vm12, %v3661_v49, 0.0  ;;  %v3611_v41 = vunpack.c.h.bf16 %v3522_v55  ;;  %v3636_v18 = vsel %vm3612_vm12, %v3608_v15, 0.0  ;;  %v3663_v62 = vmul.f32 %v3609_v37, %v3609_v37  ;;  %p4962_p0 = pnand %p4961_p13, %p4955_p10 }
 0x1d0   : > { %v3682_v51 = vadd.f32 %v3681_v23, %v3680_v0  ;;  %v3631_v14 = vadd.f32 %v3630_v45, %v3629_v48  ;;  %v3664_v9 = vmul.f32 %v3610_v30, %v3610_v30  ;;  %v3638_v38 = vsel %vm3612_vm12, %v3609_v37, 0.0 }
 0x1d1   : > { %v3689_v12 = vsel %vm3612_vm12, %v3662_v20, 0.0  ;;  %v3640_v8 = vsel %vm3612_vm12, %v3610_v30, 0.0  ;;  %v3665_v63 = vmul.f32 %v3611_v41, %v3611_v41  ;;  %v3691_v28 = vsel %vm3612_vm12, %v3663_v62, 0.0 }
 0x1d2   : > { %v3633_v13 = vadd.f32 %v3632_v36, %v3631_v14  ;;  %v3684_v32 = vadd.f32 %v3683_v19, %v3682_v51  ;;  %v3642_v11 = vsel %vm3612_vm12, %v3611_v41, 0.0  ;;  %v3693_v54 = vsel %vm3612_vm12, %v3664_v9, 0.0 }
 0x1d3   : > { %v3695_v26 = vsel %vm3612_vm12, %v3665_v63, 0.0 }
 0x1d4   : > { %v3635_v34 = vadd.f32 %v3634_v3, %v3633_v13  ;;  %v3686_v47 = vadd.f32 %v3685_v2, %v3684_v32 }
 0x1d6   : > { %v3637_v25 = vadd.f32 %v3636_v18, %v3635_v34  ;;  %v3688_v44 = vadd.f32 %v3687_v7, %v3686_v47 }
 0x1d8   : > { %v3639_v21 = vadd.f32 %v3638_v38, %v3637_v25  ;;  %v3690_v10 = vadd.f32 %v3689_v12, %v3688_v44 }
 0x1da   : > { %v3641_v55 = vadd.f32 %v3640_v8, %v3639_v21  ;;  %v3692_v4 = vadd.f32 %v3691_v28, %v3690_v10 }
 0x1dc   : > { %v3643_v42 = vadd.f32 %v3642_v11, %v3641_v55  ;;  %v3694_v46 = vadd.f32 %v3693_v54, %v3692_v4 }
 0x1de   : > { %v3644_v50 = vrot.slane %v3643_v42, 4  ;;  %v3696_v40 = vadd.f32 %v3695_v26, %v3694_v46 }
 0x1e0   : > { %v3645_v33 = vadd.f32 %v3644_v50, %v3643_v42  ;;  %v3697_v16 = vrot.slane %v3696_v40, 4 }
 0x1e2   : > { %v3646_v57 = vrot.slane %v3645_v33, 2  ;;  %v3698_v52 = vadd.f32 %v3697_v16, %v3696_v40 }
 0x1e4   : > { %v3647_v5 = vadd.f32 %v3646_v57, %v3645_v33  ;;  %v3699_v61 = vrot.slane %v3698_v52, 2 }
 0x1e6   : > { %v3648_v35 = vrot.slane %v3647_v5, 1  ;;  %v3700_v27 = vadd.f32 %v3699_v61, %v3698_v52 }
 0x1e8   : > { %v3701_v24 = vrot.slane %v3700_v27, 1  ;;  %v3649_v59 = vadd.f32 %v3648_v35, %v3647_v5 }
 0x1ea   : > { %v3702_v60 = vadd.f32 %v3701_v24, %v3700_v27 }
 0x1ec   : > { %v3704_v31 = vsel %vm3703_vm2, %v3649_v59, %v3702_v60 }
 0x1ed   : > { %3706 = vst.msk [vmem:[%s402_s17] sm:$0x3] %vm3705_vm1, %v3704_v31 }
 0x1ee   : > { %4965 = shalt.err (!%p4962_p0)
}
 0x1ef   : > { %s4966_s18 = scalar_lea.hbm %s6322_s12, 32  ;;  %s4970_s0 = scalar_lea.hbm %s6382_s7, 128 }
 0x1f0   : > { %p4967_p1 = scmp.ne.s32.totalorder %s6322_s12, %s4966_s18  ;;  %p4971_p5 = scmp.lt.u32.totalorder %s6322_s12, %s6382_s7 }
 0x1f1   : > { %p4972_p6 = scmp.lt.u32.totalorder %s4970_s0, %s4966_s18  ;;  %p4974_p9 = scmp.lt.u32.totalorder %s4966_s18, %s6322_s12 }
 0x1f2   : > { %p4968_p2 = pnand %p4967_p1, %p5142_p3 }
 0x1f3   : > { %p4973_p7 = por %p4972_p6, %p4971_p5 }
 0x1f4   : > { %p4969_p4 = pneg %p4968_p2 }
 0x1f5   : > { %p4975_p10 = por %p4974_p9, %p4973_p7 }
 0x1f7   : > { %p4976_p11 = pnand %p4975_p10, %p4969_p4 }
 0x1f9   : > { %4979 = shalt.err (!%p4976_p11)
}
 0x1fa   : > { %4798 = dma.vmem_to_hbm [thread:$0]  (%p5142_p3), %s6324_s20, 32, %s6322_s12, %s3717_s27  }
 0x1fb PF: > { %p4804_p12 = scmp.ge.s32.totalorder %s5046_s8, 2  ;;  %s3760_s22 = sand.u32 1, %s5018_s24  }
 0x1fc   : > { %s3761_s28 = scalar_lea.sflag [#allocation4], %s3760_s22 }
 0x1fd   : > { %p4801_p13 = pnand %p4804_p12, %p5151_p8 }
 0x1ff   : > { %5013 = dma.done.wait (!%p4801_p13), %s3761_s28, 32  }
 0x200   : > { %5015 = vsyncadd (!%p4801_p13), %s3761_s28, 4294967264  ;;  %s21_s8 = sadd.s32 1, %s5046_s8   ;;  %s6429_s14 = sld [smem:[#allocation6_spill]] }
 0x201   : > { %p18_p0 = scmp.ge.s32.totalorder %s21_s8, 6   ;;  %s6430_s24 = smov %s5022_s25 }
 0x202   : > { %s6431_s25 = smov %s5026_s26  ;;  %s6432_s26 = smov %s5160_s19 }
 0x203   : > { %s6433_s27 = smov %s5038_s29  ;;  %s6434_s28 = smov %s5042_s30 }
 0x204   : > { %s6435_s29 = smov %s6438_s11  ;;  %20 = sbr.rel (!%p18_p0) target bundleno = 7 (0x7), region = 105 }
 0x206   : > { %s6436_s30 = smov %s6429_s14 }
 0x20b   :  { %3766 = vsyncpa [#allocation4], 1 }
 0x20c   :  { %3768 = vsyncpa [#allocation4 + $0x1], 1 }

</bundles_post_ra>
